<compile_context>
chip_gen: v7x
topology: tpu7x:2x2x1
jax: 0.10.0
libtpu: 0.0.40
codegen_flags: <defaults>
</compile_context>

<pallas_src>
import jax
import jax.numpy as jnp
from jax import lax
from jax.experimental import pallas as pl
from jax.experimental.pallas import tpu as pltpu

_MAX_BATCH_TILE = 128                  # per-grid-step batch rows (multiple of 8)
_VMEM_BUDGET = 40 * 1024 * 1024        # shrink batch tile if estimate exceeds this
_VMEM_LIMIT = 48 * 1024 * 1024         # explicit scoped-VMEM request (fits v7x)


def _round_up(x, m):
    return ((x + m - 1) // m) * m


# ----------------------------------------------------------------------------
# Fused forward kernel (built per static configuration)
# ----------------------------------------------------------------------------
def _make_autoencoder_kernel(num_layers, T, B, H, I):
    """B is the per-block (padded) batch size handled by one grid step."""
    unroll = True if T <= 16 else 8    # full unroll only for short sequences

    def kernel(x_ref, wih0_ref, wih_ref, whh_ref, b_ref, lin_w_ref, lin_b_ref,
               out_ref, seq_a, seq_b, pre_scr):
        # Lane mask selecting the g-gate lanes (tanh) inside the fused
        # [i | f | g | o] 4H axis.  Hoisted: reused by every recurrence step.
        lane = lax.broadcasted_iota(jnp.int32, (B, 4 * H), 1)
        g_mask = (lane >= 2 * H) & (lane < 3 * H)

        def recurrence(pre_fn, whh, out_seq_ref):
            """LSTM recurrence; h/c live as fori_loop carries (vregs).

            pre_fn(t) returns the (B, 4H) hoisted input pre-activation
            (x_t @ Wih + b); only h @ Whh + gate math is on the serial path.
            Returns the final hidden state.
            """
            def step(t, carry):
                h, c = carry
                z = pre_fn(t) + jnp.dot(h, whh,
                                        preferred_element_type=jnp.float32)
                # One EUP pass for all four gates:
                #   g lanes: tanh(z); i/f/o lanes: sigmoid(z) = 0.5*(1+tanh(z/2))
                zt = jnp.where(g_mask, z, 0.5 * z)
                th = jnp.tanh(zt)
                act = jnp.where(g_mask, th, 0.5 * (th + 1.0))
                i_g = act[:, 0 * H:1 * H]
                f_g = act[:, 1 * H:2 * H]
                g_g = act[:, 2 * H:3 * H]
                o_g = act[:, 3 * H:4 * H]
                c_new = f_g * c + i_g * g_g
                h_new = o_g * jnp.tanh(c_new)
                if out_seq_ref is not None:
                    out_seq_ref[t] = h_new
                return (h_new, c_new)

            zero = jnp.zeros((B, H), jnp.float32)
            h_fin, _ = lax.fori_loop(0, T, step, (zero, zero), unroll=unroll)
            return h_fin

        def input_proj(layer, in_ref):
            """Hoisted x_t @ Wih + b for all timesteps -> pre_scr.

            Computed per timestep so at most (B, 4H) lives in vregs at once
            (no (T*B, 4H) intermediate / reshape materialization)."""
            w = wih0_ref[...] if layer == 0 else wih_ref[layer - 1]
            b = jnp.broadcast_to(b_ref[layer], (B, 4 * H))   # hoisted broadcast

            def proj(t, carry):
                pre_scr[t] = jnp.dot(in_ref[t], w,
                                     preferred_element_type=jnp.float32) + b
                return carry

            lax.fori_loop(0, T, proj, 0, unroll=unroll)

        def run_seq_layer(layer, in_ref, out_seq_ref):
            input_proj(layer, in_ref)
            whh = whh_ref[layer]                              # (H, 4H), loaded once
            return recurrence(lambda t: pre_scr[t], whh, out_seq_ref)

        # ------------------------- encoder stack ---------------------------
        bufs = (seq_a, seq_b)
        cur = 0
        cur_in = x_ref
        h_fin = None
        for l in range(num_layers):
            last = l == num_layers - 1
            # Last encoder layer only needs its final hidden state: skip the
            # per-timestep sequence writes entirely.
            out_buf = None if last else bufs[cur]
            h_fin = run_seq_layer(l, cur_in, out_buf)
            if not last:
                cur_in = bufs[cur]
                cur = 1 - cur
        # relu(encoder_out)[:, -1] == relu(final hidden of top encoder layer)
        h_last = jax.nn.relu(h_fin)                           # (B, H)

        # ------------------------ decoder stack 1 --------------------------
        # Layer 0's input is the same (B, H) vector at every timestep, so its
        # entire input projection is loop-invariant: computed once.
        g0 = num_layers
        pre_const = (jnp.dot(h_last, wih_ref[g0 - 1],
                             preferred_element_type=jnp.float32) + b_ref[g0])
        recurrence(lambda t: pre_const, whh_ref[g0], bufs[cur])
        cur_in = bufs[cur]
        cur = 1 - cur
        for l in range(1, num_layers):
            run_seq_layer(num_layers + l, cur_in, bufs[cur])
            cur_in = bufs[cur]
            cur = 1 - cur

        # ------------------------ decoder stack 2 --------------------------
        for l in range(num_layers):
            run_seq_layer(2 * num_layers + l, cur_in, bufs[cur])
            cur_in = bufs[cur]
            cur = 1 - cur

        # ----------------- time-distributed Linear (epilogue) --------------
        lin_w = lin_w_ref[...]                                # (H, I)
        lin_b = jnp.broadcast_to(lin_b_ref[...], (B, I))      # hoisted broadcast

        def lin_step(t, carry):
            out_ref[t] = (jnp.dot(cur_in[t], lin_w,
                                  preferred_element_type=jnp.float32) + lin_b)
            return carry

        lax.fori_loop(0, T, lin_step, 0, unroll=unroll)

    return kernel


# ----------------------------------------------------------------------------
# Model: parameters (restructured once) + forward
# ----------------------------------------------------------------------------
class LSTMAutoencoderPallas:
    def __init__(self, input_dim, hidden_dim, seq_len, num_layers=2, key=None):
        self.input_dim = input_dim
        self.hidden_dim = hidden_dim
        self.seq_len = seq_len
        self.num_layers = num_layers
        if key is None:
            key = jax.random.PRNGKey(0)

        H = hidden_dim
        scale = 1.0 / float(H) ** 0.5

        def init_stack(key, d_in0):
            params = []
            for layer in range(num_layers):
                d_in = d_in0 if layer == 0 else H
                key, k1, k2, k3, k4 = jax.random.split(key, 5)
                w_ih = jax.random.uniform(k1, (4 * H, d_in), jnp.float32, -scale, scale)
                w_hh = jax.random.uniform(k2, (4 * H, H), jnp.float32, -scale, scale)
                b_ih = jax.random.uniform(k3, (4 * H,), jnp.float32, -scale, scale)
                b_hh = jax.random.uniform(k4, (4 * H,), jnp.float32, -scale, scale)
                params.append((w_ih, w_hh, b_ih, b_hh))
            return key, params

        key, enc = init_stack(key, input_dim)
        key, dec1 = init_stack(key, H)
        key, dec2 = init_stack(key, H)
        key, kw, kb = jax.random.split(key, 3)
        td_w = jax.random.uniform(kw, (input_dim, H), jnp.float32, -scale, scale)
        td_b = jax.random.uniform(kb, (input_dim,), jnp.float32, -scale, scale)

        # --- restructure ONCE into fused, stacked, lane-dense layouts -------
        # torch w_ih is (4H, D_in) with gate rows [i; f; g; o]; transposing
        # gives (D_in, 4H) with lanes ordered [i | f | g | o].
        all_layers = enc + dec1 + dec2                 # global layer order
        self._d_pad = _round_up(input_dim, 8)

        w_ih0_t = all_layers[0][0].T.astype(jnp.float32)          # (D_in, 4H)
        self._wih0 = (jnp.zeros((self._d_pad, 4 * H), jnp.float32)
                      .at[:input_dim].set(w_ih0_t))                # (D_pad, 4H)
        self._wih_stack = jnp.stack(
            [w[0].T.astype(jnp.float32) for w in all_layers[1:]])  # (n-1, H, 4H)
        self._whh_stack = jnp.stack(
            [w[1].T.astype(jnp.float32) for w in all_layers])      # (n,   H, 4H)
        self._b_stack = jnp.stack(
            [(w[2] + w[3]).reshape(1, 4 * H).astype(jnp.float32)
             for w in all_layers])                                 # (n, 1, 4H)
        self._lin_w = jnp.asarray(td_w.T, jnp.float32)             # (H, I)
        self._lin_b = td_b.reshape(1, input_dim).astype(jnp.float32)

    def _vmem_bytes(self, T, bt):
        H, I, L = self.hidden_dim, self.input_dim, self.num_layers
        D_pad, n, f = self._d_pad, 3 * L, 4
        scratch = (2 * T * bt * H + T * bt * 4 * H) * f
        io = 2 * (T * bt * D_pad + T * bt * I) * f                 # 2x: double buffer
        w = 2 * (D_pad * 4 * H + (n - 1) * H * 4 * H + n * H * 4 * H
                 + n * 4 * H + H * I + I) * f
        return scratch + io + w

    def __call__(self, x):
        # x: (B, T, input_dim), batch_first like the PyTorch module.
        B, T, D = x.shape
        assert T == self.seq_len and D == self.input_dim
        H, I, L = self.hidden_dim, self.input_dim, self.num_layers
        D_pad = self._d_pad

        # Adaptive batch tile: as large as possible (better MXU/VPU fill per
        # serial step, amortized per-grid-step overhead), capped so very large
        # batches still give grid >= 2 (both TCs on v7x), shrunk if the VMEM
        # estimate exceeds budget.
        bt = min(_MAX_BATCH_TILE, _round_up(B, 8))
        while bt > 8 and self._vmem_bytes(T, bt) > _VMEM_BUDGET:
            bt = max(8, (bt // 2 // 8) * 8)
        B_pad = _round_up(B, bt)

        x_tm = jnp.transpose(x.astype(jnp.float32), (1, 0, 2))     # (T, B, D)
        if B_pad != B or D_pad != D:
            x_tm = jnp.pad(x_tm, ((0, 0), (0, B_pad - B), (0, D_pad - D)))

        kernel = _make_autoencoder_kernel(L, T, bt, H, I)

        def full(arr):
            nd = arr.ndim
            return pl.BlockSpec(arr.shape, lambda b, _n=nd: (0,) * _n)

        in_specs = [
            pl.BlockSpec((T, bt, D_pad), lambda b: (0, b, 0)),
            full(self._wih0),
            full(self._wih_stack),
            full(self._whh_stack),
            full(self._b_stack),
            full(self._lin_w),
            full(self._lin_b),
        ]
        out_spec = pl.BlockSpec((T, bt, I), lambda b: (0, b, 0))

        out_tm = pl.pallas_call(
            kernel,
            out_shape=jax.ShapeDtypeStruct((T, B_pad, I), jnp.float32),
            grid=(B_pad // bt,),
            in_specs=in_specs,
            out_specs=out_spec,
            scratch_shapes=[
                pltpu.VMEM((T, bt, H), jnp.float32),        # layer-output ping
                pltpu.VMEM((T, bt, H), jnp.float32),        # layer-output pong
                pltpu.VMEM((T, bt, 4 * H), jnp.float32),    # hoisted x @ Wih + b
            ],
            compiler_params=pltpu.CompilerParams(
                dimension_semantics=("parallel",),          # batch tiles independent
                vmem_limit_bytes=_VMEM_LIMIT),
        )(x_tm, self._wih0, self._wih_stack, self._whh_stack,
          self._b_stack, self._lin_w, self._lin_b)

        return jnp.transpose(out_tm, (1, 0, 2))[:B]                 # (B, T, I)


# ----------------------------------------------------------------------------
if __name__ == "__main__":
    batch = 2
    input_dim = 8
    hidden_dim = 32
    seq_len = 8
    num_layers = 2

    key = jax.random.PRNGKey(0)
    key, xkey, pkey = jax.random.split(key, 3)
    x = jax.random.normal(xkey, (batch, seq_len, input_dim), dtype=jnp.float32)

    model = LSTMAutoencoderPallas(input_dim, hidden_dim, seq_len, num_layers, key=pkey)
    y = jax.block_until_ready(model(x))

    assert y.shape == (batch, seq_len, input_dim), y.shape
    assert bool(jnp.all(jnp.isfinite(y)))
    print("KERNEL_OK")
</pallas_src>

<mosaic_0001>
module attributes {stable_mosaic.version = 11 : i64} {
  func.func @kernel(%arg0: i32, %arg1: memref<8x8x8xf32, #tpu.memory_space<vmem>>, %arg2: memref<8x128xf32, #tpu.memory_space<vmem>>, %arg3: memref<5x32x128xf32, #tpu.memory_space<vmem>>, %arg4: memref<6x32x128xf32, #tpu.memory_space<vmem>>, %arg5: memref<6x1x128xf32, #tpu.memory_space<vmem>>, %arg6: memref<32x8xf32, #tpu.memory_space<vmem>>, %arg7: memref<1x8xf32, #tpu.memory_space<vmem>>, %arg8: memref<8x8x8xf32, #tpu.memory_space<vmem>>, %arg9: memref<8x8x32xf32, #tpu.memory_space<vmem>>, %arg10: memref<8x8x32xf32, #tpu.memory_space<vmem>>, %arg11: memref<8x8x128xf32, #tpu.memory_space<vmem>>) attributes {dimension_semantics = [#tpu.dimension_semantics<parallel>], iteration_bounds = array<i64: 1>, scalar_prefetch = 0 : i64, scratch_operands = 3 : i64, tpu.core_type = #tpu.core_type<tc>, window_params = [{transform_indices = @transform_0, window_bounds = array<i64: 8, 8, 8>}, {pipeline_mode = #tpu.pipeline_mode<synchronous>, transform_indices = @transform_1, window_bounds = array<i64: 8, 128>}, {pipeline_mode = #tpu.pipeline_mode<synchronous>, transform_indices = @transform_2, window_bounds = array<i64: 5, 32, 128>}, {pipeline_mode = #tpu.pipeline_mode<synchronous>, transform_indices = @transform_3, window_bounds = array<i64: 6, 32, 128>}, {pipeline_mode = #tpu.pipeline_mode<synchronous>, transform_indices = @transform_4, window_bounds = array<i64: 6, 1, 128>}, {pipeline_mode = #tpu.pipeline_mode<synchronous>, transform_indices = @transform_5, window_bounds = array<i64: 32, 8>}, {pipeline_mode = #tpu.pipeline_mode<synchronous>, transform_indices = @transform_6, window_bounds = array<i64: 1, 8>}, {transform_indices = @transform_7, window_bounds = array<i64: 8, 8, 8>}]} {
    %0 = tpu.iota {dimensions = array<i32: 1>} : vector<8x128xi32>
    %c64_i32 = arith.constant 64 : i32
    %1 = vector.broadcast %c64_i32 : i32 to vector<8x128xi32>
    %2 = arith.cmpi sge, %0, %1 : vector<8x128xi32>
    %c96_i32 = arith.constant 96 : i32
    %3 = vector.broadcast %c96_i32 : i32 to vector<8x128xi32>
    %4 = arith.cmpi slt, %0, %3 : vector<8x128xi32>
    %5 = arith.andi %2, %4 : vector<8x128xi1>
    %c0 = arith.constant 0 : index
    %c0_0 = arith.constant 0 : index
    %6 = vector.load %arg2[%c0, %c0_0] : memref<8x128xf32, #tpu.memory_space<vmem>>, vector<8x128xf32>
    %c0_1 = arith.constant 0 : index
    %c0_2 = arith.constant 0 : index
    %c0_3 = arith.constant 0 : index
    %7 = vector.load %arg5[%c0_1, %c0_2, %c0_3] : memref<6x1x128xf32, #tpu.memory_space<vmem>>, vector<1x1x128xf32>
    %8 = vector.shape_cast %7 : vector<1x1x128xf32> to vector<1x128xf32>
    %9 = vector.shape_cast %8 : vector<1x128xf32> to vector<1x128xf32>
    %10 = vector.broadcast %9 : vector<1x128xf32> to vector<8x128xf32>
    %c0_i32 = arith.constant 0 : i32
    %11 = arith.index_cast %c0_i32 : i32 to index
    %c0_4 = arith.constant 0 : index
    %c0_5 = arith.constant 0 : index
    %12 = vector.load %arg1[%11, %c0_4, %c0_5] : memref<8x8x8xf32, #tpu.memory_space<vmem>>, vector<1x8x8xf32>
    %13 = vector.shape_cast %12 : vector<1x8x8xf32> to vector<8x8xf32>
    %cst = arith.constant dense<0.000000e+00> : vector<8x128xf32>
    %14 = tpu.matmul %13, %6, %cst {dimension_numbers = #tpu.dot_dimension_numbers<[1], [0], [0], [1], [0, 0, 1, 1], [], []>} : vector<8x8xf32>, vector<8x128xf32>, vector<8x128xf32> -> vector<8x128xf32>
    %15 = arith.addf %14, %10 : vector<8x128xf32>
    %16 = arith.index_cast %c0_i32 : i32 to index
    %c0_6 = arith.constant 0 : index
    %c0_7 = arith.constant 0 : index
    %17 = vector.load %arg11[%16, %c0_6, %c0_7] : memref<8x8x128xf32, #tpu.memory_space<vmem>>, vector<1x8x128xf32>
    %18 = vector.shape_cast %17 : vector<1x8x128xf32> to vector<8x128xf32>
    %19 = vector.shape_cast %15 : vector<8x128xf32> to vector<1x8x128xf32>
    tpu.vector_store %arg11[%16, %c0_6, %c0_7], %19 {strides = array<i32>} : memref<8x8x128xf32, #tpu.memory_space<vmem>>, vector<1x8x128xf32>,
    %c1_i32 = arith.constant 1 : i32
    %20 = arith.index_cast %c1_i32 : i32 to index
    %c0_8 = arith.constant 0 : index
    %c0_9 = arith.constant 0 : index
    %21 = vector.load %arg1[%20, %c0_8, %c0_9] : memref<8x8x8xf32, #tpu.memory_space<vmem>>, vector<1x8x8xf32>
    %22 = vector.shape_cast %21 : vector<1x8x8xf32> to vector<8x8xf32>
    %cst_10 = arith.constant dense<0.000000e+00> : vector<8x128xf32>
    %23 = tpu.matmul %22, %6, %cst_10 {dimension_numbers = #tpu.dot_dimension_numbers<[1], [0], [0], [1], [0, 0, 1, 1], [], []>} : vector<8x8xf32>, vector<8x128xf32>, vector<8x128xf32> -> vector<8x128xf32>
    %24 = arith.addf %23, %10 : vector<8x128xf32>
    %25 = arith.index_cast %c1_i32 : i32 to index
    %c0_11 = arith.constant 0 : index
    %c0_12 = arith.constant 0 : index
    %26 = vector.load %arg11[%25, %c0_11, %c0_12] : memref<8x8x128xf32, #tpu.memory_space<vmem>>, vector<1x8x128xf32>
    %27 = vector.shape_cast %26 : vector<1x8x128xf32> to vector<8x128xf32>
    %28 = vector.shape_cast %24 : vector<8x128xf32> to vector<1x8x128xf32>
    tpu.vector_store %arg11[%25, %c0_11, %c0_12], %28 {strides = array<i32>} : memref<8x8x128xf32, #tpu.memory_space<vmem>>, vector<1x8x128xf32>,
    %c2_i32 = arith.constant 2 : i32
    %29 = arith.index_cast %c2_i32 : i32 to index
    %c0_13 = arith.constant 0 : index
    %c0_14 = arith.constant 0 : index
    %30 = vector.load %arg1[%29, %c0_13, %c0_14] : memref<8x8x8xf32, #tpu.memory_space<vmem>>, vector<1x8x8xf32>
    %31 = vector.shape_cast %30 : vector<1x8x8xf32> to vector<8x8xf32>
    %cst_15 = arith.constant dense<0.000000e+00> : vector<8x128xf32>
    %32 = tpu.matmul %31, %6, %cst_15 {dimension_numbers = #tpu.dot_dimension_numbers<[1], [0], [0], [1], [0, 0, 1, 1], [], []>} : vector<8x8xf32>, vector<8x128xf32>, vector<8x128xf32> -> vector<8x128xf32>
    %33 = arith.addf %32, %10 : vector<8x128xf32>
    %34 = arith.index_cast %c2_i32 : i32 to index
    %c0_16 = arith.constant 0 : index
    %c0_17 = arith.constant 0 : index
    %35 = vector.load %arg11[%34, %c0_16, %c0_17] : memref<8x8x128xf32, #tpu.memory_space<vmem>>, vector<1x8x128xf32>
    %36 = vector.shape_cast %35 : vector<1x8x128xf32> to vector<8x128xf32>
    %37 = vector.shape_cast %33 : vector<8x128xf32> to vector<1x8x128xf32>
    tpu.vector_store %arg11[%34, %c0_16, %c0_17], %37 {strides = array<i32>} : memref<8x8x128xf32, #tpu.memory_space<vmem>>, vector<1x8x128xf32>,
    %c3_i32 = arith.constant 3 : i32
    %38 = arith.index_cast %c3_i32 : i32 to index
    %c0_18 = arith.constant 0 : index
    %c0_19 = arith.constant 0 : index
    %39 = vector.load %arg1[%38, %c0_18, %c0_19] : memref<8x8x8xf32, #tpu.memory_space<vmem>>, vector<1x8x8xf32>
    %40 = vector.shape_cast %39 : vector<1x8x8xf32> to vector<8x8xf32>
    %cst_20 = arith.constant dense<0.000000e+00> : vector<8x128xf32>
    %41 = tpu.matmul %40, %6, %cst_20 {dimension_numbers = #tpu.dot_dimension_numbers<[1], [0], [0], [1], [0, 0, 1, 1], [], []>} : vector<8x8xf32>, vector<8x128xf32>, vector<8x128xf32> -> vector<8x128xf32>
    %42 = arith.addf %41, %10 : vector<8x128xf32>
    %43 = arith.index_cast %c3_i32 : i32 to index
    %c0_21 = arith.constant 0 : index
    %c0_22 = arith.constant 0 : index
    %44 = vector.load %arg11[%43, %c0_21, %c0_22] : memref<8x8x128xf32, #tpu.memory_space<vmem>>, vector<1x8x128xf32>
    %45 = vector.shape_cast %44 : vector<1x8x128xf32> to vector<8x128xf32>
    %46 = vector.shape_cast %42 : vector<8x128xf32> to vector<1x8x128xf32>
    tpu.vector_store %arg11[%43, %c0_21, %c0_22], %46 {strides = array<i32>} : memref<8x8x128xf32, #tpu.memory_space<vmem>>, vector<1x8x128xf32>,
    %c4_i32 = arith.constant 4 : i32
    %47 = arith.index_cast %c4_i32 : i32 to index
    %c0_23 = arith.constant 0 : index
    %c0_24 = arith.constant 0 : index
    %48 = vector.load %arg1[%47, %c0_23, %c0_24] : memref<8x8x8xf32, #tpu.memory_space<vmem>>, vector<1x8x8xf32>
    %49 = vector.shape_cast %48 : vector<1x8x8xf32> to vector<8x8xf32>
    %cst_25 = arith.constant dense<0.000000e+00> : vector<8x128xf32>
    %50 = tpu.matmul %49, %6, %cst_25 {dimension_numbers = #tpu.dot_dimension_numbers<[1], [0], [0], [1], [0, 0, 1, 1], [], []>} : vector<8x8xf32>, vector<8x128xf32>, vector<8x128xf32> -> vector<8x128xf32>
    %51 = arith.addf %50, %10 : vector<8x128xf32>
    %52 = arith.index_cast %c4_i32 : i32 to index
    %c0_26 = arith.constant 0 : index
    %c0_27 = arith.constant 0 : index
    %53 = vector.load %arg11[%52, %c0_26, %c0_27] : memref<8x8x128xf32, #tpu.memory_space<vmem>>, vector<1x8x128xf32>
    %54 = vector.shape_cast %53 : vector<1x8x128xf32> to vector<8x128xf32>
    %55 = vector.shape_cast %51 : vector<8x128xf32> to vector<1x8x128xf32>
    tpu.vector_store %arg11[%52, %c0_26, %c0_27], %55 {strides = array<i32>} : memref<8x8x128xf32, #tpu.memory_space<vmem>>, vector<1x8x128xf32>,
    %c5_i32 = arith.constant 5 : i32
    %56 = arith.index_cast %c5_i32 : i32 to index
    %c0_28 = arith.constant 0 : index
    %c0_29 = arith.constant 0 : index
    %57 = vector.load %arg1[%56, %c0_28, %c0_29] : memref<8x8x8xf32, #tpu.memory_space<vmem>>, vector<1x8x8xf32>
    %58 = vector.shape_cast %57 : vector<1x8x8xf32> to vector<8x8xf32>
    %cst_30 = arith.constant dense<0.000000e+00> : vector<8x128xf32>
    %59 = tpu.matmul %58, %6, %cst_30 {dimension_numbers = #tpu.dot_dimension_numbers<[1], [0], [0], [1], [0, 0, 1, 1], [], []>} : vector<8x8xf32>, vector<8x128xf32>, vector<8x128xf32> -> vector<8x128xf32>
    %60 = arith.addf %59, %10 : vector<8x128xf32>
    %61 = arith.index_cast %c5_i32 : i32 to index
    %c0_31 = arith.constant 0 : index
    %c0_32 = arith.constant 0 : index
    %62 = vector.load %arg11[%61, %c0_31, %c0_32] : memref<8x8x128xf32, #tpu.memory_space<vmem>>, vector<1x8x128xf32>
    %63 = vector.shape_cast %62 : vector<1x8x128xf32> to vector<8x128xf32>
    %64 = vector.shape_cast %60 : vector<8x128xf32> to vector<1x8x128xf32>
    tpu.vector_store %arg11[%61, %c0_31, %c0_32], %64 {strides = array<i32>} : memref<8x8x128xf32, #tpu.memory_space<vmem>>, vector<1x8x128xf32>,
    %c6_i32 = arith.constant 6 : i32
    %65 = arith.index_cast %c6_i32 : i32 to index
    %c0_33 = arith.constant 0 : index
    %c0_34 = arith.constant 0 : index
    %66 = vector.load %arg1[%65, %c0_33, %c0_34] : memref<8x8x8xf32, #tpu.memory_space<vmem>>, vector<1x8x8xf32>
    %67 = vector.shape_cast %66 : vector<1x8x8xf32> to vector<8x8xf32>
    %cst_35 = arith.constant dense<0.000000e+00> : vector<8x128xf32>
    %68 = tpu.matmul %67, %6, %cst_35 {dimension_numbers = #tpu.dot_dimension_numbers<[1], [0], [0], [1], [0, 0, 1, 1], [], []>} : vector<8x8xf32>, vector<8x128xf32>, vector<8x128xf32> -> vector<8x128xf32>
    %69 = arith.addf %68, %10 : vector<8x128xf32>
    %70 = arith.index_cast %c6_i32 : i32 to index
    %c0_36 = arith.constant 0 : index
    %c0_37 = arith.constant 0 : index
    %71 = vector.load %arg11[%70, %c0_36, %c0_37] : memref<8x8x128xf32, #tpu.memory_space<vmem>>, vector<1x8x128xf32>
    %72 = vector.shape_cast %71 : vector<1x8x128xf32> to vector<8x128xf32>
    %73 = vector.shape_cast %69 : vector<8x128xf32> to vector<1x8x128xf32>
    tpu.vector_store %arg11[%70, %c0_36, %c0_37], %73 {strides = array<i32>} : memref<8x8x128xf32, #tpu.memory_space<vmem>>, vector<1x8x128xf32>,
    %c7_i32 = arith.constant 7 : i32
    %74 = arith.index_cast %c7_i32 : i32 to index
    %c0_38 = arith.constant 0 : index
    %c0_39 = arith.constant 0 : index
    %75 = vector.load %arg1[%74, %c0_38, %c0_39] : memref<8x8x8xf32, #tpu.memory_space<vmem>>, vector<1x8x8xf32>
    %76 = vector.shape_cast %75 : vector<1x8x8xf32> to vector<8x8xf32>
    %cst_40 = arith.constant dense<0.000000e+00> : vector<8x128xf32>
    %77 = tpu.matmul %76, %6, %cst_40 {dimension_numbers = #tpu.dot_dimension_numbers<[1], [0], [0], [1], [0, 0, 1, 1], [], []>} : vector<8x8xf32>, vector<8x128xf32>, vector<8x128xf32> -> vector<8x128xf32>
    %78 = arith.addf %77, %10 : vector<8x128xf32>
    %79 = arith.index_cast %c7_i32 : i32 to index
    %c0_41 = arith.constant 0 : index
    %c0_42 = arith.constant 0 : index
    %80 = vector.load %arg11[%79, %c0_41, %c0_42] : memref<8x8x128xf32, #tpu.memory_space<vmem>>, vector<1x8x128xf32>
    %81 = vector.shape_cast %80 : vector<1x8x128xf32> to vector<8x128xf32>
    %82 = vector.shape_cast %78 : vector<8x128xf32> to vector<1x8x128xf32>
    tpu.vector_store %arg11[%79, %c0_41, %c0_42], %82 {strides = array<i32>} : memref<8x8x128xf32, #tpu.memory_space<vmem>>, vector<1x8x128xf32>,
    %c8_i32 = arith.constant 8 : i32
    %c0_43 = arith.constant 0 : index
    %c0_44 = arith.constant 0 : index
    %c0_45 = arith.constant 0 : index
    %83 = vector.load %arg4[%c0_43, %c0_44, %c0_45] : memref<6x32x128xf32, #tpu.memory_space<vmem>>, vector<1x32x128xf32>
    %84 = vector.shape_cast %83 : vector<1x32x128xf32> to vector<32x128xf32>
    %cst_46 = arith.constant 0.000000e+00 : f32
    %85 = vector.broadcast %cst_46 : f32 to vector<8x32xf32>
    %c0_i32_47 = arith.constant 0 : i32
    %86 = arith.index_cast %c0_i32_47 : i32 to index
    %c0_48 = arith.constant 0 : index
    %c0_49 = arith.constant 0 : index
    %87 = vector.load %arg11[%86, %c0_48, %c0_49] : memref<8x8x128xf32, #tpu.memory_space<vmem>>, vector<1x8x128xf32>
    %88 = vector.shape_cast %87 : vector<1x8x128xf32> to vector<8x128xf32>
    %cst_50 = arith.constant dense<0.000000e+00> : vector<8x128xf32>
    %89 = tpu.matmul %85, %84, %cst_50 {dimension_numbers = #tpu.dot_dimension_numbers<[1], [0], [0], [1], [0, 0, 1, 1], [], []>} : vector<8x32xf32>, vector<32x128xf32>, vector<8x128xf32> -> vector<8x128xf32>
    %90 = arith.addf %88, %89 : vector<8x128xf32>
    %cst_51 = arith.constant 5.000000e-01 : f32
    %91 = vector.broadcast %cst_51 : f32 to vector<8x128xf32>
    %92 = arith.mulf %91, %90 : vector<8x128xf32>
    %93 = arith.select %5, %90, %92 : vector<8x128xi1>, vector<8x128xf32>
    %94 = math.tanh %93 : vector<8x128xf32>
    %cst_52 = arith.constant 1.000000e+00 : f32
    %95 = vector.broadcast %cst_52 : f32 to vector<8x128xf32>
    %96 = arith.addf %94, %95 : vector<8x128xf32>
    %cst_53 = arith.constant 5.000000e-01 : f32
    %97 = vector.broadcast %cst_53 : f32 to vector<8x128xf32>
    %98 = arith.mulf %97, %96 : vector<8x128xf32>
    %99 = arith.select %5, %94, %98 : vector<8x128xi1>, vector<8x128xf32>
    %100 = vector.extract_strided_slice %99 {offsets = [0, 0], sizes = [8, 32], strides = [1, 1]} : vector<8x128xf32> to vector<8x32xf32>
    %101 = vector.extract_strided_slice %99 {offsets = [0, 32], sizes = [8, 32], strides = [1, 1]} : vector<8x128xf32> to vector<8x32xf32>
    %102 = vector.extract_strided_slice %99 {offsets = [0, 64], sizes = [8, 32], strides = [1, 1]} : vector<8x128xf32> to vector<8x32xf32>
    %103 = vector.extract_strided_slice %99 {offsets = [0, 96], sizes = [8, 32], strides = [1, 1]} : vector<8x128xf32> to vector<8x32xf32>
    %104 = arith.mulf %101, %85 : vector<8x32xf32>
    %105 = arith.mulf %100, %102 : vector<8x32xf32>
    %106 = arith.addf %104, %105 : vector<8x32xf32>
    %107 = math.tanh %106 : vector<8x32xf32>
    %108 = arith.mulf %103, %107 : vector<8x32xf32>
    %109 = arith.index_cast %c0_i32_47 : i32 to index
    %c0_54 = arith.constant 0 : index
    %c0_55 = arith.constant 0 : index
    %110 = vector.load %arg9[%109, %c0_54, %c0_55] : memref<8x8x32xf32, #tpu.memory_space<vmem>>, vector<1x8x32xf32>
    %111 = vector.shape_cast %110 : vector<1x8x32xf32> to vector<8x32xf32>
    %112 = vector.shape_cast %108 : vector<8x32xf32> to vector<1x8x32xf32>
    tpu.vector_store %arg9[%109, %c0_54, %c0_55], %112 {strides = array<i32>} : memref<8x8x32xf32, #tpu.memory_space<vmem>>, vector<1x8x32xf32>,
    %c1_i32_56 = arith.constant 1 : i32
    %113 = arith.index_cast %c1_i32_56 : i32 to index
    %c0_57 = arith.constant 0 : index
    %c0_58 = arith.constant 0 : index
    %114 = vector.load %arg11[%113, %c0_57, %c0_58] : memref<8x8x128xf32, #tpu.memory_space<vmem>>, vector<1x8x128xf32>
    %115 = vector.shape_cast %114 : vector<1x8x128xf32> to vector<8x128xf32>
    %cst_59 = arith.constant dense<0.000000e+00> : vector<8x128xf32>
    %116 = tpu.matmul %108, %84, %cst_59 {dimension_numbers = #tpu.dot_dimension_numbers<[1], [0], [0], [1], [0, 0, 1, 1], [], []>} : vector<8x32xf32>, vector<32x128xf32>, vector<8x128xf32> -> vector<8x128xf32>
    %117 = arith.addf %115, %116 : vector<8x128xf32>
    %cst_60 = arith.constant 5.000000e-01 : f32
    %118 = vector.broadcast %cst_60 : f32 to vector<8x128xf32>
    %119 = arith.mulf %118, %117 : vector<8x128xf32>
    %120 = arith.select %5, %117, %119 : vector<8x128xi1>, vector<8x128xf32>
    %121 = math.tanh %120 : vector<8x128xf32>
    %cst_61 = arith.constant 1.000000e+00 : f32
    %122 = vector.broadcast %cst_61 : f32 to vector<8x128xf32>
    %123 = arith.addf %121, %122 : vector<8x128xf32>
    %cst_62 = arith.constant 5.000000e-01 : f32
    %124 = vector.broadcast %cst_62 : f32 to vector<8x128xf32>
    %125 = arith.mulf %124, %123 : vector<8x128xf32>
    %126 = arith.select %5, %121, %125 : vector<8x128xi1>, vector<8x128xf32>
    %127 = vector.extract_strided_slice %126 {offsets = [0, 0], sizes = [8, 32], strides = [1, 1]} : vector<8x128xf32> to vector<8x32xf32>
    %128 = vector.extract_strided_slice %126 {offsets = [0, 32], sizes = [8, 32], strides = [1, 1]} : vector<8x128xf32> to vector<8x32xf32>
    %129 = vector.extract_strided_slice %126 {offsets = [0, 64], sizes = [8, 32], strides = [1, 1]} : vector<8x128xf32> to vector<8x32xf32>
    %130 = vector.extract_strided_slice %126 {offsets = [0, 96], sizes = [8, 32], strides = [1, 1]} : vector<8x128xf32> to vector<8x32xf32>
    %131 = arith.mulf %128, %106 : vector<8x32xf32>
    %132 = arith.mulf %127, %129 : vector<8x32xf32>
    %133 = arith.addf %131, %132 : vector<8x32xf32>
    %134 = math.tanh %133 : vector<8x32xf32>
    %135 = arith.mulf %130, %134 : vector<8x32xf32>
    %136 = arith.index_cast %c1_i32_56 : i32 to index
    %c0_63 = arith.constant 0 : index
    %c0_64 = arith.constant 0 : index
    %137 = vector.load %arg9[%136, %c0_63, %c0_64] : memref<8x8x32xf32, #tpu.memory_space<vmem>>, vector<1x8x32xf32>
    %138 = vector.shape_cast %137 : vector<1x8x32xf32> to vector<8x32xf32>
    %139 = vector.shape_cast %135 : vector<8x32xf32> to vector<1x8x32xf32>
    tpu.vector_store %arg9[%136, %c0_63, %c0_64], %139 {strides = array<i32>} : memref<8x8x32xf32, #tpu.memory_space<vmem>>, vector<1x8x32xf32>,
    %c2_i32_65 = arith.constant 2 : i32
    %140 = arith.index_cast %c2_i32_65 : i32 to index
    %c0_66 = arith.constant 0 : index
    %c0_67 = arith.constant 0 : index
    %141 = vector.load %arg11[%140, %c0_66, %c0_67] : memref<8x8x128xf32, #tpu.memory_space<vmem>>, vector<1x8x128xf32>
    %142 = vector.shape_cast %141 : vector<1x8x128xf32> to vector<8x128xf32>
    %cst_68 = arith.constant dense<0.000000e+00> : vector<8x128xf32>
    %143 = tpu.matmul %135, %84, %cst_68 {dimension_numbers = #tpu.dot_dimension_numbers<[1], [0], [0], [1], [0, 0, 1, 1], [], []>} : vector<8x32xf32>, vector<32x128xf32>, vector<8x128xf32> -> vector<8x128xf32>
    %144 = arith.addf %142, %143 : vector<8x128xf32>
    %cst_69 = arith.constant 5.000000e-01 : f32
    %145 = vector.broadcast %cst_69 : f32 to vector<8x128xf32>
    %146 = arith.mulf %145, %144 : vector<8x128xf32>
    %147 = arith.select %5, %144, %146 : vector<8x128xi1>, vector<8x128xf32>
    %148 = math.tanh %147 : vector<8x128xf32>
    %cst_70 = arith.constant 1.000000e+00 : f32
    %149 = vector.broadcast %cst_70 : f32 to vector<8x128xf32>
    %150 = arith.addf %148, %149 : vector<8x128xf32>
    %cst_71 = arith.constant 5.000000e-01 : f32
    %151 = vector.broadcast %cst_71 : f32 to vector<8x128xf32>
    %152 = arith.mulf %151, %150 : vector<8x128xf32>
    %153 = arith.select %5, %148, %152 : vector<8x128xi1>, vector<8x128xf32>
    %154 = vector.extract_strided_slice %153 {offsets = [0, 0], sizes = [8, 32], strides = [1, 1]} : vector<8x128xf32> to vector<8x32xf32>
    %155 = vector.extract_strided_slice %153 {offsets = [0, 32], sizes = [8, 32], strides = [1, 1]} : vector<8x128xf32> to vector<8x32xf32>
    %156 = vector.extract_strided_slice %153 {offsets = [0, 64], sizes = [8, 32], strides = [1, 1]} : vector<8x128xf32> to vector<8x32xf32>
    %157 = vector.extract_strided_slice %153 {offsets = [0, 96], sizes = [8, 32], strides = [1, 1]} : vector<8x128xf32> to vector<8x32xf32>
    %158 = arith.mulf %155, %133 : vector<8x32xf32>
    %159 = arith.mulf %154, %156 : vector<8x32xf32>
    %160 = arith.addf %158, %159 : vector<8x32xf32>
    %161 = math.tanh %160 : vector<8x32xf32>
    %162 = arith.mulf %157, %161 : vector<8x32xf32>
    %163 = arith.index_cast %c2_i32_65 : i32 to index
    %c0_72 = arith.constant 0 : index
    %c0_73 = arith.constant 0 : index
    %164 = vector.load %arg9[%163, %c0_72, %c0_73] : memref<8x8x32xf32, #tpu.memory_space<vmem>>, vector<1x8x32xf32>
    %165 = vector.shape_cast %164 : vector<1x8x32xf32> to vector<8x32xf32>
    %166 = vector.shape_cast %162 : vector<8x32xf32> to vector<1x8x32xf32>
    tpu.vector_store %arg9[%163, %c0_72, %c0_73], %166 {strides = array<i32>} : memref<8x8x32xf32, #tpu.memory_space<vmem>>, vector<1x8x32xf32>,
    %c3_i32_74 = arith.constant 3 : i32
    %167 = arith.index_cast %c3_i32_74 : i32 to index
    %c0_75 = arith.constant 0 : index
    %c0_76 = arith.constant 0 : index
    %168 = vector.load %arg11[%167, %c0_75, %c0_76] : memref<8x8x128xf32, #tpu.memory_space<vmem>>, vector<1x8x128xf32>
    %169 = vector.shape_cast %168 : vector<1x8x128xf32> to vector<8x128xf32>
    %cst_77 = arith.constant dense<0.000000e+00> : vector<8x128xf32>
    %170 = tpu.matmul %162, %84, %cst_77 {dimension_numbers = #tpu.dot_dimension_numbers<[1], [0], [0], [1], [0, 0, 1, 1], [], []>} : vector<8x32xf32>, vector<32x128xf32>, vector<8x128xf32> -> vector<8x128xf32>
    %171 = arith.addf %169, %170 : vector<8x128xf32>
    %cst_78 = arith.constant 5.000000e-01 : f32
    %172 = vector.broadcast %cst_78 : f32 to vector<8x128xf32>
    %173 = arith.mulf %172, %171 : vector<8x128xf32>
    %174 = arith.select %5, %171, %173 : vector<8x128xi1>, vector<8x128xf32>
    %175 = math.tanh %174 : vector<8x128xf32>
    %cst_79 = arith.constant 1.000000e+00 : f32
    %176 = vector.broadcast %cst_79 : f32 to vector<8x128xf32>
    %177 = arith.addf %175, %176 : vector<8x128xf32>
    %cst_80 = arith.constant 5.000000e-01 : f32
    %178 = vector.broadcast %cst_80 : f32 to vector<8x128xf32>
    %179 = arith.mulf %178, %177 : vector<8x128xf32>
    %180 = arith.select %5, %175, %179 : vector<8x128xi1>, vector<8x128xf32>
    %181 = vector.extract_strided_slice %180 {offsets = [0, 0], sizes = [8, 32], strides = [1, 1]} : vector<8x128xf32> to vector<8x32xf32>
    %182 = vector.extract_strided_slice %180 {offsets = [0, 32], sizes = [8, 32], strides = [1, 1]} : vector<8x128xf32> to vector<8x32xf32>
    %183 = vector.extract_strided_slice %180 {offsets = [0, 64], sizes = [8, 32], strides = [1, 1]} : vector<8x128xf32> to vector<8x32xf32>
    %184 = vector.extract_strided_slice %180 {offsets = [0, 96], sizes = [8, 32], strides = [1, 1]} : vector<8x128xf32> to vector<8x32xf32>
    %185 = arith.mulf %182, %160 : vector<8x32xf32>
    %186 = arith.mulf %181, %183 : vector<8x32xf32>
    %187 = arith.addf %185, %186 : vector<8x32xf32>
    %188 = math.tanh %187 : vector<8x32xf32>
    %189 = arith.mulf %184, %188 : vector<8x32xf32>
    %190 = arith.index_cast %c3_i32_74 : i32 to index
    %c0_81 = arith.constant 0 : index
    %c0_82 = arith.constant 0 : index
    %191 = vector.load %arg9[%190, %c0_81, %c0_82] : memref<8x8x32xf32, #tpu.memory_space<vmem>>, vector<1x8x32xf32>
    %192 = vector.shape_cast %191 : vector<1x8x32xf32> to vector<8x32xf32>
    %193 = vector.shape_cast %189 : vector<8x32xf32> to vector<1x8x32xf32>
    tpu.vector_store %arg9[%190, %c0_81, %c0_82], %193 {strides = array<i32>} : memref<8x8x32xf32, #tpu.memory_space<vmem>>, vector<1x8x32xf32>,
    %c4_i32_83 = arith.constant 4 : i32
    %194 = arith.index_cast %c4_i32_83 : i32 to index
    %c0_84 = arith.constant 0 : index
    %c0_85 = arith.constant 0 : index
    %195 = vector.load %arg11[%194, %c0_84, %c0_85] : memref<8x8x128xf32, #tpu.memory_space<vmem>>, vector<1x8x128xf32>
    %196 = vector.shape_cast %195 : vector<1x8x128xf32> to vector<8x128xf32>
    %cst_86 = arith.constant dense<0.000000e+00> : vector<8x128xf32>
    %197 = tpu.matmul %189, %84, %cst_86 {dimension_numbers = #tpu.dot_dimension_numbers<[1], [0], [0], [1], [0, 0, 1, 1], [], []>} : vector<8x32xf32>, vector<32x128xf32>, vector<8x128xf32> -> vector<8x128xf32>
    %198 = arith.addf %196, %197 : vector<8x128xf32>
    %cst_87 = arith.constant 5.000000e-01 : f32
    %199 = vector.broadcast %cst_87 : f32 to vector<8x128xf32>
    %200 = arith.mulf %199, %198 : vector<8x128xf32>
    %201 = arith.select %5, %198, %200 : vector<8x128xi1>, vector<8x128xf32>
    %202 = math.tanh %201 : vector<8x128xf32>
    %cst_88 = arith.constant 1.000000e+00 : f32
    %203 = vector.broadcast %cst_88 : f32 to vector<8x128xf32>
    %204 = arith.addf %202, %203 : vector<8x128xf32>
    %cst_89 = arith.constant 5.000000e-01 : f32
    %205 = vector.broadcast %cst_89 : f32 to vector<8x128xf32>
    %206 = arith.mulf %205, %204 : vector<8x128xf32>
    %207 = arith.select %5, %202, %206 : vector<8x128xi1>, vector<8x128xf32>
    %208 = vector.extract_strided_slice %207 {offsets = [0, 0], sizes = [8, 32], strides = [1, 1]} : vector<8x128xf32> to vector<8x32xf32>
    %209 = vector.extract_strided_slice %207 {offsets = [0, 32], sizes = [8, 32], strides = [1, 1]} : vector<8x128xf32> to vector<8x32xf32>
    %210 = vector.extract_strided_slice %207 {offsets = [0, 64], sizes = [8, 32], strides = [1, 1]} : vector<8x128xf32> to vector<8x32xf32>
    %211 = vector.extract_strided_slice %207 {offsets = [0, 96], sizes = [8, 32], strides = [1, 1]} : vector<8x128xf32> to vector<8x32xf32>
    %212 = arith.mulf %209, %187 : vector<8x32xf32>
    %213 = arith.mulf %208, %210 : vector<8x32xf32>
    %214 = arith.addf %212, %213 : vector<8x32xf32>
    %215 = math.tanh %214 : vector<8x32xf32>
    %216 = arith.mulf %211, %215 : vector<8x32xf32>
    %217 = arith.index_cast %c4_i32_83 : i32 to index
    %c0_90 = arith.constant 0 : index
    %c0_91 = arith.constant 0 : index
    %218 = vector.load %arg9[%217, %c0_90, %c0_91] : memref<8x8x32xf32, #tpu.memory_space<vmem>>, vector<1x8x32xf32>
    %219 = vector.shape_cast %218 : vector<1x8x32xf32> to vector<8x32xf32>
    %220 = vector.shape_cast %216 : vector<8x32xf32> to vector<1x8x32xf32>
    tpu.vector_store %arg9[%217, %c0_90, %c0_91], %220 {strides = array<i32>} : memref<8x8x32xf32, #tpu.memory_space<vmem>>, vector<1x8x32xf32>,
    %c5_i32_92 = arith.constant 5 : i32
    %221 = arith.index_cast %c5_i32_92 : i32 to index
    %c0_93 = arith.constant 0 : index
    %c0_94 = arith.constant 0 : index
    %222 = vector.load %arg11[%221, %c0_93, %c0_94] : memref<8x8x128xf32, #tpu.memory_space<vmem>>, vector<1x8x128xf32>
    %223 = vector.shape_cast %222 : vector<1x8x128xf32> to vector<8x128xf32>
    %cst_95 = arith.constant dense<0.000000e+00> : vector<8x128xf32>
    %224 = tpu.matmul %216, %84, %cst_95 {dimension_numbers = #tpu.dot_dimension_numbers<[1], [0], [0], [1], [0, 0, 1, 1], [], []>} : vector<8x32xf32>, vector<32x128xf32>, vector<8x128xf32> -> vector<8x128xf32>
    %225 = arith.addf %223, %224 : vector<8x128xf32>
    %cst_96 = arith.constant 5.000000e-01 : f32
    %226 = vector.broadcast %cst_96 : f32 to vector<8x128xf32>
    %227 = arith.mulf %226, %225 : vector<8x128xf32>
    %228 = arith.select %5, %225, %227 : vector<8x128xi1>, vector<8x128xf32>
    %229 = math.tanh %228 : vector<8x128xf32>
    %cst_97 = arith.constant 1.000000e+00 : f32
    %230 = vector.broadcast %cst_97 : f32 to vector<8x128xf32>
    %231 = arith.addf %229, %230 : vector<8x128xf32>
    %cst_98 = arith.constant 5.000000e-01 : f32
    %232 = vector.broadcast %cst_98 : f32 to vector<8x128xf32>
    %233 = arith.mulf %232, %231 : vector<8x128xf32>
    %234 = arith.select %5, %229, %233 : vector<8x128xi1>, vector<8x128xf32>
    %235 = vector.extract_strided_slice %234 {offsets = [0, 0], sizes = [8, 32], strides = [1, 1]} : vector<8x128xf32> to vector<8x32xf32>
    %236 = vector.extract_strided_slice %234 {offsets = [0, 32], sizes = [8, 32], strides = [1, 1]} : vector<8x128xf32> to vector<8x32xf32>
    %237 = vector.extract_strided_slice %234 {offsets = [0, 64], sizes = [8, 32], strides = [1, 1]} : vector<8x128xf32> to vector<8x32xf32>
    %238 = vector.extract_strided_slice %234 {offsets = [0, 96], sizes = [8, 32], strides = [1, 1]} : vector<8x128xf32> to vector<8x32xf32>
    %239 = arith.mulf %236, %214 : vector<8x32xf32>
    %240 = arith.mulf %235, %237 : vector<8x32xf32>
    %241 = arith.addf %239, %240 : vector<8x32xf32>
    %242 = math.tanh %241 : vector<8x32xf32>
    %243 = arith.mulf %238, %242 : vector<8x32xf32>
    %244 = arith.index_cast %c5_i32_92 : i32 to index
    %c0_99 = arith.constant 0 : index
    %c0_100 = arith.constant 0 : index
    %245 = vector.load %arg9[%244, %c0_99, %c0_100] : memref<8x8x32xf32, #tpu.memory_space<vmem>>, vector<1x8x32xf32>
    %246 = vector.shape_cast %245 : vector<1x8x32xf32> to vector<8x32xf32>
    %247 = vector.shape_cast %243 : vector<8x32xf32> to vector<1x8x32xf32>
    tpu.vector_store %arg9[%244, %c0_99, %c0_100], %247 {strides = array<i32>} : memref<8x8x32xf32, #tpu.memory_space<vmem>>, vector<1x8x32xf32>,
    %c6_i32_101 = arith.constant 6 : i32
    %248 = arith.index_cast %c6_i32_101 : i32 to index
    %c0_102 = arith.constant 0 : index
    %c0_103 = arith.constant 0 : index
    %249 = vector.load %arg11[%248, %c0_102, %c0_103] : memref<8x8x128xf32, #tpu.memory_space<vmem>>, vector<1x8x128xf32>
    %250 = vector.shape_cast %249 : vector<1x8x128xf32> to vector<8x128xf32>
    %cst_104 = arith.constant dense<0.000000e+00> : vector<8x128xf32>
    %251 = tpu.matmul %243, %84, %cst_104 {dimension_numbers = #tpu.dot_dimension_numbers<[1], [0], [0], [1], [0, 0, 1, 1], [], []>} : vector<8x32xf32>, vector<32x128xf32>, vector<8x128xf32> -> vector<8x128xf32>
    %252 = arith.addf %250, %251 : vector<8x128xf32>
    %cst_105 = arith.constant 5.000000e-01 : f32
    %253 = vector.broadcast %cst_105 : f32 to vector<8x128xf32>
    %254 = arith.mulf %253, %252 : vector<8x128xf32>
    %255 = arith.select %5, %252, %254 : vector<8x128xi1>, vector<8x128xf32>
    %256 = math.tanh %255 : vector<8x128xf32>
    %cst_106 = arith.constant 1.000000e+00 : f32
    %257 = vector.broadcast %cst_106 : f32 to vector<8x128xf32>
    %258 = arith.addf %256, %257 : vector<8x128xf32>
    %cst_107 = arith.constant 5.000000e-01 : f32
    %259 = vector.broadcast %cst_107 : f32 to vector<8x128xf32>
    %260 = arith.mulf %259, %258 : vector<8x128xf32>
    %261 = arith.select %5, %256, %260 : vector<8x128xi1>, vector<8x128xf32>
    %262 = vector.extract_strided_slice %261 {offsets = [0, 0], sizes = [8, 32], strides = [1, 1]} : vector<8x128xf32> to vector<8x32xf32>
    %263 = vector.extract_strided_slice %261 {offsets = [0, 32], sizes = [8, 32], strides = [1, 1]} : vector<8x128xf32> to vector<8x32xf32>
    %264 = vector.extract_strided_slice %261 {offsets = [0, 64], sizes = [8, 32], strides = [1, 1]} : vector<8x128xf32> to vector<8x32xf32>
    %265 = vector.extract_strided_slice %261 {offsets = [0, 96], sizes = [8, 32], strides = [1, 1]} : vector<8x128xf32> to vector<8x32xf32>
    %266 = arith.mulf %263, %241 : vector<8x32xf32>
    %267 = arith.mulf %262, %264 : vector<8x32xf32>
    %268 = arith.addf %266, %267 : vector<8x32xf32>
    %269 = math.tanh %268 : vector<8x32xf32>
    %270 = arith.mulf %265, %269 : vector<8x32xf32>
    %271 = arith.index_cast %c6_i32_101 : i32 to index
    %c0_108 = arith.constant 0 : index
    %c0_109 = arith.constant 0 : index
    %272 = vector.load %arg9[%271, %c0_108, %c0_109] : memref<8x8x32xf32, #tpu.memory_space<vmem>>, vector<1x8x32xf32>
    %273 = vector.shape_cast %272 : vector<1x8x32xf32> to vector<8x32xf32>
    %274 = vector.shape_cast %270 : vector<8x32xf32> to vector<1x8x32xf32>
    tpu.vector_store %arg9[%271, %c0_108, %c0_109], %274 {strides = array<i32>} : memref<8x8x32xf32, #tpu.memory_space<vmem>>, vector<1x8x32xf32>,
    %c7_i32_110 = arith.constant 7 : i32
    %275 = arith.index_cast %c7_i32_110 : i32 to index
    %c0_111 = arith.constant 0 : index
    %c0_112 = arith.constant 0 : index
    %276 = vector.load %arg11[%275, %c0_111, %c0_112] : memref<8x8x128xf32, #tpu.memory_space<vmem>>, vector<1x8x128xf32>
    %277 = vector.shape_cast %276 : vector<1x8x128xf32> to vector<8x128xf32>
    %cst_113 = arith.constant dense<0.000000e+00> : vector<8x128xf32>
    %278 = tpu.matmul %270, %84, %cst_113 {dimension_numbers = #tpu.dot_dimension_numbers<[1], [0], [0], [1], [0, 0, 1, 1], [], []>} : vector<8x32xf32>, vector<32x128xf32>, vector<8x128xf32> -> vector<8x128xf32>
    %279 = arith.addf %277, %278 : vector<8x128xf32>
    %cst_114 = arith.constant 5.000000e-01 : f32
    %280 = vector.broadcast %cst_114 : f32 to vector<8x128xf32>
    %281 = arith.mulf %280, %279 : vector<8x128xf32>
    %282 = arith.select %5, %279, %281 : vector<8x128xi1>, vector<8x128xf32>
    %283 = math.tanh %282 : vector<8x128xf32>
    %cst_115 = arith.constant 1.000000e+00 : f32
    %284 = vector.broadcast %cst_115 : f32 to vector<8x128xf32>
    %285 = arith.addf %283, %284 : vector<8x128xf32>
    %cst_116 = arith.constant 5.000000e-01 : f32
    %286 = vector.broadcast %cst_116 : f32 to vector<8x128xf32>
    %287 = arith.mulf %286, %285 : vector<8x128xf32>
    %288 = arith.select %5, %283, %287 : vector<8x128xi1>, vector<8x128xf32>
    %289 = vector.extract_strided_slice %288 {offsets = [0, 0], sizes = [8, 32], strides = [1, 1]} : vector<8x128xf32> to vector<8x32xf32>
    %290 = vector.extract_strided_slice %288 {offsets = [0, 32], sizes = [8, 32], strides = [1, 1]} : vector<8x128xf32> to vector<8x32xf32>
    %291 = vector.extract_strided_slice %288 {offsets = [0, 64], sizes = [8, 32], strides = [1, 1]} : vector<8x128xf32> to vector<8x32xf32>
    %292 = vector.extract_strided_slice %288 {offsets = [0, 96], sizes = [8, 32], strides = [1, 1]} : vector<8x128xf32> to vector<8x32xf32>
    %293 = arith.mulf %290, %268 : vector<8x32xf32>
    %294 = arith.mulf %289, %291 : vector<8x32xf32>
    %295 = arith.addf %293, %294 : vector<8x32xf32>
    %296 = math.tanh %295 : vector<8x32xf32>
    %297 = arith.mulf %292, %296 : vector<8x32xf32>
    %298 = arith.index_cast %c7_i32_110 : i32 to index
    %c0_117 = arith.constant 0 : index
    %c0_118 = arith.constant 0 : index
    %299 = vector.load %arg9[%298, %c0_117, %c0_118] : memref<8x8x32xf32, #tpu.memory_space<vmem>>, vector<1x8x32xf32>
    %300 = vector.shape_cast %299 : vector<1x8x32xf32> to vector<8x32xf32>
    %301 = vector.shape_cast %297 : vector<8x32xf32> to vector<1x8x32xf32>
    tpu.vector_store %arg9[%298, %c0_117, %c0_118], %301 {strides = array<i32>} : memref<8x8x32xf32, #tpu.memory_space<vmem>>, vector<1x8x32xf32>,
    %c8_i32_119 = arith.constant 8 : i32
    %c0_120 = arith.constant 0 : index
    %c0_121 = arith.constant 0 : index
    %c0_122 = arith.constant 0 : index
    %302 = vector.load %arg3[%c0_120, %c0_121, %c0_122] : memref<5x32x128xf32, #tpu.memory_space<vmem>>, vector<1x32x128xf32>
    %303 = vector.shape_cast %302 : vector<1x32x128xf32> to vector<32x128xf32>
    %c1 = arith.constant 1 : index
    %c0_123 = arith.constant 0 : index
    %c0_124 = arith.constant 0 : index
    %304 = vector.load %arg5[%c1, %c0_123, %c0_124] : memref<6x1x128xf32, #tpu.memory_space<vmem>>, vector<1x1x128xf32>
    %305 = vector.shape_cast %304 : vector<1x1x128xf32> to vector<1x128xf32>
    %306 = vector.shape_cast %305 : vector<1x128xf32> to vector<1x128xf32>
    %307 = vector.broadcast %306 : vector<1x128xf32> to vector<8x128xf32>
    %c0_i32_125 = arith.constant 0 : i32
    %308 = arith.index_cast %c0_i32_125 : i32 to index
    %c0_126 = arith.constant 0 : index
    %c0_127 = arith.constant 0 : index
    %309 = vector.load %arg9[%308, %c0_126, %c0_127] : memref<8x8x32xf32, #tpu.memory_space<vmem>>, vector<1x8x32xf32>
    %310 = vector.shape_cast %309 : vector<1x8x32xf32> to vector<8x32xf32>
    %cst_128 = arith.constant dense<0.000000e+00> : vector<8x128xf32>
    %311 = tpu.matmul %310, %303, %cst_128 {dimension_numbers = #tpu.dot_dimension_numbers<[1], [0], [0], [1], [0, 0, 1, 1], [], []>} : vector<8x32xf32>, vector<32x128xf32>, vector<8x128xf32> -> vector<8x128xf32>
    %312 = arith.addf %311, %307 : vector<8x128xf32>
    %313 = arith.index_cast %c0_i32_125 : i32 to index
    %c0_129 = arith.constant 0 : index
    %c0_130 = arith.constant 0 : index
    %314 = vector.load %arg11[%313, %c0_129, %c0_130] : memref<8x8x128xf32, #tpu.memory_space<vmem>>, vector<1x8x128xf32>
    %315 = vector.shape_cast %314 : vector<1x8x128xf32> to vector<8x128xf32>
    %316 = vector.shape_cast %312 : vector<8x128xf32> to vector<1x8x128xf32>
    tpu.vector_store %arg11[%313, %c0_129, %c0_130], %316 {strides = array<i32>} : memref<8x8x128xf32, #tpu.memory_space<vmem>>, vector<1x8x128xf32>,
    %c1_i32_131 = arith.constant 1 : i32
    %317 = arith.index_cast %c1_i32_131 : i32 to index
    %c0_132 = arith.constant 0 : index
    %c0_133 = arith.constant 0 : index
    %318 = vector.load %arg9[%317, %c0_132, %c0_133] : memref<8x8x32xf32, #tpu.memory_space<vmem>>, vector<1x8x32xf32>
    %319 = vector.shape_cast %318 : vector<1x8x32xf32> to vector<8x32xf32>
    %cst_134 = arith.constant dense<0.000000e+00> : vector<8x128xf32>
    %320 = tpu.matmul %319, %303, %cst_134 {dimension_numbers = #tpu.dot_dimension_numbers<[1], [0], [0], [1], [0, 0, 1, 1], [], []>} : vector<8x32xf32>, vector<32x128xf32>, vector<8x128xf32> -> vector<8x128xf32>
    %321 = arith.addf %320, %307 : vector<8x128xf32>
    %322 = arith.index_cast %c1_i32_131 : i32 to index
    %c0_135 = arith.constant 0 : index
    %c0_136 = arith.constant 0 : index
    %323 = vector.load %arg11[%322, %c0_135, %c0_136] : memref<8x8x128xf32, #tpu.memory_space<vmem>>, vector<1x8x128xf32>
    %324 = vector.shape_cast %323 : vector<1x8x128xf32> to vector<8x128xf32>
    %325 = vector.shape_cast %321 : vector<8x128xf32> to vector<1x8x128xf32>
    tpu.vector_store %arg11[%322, %c0_135, %c0_136], %325 {strides = array<i32>} : memref<8x8x128xf32, #tpu.memory_space<vmem>>, vector<1x8x128xf32>,
    %c2_i32_137 = arith.constant 2 : i32
    %326 = arith.index_cast %c2_i32_137 : i32 to index
    %c0_138 = arith.constant 0 : index
    %c0_139 = arith.constant 0 : index
    %327 = vector.load %arg9[%326, %c0_138, %c0_139] : memref<8x8x32xf32, #tpu.memory_space<vmem>>, vector<1x8x32xf32>
    %328 = vector.shape_cast %327 : vector<1x8x32xf32> to vector<8x32xf32>
    %cst_140 = arith.constant dense<0.000000e+00> : vector<8x128xf32>
    %329 = tpu.matmul %328, %303, %cst_140 {dimension_numbers = #tpu.dot_dimension_numbers<[1], [0], [0], [1], [0, 0, 1, 1], [], []>} : vector<8x32xf32>, vector<32x128xf32>, vector<8x128xf32> -> vector<8x128xf32>
    %330 = arith.addf %329, %307 : vector<8x128xf32>
    %331 = arith.index_cast %c2_i32_137 : i32 to index
    %c0_141 = arith.constant 0 : index
    %c0_142 = arith.constant 0 : index
    %332 = vector.load %arg11[%331, %c0_141, %c0_142] : memref<8x8x128xf32, #tpu.memory_space<vmem>>, vector<1x8x128xf32>
    %333 = vector.shape_cast %332 : vector<1x8x128xf32> to vector<8x128xf32>
    %334 = vector.shape_cast %330 : vector<8x128xf32> to vector<1x8x128xf32>
    tpu.vector_store %arg11[%331, %c0_141, %c0_142], %334 {strides = array<i32>} : memref<8x8x128xf32, #tpu.memory_space<vmem>>, vector<1x8x128xf32>,
    %c3_i32_143 = arith.constant 3 : i32
    %335 = arith.index_cast %c3_i32_143 : i32 to index
    %c0_144 = arith.constant 0 : index
    %c0_145 = arith.constant 0 : index
    %336 = vector.load %arg9[%335, %c0_144, %c0_145] : memref<8x8x32xf32, #tpu.memory_space<vmem>>, vector<1x8x32xf32>
    %337 = vector.shape_cast %336 : vector<1x8x32xf32> to vector<8x32xf32>
    %cst_146 = arith.constant dense<0.000000e+00> : vector<8x128xf32>
    %338 = tpu.matmul %337, %303, %cst_146 {dimension_numbers = #tpu.dot_dimension_numbers<[1], [0], [0], [1], [0, 0, 1, 1], [], []>} : vector<8x32xf32>, vector<32x128xf32>, vector<8x128xf32> -> vector<8x128xf32>
    %339 = arith.addf %338, %307 : vector<8x128xf32>
    %340 = arith.index_cast %c3_i32_143 : i32 to index
    %c0_147 = arith.constant 0 : index
    %c0_148 = arith.constant 0 : index
    %341 = vector.load %arg11[%340, %c0_147, %c0_148] : memref<8x8x128xf32, #tpu.memory_space<vmem>>, vector<1x8x128xf32>
    %342 = vector.shape_cast %341 : vector<1x8x128xf32> to vector<8x128xf32>
    %343 = vector.shape_cast %339 : vector<8x128xf32> to vector<1x8x128xf32>
    tpu.vector_store %arg11[%340, %c0_147, %c0_148], %343 {strides = array<i32>} : memref<8x8x128xf32, #tpu.memory_space<vmem>>, vector<1x8x128xf32>,
    %c4_i32_149 = arith.constant 4 : i32
    %344 = arith.index_cast %c4_i32_149 : i32 to index
    %c0_150 = arith.constant 0 : index
    %c0_151 = arith.constant 0 : index
    %345 = vector.load %arg9[%344, %c0_150, %c0_151] : memref<8x8x32xf32, #tpu.memory_space<vmem>>, vector<1x8x32xf32>
    %346 = vector.shape_cast %345 : vector<1x8x32xf32> to vector<8x32xf32>
    %cst_152 = arith.constant dense<0.000000e+00> : vector<8x128xf32>
    %347 = tpu.matmul %346, %303, %cst_152 {dimension_numbers = #tpu.dot_dimension_numbers<[1], [0], [0], [1], [0, 0, 1, 1], [], []>} : vector<8x32xf32>, vector<32x128xf32>, vector<8x128xf32> -> vector<8x128xf32>
    %348 = arith.addf %347, %307 : vector<8x128xf32>
    %349 = arith.index_cast %c4_i32_149 : i32 to index
    %c0_153 = arith.constant 0 : index
    %c0_154 = arith.constant 0 : index
    %350 = vector.load %arg11[%349, %c0_153, %c0_154] : memref<8x8x128xf32, #tpu.memory_space<vmem>>, vector<1x8x128xf32>
    %351 = vector.shape_cast %350 : vector<1x8x128xf32> to vector<8x128xf32>
    %352 = vector.shape_cast %348 : vector<8x128xf32> to vector<1x8x128xf32>
    tpu.vector_store %arg11[%349, %c0_153, %c0_154], %352 {strides = array<i32>} : memref<8x8x128xf32, #tpu.memory_space<vmem>>, vector<1x8x128xf32>,
    %c5_i32_155 = arith.constant 5 : i32
    %353 = arith.index_cast %c5_i32_155 : i32 to index
    %c0_156 = arith.constant 0 : index
    %c0_157 = arith.constant 0 : index
    %354 = vector.load %arg9[%353, %c0_156, %c0_157] : memref<8x8x32xf32, #tpu.memory_space<vmem>>, vector<1x8x32xf32>
    %355 = vector.shape_cast %354 : vector<1x8x32xf32> to vector<8x32xf32>
    %cst_158 = arith.constant dense<0.000000e+00> : vector<8x128xf32>
    %356 = tpu.matmul %355, %303, %cst_158 {dimension_numbers = #tpu.dot_dimension_numbers<[1], [0], [0], [1], [0, 0, 1, 1], [], []>} : vector<8x32xf32>, vector<32x128xf32>, vector<8x128xf32> -> vector<8x128xf32>
    %357 = arith.addf %356, %307 : vector<8x128xf32>
    %358 = arith.index_cast %c5_i32_155 : i32 to index
    %c0_159 = arith.constant 0 : index
    %c0_160 = arith.constant 0 : index
    %359 = vector.load %arg11[%358, %c0_159, %c0_160] : memref<8x8x128xf32, #tpu.memory_space<vmem>>, vector<1x8x128xf32>
    %360 = vector.shape_cast %359 : vector<1x8x128xf32> to vector<8x128xf32>
    %361 = vector.shape_cast %357 : vector<8x128xf32> to vector<1x8x128xf32>
    tpu.vector_store %arg11[%358, %c0_159, %c0_160], %361 {strides = array<i32>} : memref<8x8x128xf32, #tpu.memory_space<vmem>>, vector<1x8x128xf32>,
    %c6_i32_161 = arith.constant 6 : i32
    %362 = arith.index_cast %c6_i32_161 : i32 to index
    %c0_162 = arith.constant 0 : index
    %c0_163 = arith.constant 0 : index
    %363 = vector.load %arg9[%362, %c0_162, %c0_163] : memref<8x8x32xf32, #tpu.memory_space<vmem>>, vector<1x8x32xf32>
    %364 = vector.shape_cast %363 : vector<1x8x32xf32> to vector<8x32xf32>
    %cst_164 = arith.constant dense<0.000000e+00> : vector<8x128xf32>
    %365 = tpu.matmul %364, %303, %cst_164 {dimension_numbers = #tpu.dot_dimension_numbers<[1], [0], [0], [1], [0, 0, 1, 1], [], []>} : vector<8x32xf32>, vector<32x128xf32>, vector<8x128xf32> -> vector<8x128xf32>
    %366 = arith.addf %365, %307 : vector<8x128xf32>
    %367 = arith.index_cast %c6_i32_161 : i32 to index
    %c0_165 = arith.constant 0 : index
    %c0_166 = arith.constant 0 : index
    %368 = vector.load %arg11[%367, %c0_165, %c0_166] : memref<8x8x128xf32, #tpu.memory_space<vmem>>, vector<1x8x128xf32>
    %369 = vector.shape_cast %368 : vector<1x8x128xf32> to vector<8x128xf32>
    %370 = vector.shape_cast %366 : vector<8x128xf32> to vector<1x8x128xf32>
    tpu.vector_store %arg11[%367, %c0_165, %c0_166], %370 {strides = array<i32>} : memref<8x8x128xf32, #tpu.memory_space<vmem>>, vector<1x8x128xf32>,
    %c7_i32_167 = arith.constant 7 : i32
    %371 = arith.index_cast %c7_i32_167 : i32 to index
    %c0_168 = arith.constant 0 : index
    %c0_169 = arith.constant 0 : index
    %372 = vector.load %arg9[%371, %c0_168, %c0_169] : memref<8x8x32xf32, #tpu.memory_space<vmem>>, vector<1x8x32xf32>
    %373 = vector.shape_cast %372 : vector<1x8x32xf32> to vector<8x32xf32>
    %cst_170 = arith.constant dense<0.000000e+00> : vector<8x128xf32>
    %374 = tpu.matmul %373, %303, %cst_170 {dimension_numbers = #tpu.dot_dimension_numbers<[1], [0], [0], [1], [0, 0, 1, 1], [], []>} : vector<8x32xf32>, vector<32x128xf32>, vector<8x128xf32> -> vector<8x128xf32>
    %375 = arith.addf %374, %307 : vector<8x128xf32>
    %376 = arith.index_cast %c7_i32_167 : i32 to index
    %c0_171 = arith.constant 0 : index
    %c0_172 = arith.constant 0 : index
    %377 = vector.load %arg11[%376, %c0_171, %c0_172] : memref<8x8x128xf32, #tpu.memory_space<vmem>>, vector<1x8x128xf32>
    %378 = vector.shape_cast %377 : vector<1x8x128xf32> to vector<8x128xf32>
    %379 = vector.shape_cast %375 : vector<8x128xf32> to vector<1x8x128xf32>
    tpu.vector_store %arg11[%376, %c0_171, %c0_172], %379 {strides = array<i32>} : memref<8x8x128xf32, #tpu.memory_space<vmem>>, vector<1x8x128xf32>,
    %c8_i32_173 = arith.constant 8 : i32
    %c1_174 = arith.constant 1 : index
    %c0_175 = arith.constant 0 : index
    %c0_176 = arith.constant 0 : index
    %380 = vector.load %arg4[%c1_174, %c0_175, %c0_176] : memref<6x32x128xf32, #tpu.memory_space<vmem>>, vector<1x32x128xf32>
    %381 = vector.shape_cast %380 : vector<1x32x128xf32> to vector<32x128xf32>
    %cst_177 = arith.constant 0.000000e+00 : f32
    %382 = vector.broadcast %cst_177 : f32 to vector<8x32xf32>
    %c0_i32_178 = arith.constant 0 : i32
    %383 = arith.index_cast %c0_i32_178 : i32 to index
    %c0_179 = arith.constant 0 : index
    %c0_180 = arith.constant 0 : index
    %384 = vector.load %arg11[%383, %c0_179, %c0_180] : memref<8x8x128xf32, #tpu.memory_space<vmem>>, vector<1x8x128xf32>
    %385 = vector.shape_cast %384 : vector<1x8x128xf32> to vector<8x128xf32>
    %cst_181 = arith.constant dense<0.000000e+00> : vector<8x128xf32>
    %386 = tpu.matmul %382, %381, %cst_181 {dimension_numbers = #tpu.dot_dimension_numbers<[1], [0], [0], [1], [0, 0, 1, 1], [], []>} : vector<8x32xf32>, vector<32x128xf32>, vector<8x128xf32> -> vector<8x128xf32>
    %387 = arith.addf %385, %386 : vector<8x128xf32>
    %cst_182 = arith.constant 5.000000e-01 : f32
    %388 = vector.broadcast %cst_182 : f32 to vector<8x128xf32>
    %389 = arith.mulf %388, %387 : vector<8x128xf32>
    %390 = arith.select %5, %387, %389 : vector<8x128xi1>, vector<8x128xf32>
    %391 = math.tanh %390 : vector<8x128xf32>
    %cst_183 = arith.constant 1.000000e+00 : f32
    %392 = vector.broadcast %cst_183 : f32 to vector<8x128xf32>
    %393 = arith.addf %391, %392 : vector<8x128xf32>
    %cst_184 = arith.constant 5.000000e-01 : f32
    %394 = vector.broadcast %cst_184 : f32 to vector<8x128xf32>
    %395 = arith.mulf %394, %393 : vector<8x128xf32>
    %396 = arith.select %5, %391, %395 : vector<8x128xi1>, vector<8x128xf32>
    %397 = vector.extract_strided_slice %396 {offsets = [0, 0], sizes = [8, 32], strides = [1, 1]} : vector<8x128xf32> to vector<8x32xf32>
    %398 = vector.extract_strided_slice %396 {offsets = [0, 32], sizes = [8, 32], strides = [1, 1]} : vector<8x128xf32> to vector<8x32xf32>
    %399 = vector.extract_strided_slice %396 {offsets = [0, 64], sizes = [8, 32], strides = [1, 1]} : vector<8x128xf32> to vector<8x32xf32>
    %400 = vector.extract_strided_slice %396 {offsets = [0, 96], sizes = [8, 32], strides = [1, 1]} : vector<8x128xf32> to vector<8x32xf32>
    %401 = arith.mulf %398, %382 : vector<8x32xf32>
    %402 = arith.mulf %397, %399 : vector<8x32xf32>
    %403 = arith.addf %401, %402 : vector<8x32xf32>
    %404 = math.tanh %403 : vector<8x32xf32>
    %405 = arith.mulf %400, %404 : vector<8x32xf32>
    %c1_i32_185 = arith.constant 1 : i32
    %406 = arith.index_cast %c1_i32_185 : i32 to index
    %c0_186 = arith.constant 0 : index
    %c0_187 = arith.constant 0 : index
    %407 = vector.load %arg11[%406, %c0_186, %c0_187] : memref<8x8x128xf32, #tpu.memory_space<vmem>>, vector<1x8x128xf32>
    %408 = vector.shape_cast %407 : vector<1x8x128xf32> to vector<8x128xf32>
    %cst_188 = arith.constant dense<0.000000e+00> : vector<8x128xf32>
    %409 = tpu.matmul %405, %381, %cst_188 {dimension_numbers = #tpu.dot_dimension_numbers<[1], [0], [0], [1], [0, 0, 1, 1], [], []>} : vector<8x32xf32>, vector<32x128xf32>, vector<8x128xf32> -> vector<8x128xf32>
    %410 = arith.addf %408, %409 : vector<8x128xf32>
    %cst_189 = arith.constant 5.000000e-01 : f32
    %411 = vector.broadcast %cst_189 : f32 to vector<8x128xf32>
    %412 = arith.mulf %411, %410 : vector<8x128xf32>
    %413 = arith.select %5, %410, %412 : vector<8x128xi1>, vector<8x128xf32>
    %414 = math.tanh %413 : vector<8x128xf32>
    %cst_190 = arith.constant 1.000000e+00 : f32
    %415 = vector.broadcast %cst_190 : f32 to vector<8x128xf32>
    %416 = arith.addf %414, %415 : vector<8x128xf32>
    %cst_191 = arith.constant 5.000000e-01 : f32
    %417 = vector.broadcast %cst_191 : f32 to vector<8x128xf32>
    %418 = arith.mulf %417, %416 : vector<8x128xf32>
    %419 = arith.select %5, %414, %418 : vector<8x128xi1>, vector<8x128xf32>
    %420 = vector.extract_strided_slice %419 {offsets = [0, 0], sizes = [8, 32], strides = [1, 1]} : vector<8x128xf32> to vector<8x32xf32>
    %421 = vector.extract_strided_slice %419 {offsets = [0, 32], sizes = [8, 32], strides = [1, 1]} : vector<8x128xf32> to vector<8x32xf32>
    %422 = vector.extract_strided_slice %419 {offsets = [0, 64], sizes = [8, 32], strides = [1, 1]} : vector<8x128xf32> to vector<8x32xf32>
    %423 = vector.extract_strided_slice %419 {offsets = [0, 96], sizes = [8, 32], strides = [1, 1]} : vector<8x128xf32> to vector<8x32xf32>
    %424 = arith.mulf %421, %403 : vector<8x32xf32>
    %425 = arith.mulf %420, %422 : vector<8x32xf32>
    %426 = arith.addf %424, %425 : vector<8x32xf32>
    %427 = math.tanh %426 : vector<8x32xf32>
    %428 = arith.mulf %423, %427 : vector<8x32xf32>
    %c2_i32_192 = arith.constant 2 : i32
    %429 = arith.index_cast %c2_i32_192 : i32 to index
    %c0_193 = arith.constant 0 : index
    %c0_194 = arith.constant 0 : index
    %430 = vector.load %arg11[%429, %c0_193, %c0_194] : memref<8x8x128xf32, #tpu.memory_space<vmem>>, vector<1x8x128xf32>
    %431 = vector.shape_cast %430 : vector<1x8x128xf32> to vector<8x128xf32>
    %cst_195 = arith.constant dense<0.000000e+00> : vector<8x128xf32>
    %432 = tpu.matmul %428, %381, %cst_195 {dimension_numbers = #tpu.dot_dimension_numbers<[1], [0], [0], [1], [0, 0, 1, 1], [], []>} : vector<8x32xf32>, vector<32x128xf32>, vector<8x128xf32> -> vector<8x128xf32>
    %433 = arith.addf %431, %432 : vector<8x128xf32>
    %cst_196 = arith.constant 5.000000e-01 : f32
    %434 = vector.broadcast %cst_196 : f32 to vector<8x128xf32>
    %435 = arith.mulf %434, %433 : vector<8x128xf32>
    %436 = arith.select %5, %433, %435 : vector<8x128xi1>, vector<8x128xf32>
    %437 = math.tanh %436 : vector<8x128xf32>
    %cst_197 = arith.constant 1.000000e+00 : f32
    %438 = vector.broadcast %cst_197 : f32 to vector<8x128xf32>
    %439 = arith.addf %437, %438 : vector<8x128xf32>
    %cst_198 = arith.constant 5.000000e-01 : f32
    %440 = vector.broadcast %cst_198 : f32 to vector<8x128xf32>
    %441 = arith.mulf %440, %439 : vector<8x128xf32>
    %442 = arith.select %5, %437, %441 : vector<8x128xi1>, vector<8x128xf32>
    %443 = vector.extract_strided_slice %442 {offsets = [0, 0], sizes = [8, 32], strides = [1, 1]} : vector<8x128xf32> to vector<8x32xf32>
    %444 = vector.extract_strided_slice %442 {offsets = [0, 32], sizes = [8, 32], strides = [1, 1]} : vector<8x128xf32> to vector<8x32xf32>
    %445 = vector.extract_strided_slice %442 {offsets = [0, 64], sizes = [8, 32], strides = [1, 1]} : vector<8x128xf32> to vector<8x32xf32>
    %446 = vector.extract_strided_slice %442 {offsets = [0, 96], sizes = [8, 32], strides = [1, 1]} : vector<8x128xf32> to vector<8x32xf32>
    %447 = arith.mulf %444, %426 : vector<8x32xf32>
    %448 = arith.mulf %443, %445 : vector<8x32xf32>
    %449 = arith.addf %447, %448 : vector<8x32xf32>
    %450 = math.tanh %449 : vector<8x32xf32>
    %451 = arith.mulf %446, %450 : vector<8x32xf32>
    %c3_i32_199 = arith.constant 3 : i32
    %452 = arith.index_cast %c3_i32_199 : i32 to index
    %c0_200 = arith.constant 0 : index
    %c0_201 = arith.constant 0 : index
    %453 = vector.load %arg11[%452, %c0_200, %c0_201] : memref<8x8x128xf32, #tpu.memory_space<vmem>>, vector<1x8x128xf32>
    %454 = vector.shape_cast %453 : vector<1x8x128xf32> to vector<8x128xf32>
    %cst_202 = arith.constant dense<0.000000e+00> : vector<8x128xf32>
    %455 = tpu.matmul %451, %381, %cst_202 {dimension_numbers = #tpu.dot_dimension_numbers<[1], [0], [0], [1], [0, 0, 1, 1], [], []>} : vector<8x32xf32>, vector<32x128xf32>, vector<8x128xf32> -> vector<8x128xf32>
    %456 = arith.addf %454, %455 : vector<8x128xf32>
    %cst_203 = arith.constant 5.000000e-01 : f32
    %457 = vector.broadcast %cst_203 : f32 to vector<8x128xf32>
    %458 = arith.mulf %457, %456 : vector<8x128xf32>
    %459 = arith.select %5, %456, %458 : vector<8x128xi1>, vector<8x128xf32>
    %460 = math.tanh %459 : vector<8x128xf32>
    %cst_204 = arith.constant 1.000000e+00 : f32
    %461 = vector.broadcast %cst_204 : f32 to vector<8x128xf32>
    %462 = arith.addf %460, %461 : vector<8x128xf32>
    %cst_205 = arith.constant 5.000000e-01 : f32
    %463 = vector.broadcast %cst_205 : f32 to vector<8x128xf32>
    %464 = arith.mulf %463, %462 : vector<8x128xf32>
    %465 = arith.select %5, %460, %464 : vector<8x128xi1>, vector<8x128xf32>
    %466 = vector.extract_strided_slice %465 {offsets = [0, 0], sizes = [8, 32], strides = [1, 1]} : vector<8x128xf32> to vector<8x32xf32>
    %467 = vector.extract_strided_slice %465 {offsets = [0, 32], sizes = [8, 32], strides = [1, 1]} : vector<8x128xf32> to vector<8x32xf32>
    %468 = vector.extract_strided_slice %465 {offsets = [0, 64], sizes = [8, 32], strides = [1, 1]} : vector<8x128xf32> to vector<8x32xf32>
    %469 = vector.extract_strided_slice %465 {offsets = [0, 96], sizes = [8, 32], strides = [1, 1]} : vector<8x128xf32> to vector<8x32xf32>
    %470 = arith.mulf %467, %449 : vector<8x32xf32>
    %471 = arith.mulf %466, %468 : vector<8x32xf32>
    %472 = arith.addf %470, %471 : vector<8x32xf32>
    %473 = math.tanh %472 : vector<8x32xf32>
    %474 = arith.mulf %469, %473 : vector<8x32xf32>
    %c4_i32_206 = arith.constant 4 : i32
    %475 = arith.index_cast %c4_i32_206 : i32 to index
    %c0_207 = arith.constant 0 : index
    %c0_208 = arith.constant 0 : index
    %476 = vector.load %arg11[%475, %c0_207, %c0_208] : memref<8x8x128xf32, #tpu.memory_space<vmem>>, vector<1x8x128xf32>
    %477 = vector.shape_cast %476 : vector<1x8x128xf32> to vector<8x128xf32>
    %cst_209 = arith.constant dense<0.000000e+00> : vector<8x128xf32>
    %478 = tpu.matmul %474, %381, %cst_209 {dimension_numbers = #tpu.dot_dimension_numbers<[1], [0], [0], [1], [0, 0, 1, 1], [], []>} : vector<8x32xf32>, vector<32x128xf32>, vector<8x128xf32> -> vector<8x128xf32>
    %479 = arith.addf %477, %478 : vector<8x128xf32>
    %cst_210 = arith.constant 5.000000e-01 : f32
    %480 = vector.broadcast %cst_210 : f32 to vector<8x128xf32>
    %481 = arith.mulf %480, %479 : vector<8x128xf32>
    %482 = arith.select %5, %479, %481 : vector<8x128xi1>, vector<8x128xf32>
    %483 = math.tanh %482 : vector<8x128xf32>
    %cst_211 = arith.constant 1.000000e+00 : f32
    %484 = vector.broadcast %cst_211 : f32 to vector<8x128xf32>
    %485 = arith.addf %483, %484 : vector<8x128xf32>
    %cst_212 = arith.constant 5.000000e-01 : f32
    %486 = vector.broadcast %cst_212 : f32 to vector<8x128xf32>
    %487 = arith.mulf %486, %485 : vector<8x128xf32>
    %488 = arith.select %5, %483, %487 : vector<8x128xi1>, vector<8x128xf32>
    %489 = vector.extract_strided_slice %488 {offsets = [0, 0], sizes = [8, 32], strides = [1, 1]} : vector<8x128xf32> to vector<8x32xf32>
    %490 = vector.extract_strided_slice %488 {offsets = [0, 32], sizes = [8, 32], strides = [1, 1]} : vector<8x128xf32> to vector<8x32xf32>
    %491 = vector.extract_strided_slice %488 {offsets = [0, 64], sizes = [8, 32], strides = [1, 1]} : vector<8x128xf32> to vector<8x32xf32>
    %492 = vector.extract_strided_slice %488 {offsets = [0, 96], sizes = [8, 32], strides = [1, 1]} : vector<8x128xf32> to vector<8x32xf32>
    %493 = arith.mulf %490, %472 : vector<8x32xf32>
    %494 = arith.mulf %489, %491 : vector<8x32xf32>
    %495 = arith.addf %493, %494 : vector<8x32xf32>
    %496 = math.tanh %495 : vector<8x32xf32>
    %497 = arith.mulf %492, %496 : vector<8x32xf32>
    %c5_i32_213 = arith.constant 5 : i32
    %498 = arith.index_cast %c5_i32_213 : i32 to index
    %c0_214 = arith.constant 0 : index
    %c0_215 = arith.constant 0 : index
    %499 = vector.load %arg11[%498, %c0_214, %c0_215] : memref<8x8x128xf32, #tpu.memory_space<vmem>>, vector<1x8x128xf32>
    %500 = vector.shape_cast %499 : vector<1x8x128xf32> to vector<8x128xf32>
    %cst_216 = arith.constant dense<0.000000e+00> : vector<8x128xf32>
    %501 = tpu.matmul %497, %381, %cst_216 {dimension_numbers = #tpu.dot_dimension_numbers<[1], [0], [0], [1], [0, 0, 1, 1], [], []>} : vector<8x32xf32>, vector<32x128xf32>, vector<8x128xf32> -> vector<8x128xf32>
    %502 = arith.addf %500, %501 : vector<8x128xf32>
    %cst_217 = arith.constant 5.000000e-01 : f32
    %503 = vector.broadcast %cst_217 : f32 to vector<8x128xf32>
    %504 = arith.mulf %503, %502 : vector<8x128xf32>
    %505 = arith.select %5, %502, %504 : vector<8x128xi1>, vector<8x128xf32>
    %506 = math.tanh %505 : vector<8x128xf32>
    %cst_218 = arith.constant 1.000000e+00 : f32
    %507 = vector.broadcast %cst_218 : f32 to vector<8x128xf32>
    %508 = arith.addf %506, %507 : vector<8x128xf32>
    %cst_219 = arith.constant 5.000000e-01 : f32
    %509 = vector.broadcast %cst_219 : f32 to vector<8x128xf32>
    %510 = arith.mulf %509, %508 : vector<8x128xf32>
    %511 = arith.select %5, %506, %510 : vector<8x128xi1>, vector<8x128xf32>
    %512 = vector.extract_strided_slice %511 {offsets = [0, 0], sizes = [8, 32], strides = [1, 1]} : vector<8x128xf32> to vector<8x32xf32>
    %513 = vector.extract_strided_slice %511 {offsets = [0, 32], sizes = [8, 32], strides = [1, 1]} : vector<8x128xf32> to vector<8x32xf32>
    %514 = vector.extract_strided_slice %511 {offsets = [0, 64], sizes = [8, 32], strides = [1, 1]} : vector<8x128xf32> to vector<8x32xf32>
    %515 = vector.extract_strided_slice %511 {offsets = [0, 96], sizes = [8, 32], strides = [1, 1]} : vector<8x128xf32> to vector<8x32xf32>
    %516 = arith.mulf %513, %495 : vector<8x32xf32>
    %517 = arith.mulf %512, %514 : vector<8x32xf32>
    %518 = arith.addf %516, %517 : vector<8x32xf32>
    %519 = math.tanh %518 : vector<8x32xf32>
    %520 = arith.mulf %515, %519 : vector<8x32xf32>
    %c6_i32_220 = arith.constant 6 : i32
    %521 = arith.index_cast %c6_i32_220 : i32 to index
    %c0_221 = arith.constant 0 : index
    %c0_222 = arith.constant 0 : index
    %522 = vector.load %arg11[%521, %c0_221, %c0_222] : memref<8x8x128xf32, #tpu.memory_space<vmem>>, vector<1x8x128xf32>
    %523 = vector.shape_cast %522 : vector<1x8x128xf32> to vector<8x128xf32>
    %cst_223 = arith.constant dense<0.000000e+00> : vector<8x128xf32>
    %524 = tpu.matmul %520, %381, %cst_223 {dimension_numbers = #tpu.dot_dimension_numbers<[1], [0], [0], [1], [0, 0, 1, 1], [], []>} : vector<8x32xf32>, vector<32x128xf32>, vector<8x128xf32> -> vector<8x128xf32>
    %525 = arith.addf %523, %524 : vector<8x128xf32>
    %cst_224 = arith.constant 5.000000e-01 : f32
    %526 = vector.broadcast %cst_224 : f32 to vector<8x128xf32>
    %527 = arith.mulf %526, %525 : vector<8x128xf32>
    %528 = arith.select %5, %525, %527 : vector<8x128xi1>, vector<8x128xf32>
    %529 = math.tanh %528 : vector<8x128xf32>
    %cst_225 = arith.constant 1.000000e+00 : f32
    %530 = vector.broadcast %cst_225 : f32 to vector<8x128xf32>
    %531 = arith.addf %529, %530 : vector<8x128xf32>
    %cst_226 = arith.constant 5.000000e-01 : f32
    %532 = vector.broadcast %cst_226 : f32 to vector<8x128xf32>
    %533 = arith.mulf %532, %531 : vector<8x128xf32>
    %534 = arith.select %5, %529, %533 : vector<8x128xi1>, vector<8x128xf32>
    %535 = vector.extract_strided_slice %534 {offsets = [0, 0], sizes = [8, 32], strides = [1, 1]} : vector<8x128xf32> to vector<8x32xf32>
    %536 = vector.extract_strided_slice %534 {offsets = [0, 32], sizes = [8, 32], strides = [1, 1]} : vector<8x128xf32> to vector<8x32xf32>
    %537 = vector.extract_strided_slice %534 {offsets = [0, 64], sizes = [8, 32], strides = [1, 1]} : vector<8x128xf32> to vector<8x32xf32>
    %538 = vector.extract_strided_slice %534 {offsets = [0, 96], sizes = [8, 32], strides = [1, 1]} : vector<8x128xf32> to vector<8x32xf32>
    %539 = arith.mulf %536, %518 : vector<8x32xf32>
    %540 = arith.mulf %535, %537 : vector<8x32xf32>
    %541 = arith.addf %539, %540 : vector<8x32xf32>
    %542 = math.tanh %541 : vector<8x32xf32>
    %543 = arith.mulf %538, %542 : vector<8x32xf32>
    %c7_i32_227 = arith.constant 7 : i32
    %544 = arith.index_cast %c7_i32_227 : i32 to index
    %c0_228 = arith.constant 0 : index
    %c0_229 = arith.constant 0 : index
    %545 = vector.load %arg11[%544, %c0_228, %c0_229] : memref<8x8x128xf32, #tpu.memory_space<vmem>>, vector<1x8x128xf32>
    %546 = vector.shape_cast %545 : vector<1x8x128xf32> to vector<8x128xf32>
    %cst_230 = arith.constant dense<0.000000e+00> : vector<8x128xf32>
    %547 = tpu.matmul %543, %381, %cst_230 {dimension_numbers = #tpu.dot_dimension_numbers<[1], [0], [0], [1], [0, 0, 1, 1], [], []>} : vector<8x32xf32>, vector<32x128xf32>, vector<8x128xf32> -> vector<8x128xf32>
    %548 = arith.addf %546, %547 : vector<8x128xf32>
    %cst_231 = arith.constant 5.000000e-01 : f32
    %549 = vector.broadcast %cst_231 : f32 to vector<8x128xf32>
    %550 = arith.mulf %549, %548 : vector<8x128xf32>
    %551 = arith.select %5, %548, %550 : vector<8x128xi1>, vector<8x128xf32>
    %552 = math.tanh %551 : vector<8x128xf32>
    %cst_232 = arith.constant 1.000000e+00 : f32
    %553 = vector.broadcast %cst_232 : f32 to vector<8x128xf32>
    %554 = arith.addf %552, %553 : vector<8x128xf32>
    %cst_233 = arith.constant 5.000000e-01 : f32
    %555 = vector.broadcast %cst_233 : f32 to vector<8x128xf32>
    %556 = arith.mulf %555, %554 : vector<8x128xf32>
    %557 = arith.select %5, %552, %556 : vector<8x128xi1>, vector<8x128xf32>
    %558 = vector.extract_strided_slice %557 {offsets = [0, 0], sizes = [8, 32], strides = [1, 1]} : vector<8x128xf32> to vector<8x32xf32>
    %559 = vector.extract_strided_slice %557 {offsets = [0, 32], sizes = [8, 32], strides = [1, 1]} : vector<8x128xf32> to vector<8x32xf32>
    %560 = vector.extract_strided_slice %557 {offsets = [0, 64], sizes = [8, 32], strides = [1, 1]} : vector<8x128xf32> to vector<8x32xf32>
    %561 = vector.extract_strided_slice %557 {offsets = [0, 96], sizes = [8, 32], strides = [1, 1]} : vector<8x128xf32> to vector<8x32xf32>
    %562 = arith.mulf %559, %541 : vector<8x32xf32>
    %563 = arith.mulf %558, %560 : vector<8x32xf32>
    %564 = arith.addf %562, %563 : vector<8x32xf32>
    %565 = math.tanh %564 : vector<8x32xf32>
    %566 = arith.mulf %561, %565 : vector<8x32xf32>
    %c8_i32_234 = arith.constant 8 : i32
    %cst_235 = arith.constant 0.000000e+00 : f32
    %567 = vector.broadcast %cst_235 : f32 to vector<8x32xf32>
    %568 = arith.maximumf %566, %567 : vector<8x32xf32>
    %c1_236 = arith.constant 1 : index
    %c0_237 = arith.constant 0 : index
    %c0_238 = arith.constant 0 : index
    %569 = vector.load %arg3[%c1_236, %c0_237, %c0_238] : memref<5x32x128xf32, #tpu.memory_space<vmem>>, vector<1x32x128xf32>
    %570 = vector.shape_cast %569 : vector<1x32x128xf32> to vector<32x128xf32>
    %cst_239 = arith.constant dense<0.000000e+00> : vector<8x128xf32>
    %571 = tpu.matmul %568, %570, %cst_239 {dimension_numbers = #tpu.dot_dimension_numbers<[1], [0], [0], [1], [0, 0, 1, 1], [], []>} : vector<8x32xf32>, vector<32x128xf32>, vector<8x128xf32> -> vector<8x128xf32>
    %c2 = arith.constant 2 : index
    %c0_240 = arith.constant 0 : index
    %c0_241 = arith.constant 0 : index
    %572 = vector.load %arg5[%c2, %c0_240, %c0_241] : memref<6x1x128xf32, #tpu.memory_space<vmem>>, vector<1x1x128xf32>
    %573 = vector.shape_cast %572 : vector<1x1x128xf32> to vector<1x128xf32>
    %574 = vector.broadcast %573 : vector<1x128xf32> to vector<8x128xf32>
    %575 = arith.addf %571, %574 : vector<8x128xf32>
    %c2_242 = arith.constant 2 : index
    %c0_243 = arith.constant 0 : index
    %c0_244 = arith.constant 0 : index
    %576 = vector.load %arg4[%c2_242, %c0_243, %c0_244] : memref<6x32x128xf32, #tpu.memory_space<vmem>>, vector<1x32x128xf32>
    %577 = vector.shape_cast %576 : vector<1x32x128xf32> to vector<32x128xf32>
    %cst_245 = arith.constant 0.000000e+00 : f32
    %578 = vector.broadcast %cst_245 : f32 to vector<8x32xf32>
    %c0_i32_246 = arith.constant 0 : i32
    %cst_247 = arith.constant dense<0.000000e+00> : vector<8x128xf32>
    %579 = tpu.matmul %578, %577, %cst_247 {dimension_numbers = #tpu.dot_dimension_numbers<[1], [0], [0], [1], [0, 0, 1, 1], [], []>} : vector<8x32xf32>, vector<32x128xf32>, vector<8x128xf32> -> vector<8x128xf32>
    %580 = arith.addf %575, %579 : vector<8x128xf32>
    %cst_248 = arith.constant 5.000000e-01 : f32
    %581 = vector.broadcast %cst_248 : f32 to vector<8x128xf32>
    %582 = arith.mulf %581, %580 : vector<8x128xf32>
    %583 = arith.select %5, %580, %582 : vector<8x128xi1>, vector<8x128xf32>
    %584 = math.tanh %583 : vector<8x128xf32>
    %cst_249 = arith.constant 1.000000e+00 : f32
    %585 = vector.broadcast %cst_249 : f32 to vector<8x128xf32>
    %586 = arith.addf %584, %585 : vector<8x128xf32>
    %cst_250 = arith.constant 5.000000e-01 : f32
    %587 = vector.broadcast %cst_250 : f32 to vector<8x128xf32>
    %588 = arith.mulf %587, %586 : vector<8x128xf32>
    %589 = arith.select %5, %584, %588 : vector<8x128xi1>, vector<8x128xf32>
    %590 = vector.extract_strided_slice %589 {offsets = [0, 0], sizes = [8, 32], strides = [1, 1]} : vector<8x128xf32> to vector<8x32xf32>
    %591 = vector.extract_strided_slice %589 {offsets = [0, 32], sizes = [8, 32], strides = [1, 1]} : vector<8x128xf32> to vector<8x32xf32>
    %592 = vector.extract_strided_slice %589 {offsets = [0, 64], sizes = [8, 32], strides = [1, 1]} : vector<8x128xf32> to vector<8x32xf32>
    %593 = vector.extract_strided_slice %589 {offsets = [0, 96], sizes = [8, 32], strides = [1, 1]} : vector<8x128xf32> to vector<8x32xf32>
    %594 = arith.mulf %591, %578 : vector<8x32xf32>
    %595 = arith.mulf %590, %592 : vector<8x32xf32>
    %596 = arith.addf %594, %595 : vector<8x32xf32>
    %597 = math.tanh %596 : vector<8x32xf32>
    %598 = arith.mulf %593, %597 : vector<8x32xf32>
    %599 = arith.index_cast %c0_i32_246 : i32 to index
    %c0_251 = arith.constant 0 : index
    %c0_252 = arith.constant 0 : index
    %600 = vector.load %arg10[%599, %c0_251, %c0_252] : memref<8x8x32xf32, #tpu.memory_space<vmem>>, vector<1x8x32xf32>
    %601 = vector.shape_cast %600 : vector<1x8x32xf32> to vector<8x32xf32>
    %602 = vector.shape_cast %598 : vector<8x32xf32> to vector<1x8x32xf32>
    tpu.vector_store %arg10[%599, %c0_251, %c0_252], %602 {strides = array<i32>} : memref<8x8x32xf32, #tpu.memory_space<vmem>>, vector<1x8x32xf32>,
    %c1_i32_253 = arith.constant 1 : i32
    %cst_254 = arith.constant dense<0.000000e+00> : vector<8x128xf32>
    %603 = tpu.matmul %598, %577, %cst_254 {dimension_numbers = #tpu.dot_dimension_numbers<[1], [0], [0], [1], [0, 0, 1, 1], [], []>} : vector<8x32xf32>, vector<32x128xf32>, vector<8x128xf32> -> vector<8x128xf32>
    %604 = arith.addf %575, %603 : vector<8x128xf32>
    %cst_255 = arith.constant 5.000000e-01 : f32
    %605 = vector.broadcast %cst_255 : f32 to vector<8x128xf32>
    %606 = arith.mulf %605, %604 : vector<8x128xf32>
    %607 = arith.select %5, %604, %606 : vector<8x128xi1>, vector<8x128xf32>
    %608 = math.tanh %607 : vector<8x128xf32>
    %cst_256 = arith.constant 1.000000e+00 : f32
    %609 = vector.broadcast %cst_256 : f32 to vector<8x128xf32>
    %610 = arith.addf %608, %609 : vector<8x128xf32>
    %cst_257 = arith.constant 5.000000e-01 : f32
    %611 = vector.broadcast %cst_257 : f32 to vector<8x128xf32>
    %612 = arith.mulf %611, %610 : vector<8x128xf32>
    %613 = arith.select %5, %608, %612 : vector<8x128xi1>, vector<8x128xf32>
    %614 = vector.extract_strided_slice %613 {offsets = [0, 0], sizes = [8, 32], strides = [1, 1]} : vector<8x128xf32> to vector<8x32xf32>
    %615 = vector.extract_strided_slice %613 {offsets = [0, 32], sizes = [8, 32], strides = [1, 1]} : vector<8x128xf32> to vector<8x32xf32>
    %616 = vector.extract_strided_slice %613 {offsets = [0, 64], sizes = [8, 32], strides = [1, 1]} : vector<8x128xf32> to vector<8x32xf32>
    %617 = vector.extract_strided_slice %613 {offsets = [0, 96], sizes = [8, 32], strides = [1, 1]} : vector<8x128xf32> to vector<8x32xf32>
    %618 = arith.mulf %615, %596 : vector<8x32xf32>
    %619 = arith.mulf %614, %616 : vector<8x32xf32>
    %620 = arith.addf %618, %619 : vector<8x32xf32>
    %621 = math.tanh %620 : vector<8x32xf32>
    %622 = arith.mulf %617, %621 : vector<8x32xf32>
    %623 = arith.index_cast %c1_i32_253 : i32 to index
    %c0_258 = arith.constant 0 : index
    %c0_259 = arith.constant 0 : index
    %624 = vector.load %arg10[%623, %c0_258, %c0_259] : memref<8x8x32xf32, #tpu.memory_space<vmem>>, vector<1x8x32xf32>
    %625 = vector.shape_cast %624 : vector<1x8x32xf32> to vector<8x32xf32>
    %626 = vector.shape_cast %622 : vector<8x32xf32> to vector<1x8x32xf32>
    tpu.vector_store %arg10[%623, %c0_258, %c0_259], %626 {strides = array<i32>} : memref<8x8x32xf32, #tpu.memory_space<vmem>>, vector<1x8x32xf32>,
    %c2_i32_260 = arith.constant 2 : i32
    %cst_261 = arith.constant dense<0.000000e+00> : vector<8x128xf32>
    %627 = tpu.matmul %622, %577, %cst_261 {dimension_numbers = #tpu.dot_dimension_numbers<[1], [0], [0], [1], [0, 0, 1, 1], [], []>} : vector<8x32xf32>, vector<32x128xf32>, vector<8x128xf32> -> vector<8x128xf32>
    %628 = arith.addf %575, %627 : vector<8x128xf32>
    %cst_262 = arith.constant 5.000000e-01 : f32
    %629 = vector.broadcast %cst_262 : f32 to vector<8x128xf32>
    %630 = arith.mulf %629, %628 : vector<8x128xf32>
    %631 = arith.select %5, %628, %630 : vector<8x128xi1>, vector<8x128xf32>
    %632 = math.tanh %631 : vector<8x128xf32>
    %cst_263 = arith.constant 1.000000e+00 : f32
    %633 = vector.broadcast %cst_263 : f32 to vector<8x128xf32>
    %634 = arith.addf %632, %633 : vector<8x128xf32>
    %cst_264 = arith.constant 5.000000e-01 : f32
    %635 = vector.broadcast %cst_264 : f32 to vector<8x128xf32>
    %636 = arith.mulf %635, %634 : vector<8x128xf32>
    %637 = arith.select %5, %632, %636 : vector<8x128xi1>, vector<8x128xf32>
    %638 = vector.extract_strided_slice %637 {offsets = [0, 0], sizes = [8, 32], strides = [1, 1]} : vector<8x128xf32> to vector<8x32xf32>
    %639 = vector.extract_strided_slice %637 {offsets = [0, 32], sizes = [8, 32], strides = [1, 1]} : vector<8x128xf32> to vector<8x32xf32>
    %640 = vector.extract_strided_slice %637 {offsets = [0, 64], sizes = [8, 32], strides = [1, 1]} : vector<8x128xf32> to vector<8x32xf32>
    %641 = vector.extract_strided_slice %637 {offsets = [0, 96], sizes = [8, 32], strides = [1, 1]} : vector<8x128xf32> to vector<8x32xf32>
    %642 = arith.mulf %639, %620 : vector<8x32xf32>
    %643 = arith.mulf %638, %640 : vector<8x32xf32>
    %644 = arith.addf %642, %643 : vector<8x32xf32>
    %645 = math.tanh %644 : vector<8x32xf32>
    %646 = arith.mulf %641, %645 : vector<8x32xf32>
    %647 = arith.index_cast %c2_i32_260 : i32 to index
    %c0_265 = arith.constant 0 : index
    %c0_266 = arith.constant 0 : index
    %648 = vector.load %arg10[%647, %c0_265, %c0_266] : memref<8x8x32xf32, #tpu.memory_space<vmem>>, vector<1x8x32xf32>
    %649 = vector.shape_cast %648 : vector<1x8x32xf32> to vector<8x32xf32>
    %650 = vector.shape_cast %646 : vector<8x32xf32> to vector<1x8x32xf32>
    tpu.vector_store %arg10[%647, %c0_265, %c0_266], %650 {strides = array<i32>} : memref<8x8x32xf32, #tpu.memory_space<vmem>>, vector<1x8x32xf32>,
    %c3_i32_267 = arith.constant 3 : i32
    %cst_268 = arith.constant dense<0.000000e+00> : vector<8x128xf32>
    %651 = tpu.matmul %646, %577, %cst_268 {dimension_numbers = #tpu.dot_dimension_numbers<[1], [0], [0], [1], [0, 0, 1, 1], [], []>} : vector<8x32xf32>, vector<32x128xf32>, vector<8x128xf32> -> vector<8x128xf32>
    %652 = arith.addf %575, %651 : vector<8x128xf32>
    %cst_269 = arith.constant 5.000000e-01 : f32
    %653 = vector.broadcast %cst_269 : f32 to vector<8x128xf32>
    %654 = arith.mulf %653, %652 : vector<8x128xf32>
    %655 = arith.select %5, %652, %654 : vector<8x128xi1>, vector<8x128xf32>
    %656 = math.tanh %655 : vector<8x128xf32>
    %cst_270 = arith.constant 1.000000e+00 : f32
    %657 = vector.broadcast %cst_270 : f32 to vector<8x128xf32>
    %658 = arith.addf %656, %657 : vector<8x128xf32>
    %cst_271 = arith.constant 5.000000e-01 : f32
    %659 = vector.broadcast %cst_271 : f32 to vector<8x128xf32>
    %660 = arith.mulf %659, %658 : vector<8x128xf32>
    %661 = arith.select %5, %656, %660 : vector<8x128xi1>, vector<8x128xf32>
    %662 = vector.extract_strided_slice %661 {offsets = [0, 0], sizes = [8, 32], strides = [1, 1]} : vector<8x128xf32> to vector<8x32xf32>
    %663 = vector.extract_strided_slice %661 {offsets = [0, 32], sizes = [8, 32], strides = [1, 1]} : vector<8x128xf32> to vector<8x32xf32>
    %664 = vector.extract_strided_slice %661 {offsets = [0, 64], sizes = [8, 32], strides = [1, 1]} : vector<8x128xf32> to vector<8x32xf32>
    %665 = vector.extract_strided_slice %661 {offsets = [0, 96], sizes = [8, 32], strides = [1, 1]} : vector<8x128xf32> to vector<8x32xf32>
    %666 = arith.mulf %663, %644 : vector<8x32xf32>
    %667 = arith.mulf %662, %664 : vector<8x32xf32>
    %668 = arith.addf %666, %667 : vector<8x32xf32>
    %669 = math.tanh %668 : vector<8x32xf32>
    %670 = arith.mulf %665, %669 : vector<8x32xf32>
    %671 = arith.index_cast %c3_i32_267 : i32 to index
    %c0_272 = arith.constant 0 : index
    %c0_273 = arith.constant 0 : index
    %672 = vector.load %arg10[%671, %c0_272, %c0_273] : memref<8x8x32xf32, #tpu.memory_space<vmem>>, vector<1x8x32xf32>
    %673 = vector.shape_cast %672 : vector<1x8x32xf32> to vector<8x32xf32>
    %674 = vector.shape_cast %670 : vector<8x32xf32> to vector<1x8x32xf32>
    tpu.vector_store %arg10[%671, %c0_272, %c0_273], %674 {strides = array<i32>} : memref<8x8x32xf32, #tpu.memory_space<vmem>>, vector<1x8x32xf32>,
    %c4_i32_274 = arith.constant 4 : i32
    %cst_275 = arith.constant dense<0.000000e+00> : vector<8x128xf32>
    %675 = tpu.matmul %670, %577, %cst_275 {dimension_numbers = #tpu.dot_dimension_numbers<[1], [0], [0], [1], [0, 0, 1, 1], [], []>} : vector<8x32xf32>, vector<32x128xf32>, vector<8x128xf32> -> vector<8x128xf32>
    %676 = arith.addf %575, %675 : vector<8x128xf32>
    %cst_276 = arith.constant 5.000000e-01 : f32
    %677 = vector.broadcast %cst_276 : f32 to vector<8x128xf32>
    %678 = arith.mulf %677, %676 : vector<8x128xf32>
    %679 = arith.select %5, %676, %678 : vector<8x128xi1>, vector<8x128xf32>
    %680 = math.tanh %679 : vector<8x128xf32>
    %cst_277 = arith.constant 1.000000e+00 : f32
    %681 = vector.broadcast %cst_277 : f32 to vector<8x128xf32>
    %682 = arith.addf %680, %681 : vector<8x128xf32>
    %cst_278 = arith.constant 5.000000e-01 : f32
    %683 = vector.broadcast %cst_278 : f32 to vector<8x128xf32>
    %684 = arith.mulf %683, %682 : vector<8x128xf32>
    %685 = arith.select %5, %680, %684 : vector<8x128xi1>, vector<8x128xf32>
    %686 = vector.extract_strided_slice %685 {offsets = [0, 0], sizes = [8, 32], strides = [1, 1]} : vector<8x128xf32> to vector<8x32xf32>
    %687 = vector.extract_strided_slice %685 {offsets = [0, 32], sizes = [8, 32], strides = [1, 1]} : vector<8x128xf32> to vector<8x32xf32>
    %688 = vector.extract_strided_slice %685 {offsets = [0, 64], sizes = [8, 32], strides = [1, 1]} : vector<8x128xf32> to vector<8x32xf32>
    %689 = vector.extract_strided_slice %685 {offsets = [0, 96], sizes = [8, 32], strides = [1, 1]} : vector<8x128xf32> to vector<8x32xf32>
    %690 = arith.mulf %687, %668 : vector<8x32xf32>
    %691 = arith.mulf %686, %688 : vector<8x32xf32>
    %692 = arith.addf %690, %691 : vector<8x32xf32>
    %693 = math.tanh %692 : vector<8x32xf32>
    %694 = arith.mulf %689, %693 : vector<8x32xf32>
    %695 = arith.index_cast %c4_i32_274 : i32 to index
    %c0_279 = arith.constant 0 : index
    %c0_280 = arith.constant 0 : index
    %696 = vector.load %arg10[%695, %c0_279, %c0_280] : memref<8x8x32xf32, #tpu.memory_space<vmem>>, vector<1x8x32xf32>
    %697 = vector.shape_cast %696 : vector<1x8x32xf32> to vector<8x32xf32>
    %698 = vector.shape_cast %694 : vector<8x32xf32> to vector<1x8x32xf32>
    tpu.vector_store %arg10[%695, %c0_279, %c0_280], %698 {strides = array<i32>} : memref<8x8x32xf32, #tpu.memory_space<vmem>>, vector<1x8x32xf32>,
    %c5_i32_281 = arith.constant 5 : i32
    %cst_282 = arith.constant dense<0.000000e+00> : vector<8x128xf32>
    %699 = tpu.matmul %694, %577, %cst_282 {dimension_numbers = #tpu.dot_dimension_numbers<[1], [0], [0], [1], [0, 0, 1, 1], [], []>} : vector<8x32xf32>, vector<32x128xf32>, vector<8x128xf32> -> vector<8x128xf32>
    %700 = arith.addf %575, %699 : vector<8x128xf32>
    %cst_283 = arith.constant 5.000000e-01 : f32
    %701 = vector.broadcast %cst_283 : f32 to vector<8x128xf32>
    %702 = arith.mulf %701, %700 : vector<8x128xf32>
    %703 = arith.select %5, %700, %702 : vector<8x128xi1>, vector<8x128xf32>
    %704 = math.tanh %703 : vector<8x128xf32>
    %cst_284 = arith.constant 1.000000e+00 : f32
    %705 = vector.broadcast %cst_284 : f32 to vector<8x128xf32>
    %706 = arith.addf %704, %705 : vector<8x128xf32>
    %cst_285 = arith.constant 5.000000e-01 : f32
    %707 = vector.broadcast %cst_285 : f32 to vector<8x128xf32>
    %708 = arith.mulf %707, %706 : vector<8x128xf32>
    %709 = arith.select %5, %704, %708 : vector<8x128xi1>, vector<8x128xf32>
    %710 = vector.extract_strided_slice %709 {offsets = [0, 0], sizes = [8, 32], strides = [1, 1]} : vector<8x128xf32> to vector<8x32xf32>
    %711 = vector.extract_strided_slice %709 {offsets = [0, 32], sizes = [8, 32], strides = [1, 1]} : vector<8x128xf32> to vector<8x32xf32>
    %712 = vector.extract_strided_slice %709 {offsets = [0, 64], sizes = [8, 32], strides = [1, 1]} : vector<8x128xf32> to vector<8x32xf32>
    %713 = vector.extract_strided_slice %709 {offsets = [0, 96], sizes = [8, 32], strides = [1, 1]} : vector<8x128xf32> to vector<8x32xf32>
    %714 = arith.mulf %711, %692 : vector<8x32xf32>
    %715 = arith.mulf %710, %712 : vector<8x32xf32>
    %716 = arith.addf %714, %715 : vector<8x32xf32>
    %717 = math.tanh %716 : vector<8x32xf32>
    %718 = arith.mulf %713, %717 : vector<8x32xf32>
    %719 = arith.index_cast %c5_i32_281 : i32 to index
    %c0_286 = arith.constant 0 : index
    %c0_287 = arith.constant 0 : index
    %720 = vector.load %arg10[%719, %c0_286, %c0_287] : memref<8x8x32xf32, #tpu.memory_space<vmem>>, vector<1x8x32xf32>
    %721 = vector.shape_cast %720 : vector<1x8x32xf32> to vector<8x32xf32>
    %722 = vector.shape_cast %718 : vector<8x32xf32> to vector<1x8x32xf32>
    tpu.vector_store %arg10[%719, %c0_286, %c0_287], %722 {strides = array<i32>} : memref<8x8x32xf32, #tpu.memory_space<vmem>>, vector<1x8x32xf32>,
    %c6_i32_288 = arith.constant 6 : i32
    %cst_289 = arith.constant dense<0.000000e+00> : vector<8x128xf32>
    %723 = tpu.matmul %718, %577, %cst_289 {dimension_numbers = #tpu.dot_dimension_numbers<[1], [0], [0], [1], [0, 0, 1, 1], [], []>} : vector<8x32xf32>, vector<32x128xf32>, vector<8x128xf32> -> vector<8x128xf32>
    %724 = arith.addf %575, %723 : vector<8x128xf32>
    %cst_290 = arith.constant 5.000000e-01 : f32
    %725 = vector.broadcast %cst_290 : f32 to vector<8x128xf32>
    %726 = arith.mulf %725, %724 : vector<8x128xf32>
    %727 = arith.select %5, %724, %726 : vector<8x128xi1>, vector<8x128xf32>
    %728 = math.tanh %727 : vector<8x128xf32>
    %cst_291 = arith.constant 1.000000e+00 : f32
    %729 = vector.broadcast %cst_291 : f32 to vector<8x128xf32>
    %730 = arith.addf %728, %729 : vector<8x128xf32>
    %cst_292 = arith.constant 5.000000e-01 : f32
    %731 = vector.broadcast %cst_292 : f32 to vector<8x128xf32>
    %732 = arith.mulf %731, %730 : vector<8x128xf32>
    %733 = arith.select %5, %728, %732 : vector<8x128xi1>, vector<8x128xf32>
    %734 = vector.extract_strided_slice %733 {offsets = [0, 0], sizes = [8, 32], strides = [1, 1]} : vector<8x128xf32> to vector<8x32xf32>
    %735 = vector.extract_strided_slice %733 {offsets = [0, 32], sizes = [8, 32], strides = [1, 1]} : vector<8x128xf32> to vector<8x32xf32>
    %736 = vector.extract_strided_slice %733 {offsets = [0, 64], sizes = [8, 32], strides = [1, 1]} : vector<8x128xf32> to vector<8x32xf32>
    %737 = vector.extract_strided_slice %733 {offsets = [0, 96], sizes = [8, 32], strides = [1, 1]} : vector<8x128xf32> to vector<8x32xf32>
    %738 = arith.mulf %735, %716 : vector<8x32xf32>
    %739 = arith.mulf %734, %736 : vector<8x32xf32>
    %740 = arith.addf %738, %739 : vector<8x32xf32>
    %741 = math.tanh %740 : vector<8x32xf32>
    %742 = arith.mulf %737, %741 : vector<8x32xf32>
    %743 = arith.index_cast %c6_i32_288 : i32 to index
    %c0_293 = arith.constant 0 : index
    %c0_294 = arith.constant 0 : index
    %744 = vector.load %arg10[%743, %c0_293, %c0_294] : memref<8x8x32xf32, #tpu.memory_space<vmem>>, vector<1x8x32xf32>
    %745 = vector.shape_cast %744 : vector<1x8x32xf32> to vector<8x32xf32>
    %746 = vector.shape_cast %742 : vector<8x32xf32> to vector<1x8x32xf32>
    tpu.vector_store %arg10[%743, %c0_293, %c0_294], %746 {strides = array<i32>} : memref<8x8x32xf32, #tpu.memory_space<vmem>>, vector<1x8x32xf32>,
    %c7_i32_295 = arith.constant 7 : i32
    %cst_296 = arith.constant dense<0.000000e+00> : vector<8x128xf32>
    %747 = tpu.matmul %742, %577, %cst_296 {dimension_numbers = #tpu.dot_dimension_numbers<[1], [0], [0], [1], [0, 0, 1, 1], [], []>} : vector<8x32xf32>, vector<32x128xf32>, vector<8x128xf32> -> vector<8x128xf32>
    %748 = arith.addf %575, %747 : vector<8x128xf32>
    %cst_297 = arith.constant 5.000000e-01 : f32
    %749 = vector.broadcast %cst_297 : f32 to vector<8x128xf32>
    %750 = arith.mulf %749, %748 : vector<8x128xf32>
    %751 = arith.select %5, %748, %750 : vector<8x128xi1>, vector<8x128xf32>
    %752 = math.tanh %751 : vector<8x128xf32>
    %cst_298 = arith.constant 1.000000e+00 : f32
    %753 = vector.broadcast %cst_298 : f32 to vector<8x128xf32>
    %754 = arith.addf %752, %753 : vector<8x128xf32>
    %cst_299 = arith.constant 5.000000e-01 : f32
    %755 = vector.broadcast %cst_299 : f32 to vector<8x128xf32>
    %756 = arith.mulf %755, %754 : vector<8x128xf32>
    %757 = arith.select %5, %752, %756 : vector<8x128xi1>, vector<8x128xf32>
    %758 = vector.extract_strided_slice %757 {offsets = [0, 0], sizes = [8, 32], strides = [1, 1]} : vector<8x128xf32> to vector<8x32xf32>
    %759 = vector.extract_strided_slice %757 {offsets = [0, 32], sizes = [8, 32], strides = [1, 1]} : vector<8x128xf32> to vector<8x32xf32>
    %760 = vector.extract_strided_slice %757 {offsets = [0, 64], sizes = [8, 32], strides = [1, 1]} : vector<8x128xf32> to vector<8x32xf32>
    %761 = vector.extract_strided_slice %757 {offsets = [0, 96], sizes = [8, 32], strides = [1, 1]} : vector<8x128xf32> to vector<8x32xf32>
    %762 = arith.mulf %759, %740 : vector<8x32xf32>
    %763 = arith.mulf %758, %760 : vector<8x32xf32>
    %764 = arith.addf %762, %763 : vector<8x32xf32>
    %765 = math.tanh %764 : vector<8x32xf32>
    %766 = arith.mulf %761, %765 : vector<8x32xf32>
    %767 = arith.index_cast %c7_i32_295 : i32 to index
    %c0_300 = arith.constant 0 : index
    %c0_301 = arith.constant 0 : index
    %768 = vector.load %arg10[%767, %c0_300, %c0_301] : memref<8x8x32xf32, #tpu.memory_space<vmem>>, vector<1x8x32xf32>
    %769 = vector.shape_cast %768 : vector<1x8x32xf32> to vector<8x32xf32>
    %770 = vector.shape_cast %766 : vector<8x32xf32> to vector<1x8x32xf32>
    tpu.vector_store %arg10[%767, %c0_300, %c0_301], %770 {strides = array<i32>} : memref<8x8x32xf32, #tpu.memory_space<vmem>>, vector<1x8x32xf32>,
    %c8_i32_302 = arith.constant 8 : i32
    %c2_303 = arith.constant 2 : index
    %c0_304 = arith.constant 0 : index
    %c0_305 = arith.constant 0 : index
    %771 = vector.load %arg3[%c2_303, %c0_304, %c0_305] : memref<5x32x128xf32, #tpu.memory_space<vmem>>, vector<1x32x128xf32>
    %772 = vector.shape_cast %771 : vector<1x32x128xf32> to vector<32x128xf32>
    %c3 = arith.constant 3 : index
    %c0_306 = arith.constant 0 : index
    %c0_307 = arith.constant 0 : index
    %773 = vector.load %arg5[%c3, %c0_306, %c0_307] : memref<6x1x128xf32, #tpu.memory_space<vmem>>, vector<1x1x128xf32>
    %774 = vector.shape_cast %773 : vector<1x1x128xf32> to vector<1x128xf32>
    %775 = vector.shape_cast %774 : vector<1x128xf32> to vector<1x128xf32>
    %776 = vector.broadcast %775 : vector<1x128xf32> to vector<8x128xf32>
    %c0_i32_308 = arith.constant 0 : i32
    %777 = arith.index_cast %c0_i32_308 : i32 to index
    %c0_309 = arith.constant 0 : index
    %c0_310 = arith.constant 0 : index
    %778 = vector.load %arg10[%777, %c0_309, %c0_310] : memref<8x8x32xf32, #tpu.memory_space<vmem>>, vector<1x8x32xf32>
    %779 = vector.shape_cast %778 : vector<1x8x32xf32> to vector<8x32xf32>
    %cst_311 = arith.constant dense<0.000000e+00> : vector<8x128xf32>
    %780 = tpu.matmul %779, %772, %cst_311 {dimension_numbers = #tpu.dot_dimension_numbers<[1], [0], [0], [1], [0, 0, 1, 1], [], []>} : vector<8x32xf32>, vector<32x128xf32>, vector<8x128xf32> -> vector<8x128xf32>
    %781 = arith.addf %780, %776 : vector<8x128xf32>
    %782 = arith.index_cast %c0_i32_308 : i32 to index
    %c0_312 = arith.constant 0 : index
    %c0_313 = arith.constant 0 : index
    %783 = vector.load %arg11[%782, %c0_312, %c0_313] : memref<8x8x128xf32, #tpu.memory_space<vmem>>, vector<1x8x128xf32>
    %784 = vector.shape_cast %783 : vector<1x8x128xf32> to vector<8x128xf32>
    %785 = vector.shape_cast %781 : vector<8x128xf32> to vector<1x8x128xf32>
    tpu.vector_store %arg11[%782, %c0_312, %c0_313], %785 {strides = array<i32>} : memref<8x8x128xf32, #tpu.memory_space<vmem>>, vector<1x8x128xf32>,
    %c1_i32_314 = arith.constant 1 : i32
    %786 = arith.index_cast %c1_i32_314 : i32 to index
    %c0_315 = arith.constant 0 : index
    %c0_316 = arith.constant 0 : index
    %787 = vector.load %arg10[%786, %c0_315, %c0_316] : memref<8x8x32xf32, #tpu.memory_space<vmem>>, vector<1x8x32xf32>
    %788 = vector.shape_cast %787 : vector<1x8x32xf32> to vector<8x32xf32>
    %cst_317 = arith.constant dense<0.000000e+00> : vector<8x128xf32>
    %789 = tpu.matmul %788, %772, %cst_317 {dimension_numbers = #tpu.dot_dimension_numbers<[1], [0], [0], [1], [0, 0, 1, 1], [], []>} : vector<8x32xf32>, vector<32x128xf32>, vector<8x128xf32> -> vector<8x128xf32>
    %790 = arith.addf %789, %776 : vector<8x128xf32>
    %791 = arith.index_cast %c1_i32_314 : i32 to index
    %c0_318 = arith.constant 0 : index
    %c0_319 = arith.constant 0 : index
    %792 = vector.load %arg11[%791, %c0_318, %c0_319] : memref<8x8x128xf32, #tpu.memory_space<vmem>>, vector<1x8x128xf32>
    %793 = vector.shape_cast %792 : vector<1x8x128xf32> to vector<8x128xf32>
    %794 = vector.shape_cast %790 : vector<8x128xf32> to vector<1x8x128xf32>
    tpu.vector_store %arg11[%791, %c0_318, %c0_319], %794 {strides = array<i32>} : memref<8x8x128xf32, #tpu.memory_space<vmem>>, vector<1x8x128xf32>,
    %c2_i32_320 = arith.constant 2 : i32
    %795 = arith.index_cast %c2_i32_320 : i32 to index
    %c0_321 = arith.constant 0 : index
    %c0_322 = arith.constant 0 : index
    %796 = vector.load %arg10[%795, %c0_321, %c0_322] : memref<8x8x32xf32, #tpu.memory_space<vmem>>, vector<1x8x32xf32>
    %797 = vector.shape_cast %796 : vector<1x8x32xf32> to vector<8x32xf32>
    %cst_323 = arith.constant dense<0.000000e+00> : vector<8x128xf32>
    %798 = tpu.matmul %797, %772, %cst_323 {dimension_numbers = #tpu.dot_dimension_numbers<[1], [0], [0], [1], [0, 0, 1, 1], [], []>} : vector<8x32xf32>, vector<32x128xf32>, vector<8x128xf32> -> vector<8x128xf32>
    %799 = arith.addf %798, %776 : vector<8x128xf32>
    %800 = arith.index_cast %c2_i32_320 : i32 to index
    %c0_324 = arith.constant 0 : index
    %c0_325 = arith.constant 0 : index
    %801 = vector.load %arg11[%800, %c0_324, %c0_325] : memref<8x8x128xf32, #tpu.memory_space<vmem>>, vector<1x8x128xf32>
    %802 = vector.shape_cast %801 : vector<1x8x128xf32> to vector<8x128xf32>
    %803 = vector.shape_cast %799 : vector<8x128xf32> to vector<1x8x128xf32>
    tpu.vector_store %arg11[%800, %c0_324, %c0_325], %803 {strides = array<i32>} : memref<8x8x128xf32, #tpu.memory_space<vmem>>, vector<1x8x128xf32>,
    %c3_i32_326 = arith.constant 3 : i32
    %804 = arith.index_cast %c3_i32_326 : i32 to index
    %c0_327 = arith.constant 0 : index
    %c0_328 = arith.constant 0 : index
    %805 = vector.load %arg10[%804, %c0_327, %c0_328] : memref<8x8x32xf32, #tpu.memory_space<vmem>>, vector<1x8x32xf32>
    %806 = vector.shape_cast %805 : vector<1x8x32xf32> to vector<8x32xf32>
    %cst_329 = arith.constant dense<0.000000e+00> : vector<8x128xf32>
    %807 = tpu.matmul %806, %772, %cst_329 {dimension_numbers = #tpu.dot_dimension_numbers<[1], [0], [0], [1], [0, 0, 1, 1], [], []>} : vector<8x32xf32>, vector<32x128xf32>, vector<8x128xf32> -> vector<8x128xf32>
    %808 = arith.addf %807, %776 : vector<8x128xf32>
    %809 = arith.index_cast %c3_i32_326 : i32 to index
    %c0_330 = arith.constant 0 : index
    %c0_331 = arith.constant 0 : index
    %810 = vector.load %arg11[%809, %c0_330, %c0_331] : memref<8x8x128xf32, #tpu.memory_space<vmem>>, vector<1x8x128xf32>
    %811 = vector.shape_cast %810 : vector<1x8x128xf32> to vector<8x128xf32>
    %812 = vector.shape_cast %808 : vector<8x128xf32> to vector<1x8x128xf32>
    tpu.vector_store %arg11[%809, %c0_330, %c0_331], %812 {strides = array<i32>} : memref<8x8x128xf32, #tpu.memory_space<vmem>>, vector<1x8x128xf32>,
    %c4_i32_332 = arith.constant 4 : i32
    %813 = arith.index_cast %c4_i32_332 : i32 to index
    %c0_333 = arith.constant 0 : index
    %c0_334 = arith.constant 0 : index
    %814 = vector.load %arg10[%813, %c0_333, %c0_334] : memref<8x8x32xf32, #tpu.memory_space<vmem>>, vector<1x8x32xf32>
    %815 = vector.shape_cast %814 : vector<1x8x32xf32> to vector<8x32xf32>
    %cst_335 = arith.constant dense<0.000000e+00> : vector<8x128xf32>
    %816 = tpu.matmul %815, %772, %cst_335 {dimension_numbers = #tpu.dot_dimension_numbers<[1], [0], [0], [1], [0, 0, 1, 1], [], []>} : vector<8x32xf32>, vector<32x128xf32>, vector<8x128xf32> -> vector<8x128xf32>
    %817 = arith.addf %816, %776 : vector<8x128xf32>
    %818 = arith.index_cast %c4_i32_332 : i32 to index
    %c0_336 = arith.constant 0 : index
    %c0_337 = arith.constant 0 : index
    %819 = vector.load %arg11[%818, %c0_336, %c0_337] : memref<8x8x128xf32, #tpu.memory_space<vmem>>, vector<1x8x128xf32>
    %820 = vector.shape_cast %819 : vector<1x8x128xf32> to vector<8x128xf32>
    %821 = vector.shape_cast %817 : vector<8x128xf32> to vector<1x8x128xf32>
    tpu.vector_store %arg11[%818, %c0_336, %c0_337], %821 {strides = array<i32>} : memref<8x8x128xf32, #tpu.memory_space<vmem>>, vector<1x8x128xf32>,
    %c5_i32_338 = arith.constant 5 : i32
    %822 = arith.index_cast %c5_i32_338 : i32 to index
    %c0_339 = arith.constant 0 : index
    %c0_340 = arith.constant 0 : index
    %823 = vector.load %arg10[%822, %c0_339, %c0_340] : memref<8x8x32xf32, #tpu.memory_space<vmem>>, vector<1x8x32xf32>
    %824 = vector.shape_cast %823 : vector<1x8x32xf32> to vector<8x32xf32>
    %cst_341 = arith.constant dense<0.000000e+00> : vector<8x128xf32>
    %825 = tpu.matmul %824, %772, %cst_341 {dimension_numbers = #tpu.dot_dimension_numbers<[1], [0], [0], [1], [0, 0, 1, 1], [], []>} : vector<8x32xf32>, vector<32x128xf32>, vector<8x128xf32> -> vector<8x128xf32>
    %826 = arith.addf %825, %776 : vector<8x128xf32>
    %827 = arith.index_cast %c5_i32_338 : i32 to index
    %c0_342 = arith.constant 0 : index
    %c0_343 = arith.constant 0 : index
    %828 = vector.load %arg11[%827, %c0_342, %c0_343] : memref<8x8x128xf32, #tpu.memory_space<vmem>>, vector<1x8x128xf32>
    %829 = vector.shape_cast %828 : vector<1x8x128xf32> to vector<8x128xf32>
    %830 = vector.shape_cast %826 : vector<8x128xf32> to vector<1x8x128xf32>
    tpu.vector_store %arg11[%827, %c0_342, %c0_343], %830 {strides = array<i32>} : memref<8x8x128xf32, #tpu.memory_space<vmem>>, vector<1x8x128xf32>,
    %c6_i32_344 = arith.constant 6 : i32
    %831 = arith.index_cast %c6_i32_344 : i32 to index
    %c0_345 = arith.constant 0 : index
    %c0_346 = arith.constant 0 : index
    %832 = vector.load %arg10[%831, %c0_345, %c0_346] : memref<8x8x32xf32, #tpu.memory_space<vmem>>, vector<1x8x32xf32>
    %833 = vector.shape_cast %832 : vector<1x8x32xf32> to vector<8x32xf32>
    %cst_347 = arith.constant dense<0.000000e+00> : vector<8x128xf32>
    %834 = tpu.matmul %833, %772, %cst_347 {dimension_numbers = #tpu.dot_dimension_numbers<[1], [0], [0], [1], [0, 0, 1, 1], [], []>} : vector<8x32xf32>, vector<32x128xf32>, vector<8x128xf32> -> vector<8x128xf32>
    %835 = arith.addf %834, %776 : vector<8x128xf32>
    %836 = arith.index_cast %c6_i32_344 : i32 to index
    %c0_348 = arith.constant 0 : index
    %c0_349 = arith.constant 0 : index
    %837 = vector.load %arg11[%836, %c0_348, %c0_349] : memref<8x8x128xf32, #tpu.memory_space<vmem>>, vector<1x8x128xf32>
    %838 = vector.shape_cast %837 : vector<1x8x128xf32> to vector<8x128xf32>
    %839 = vector.shape_cast %835 : vector<8x128xf32> to vector<1x8x128xf32>
    tpu.vector_store %arg11[%836, %c0_348, %c0_349], %839 {strides = array<i32>} : memref<8x8x128xf32, #tpu.memory_space<vmem>>, vector<1x8x128xf32>,
    %c7_i32_350 = arith.constant 7 : i32
    %840 = arith.index_cast %c7_i32_350 : i32 to index
    %c0_351 = arith.constant 0 : index
    %c0_352 = arith.constant 0 : index
    %841 = vector.load %arg10[%840, %c0_351, %c0_352] : memref<8x8x32xf32, #tpu.memory_space<vmem>>, vector<1x8x32xf32>
    %842 = vector.shape_cast %841 : vector<1x8x32xf32> to vector<8x32xf32>
    %cst_353 = arith.constant dense<0.000000e+00> : vector<8x128xf32>
    %843 = tpu.matmul %842, %772, %cst_353 {dimension_numbers = #tpu.dot_dimension_numbers<[1], [0], [0], [1], [0, 0, 1, 1], [], []>} : vector<8x32xf32>, vector<32x128xf32>, vector<8x128xf32> -> vector<8x128xf32>
    %844 = arith.addf %843, %776 : vector<8x128xf32>
    %845 = arith.index_cast %c7_i32_350 : i32 to index
    %c0_354 = arith.constant 0 : index
    %c0_355 = arith.constant 0 : index
    %846 = vector.load %arg11[%845, %c0_354, %c0_355] : memref<8x8x128xf32, #tpu.memory_space<vmem>>, vector<1x8x128xf32>
    %847 = vector.shape_cast %846 : vector<1x8x128xf32> to vector<8x128xf32>
    %848 = vector.shape_cast %844 : vector<8x128xf32> to vector<1x8x128xf32>
    tpu.vector_store %arg11[%845, %c0_354, %c0_355], %848 {strides = array<i32>} : memref<8x8x128xf32, #tpu.memory_space<vmem>>, vector<1x8x128xf32>,
    %c8_i32_356 = arith.constant 8 : i32
    %c3_357 = arith.constant 3 : index
    %c0_358 = arith.constant 0 : index
    %c0_359 = arith.constant 0 : index
    %849 = vector.load %arg4[%c3_357, %c0_358, %c0_359] : memref<6x32x128xf32, #tpu.memory_space<vmem>>, vector<1x32x128xf32>
    %850 = vector.shape_cast %849 : vector<1x32x128xf32> to vector<32x128xf32>
    %cst_360 = arith.constant 0.000000e+00 : f32
    %851 = vector.broadcast %cst_360 : f32 to vector<8x32xf32>
    %c0_i32_361 = arith.constant 0 : i32
    %852 = arith.index_cast %c0_i32_361 : i32 to index
    %c0_362 = arith.constant 0 : index
    %c0_363 = arith.constant 0 : index
    %853 = vector.load %arg11[%852, %c0_362, %c0_363] : memref<8x8x128xf32, #tpu.memory_space<vmem>>, vector<1x8x128xf32>
    %854 = vector.shape_cast %853 : vector<1x8x128xf32> to vector<8x128xf32>
    %cst_364 = arith.constant dense<0.000000e+00> : vector<8x128xf32>
    %855 = tpu.matmul %851, %850, %cst_364 {dimension_numbers = #tpu.dot_dimension_numbers<[1], [0], [0], [1], [0, 0, 1, 1], [], []>} : vector<8x32xf32>, vector<32x128xf32>, vector<8x128xf32> -> vector<8x128xf32>
    %856 = arith.addf %854, %855 : vector<8x128xf32>
    %cst_365 = arith.constant 5.000000e-01 : f32
    %857 = vector.broadcast %cst_365 : f32 to vector<8x128xf32>
    %858 = arith.mulf %857, %856 : vector<8x128xf32>
    %859 = arith.select %5, %856, %858 : vector<8x128xi1>, vector<8x128xf32>
    %860 = math.tanh %859 : vector<8x128xf32>
    %cst_366 = arith.constant 1.000000e+00 : f32
    %861 = vector.broadcast %cst_366 : f32 to vector<8x128xf32>
    %862 = arith.addf %860, %861 : vector<8x128xf32>
    %cst_367 = arith.constant 5.000000e-01 : f32
    %863 = vector.broadcast %cst_367 : f32 to vector<8x128xf32>
    %864 = arith.mulf %863, %862 : vector<8x128xf32>
    %865 = arith.select %5, %860, %864 : vector<8x128xi1>, vector<8x128xf32>
    %866 = vector.extract_strided_slice %865 {offsets = [0, 0], sizes = [8, 32], strides = [1, 1]} : vector<8x128xf32> to vector<8x32xf32>
    %867 = vector.extract_strided_slice %865 {offsets = [0, 32], sizes = [8, 32], strides = [1, 1]} : vector<8x128xf32> to vector<8x32xf32>
    %868 = vector.extract_strided_slice %865 {offsets = [0, 64], sizes = [8, 32], strides = [1, 1]} : vector<8x128xf32> to vector<8x32xf32>
    %869 = vector.extract_strided_slice %865 {offsets = [0, 96], sizes = [8, 32], strides = [1, 1]} : vector<8x128xf32> to vector<8x32xf32>
    %870 = arith.mulf %867, %851 : vector<8x32xf32>
    %871 = arith.mulf %866, %868 : vector<8x32xf32>
    %872 = arith.addf %870, %871 : vector<8x32xf32>
    %873 = math.tanh %872 : vector<8x32xf32>
    %874 = arith.mulf %869, %873 : vector<8x32xf32>
    %875 = arith.index_cast %c0_i32_361 : i32 to index
    %c0_368 = arith.constant 0 : index
    %c0_369 = arith.constant 0 : index
    %876 = vector.load %arg9[%875, %c0_368, %c0_369] : memref<8x8x32xf32, #tpu.memory_space<vmem>>, vector<1x8x32xf32>
    %877 = vector.shape_cast %876 : vector<1x8x32xf32> to vector<8x32xf32>
    %878 = vector.shape_cast %874 : vector<8x32xf32> to vector<1x8x32xf32>
    tpu.vector_store %arg9[%875, %c0_368, %c0_369], %878 {strides = array<i32>} : memref<8x8x32xf32, #tpu.memory_space<vmem>>, vector<1x8x32xf32>,
    %c1_i32_370 = arith.constant 1 : i32
    %879 = arith.index_cast %c1_i32_370 : i32 to index
    %c0_371 = arith.constant 0 : index
    %c0_372 = arith.constant 0 : index
    %880 = vector.load %arg11[%879, %c0_371, %c0_372] : memref<8x8x128xf32, #tpu.memory_space<vmem>>, vector<1x8x128xf32>
    %881 = vector.shape_cast %880 : vector<1x8x128xf32> to vector<8x128xf32>
    %cst_373 = arith.constant dense<0.000000e+00> : vector<8x128xf32>
    %882 = tpu.matmul %874, %850, %cst_373 {dimension_numbers = #tpu.dot_dimension_numbers<[1], [0], [0], [1], [0, 0, 1, 1], [], []>} : vector<8x32xf32>, vector<32x128xf32>, vector<8x128xf32> -> vector<8x128xf32>
    %883 = arith.addf %881, %882 : vector<8x128xf32>
    %cst_374 = arith.constant 5.000000e-01 : f32
    %884 = vector.broadcast %cst_374 : f32 to vector<8x128xf32>
    %885 = arith.mulf %884, %883 : vector<8x128xf32>
    %886 = arith.select %5, %883, %885 : vector<8x128xi1>, vector<8x128xf32>
    %887 = math.tanh %886 : vector<8x128xf32>
    %cst_375 = arith.constant 1.000000e+00 : f32
    %888 = vector.broadcast %cst_375 : f32 to vector<8x128xf32>
    %889 = arith.addf %887, %888 : vector<8x128xf32>
    %cst_376 = arith.constant 5.000000e-01 : f32
    %890 = vector.broadcast %cst_376 : f32 to vector<8x128xf32>
    %891 = arith.mulf %890, %889 : vector<8x128xf32>
    %892 = arith.select %5, %887, %891 : vector<8x128xi1>, vector<8x128xf32>
    %893 = vector.extract_strided_slice %892 {offsets = [0, 0], sizes = [8, 32], strides = [1, 1]} : vector<8x128xf32> to vector<8x32xf32>
    %894 = vector.extract_strided_slice %892 {offsets = [0, 32], sizes = [8, 32], strides = [1, 1]} : vector<8x128xf32> to vector<8x32xf32>
    %895 = vector.extract_strided_slice %892 {offsets = [0, 64], sizes = [8, 32], strides = [1, 1]} : vector<8x128xf32> to vector<8x32xf32>
    %896 = vector.extract_strided_slice %892 {offsets = [0, 96], sizes = [8, 32], strides = [1, 1]} : vector<8x128xf32> to vector<8x32xf32>
    %897 = arith.mulf %894, %872 : vector<8x32xf32>
    %898 = arith.mulf %893, %895 : vector<8x32xf32>
    %899 = arith.addf %897, %898 : vector<8x32xf32>
    %900 = math.tanh %899 : vector<8x32xf32>
    %901 = arith.mulf %896, %900 : vector<8x32xf32>
    %902 = arith.index_cast %c1_i32_370 : i32 to index
    %c0_377 = arith.constant 0 : index
    %c0_378 = arith.constant 0 : index
    %903 = vector.load %arg9[%902, %c0_377, %c0_378] : memref<8x8x32xf32, #tpu.memory_space<vmem>>, vector<1x8x32xf32>
    %904 = vector.shape_cast %903 : vector<1x8x32xf32> to vector<8x32xf32>
    %905 = vector.shape_cast %901 : vector<8x32xf32> to vector<1x8x32xf32>
    tpu.vector_store %arg9[%902, %c0_377, %c0_378], %905 {strides = array<i32>} : memref<8x8x32xf32, #tpu.memory_space<vmem>>, vector<1x8x32xf32>,
    %c2_i32_379 = arith.constant 2 : i32
    %906 = arith.index_cast %c2_i32_379 : i32 to index
    %c0_380 = arith.constant 0 : index
    %c0_381 = arith.constant 0 : index
    %907 = vector.load %arg11[%906, %c0_380, %c0_381] : memref<8x8x128xf32, #tpu.memory_space<vmem>>, vector<1x8x128xf32>
    %908 = vector.shape_cast %907 : vector<1x8x128xf32> to vector<8x128xf32>
    %cst_382 = arith.constant dense<0.000000e+00> : vector<8x128xf32>
    %909 = tpu.matmul %901, %850, %cst_382 {dimension_numbers = #tpu.dot_dimension_numbers<[1], [0], [0], [1], [0, 0, 1, 1], [], []>} : vector<8x32xf32>, vector<32x128xf32>, vector<8x128xf32> -> vector<8x128xf32>
    %910 = arith.addf %908, %909 : vector<8x128xf32>
    %cst_383 = arith.constant 5.000000e-01 : f32
    %911 = vector.broadcast %cst_383 : f32 to vector<8x128xf32>
    %912 = arith.mulf %911, %910 : vector<8x128xf32>
    %913 = arith.select %5, %910, %912 : vector<8x128xi1>, vector<8x128xf32>
    %914 = math.tanh %913 : vector<8x128xf32>
    %cst_384 = arith.constant 1.000000e+00 : f32
    %915 = vector.broadcast %cst_384 : f32 to vector<8x128xf32>
    %916 = arith.addf %914, %915 : vector<8x128xf32>
    %cst_385 = arith.constant 5.000000e-01 : f32
    %917 = vector.broadcast %cst_385 : f32 to vector<8x128xf32>
    %918 = arith.mulf %917, %916 : vector<8x128xf32>
    %919 = arith.select %5, %914, %918 : vector<8x128xi1>, vector<8x128xf32>
    %920 = vector.extract_strided_slice %919 {offsets = [0, 0], sizes = [8, 32], strides = [1, 1]} : vector<8x128xf32> to vector<8x32xf32>
    %921 = vector.extract_strided_slice %919 {offsets = [0, 32], sizes = [8, 32], strides = [1, 1]} : vector<8x128xf32> to vector<8x32xf32>
    %922 = vector.extract_strided_slice %919 {offsets = [0, 64], sizes = [8, 32], strides = [1, 1]} : vector<8x128xf32> to vector<8x32xf32>
    %923 = vector.extract_strided_slice %919 {offsets = [0, 96], sizes = [8, 32], strides = [1, 1]} : vector<8x128xf32> to vector<8x32xf32>
    %924 = arith.mulf %921, %899 : vector<8x32xf32>
    %925 = arith.mulf %920, %922 : vector<8x32xf32>
    %926 = arith.addf %924, %925 : vector<8x32xf32>
    %927 = math.tanh %926 : vector<8x32xf32>
    %928 = arith.mulf %923, %927 : vector<8x32xf32>
    %929 = arith.index_cast %c2_i32_379 : i32 to index
    %c0_386 = arith.constant 0 : index
    %c0_387 = arith.constant 0 : index
    %930 = vector.load %arg9[%929, %c0_386, %c0_387] : memref<8x8x32xf32, #tpu.memory_space<vmem>>, vector<1x8x32xf32>
    %931 = vector.shape_cast %930 : vector<1x8x32xf32> to vector<8x32xf32>
    %932 = vector.shape_cast %928 : vector<8x32xf32> to vector<1x8x32xf32>
    tpu.vector_store %arg9[%929, %c0_386, %c0_387], %932 {strides = array<i32>} : memref<8x8x32xf32, #tpu.memory_space<vmem>>, vector<1x8x32xf32>,
    %c3_i32_388 = arith.constant 3 : i32
    %933 = arith.index_cast %c3_i32_388 : i32 to index
    %c0_389 = arith.constant 0 : index
    %c0_390 = arith.constant 0 : index
    %934 = vector.load %arg11[%933, %c0_389, %c0_390] : memref<8x8x128xf32, #tpu.memory_space<vmem>>, vector<1x8x128xf32>
    %935 = vector.shape_cast %934 : vector<1x8x128xf32> to vector<8x128xf32>
    %cst_391 = arith.constant dense<0.000000e+00> : vector<8x128xf32>
    %936 = tpu.matmul %928, %850, %cst_391 {dimension_numbers = #tpu.dot_dimension_numbers<[1], [0], [0], [1], [0, 0, 1, 1], [], []>} : vector<8x32xf32>, vector<32x128xf32>, vector<8x128xf32> -> vector<8x128xf32>
    %937 = arith.addf %935, %936 : vector<8x128xf32>
    %cst_392 = arith.constant 5.000000e-01 : f32
    %938 = vector.broadcast %cst_392 : f32 to vector<8x128xf32>
    %939 = arith.mulf %938, %937 : vector<8x128xf32>
    %940 = arith.select %5, %937, %939 : vector<8x128xi1>, vector<8x128xf32>
    %941 = math.tanh %940 : vector<8x128xf32>
    %cst_393 = arith.constant 1.000000e+00 : f32
    %942 = vector.broadcast %cst_393 : f32 to vector<8x128xf32>
    %943 = arith.addf %941, %942 : vector<8x128xf32>
    %cst_394 = arith.constant 5.000000e-01 : f32
    %944 = vector.broadcast %cst_394 : f32 to vector<8x128xf32>
    %945 = arith.mulf %944, %943 : vector<8x128xf32>
    %946 = arith.select %5, %941, %945 : vector<8x128xi1>, vector<8x128xf32>
    %947 = vector.extract_strided_slice %946 {offsets = [0, 0], sizes = [8, 32], strides = [1, 1]} : vector<8x128xf32> to vector<8x32xf32>
    %948 = vector.extract_strided_slice %946 {offsets = [0, 32], sizes = [8, 32], strides = [1, 1]} : vector<8x128xf32> to vector<8x32xf32>
    %949 = vector.extract_strided_slice %946 {offsets = [0, 64], sizes = [8, 32], strides = [1, 1]} : vector<8x128xf32> to vector<8x32xf32>
    %950 = vector.extract_strided_slice %946 {offsets = [0, 96], sizes = [8, 32], strides = [1, 1]} : vector<8x128xf32> to vector<8x32xf32>
    %951 = arith.mulf %948, %926 : vector<8x32xf32>
    %952 = arith.mulf %947, %949 : vector<8x32xf32>
    %953 = arith.addf %951, %952 : vector<8x32xf32>
    %954 = math.tanh %953 : vector<8x32xf32>
    %955 = arith.mulf %950, %954 : vector<8x32xf32>
    %956 = arith.index_cast %c3_i32_388 : i32 to index
    %c0_395 = arith.constant 0 : index
    %c0_396 = arith.constant 0 : index
    %957 = vector.load %arg9[%956, %c0_395, %c0_396] : memref<8x8x32xf32, #tpu.memory_space<vmem>>, vector<1x8x32xf32>
    %958 = vector.shape_cast %957 : vector<1x8x32xf32> to vector<8x32xf32>
    %959 = vector.shape_cast %955 : vector<8x32xf32> to vector<1x8x32xf32>
    tpu.vector_store %arg9[%956, %c0_395, %c0_396], %959 {strides = array<i32>} : memref<8x8x32xf32, #tpu.memory_space<vmem>>, vector<1x8x32xf32>,
    %c4_i32_397 = arith.constant 4 : i32
    %960 = arith.index_cast %c4_i32_397 : i32 to index
    %c0_398 = arith.constant 0 : index
    %c0_399 = arith.constant 0 : index
    %961 = vector.load %arg11[%960, %c0_398, %c0_399] : memref<8x8x128xf32, #tpu.memory_space<vmem>>, vector<1x8x128xf32>
    %962 = vector.shape_cast %961 : vector<1x8x128xf32> to vector<8x128xf32>
    %cst_400 = arith.constant dense<0.000000e+00> : vector<8x128xf32>
    %963 = tpu.matmul %955, %850, %cst_400 {dimension_numbers = #tpu.dot_dimension_numbers<[1], [0], [0], [1], [0, 0, 1, 1], [], []>} : vector<8x32xf32>, vector<32x128xf32>, vector<8x128xf32> -> vector<8x128xf32>
    %964 = arith.addf %962, %963 : vector<8x128xf32>
    %cst_401 = arith.constant 5.000000e-01 : f32
    %965 = vector.broadcast %cst_401 : f32 to vector<8x128xf32>
    %966 = arith.mulf %965, %964 : vector<8x128xf32>
    %967 = arith.select %5, %964, %966 : vector<8x128xi1>, vector<8x128xf32>
    %968 = math.tanh %967 : vector<8x128xf32>
    %cst_402 = arith.constant 1.000000e+00 : f32
    %969 = vector.broadcast %cst_402 : f32 to vector<8x128xf32>
    %970 = arith.addf %968, %969 : vector<8x128xf32>
    %cst_403 = arith.constant 5.000000e-01 : f32
    %971 = vector.broadcast %cst_403 : f32 to vector<8x128xf32>
    %972 = arith.mulf %971, %970 : vector<8x128xf32>
    %973 = arith.select %5, %968, %972 : vector<8x128xi1>, vector<8x128xf32>
    %974 = vector.extract_strided_slice %973 {offsets = [0, 0], sizes = [8, 32], strides = [1, 1]} : vector<8x128xf32> to vector<8x32xf32>
    %975 = vector.extract_strided_slice %973 {offsets = [0, 32], sizes = [8, 32], strides = [1, 1]} : vector<8x128xf32> to vector<8x32xf32>
    %976 = vector.extract_strided_slice %973 {offsets = [0, 64], sizes = [8, 32], strides = [1, 1]} : vector<8x128xf32> to vector<8x32xf32>
    %977 = vector.extract_strided_slice %973 {offsets = [0, 96], sizes = [8, 32], strides = [1, 1]} : vector<8x128xf32> to vector<8x32xf32>
    %978 = arith.mulf %975, %953 : vector<8x32xf32>
    %979 = arith.mulf %974, %976 : vector<8x32xf32>
    %980 = arith.addf %978, %979 : vector<8x32xf32>
    %981 = math.tanh %980 : vector<8x32xf32>
    %982 = arith.mulf %977, %981 : vector<8x32xf32>
    %983 = arith.index_cast %c4_i32_397 : i32 to index
    %c0_404 = arith.constant 0 : index
    %c0_405 = arith.constant 0 : index
    %984 = vector.load %arg9[%983, %c0_404, %c0_405] : memref<8x8x32xf32, #tpu.memory_space<vmem>>, vector<1x8x32xf32>
    %985 = vector.shape_cast %984 : vector<1x8x32xf32> to vector<8x32xf32>
    %986 = vector.shape_cast %982 : vector<8x32xf32> to vector<1x8x32xf32>
    tpu.vector_store %arg9[%983, %c0_404, %c0_405], %986 {strides = array<i32>} : memref<8x8x32xf32, #tpu.memory_space<vmem>>, vector<1x8x32xf32>,
    %c5_i32_406 = arith.constant 5 : i32
    %987 = arith.index_cast %c5_i32_406 : i32 to index
    %c0_407 = arith.constant 0 : index
    %c0_408 = arith.constant 0 : index
    %988 = vector.load %arg11[%987, %c0_407, %c0_408] : memref<8x8x128xf32, #tpu.memory_space<vmem>>, vector<1x8x128xf32>
    %989 = vector.shape_cast %988 : vector<1x8x128xf32> to vector<8x128xf32>
    %cst_409 = arith.constant dense<0.000000e+00> : vector<8x128xf32>
    %990 = tpu.matmul %982, %850, %cst_409 {dimension_numbers = #tpu.dot_dimension_numbers<[1], [0], [0], [1], [0, 0, 1, 1], [], []>} : vector<8x32xf32>, vector<32x128xf32>, vector<8x128xf32> -> vector<8x128xf32>
    %991 = arith.addf %989, %990 : vector<8x128xf32>
    %cst_410 = arith.constant 5.000000e-01 : f32
    %992 = vector.broadcast %cst_410 : f32 to vector<8x128xf32>
    %993 = arith.mulf %992, %991 : vector<8x128xf32>
    %994 = arith.select %5, %991, %993 : vector<8x128xi1>, vector<8x128xf32>
    %995 = math.tanh %994 : vector<8x128xf32>
    %cst_411 = arith.constant 1.000000e+00 : f32
    %996 = vector.broadcast %cst_411 : f32 to vector<8x128xf32>
    %997 = arith.addf %995, %996 : vector<8x128xf32>
    %cst_412 = arith.constant 5.000000e-01 : f32
    %998 = vector.broadcast %cst_412 : f32 to vector<8x128xf32>
    %999 = arith.mulf %998, %997 : vector<8x128xf32>
    %1000 = arith.select %5, %995, %999 : vector<8x128xi1>, vector<8x128xf32>
    %1001 = vector.extract_strided_slice %1000 {offsets = [0, 0], sizes = [8, 32], strides = [1, 1]} : vector<8x128xf32> to vector<8x32xf32>
    %1002 = vector.extract_strided_slice %1000 {offsets = [0, 32], sizes = [8, 32], strides = [1, 1]} : vector<8x128xf32> to vector<8x32xf32>
    %1003 = vector.extract_strided_slice %1000 {offsets = [0, 64], sizes = [8, 32], strides = [1, 1]} : vector<8x128xf32> to vector<8x32xf32>
    %1004 = vector.extract_strided_slice %1000 {offsets = [0, 96], sizes = [8, 32], strides = [1, 1]} : vector<8x128xf32> to vector<8x32xf32>
    %1005 = arith.mulf %1002, %980 : vector<8x32xf32>
    %1006 = arith.mulf %1001, %1003 : vector<8x32xf32>
    %1007 = arith.addf %1005, %1006 : vector<8x32xf32>
    %1008 = math.tanh %1007 : vector<8x32xf32>
    %1009 = arith.mulf %1004, %1008 : vector<8x32xf32>
    %1010 = arith.index_cast %c5_i32_406 : i32 to index
    %c0_413 = arith.constant 0 : index
    %c0_414 = arith.constant 0 : index
    %1011 = vector.load %arg9[%1010, %c0_413, %c0_414] : memref<8x8x32xf32, #tpu.memory_space<vmem>>, vector<1x8x32xf32>
    %1012 = vector.shape_cast %1011 : vector<1x8x32xf32> to vector<8x32xf32>
    %1013 = vector.shape_cast %1009 : vector<8x32xf32> to vector<1x8x32xf32>
    tpu.vector_store %arg9[%1010, %c0_413, %c0_414], %1013 {strides = array<i32>} : memref<8x8x32xf32, #tpu.memory_space<vmem>>, vector<1x8x32xf32>,
    %c6_i32_415 = arith.constant 6 : i32
    %1014 = arith.index_cast %c6_i32_415 : i32 to index
    %c0_416 = arith.constant 0 : index
    %c0_417 = arith.constant 0 : index
    %1015 = vector.load %arg11[%1014, %c0_416, %c0_417] : memref<8x8x128xf32, #tpu.memory_space<vmem>>, vector<1x8x128xf32>
    %1016 = vector.shape_cast %1015 : vector<1x8x128xf32> to vector<8x128xf32>
    %cst_418 = arith.constant dense<0.000000e+00> : vector<8x128xf32>
    %1017 = tpu.matmul %1009, %850, %cst_418 {dimension_numbers = #tpu.dot_dimension_numbers<[1], [0], [0], [1], [0, 0, 1, 1], [], []>} : vector<8x32xf32>, vector<32x128xf32>, vector<8x128xf32> -> vector<8x128xf32>
    %1018 = arith.addf %1016, %1017 : vector<8x128xf32>
    %cst_419 = arith.constant 5.000000e-01 : f32
    %1019 = vector.broadcast %cst_419 : f32 to vector<8x128xf32>
    %1020 = arith.mulf %1019, %1018 : vector<8x128xf32>
    %1021 = arith.select %5, %1018, %1020 : vector<8x128xi1>, vector<8x128xf32>
    %1022 = math.tanh %1021 : vector<8x128xf32>
    %cst_420 = arith.constant 1.000000e+00 : f32
    %1023 = vector.broadcast %cst_420 : f32 to vector<8x128xf32>
    %1024 = arith.addf %1022, %1023 : vector<8x128xf32>
    %cst_421 = arith.constant 5.000000e-01 : f32
    %1025 = vector.broadcast %cst_421 : f32 to vector<8x128xf32>
    %1026 = arith.mulf %1025, %1024 : vector<8x128xf32>
    %1027 = arith.select %5, %1022, %1026 : vector<8x128xi1>, vector<8x128xf32>
    %1028 = vector.extract_strided_slice %1027 {offsets = [0, 0], sizes = [8, 32], strides = [1, 1]} : vector<8x128xf32> to vector<8x32xf32>
    %1029 = vector.extract_strided_slice %1027 {offsets = [0, 32], sizes = [8, 32], strides = [1, 1]} : vector<8x128xf32> to vector<8x32xf32>
    %1030 = vector.extract_strided_slice %1027 {offsets = [0, 64], sizes = [8, 32], strides = [1, 1]} : vector<8x128xf32> to vector<8x32xf32>
    %1031 = vector.extract_strided_slice %1027 {offsets = [0, 96], sizes = [8, 32], strides = [1, 1]} : vector<8x128xf32> to vector<8x32xf32>
    %1032 = arith.mulf %1029, %1007 : vector<8x32xf32>
    %1033 = arith.mulf %1028, %1030 : vector<8x32xf32>
    %1034 = arith.addf %1032, %1033 : vector<8x32xf32>
    %1035 = math.tanh %1034 : vector<8x32xf32>
    %1036 = arith.mulf %1031, %1035 : vector<8x32xf32>
    %1037 = arith.index_cast %c6_i32_415 : i32 to index
    %c0_422 = arith.constant 0 : index
    %c0_423 = arith.constant 0 : index
    %1038 = vector.load %arg9[%1037, %c0_422, %c0_423] : memref<8x8x32xf32, #tpu.memory_space<vmem>>, vector<1x8x32xf32>
    %1039 = vector.shape_cast %1038 : vector<1x8x32xf32> to vector<8x32xf32>
    %1040 = vector.shape_cast %1036 : vector<8x32xf32> to vector<1x8x32xf32>
    tpu.vector_store %arg9[%1037, %c0_422, %c0_423], %1040 {strides = array<i32>} : memref<8x8x32xf32, #tpu.memory_space<vmem>>, vector<1x8x32xf32>,
    %c7_i32_424 = arith.constant 7 : i32
    %1041 = arith.index_cast %c7_i32_424 : i32 to index
    %c0_425 = arith.constant 0 : index
    %c0_426 = arith.constant 0 : index
    %1042 = vector.load %arg11[%1041, %c0_425, %c0_426] : memref<8x8x128xf32, #tpu.memory_space<vmem>>, vector<1x8x128xf32>
    %1043 = vector.shape_cast %1042 : vector<1x8x128xf32> to vector<8x128xf32>
    %cst_427 = arith.constant dense<0.000000e+00> : vector<8x128xf32>
    %1044 = tpu.matmul %1036, %850, %cst_427 {dimension_numbers = #tpu.dot_dimension_numbers<[1], [0], [0], [1], [0, 0, 1, 1], [], []>} : vector<8x32xf32>, vector<32x128xf32>, vector<8x128xf32> -> vector<8x128xf32>
    %1045 = arith.addf %1043, %1044 : vector<8x128xf32>
    %cst_428 = arith.constant 5.000000e-01 : f32
    %1046 = vector.broadcast %cst_428 : f32 to vector<8x128xf32>
    %1047 = arith.mulf %1046, %1045 : vector<8x128xf32>
    %1048 = arith.select %5, %1045, %1047 : vector<8x128xi1>, vector<8x128xf32>
    %1049 = math.tanh %1048 : vector<8x128xf32>
    %cst_429 = arith.constant 1.000000e+00 : f32
    %1050 = vector.broadcast %cst_429 : f32 to vector<8x128xf32>
    %1051 = arith.addf %1049, %1050 : vector<8x128xf32>
    %cst_430 = arith.constant 5.000000e-01 : f32
    %1052 = vector.broadcast %cst_430 : f32 to vector<8x128xf32>
    %1053 = arith.mulf %1052, %1051 : vector<8x128xf32>
    %1054 = arith.select %5, %1049, %1053 : vector<8x128xi1>, vector<8x128xf32>
    %1055 = vector.extract_strided_slice %1054 {offsets = [0, 0], sizes = [8, 32], strides = [1, 1]} : vector<8x128xf32> to vector<8x32xf32>
    %1056 = vector.extract_strided_slice %1054 {offsets = [0, 32], sizes = [8, 32], strides = [1, 1]} : vector<8x128xf32> to vector<8x32xf32>
    %1057 = vector.extract_strided_slice %1054 {offsets = [0, 64], sizes = [8, 32], strides = [1, 1]} : vector<8x128xf32> to vector<8x32xf32>
    %1058 = vector.extract_strided_slice %1054 {offsets = [0, 96], sizes = [8, 32], strides = [1, 1]} : vector<8x128xf32> to vector<8x32xf32>
    %1059 = arith.mulf %1056, %1034 : vector<8x32xf32>
    %1060 = arith.mulf %1055, %1057 : vector<8x32xf32>
    %1061 = arith.addf %1059, %1060 : vector<8x32xf32>
    %1062 = math.tanh %1061 : vector<8x32xf32>
    %1063 = arith.mulf %1058, %1062 : vector<8x32xf32>
    %1064 = arith.index_cast %c7_i32_424 : i32 to index
    %c0_431 = arith.constant 0 : index
    %c0_432 = arith.constant 0 : index
    %1065 = vector.load %arg9[%1064, %c0_431, %c0_432] : memref<8x8x32xf32, #tpu.memory_space<vmem>>, vector<1x8x32xf32>
    %1066 = vector.shape_cast %1065 : vector<1x8x32xf32> to vector<8x32xf32>
    %1067 = vector.shape_cast %1063 : vector<8x32xf32> to vector<1x8x32xf32>
    tpu.vector_store %arg9[%1064, %c0_431, %c0_432], %1067 {strides = array<i32>} : memref<8x8x32xf32, #tpu.memory_space<vmem>>, vector<1x8x32xf32>,
    %c8_i32_433 = arith.constant 8 : i32
    %c3_434 = arith.constant 3 : index
    %c0_435 = arith.constant 0 : index
    %c0_436 = arith.constant 0 : index
    %1068 = vector.load %arg3[%c3_434, %c0_435, %c0_436] : memref<5x32x128xf32, #tpu.memory_space<vmem>>, vector<1x32x128xf32>
    %1069 = vector.shape_cast %1068 : vector<1x32x128xf32> to vector<32x128xf32>
    %c4 = arith.constant 4 : index
    %c0_437 = arith.constant 0 : index
    %c0_438 = arith.constant 0 : index
    %1070 = vector.load %arg5[%c4, %c0_437, %c0_438] : memref<6x1x128xf32, #tpu.memory_space<vmem>>, vector<1x1x128xf32>
    %1071 = vector.shape_cast %1070 : vector<1x1x128xf32> to vector<1x128xf32>
    %1072 = vector.shape_cast %1071 : vector<1x128xf32> to vector<1x128xf32>
    %1073 = vector.broadcast %1072 : vector<1x128xf32> to vector<8x128xf32>
    %c0_i32_439 = arith.constant 0 : i32
    %1074 = arith.index_cast %c0_i32_439 : i32 to index
    %c0_440 = arith.constant 0 : index
    %c0_441 = arith.constant 0 : index
    %1075 = vector.load %arg9[%1074, %c0_440, %c0_441] : memref<8x8x32xf32, #tpu.memory_space<vmem>>, vector<1x8x32xf32>
    %1076 = vector.shape_cast %1075 : vector<1x8x32xf32> to vector<8x32xf32>
    %cst_442 = arith.constant dense<0.000000e+00> : vector<8x128xf32>
    %1077 = tpu.matmul %1076, %1069, %cst_442 {dimension_numbers = #tpu.dot_dimension_numbers<[1], [0], [0], [1], [0, 0, 1, 1], [], []>} : vector<8x32xf32>, vector<32x128xf32>, vector<8x128xf32> -> vector<8x128xf32>
    %1078 = arith.addf %1077, %1073 : vector<8x128xf32>
    %1079 = arith.index_cast %c0_i32_439 : i32 to index
    %c0_443 = arith.constant 0 : index
    %c0_444 = arith.constant 0 : index
    %1080 = vector.load %arg11[%1079, %c0_443, %c0_444] : memref<8x8x128xf32, #tpu.memory_space<vmem>>, vector<1x8x128xf32>
    %1081 = vector.shape_cast %1080 : vector<1x8x128xf32> to vector<8x128xf32>
    %1082 = vector.shape_cast %1078 : vector<8x128xf32> to vector<1x8x128xf32>
    tpu.vector_store %arg11[%1079, %c0_443, %c0_444], %1082 {strides = array<i32>} : memref<8x8x128xf32, #tpu.memory_space<vmem>>, vector<1x8x128xf32>,
    %c1_i32_445 = arith.constant 1 : i32
    %1083 = arith.index_cast %c1_i32_445 : i32 to index
    %c0_446 = arith.constant 0 : index
    %c0_447 = arith.constant 0 : index
    %1084 = vector.load %arg9[%1083, %c0_446, %c0_447] : memref<8x8x32xf32, #tpu.memory_space<vmem>>, vector<1x8x32xf32>
    %1085 = vector.shape_cast %1084 : vector<1x8x32xf32> to vector<8x32xf32>
    %cst_448 = arith.constant dense<0.000000e+00> : vector<8x128xf32>
    %1086 = tpu.matmul %1085, %1069, %cst_448 {dimension_numbers = #tpu.dot_dimension_numbers<[1], [0], [0], [1], [0, 0, 1, 1], [], []>} : vector<8x32xf32>, vector<32x128xf32>, vector<8x128xf32> -> vector<8x128xf32>
    %1087 = arith.addf %1086, %1073 : vector<8x128xf32>
    %1088 = arith.index_cast %c1_i32_445 : i32 to index
    %c0_449 = arith.constant 0 : index
    %c0_450 = arith.constant 0 : index
    %1089 = vector.load %arg11[%1088, %c0_449, %c0_450] : memref<8x8x128xf32, #tpu.memory_space<vmem>>, vector<1x8x128xf32>
    %1090 = vector.shape_cast %1089 : vector<1x8x128xf32> to vector<8x128xf32>
    %1091 = vector.shape_cast %1087 : vector<8x128xf32> to vector<1x8x128xf32>
    tpu.vector_store %arg11[%1088, %c0_449, %c0_450], %1091 {strides = array<i32>} : memref<8x8x128xf32, #tpu.memory_space<vmem>>, vector<1x8x128xf32>,
    %c2_i32_451 = arith.constant 2 : i32
    %1092 = arith.index_cast %c2_i32_451 : i32 to index
    %c0_452 = arith.constant 0 : index
    %c0_453 = arith.constant 0 : index
    %1093 = vector.load %arg9[%1092, %c0_452, %c0_453] : memref<8x8x32xf32, #tpu.memory_space<vmem>>, vector<1x8x32xf32>
    %1094 = vector.shape_cast %1093 : vector<1x8x32xf32> to vector<8x32xf32>
    %cst_454 = arith.constant dense<0.000000e+00> : vector<8x128xf32>
    %1095 = tpu.matmul %1094, %1069, %cst_454 {dimension_numbers = #tpu.dot_dimension_numbers<[1], [0], [0], [1], [0, 0, 1, 1], [], []>} : vector<8x32xf32>, vector<32x128xf32>, vector<8x128xf32> -> vector<8x128xf32>
    %1096 = arith.addf %1095, %1073 : vector<8x128xf32>
    %1097 = arith.index_cast %c2_i32_451 : i32 to index
    %c0_455 = arith.constant 0 : index
    %c0_456 = arith.constant 0 : index
    %1098 = vector.load %arg11[%1097, %c0_455, %c0_456] : memref<8x8x128xf32, #tpu.memory_space<vmem>>, vector<1x8x128xf32>
    %1099 = vector.shape_cast %1098 : vector<1x8x128xf32> to vector<8x128xf32>
    %1100 = vector.shape_cast %1096 : vector<8x128xf32> to vector<1x8x128xf32>
    tpu.vector_store %arg11[%1097, %c0_455, %c0_456], %1100 {strides = array<i32>} : memref<8x8x128xf32, #tpu.memory_space<vmem>>, vector<1x8x128xf32>,
    %c3_i32_457 = arith.constant 3 : i32
    %1101 = arith.index_cast %c3_i32_457 : i32 to index
    %c0_458 = arith.constant 0 : index
    %c0_459 = arith.constant 0 : index
    %1102 = vector.load %arg9[%1101, %c0_458, %c0_459] : memref<8x8x32xf32, #tpu.memory_space<vmem>>, vector<1x8x32xf32>
    %1103 = vector.shape_cast %1102 : vector<1x8x32xf32> to vector<8x32xf32>
    %cst_460 = arith.constant dense<0.000000e+00> : vector<8x128xf32>
    %1104 = tpu.matmul %1103, %1069, %cst_460 {dimension_numbers = #tpu.dot_dimension_numbers<[1], [0], [0], [1], [0, 0, 1, 1], [], []>} : vector<8x32xf32>, vector<32x128xf32>, vector<8x128xf32> -> vector<8x128xf32>
    %1105 = arith.addf %1104, %1073 : vector<8x128xf32>
    %1106 = arith.index_cast %c3_i32_457 : i32 to index
    %c0_461 = arith.constant 0 : index
    %c0_462 = arith.constant 0 : index
    %1107 = vector.load %arg11[%1106, %c0_461, %c0_462] : memref<8x8x128xf32, #tpu.memory_space<vmem>>, vector<1x8x128xf32>
    %1108 = vector.shape_cast %1107 : vector<1x8x128xf32> to vector<8x128xf32>
    %1109 = vector.shape_cast %1105 : vector<8x128xf32> to vector<1x8x128xf32>
    tpu.vector_store %arg11[%1106, %c0_461, %c0_462], %1109 {strides = array<i32>} : memref<8x8x128xf32, #tpu.memory_space<vmem>>, vector<1x8x128xf32>,
    %c4_i32_463 = arith.constant 4 : i32
    %1110 = arith.index_cast %c4_i32_463 : i32 to index
    %c0_464 = arith.constant 0 : index
    %c0_465 = arith.constant 0 : index
    %1111 = vector.load %arg9[%1110, %c0_464, %c0_465] : memref<8x8x32xf32, #tpu.memory_space<vmem>>, vector<1x8x32xf32>
    %1112 = vector.shape_cast %1111 : vector<1x8x32xf32> to vector<8x32xf32>
    %cst_466 = arith.constant dense<0.000000e+00> : vector<8x128xf32>
    %1113 = tpu.matmul %1112, %1069, %cst_466 {dimension_numbers = #tpu.dot_dimension_numbers<[1], [0], [0], [1], [0, 0, 1, 1], [], []>} : vector<8x32xf32>, vector<32x128xf32>, vector<8x128xf32> -> vector<8x128xf32>
    %1114 = arith.addf %1113, %1073 : vector<8x128xf32>
    %1115 = arith.index_cast %c4_i32_463 : i32 to index
    %c0_467 = arith.constant 0 : index
    %c0_468 = arith.constant 0 : index
    %1116 = vector.load %arg11[%1115, %c0_467, %c0_468] : memref<8x8x128xf32, #tpu.memory_space<vmem>>, vector<1x8x128xf32>
    %1117 = vector.shape_cast %1116 : vector<1x8x128xf32> to vector<8x128xf32>
    %1118 = vector.shape_cast %1114 : vector<8x128xf32> to vector<1x8x128xf32>
    tpu.vector_store %arg11[%1115, %c0_467, %c0_468], %1118 {strides = array<i32>} : memref<8x8x128xf32, #tpu.memory_space<vmem>>, vector<1x8x128xf32>,
    %c5_i32_469 = arith.constant 5 : i32
    %1119 = arith.index_cast %c5_i32_469 : i32 to index
    %c0_470 = arith.constant 0 : index
    %c0_471 = arith.constant 0 : index
    %1120 = vector.load %arg9[%1119, %c0_470, %c0_471] : memref<8x8x32xf32, #tpu.memory_space<vmem>>, vector<1x8x32xf32>
    %1121 = vector.shape_cast %1120 : vector<1x8x32xf32> to vector<8x32xf32>
    %cst_472 = arith.constant dense<0.000000e+00> : vector<8x128xf32>
    %1122 = tpu.matmul %1121, %1069, %cst_472 {dimension_numbers = #tpu.dot_dimension_numbers<[1], [0], [0], [1], [0, 0, 1, 1], [], []>} : vector<8x32xf32>, vector<32x128xf32>, vector<8x128xf32> -> vector<8x128xf32>
    %1123 = arith.addf %1122, %1073 : vector<8x128xf32>
    %1124 = arith.index_cast %c5_i32_469 : i32 to index
    %c0_473 = arith.constant 0 : index
    %c0_474 = arith.constant 0 : index
    %1125 = vector.load %arg11[%1124, %c0_473, %c0_474] : memref<8x8x128xf32, #tpu.memory_space<vmem>>, vector<1x8x128xf32>
    %1126 = vector.shape_cast %1125 : vector<1x8x128xf32> to vector<8x128xf32>
    %1127 = vector.shape_cast %1123 : vector<8x128xf32> to vector<1x8x128xf32>
    tpu.vector_store %arg11[%1124, %c0_473, %c0_474], %1127 {strides = array<i32>} : memref<8x8x128xf32, #tpu.memory_space<vmem>>, vector<1x8x128xf32>,
    %c6_i32_475 = arith.constant 6 : i32
    %1128 = arith.index_cast %c6_i32_475 : i32 to index
    %c0_476 = arith.constant 0 : index
    %c0_477 = arith.constant 0 : index
    %1129 = vector.load %arg9[%1128, %c0_476, %c0_477] : memref<8x8x32xf32, #tpu.memory_space<vmem>>, vector<1x8x32xf32>
    %1130 = vector.shape_cast %1129 : vector<1x8x32xf32> to vector<8x32xf32>
    %cst_478 = arith.constant dense<0.000000e+00> : vector<8x128xf32>
    %1131 = tpu.matmul %1130, %1069, %cst_478 {dimension_numbers = #tpu.dot_dimension_numbers<[1], [0], [0], [1], [0, 0, 1, 1], [], []>} : vector<8x32xf32>, vector<32x128xf32>, vector<8x128xf32> -> vector<8x128xf32>
    %1132 = arith.addf %1131, %1073 : vector<8x128xf32>
    %1133 = arith.index_cast %c6_i32_475 : i32 to index
    %c0_479 = arith.constant 0 : index
    %c0_480 = arith.constant 0 : index
    %1134 = vector.load %arg11[%1133, %c0_479, %c0_480] : memref<8x8x128xf32, #tpu.memory_space<vmem>>, vector<1x8x128xf32>
    %1135 = vector.shape_cast %1134 : vector<1x8x128xf32> to vector<8x128xf32>
    %1136 = vector.shape_cast %1132 : vector<8x128xf32> to vector<1x8x128xf32>
    tpu.vector_store %arg11[%1133, %c0_479, %c0_480], %1136 {strides = array<i32>} : memref<8x8x128xf32, #tpu.memory_space<vmem>>, vector<1x8x128xf32>,
    %c7_i32_481 = arith.constant 7 : i32
    %1137 = arith.index_cast %c7_i32_481 : i32 to index
    %c0_482 = arith.constant 0 : index
    %c0_483 = arith.constant 0 : index
    %1138 = vector.load %arg9[%1137, %c0_482, %c0_483] : memref<8x8x32xf32, #tpu.memory_space<vmem>>, vector<1x8x32xf32>
    %1139 = vector.shape_cast %1138 : vector<1x8x32xf32> to vector<8x32xf32>
    %cst_484 = arith.constant dense<0.000000e+00> : vector<8x128xf32>
    %1140 = tpu.matmul %1139, %1069, %cst_484 {dimension_numbers = #tpu.dot_dimension_numbers<[1], [0], [0], [1], [0, 0, 1, 1], [], []>} : vector<8x32xf32>, vector<32x128xf32>, vector<8x128xf32> -> vector<8x128xf32>
    %1141 = arith.addf %1140, %1073 : vector<8x128xf32>
    %1142 = arith.index_cast %c7_i32_481 : i32 to index
    %c0_485 = arith.constant 0 : index
    %c0_486 = arith.constant 0 : index
    %1143 = vector.load %arg11[%1142, %c0_485, %c0_486] : memref<8x8x128xf32, #tpu.memory_space<vmem>>, vector<1x8x128xf32>
    %1144 = vector.shape_cast %1143 : vector<1x8x128xf32> to vector<8x128xf32>
    %1145 = vector.shape_cast %1141 : vector<8x128xf32> to vector<1x8x128xf32>
    tpu.vector_store %arg11[%1142, %c0_485, %c0_486], %1145 {strides = array<i32>} : memref<8x8x128xf32, #tpu.memory_space<vmem>>, vector<1x8x128xf32>,
    %c8_i32_487 = arith.constant 8 : i32
    %c4_488 = arith.constant 4 : index
    %c0_489 = arith.constant 0 : index
    %c0_490 = arith.constant 0 : index
    %1146 = vector.load %arg4[%c4_488, %c0_489, %c0_490] : memref<6x32x128xf32, #tpu.memory_space<vmem>>, vector<1x32x128xf32>
    %1147 = vector.shape_cast %1146 : vector<1x32x128xf32> to vector<32x128xf32>
    %cst_491 = arith.constant 0.000000e+00 : f32
    %1148 = vector.broadcast %cst_491 : f32 to vector<8x32xf32>
    %c0_i32_492 = arith.constant 0 : i32
    %1149 = arith.index_cast %c0_i32_492 : i32 to index
    %c0_493 = arith.constant 0 : index
    %c0_494 = arith.constant 0 : index
    %1150 = vector.load %arg11[%1149, %c0_493, %c0_494] : memref<8x8x128xf32, #tpu.memory_space<vmem>>, vector<1x8x128xf32>
    %1151 = vector.shape_cast %1150 : vector<1x8x128xf32> to vector<8x128xf32>
    %cst_495 = arith.constant dense<0.000000e+00> : vector<8x128xf32>
    %1152 = tpu.matmul %1148, %1147, %cst_495 {dimension_numbers = #tpu.dot_dimension_numbers<[1], [0], [0], [1], [0, 0, 1, 1], [], []>} : vector<8x32xf32>, vector<32x128xf32>, vector<8x128xf32> -> vector<8x128xf32>
    %1153 = arith.addf %1151, %1152 : vector<8x128xf32>
    %cst_496 = arith.constant 5.000000e-01 : f32
    %1154 = vector.broadcast %cst_496 : f32 to vector<8x128xf32>
    %1155 = arith.mulf %1154, %1153 : vector<8x128xf32>
    %1156 = arith.select %5, %1153, %1155 : vector<8x128xi1>, vector<8x128xf32>
    %1157 = math.tanh %1156 : vector<8x128xf32>
    %cst_497 = arith.constant 1.000000e+00 : f32
    %1158 = vector.broadcast %cst_497 : f32 to vector<8x128xf32>
    %1159 = arith.addf %1157, %1158 : vector<8x128xf32>
    %cst_498 = arith.constant 5.000000e-01 : f32
    %1160 = vector.broadcast %cst_498 : f32 to vector<8x128xf32>
    %1161 = arith.mulf %1160, %1159 : vector<8x128xf32>
    %1162 = arith.select %5, %1157, %1161 : vector<8x128xi1>, vector<8x128xf32>
    %1163 = vector.extract_strided_slice %1162 {offsets = [0, 0], sizes = [8, 32], strides = [1, 1]} : vector<8x128xf32> to vector<8x32xf32>
    %1164 = vector.extract_strided_slice %1162 {offsets = [0, 32], sizes = [8, 32], strides = [1, 1]} : vector<8x128xf32> to vector<8x32xf32>
    %1165 = vector.extract_strided_slice %1162 {offsets = [0, 64], sizes = [8, 32], strides = [1, 1]} : vector<8x128xf32> to vector<8x32xf32>
    %1166 = vector.extract_strided_slice %1162 {offsets = [0, 96], sizes = [8, 32], strides = [1, 1]} : vector<8x128xf32> to vector<8x32xf32>
    %1167 = arith.mulf %1164, %1148 : vector<8x32xf32>
    %1168 = arith.mulf %1163, %1165 : vector<8x32xf32>
    %1169 = arith.addf %1167, %1168 : vector<8x32xf32>
    %1170 = math.tanh %1169 : vector<8x32xf32>
    %1171 = arith.mulf %1166, %1170 : vector<8x32xf32>
    %1172 = arith.index_cast %c0_i32_492 : i32 to index
    %c0_499 = arith.constant 0 : index
    %c0_500 = arith.constant 0 : index
    %1173 = vector.load %arg10[%1172, %c0_499, %c0_500] : memref<8x8x32xf32, #tpu.memory_space<vmem>>, vector<1x8x32xf32>
    %1174 = vector.shape_cast %1173 : vector<1x8x32xf32> to vector<8x32xf32>
    %1175 = vector.shape_cast %1171 : vector<8x32xf32> to vector<1x8x32xf32>
    tpu.vector_store %arg10[%1172, %c0_499, %c0_500], %1175 {strides = array<i32>} : memref<8x8x32xf32, #tpu.memory_space<vmem>>, vector<1x8x32xf32>,
    %c1_i32_501 = arith.constant 1 : i32
    %1176 = arith.index_cast %c1_i32_501 : i32 to index
    %c0_502 = arith.constant 0 : index
    %c0_503 = arith.constant 0 : index
    %1177 = vector.load %arg11[%1176, %c0_502, %c0_503] : memref<8x8x128xf32, #tpu.memory_space<vmem>>, vector<1x8x128xf32>
    %1178 = vector.shape_cast %1177 : vector<1x8x128xf32> to vector<8x128xf32>
    %cst_504 = arith.constant dense<0.000000e+00> : vector<8x128xf32>
    %1179 = tpu.matmul %1171, %1147, %cst_504 {dimension_numbers = #tpu.dot_dimension_numbers<[1], [0], [0], [1], [0, 0, 1, 1], [], []>} : vector<8x32xf32>, vector<32x128xf32>, vector<8x128xf32> -> vector<8x128xf32>
    %1180 = arith.addf %1178, %1179 : vector<8x128xf32>
    %cst_505 = arith.constant 5.000000e-01 : f32
    %1181 = vector.broadcast %cst_505 : f32 to vector<8x128xf32>
    %1182 = arith.mulf %1181, %1180 : vector<8x128xf32>
    %1183 = arith.select %5, %1180, %1182 : vector<8x128xi1>, vector<8x128xf32>
    %1184 = math.tanh %1183 : vector<8x128xf32>
    %cst_506 = arith.constant 1.000000e+00 : f32
    %1185 = vector.broadcast %cst_506 : f32 to vector<8x128xf32>
    %1186 = arith.addf %1184, %1185 : vector<8x128xf32>
    %cst_507 = arith.constant 5.000000e-01 : f32
    %1187 = vector.broadcast %cst_507 : f32 to vector<8x128xf32>
    %1188 = arith.mulf %1187, %1186 : vector<8x128xf32>
    %1189 = arith.select %5, %1184, %1188 : vector<8x128xi1>, vector<8x128xf32>
    %1190 = vector.extract_strided_slice %1189 {offsets = [0, 0], sizes = [8, 32], strides = [1, 1]} : vector<8x128xf32> to vector<8x32xf32>
    %1191 = vector.extract_strided_slice %1189 {offsets = [0, 32], sizes = [8, 32], strides = [1, 1]} : vector<8x128xf32> to vector<8x32xf32>
    %1192 = vector.extract_strided_slice %1189 {offsets = [0, 64], sizes = [8, 32], strides = [1, 1]} : vector<8x128xf32> to vector<8x32xf32>
    %1193 = vector.extract_strided_slice %1189 {offsets = [0, 96], sizes = [8, 32], strides = [1, 1]} : vector<8x128xf32> to vector<8x32xf32>
    %1194 = arith.mulf %1191, %1169 : vector<8x32xf32>
    %1195 = arith.mulf %1190, %1192 : vector<8x32xf32>
    %1196 = arith.addf %1194, %1195 : vector<8x32xf32>
    %1197 = math.tanh %1196 : vector<8x32xf32>
    %1198 = arith.mulf %1193, %1197 : vector<8x32xf32>
    %1199 = arith.index_cast %c1_i32_501 : i32 to index
    %c0_508 = arith.constant 0 : index
    %c0_509 = arith.constant 0 : index
    %1200 = vector.load %arg10[%1199, %c0_508, %c0_509] : memref<8x8x32xf32, #tpu.memory_space<vmem>>, vector<1x8x32xf32>
    %1201 = vector.shape_cast %1200 : vector<1x8x32xf32> to vector<8x32xf32>
    %1202 = vector.shape_cast %1198 : vector<8x32xf32> to vector<1x8x32xf32>
    tpu.vector_store %arg10[%1199, %c0_508, %c0_509], %1202 {strides = array<i32>} : memref<8x8x32xf32, #tpu.memory_space<vmem>>, vector<1x8x32xf32>,
    %c2_i32_510 = arith.constant 2 : i32
    %1203 = arith.index_cast %c2_i32_510 : i32 to index
    %c0_511 = arith.constant 0 : index
    %c0_512 = arith.constant 0 : index
    %1204 = vector.load %arg11[%1203, %c0_511, %c0_512] : memref<8x8x128xf32, #tpu.memory_space<vmem>>, vector<1x8x128xf32>
    %1205 = vector.shape_cast %1204 : vector<1x8x128xf32> to vector<8x128xf32>
    %cst_513 = arith.constant dense<0.000000e+00> : vector<8x128xf32>
    %1206 = tpu.matmul %1198, %1147, %cst_513 {dimension_numbers = #tpu.dot_dimension_numbers<[1], [0], [0], [1], [0, 0, 1, 1], [], []>} : vector<8x32xf32>, vector<32x128xf32>, vector<8x128xf32> -> vector<8x128xf32>
    %1207 = arith.addf %1205, %1206 : vector<8x128xf32>
    %cst_514 = arith.constant 5.000000e-01 : f32
    %1208 = vector.broadcast %cst_514 : f32 to vector<8x128xf32>
    %1209 = arith.mulf %1208, %1207 : vector<8x128xf32>
    %1210 = arith.select %5, %1207, %1209 : vector<8x128xi1>, vector<8x128xf32>
    %1211 = math.tanh %1210 : vector<8x128xf32>
    %cst_515 = arith.constant 1.000000e+00 : f32
    %1212 = vector.broadcast %cst_515 : f32 to vector<8x128xf32>
    %1213 = arith.addf %1211, %1212 : vector<8x128xf32>
    %cst_516 = arith.constant 5.000000e-01 : f32
    %1214 = vector.broadcast %cst_516 : f32 to vector<8x128xf32>
    %1215 = arith.mulf %1214, %1213 : vector<8x128xf32>
    %1216 = arith.select %5, %1211, %1215 : vector<8x128xi1>, vector<8x128xf32>
    %1217 = vector.extract_strided_slice %1216 {offsets = [0, 0], sizes = [8, 32], strides = [1, 1]} : vector<8x128xf32> to vector<8x32xf32>
    %1218 = vector.extract_strided_slice %1216 {offsets = [0, 32], sizes = [8, 32], strides = [1, 1]} : vector<8x128xf32> to vector<8x32xf32>
    %1219 = vector.extract_strided_slice %1216 {offsets = [0, 64], sizes = [8, 32], strides = [1, 1]} : vector<8x128xf32> to vector<8x32xf32>
    %1220 = vector.extract_strided_slice %1216 {offsets = [0, 96], sizes = [8, 32], strides = [1, 1]} : vector<8x128xf32> to vector<8x32xf32>
    %1221 = arith.mulf %1218, %1196 : vector<8x32xf32>
    %1222 = arith.mulf %1217, %1219 : vector<8x32xf32>
    %1223 = arith.addf %1221, %1222 : vector<8x32xf32>
    %1224 = math.tanh %1223 : vector<8x32xf32>
    %1225 = arith.mulf %1220, %1224 : vector<8x32xf32>
    %1226 = arith.index_cast %c2_i32_510 : i32 to index
    %c0_517 = arith.constant 0 : index
    %c0_518 = arith.constant 0 : index
    %1227 = vector.load %arg10[%1226, %c0_517, %c0_518] : memref<8x8x32xf32, #tpu.memory_space<vmem>>, vector<1x8x32xf32>
    %1228 = vector.shape_cast %1227 : vector<1x8x32xf32> to vector<8x32xf32>
    %1229 = vector.shape_cast %1225 : vector<8x32xf32> to vector<1x8x32xf32>
    tpu.vector_store %arg10[%1226, %c0_517, %c0_518], %1229 {strides = array<i32>} : memref<8x8x32xf32, #tpu.memory_space<vmem>>, vector<1x8x32xf32>,
    %c3_i32_519 = arith.constant 3 : i32
    %1230 = arith.index_cast %c3_i32_519 : i32 to index
    %c0_520 = arith.constant 0 : index
    %c0_521 = arith.constant 0 : index
    %1231 = vector.load %arg11[%1230, %c0_520, %c0_521] : memref<8x8x128xf32, #tpu.memory_space<vmem>>, vector<1x8x128xf32>
    %1232 = vector.shape_cast %1231 : vector<1x8x128xf32> to vector<8x128xf32>
    %cst_522 = arith.constant dense<0.000000e+00> : vector<8x128xf32>
    %1233 = tpu.matmul %1225, %1147, %cst_522 {dimension_numbers = #tpu.dot_dimension_numbers<[1], [0], [0], [1], [0, 0, 1, 1], [], []>} : vector<8x32xf32>, vector<32x128xf32>, vector<8x128xf32> -> vector<8x128xf32>
    %1234 = arith.addf %1232, %1233 : vector<8x128xf32>
    %cst_523 = arith.constant 5.000000e-01 : f32
    %1235 = vector.broadcast %cst_523 : f32 to vector<8x128xf32>
    %1236 = arith.mulf %1235, %1234 : vector<8x128xf32>
    %1237 = arith.select %5, %1234, %1236 : vector<8x128xi1>, vector<8x128xf32>
    %1238 = math.tanh %1237 : vector<8x128xf32>
    %cst_524 = arith.constant 1.000000e+00 : f32
    %1239 = vector.broadcast %cst_524 : f32 to vector<8x128xf32>
    %1240 = arith.addf %1238, %1239 : vector<8x128xf32>
    %cst_525 = arith.constant 5.000000e-01 : f32
    %1241 = vector.broadcast %cst_525 : f32 to vector<8x128xf32>
    %1242 = arith.mulf %1241, %1240 : vector<8x128xf32>
    %1243 = arith.select %5, %1238, %1242 : vector<8x128xi1>, vector<8x128xf32>
    %1244 = vector.extract_strided_slice %1243 {offsets = [0, 0], sizes = [8, 32], strides = [1, 1]} : vector<8x128xf32> to vector<8x32xf32>
    %1245 = vector.extract_strided_slice %1243 {offsets = [0, 32], sizes = [8, 32], strides = [1, 1]} : vector<8x128xf32> to vector<8x32xf32>
    %1246 = vector.extract_strided_slice %1243 {offsets = [0, 64], sizes = [8, 32], strides = [1, 1]} : vector<8x128xf32> to vector<8x32xf32>
    %1247 = vector.extract_strided_slice %1243 {offsets = [0, 96], sizes = [8, 32], strides = [1, 1]} : vector<8x128xf32> to vector<8x32xf32>
    %1248 = arith.mulf %1245, %1223 : vector<8x32xf32>
    %1249 = arith.mulf %1244, %1246 : vector<8x32xf32>
    %1250 = arith.addf %1248, %1249 : vector<8x32xf32>
    %1251 = math.tanh %1250 : vector<8x32xf32>
    %1252 = arith.mulf %1247, %1251 : vector<8x32xf32>
    %1253 = arith.index_cast %c3_i32_519 : i32 to index
    %c0_526 = arith.constant 0 : index
    %c0_527 = arith.constant 0 : index
    %1254 = vector.load %arg10[%1253, %c0_526, %c0_527] : memref<8x8x32xf32, #tpu.memory_space<vmem>>, vector<1x8x32xf32>
    %1255 = vector.shape_cast %1254 : vector<1x8x32xf32> to vector<8x32xf32>
    %1256 = vector.shape_cast %1252 : vector<8x32xf32> to vector<1x8x32xf32>
    tpu.vector_store %arg10[%1253, %c0_526, %c0_527], %1256 {strides = array<i32>} : memref<8x8x32xf32, #tpu.memory_space<vmem>>, vector<1x8x32xf32>,
    %c4_i32_528 = arith.constant 4 : i32
    %1257 = arith.index_cast %c4_i32_528 : i32 to index
    %c0_529 = arith.constant 0 : index
    %c0_530 = arith.constant 0 : index
    %1258 = vector.load %arg11[%1257, %c0_529, %c0_530] : memref<8x8x128xf32, #tpu.memory_space<vmem>>, vector<1x8x128xf32>
    %1259 = vector.shape_cast %1258 : vector<1x8x128xf32> to vector<8x128xf32>
    %cst_531 = arith.constant dense<0.000000e+00> : vector<8x128xf32>
    %1260 = tpu.matmul %1252, %1147, %cst_531 {dimension_numbers = #tpu.dot_dimension_numbers<[1], [0], [0], [1], [0, 0, 1, 1], [], []>} : vector<8x32xf32>, vector<32x128xf32>, vector<8x128xf32> -> vector<8x128xf32>
    %1261 = arith.addf %1259, %1260 : vector<8x128xf32>
    %cst_532 = arith.constant 5.000000e-01 : f32
    %1262 = vector.broadcast %cst_532 : f32 to vector<8x128xf32>
    %1263 = arith.mulf %1262, %1261 : vector<8x128xf32>
    %1264 = arith.select %5, %1261, %1263 : vector<8x128xi1>, vector<8x128xf32>
    %1265 = math.tanh %1264 : vector<8x128xf32>
    %cst_533 = arith.constant 1.000000e+00 : f32
    %1266 = vector.broadcast %cst_533 : f32 to vector<8x128xf32>
    %1267 = arith.addf %1265, %1266 : vector<8x128xf32>
    %cst_534 = arith.constant 5.000000e-01 : f32
    %1268 = vector.broadcast %cst_534 : f32 to vector<8x128xf32>
    %1269 = arith.mulf %1268, %1267 : vector<8x128xf32>
    %1270 = arith.select %5, %1265, %1269 : vector<8x128xi1>, vector<8x128xf32>
    %1271 = vector.extract_strided_slice %1270 {offsets = [0, 0], sizes = [8, 32], strides = [1, 1]} : vector<8x128xf32> to vector<8x32xf32>
    %1272 = vector.extract_strided_slice %1270 {offsets = [0, 32], sizes = [8, 32], strides = [1, 1]} : vector<8x128xf32> to vector<8x32xf32>
    %1273 = vector.extract_strided_slice %1270 {offsets = [0, 64], sizes = [8, 32], strides = [1, 1]} : vector<8x128xf32> to vector<8x32xf32>
    %1274 = vector.extract_strided_slice %1270 {offsets = [0, 96], sizes = [8, 32], strides = [1, 1]} : vector<8x128xf32> to vector<8x32xf32>
    %1275 = arith.mulf %1272, %1250 : vector<8x32xf32>
    %1276 = arith.mulf %1271, %1273 : vector<8x32xf32>
    %1277 = arith.addf %1275, %1276 : vector<8x32xf32>
    %1278 = math.tanh %1277 : vector<8x32xf32>
    %1279 = arith.mulf %1274, %1278 : vector<8x32xf32>
    %1280 = arith.index_cast %c4_i32_528 : i32 to index
    %c0_535 = arith.constant 0 : index
    %c0_536 = arith.constant 0 : index
    %1281 = vector.load %arg10[%1280, %c0_535, %c0_536] : memref<8x8x32xf32, #tpu.memory_space<vmem>>, vector<1x8x32xf32>
    %1282 = vector.shape_cast %1281 : vector<1x8x32xf32> to vector<8x32xf32>
    %1283 = vector.shape_cast %1279 : vector<8x32xf32> to vector<1x8x32xf32>
    tpu.vector_store %arg10[%1280, %c0_535, %c0_536], %1283 {strides = array<i32>} : memref<8x8x32xf32, #tpu.memory_space<vmem>>, vector<1x8x32xf32>,
    %c5_i32_537 = arith.constant 5 : i32
    %1284 = arith.index_cast %c5_i32_537 : i32 to index
    %c0_538 = arith.constant 0 : index
    %c0_539 = arith.constant 0 : index
    %1285 = vector.load %arg11[%1284, %c0_538, %c0_539] : memref<8x8x128xf32, #tpu.memory_space<vmem>>, vector<1x8x128xf32>
    %1286 = vector.shape_cast %1285 : vector<1x8x128xf32> to vector<8x128xf32>
    %cst_540 = arith.constant dense<0.000000e+00> : vector<8x128xf32>
    %1287 = tpu.matmul %1279, %1147, %cst_540 {dimension_numbers = #tpu.dot_dimension_numbers<[1], [0], [0], [1], [0, 0, 1, 1], [], []>} : vector<8x32xf32>, vector<32x128xf32>, vector<8x128xf32> -> vector<8x128xf32>
    %1288 = arith.addf %1286, %1287 : vector<8x128xf32>
    %cst_541 = arith.constant 5.000000e-01 : f32
    %1289 = vector.broadcast %cst_541 : f32 to vector<8x128xf32>
    %1290 = arith.mulf %1289, %1288 : vector<8x128xf32>
    %1291 = arith.select %5, %1288, %1290 : vector<8x128xi1>, vector<8x128xf32>
    %1292 = math.tanh %1291 : vector<8x128xf32>
    %cst_542 = arith.constant 1.000000e+00 : f32
    %1293 = vector.broadcast %cst_542 : f32 to vector<8x128xf32>
    %1294 = arith.addf %1292, %1293 : vector<8x128xf32>
    %cst_543 = arith.constant 5.000000e-01 : f32
    %1295 = vector.broadcast %cst_543 : f32 to vector<8x128xf32>
    %1296 = arith.mulf %1295, %1294 : vector<8x128xf32>
    %1297 = arith.select %5, %1292, %1296 : vector<8x128xi1>, vector<8x128xf32>
    %1298 = vector.extract_strided_slice %1297 {offsets = [0, 0], sizes = [8, 32], strides = [1, 1]} : vector<8x128xf32> to vector<8x32xf32>
    %1299 = vector.extract_strided_slice %1297 {offsets = [0, 32], sizes = [8, 32], strides = [1, 1]} : vector<8x128xf32> to vector<8x32xf32>
    %1300 = vector.extract_strided_slice %1297 {offsets = [0, 64], sizes = [8, 32], strides = [1, 1]} : vector<8x128xf32> to vector<8x32xf32>
    %1301 = vector.extract_strided_slice %1297 {offsets = [0, 96], sizes = [8, 32], strides = [1, 1]} : vector<8x128xf32> to vector<8x32xf32>
    %1302 = arith.mulf %1299, %1277 : vector<8x32xf32>
    %1303 = arith.mulf %1298, %1300 : vector<8x32xf32>
    %1304 = arith.addf %1302, %1303 : vector<8x32xf32>
    %1305 = math.tanh %1304 : vector<8x32xf32>
    %1306 = arith.mulf %1301, %1305 : vector<8x32xf32>
    %1307 = arith.index_cast %c5_i32_537 : i32 to index
    %c0_544 = arith.constant 0 : index
    %c0_545 = arith.constant 0 : index
    %1308 = vector.load %arg10[%1307, %c0_544, %c0_545] : memref<8x8x32xf32, #tpu.memory_space<vmem>>, vector<1x8x32xf32>
    %1309 = vector.shape_cast %1308 : vector<1x8x32xf32> to vector<8x32xf32>
    %1310 = vector.shape_cast %1306 : vector<8x32xf32> to vector<1x8x32xf32>
    tpu.vector_store %arg10[%1307, %c0_544, %c0_545], %1310 {strides = array<i32>} : memref<8x8x32xf32, #tpu.memory_space<vmem>>, vector<1x8x32xf32>,
    %c6_i32_546 = arith.constant 6 : i32
    %1311 = arith.index_cast %c6_i32_546 : i32 to index
    %c0_547 = arith.constant 0 : index
    %c0_548 = arith.constant 0 : index
    %1312 = vector.load %arg11[%1311, %c0_547, %c0_548] : memref<8x8x128xf32, #tpu.memory_space<vmem>>, vector<1x8x128xf32>
    %1313 = vector.shape_cast %1312 : vector<1x8x128xf32> to vector<8x128xf32>
    %cst_549 = arith.constant dense<0.000000e+00> : vector<8x128xf32>
    %1314 = tpu.matmul %1306, %1147, %cst_549 {dimension_numbers = #tpu.dot_dimension_numbers<[1], [0], [0], [1], [0, 0, 1, 1], [], []>} : vector<8x32xf32>, vector<32x128xf32>, vector<8x128xf32> -> vector<8x128xf32>
    %1315 = arith.addf %1313, %1314 : vector<8x128xf32>
    %cst_550 = arith.constant 5.000000e-01 : f32
    %1316 = vector.broadcast %cst_550 : f32 to vector<8x128xf32>
    %1317 = arith.mulf %1316, %1315 : vector<8x128xf32>
    %1318 = arith.select %5, %1315, %1317 : vector<8x128xi1>, vector<8x128xf32>
    %1319 = math.tanh %1318 : vector<8x128xf32>
    %cst_551 = arith.constant 1.000000e+00 : f32
    %1320 = vector.broadcast %cst_551 : f32 to vector<8x128xf32>
    %1321 = arith.addf %1319, %1320 : vector<8x128xf32>
    %cst_552 = arith.constant 5.000000e-01 : f32
    %1322 = vector.broadcast %cst_552 : f32 to vector<8x128xf32>
    %1323 = arith.mulf %1322, %1321 : vector<8x128xf32>
    %1324 = arith.select %5, %1319, %1323 : vector<8x128xi1>, vector<8x128xf32>
    %1325 = vector.extract_strided_slice %1324 {offsets = [0, 0], sizes = [8, 32], strides = [1, 1]} : vector<8x128xf32> to vector<8x32xf32>
    %1326 = vector.extract_strided_slice %1324 {offsets = [0, 32], sizes = [8, 32], strides = [1, 1]} : vector<8x128xf32> to vector<8x32xf32>
    %1327 = vector.extract_strided_slice %1324 {offsets = [0, 64], sizes = [8, 32], strides = [1, 1]} : vector<8x128xf32> to vector<8x32xf32>
    %1328 = vector.extract_strided_slice %1324 {offsets = [0, 96], sizes = [8, 32], strides = [1, 1]} : vector<8x128xf32> to vector<8x32xf32>
    %1329 = arith.mulf %1326, %1304 : vector<8x32xf32>
    %1330 = arith.mulf %1325, %1327 : vector<8x32xf32>
    %1331 = arith.addf %1329, %1330 : vector<8x32xf32>
    %1332 = math.tanh %1331 : vector<8x32xf32>
    %1333 = arith.mulf %1328, %1332 : vector<8x32xf32>
    %1334 = arith.index_cast %c6_i32_546 : i32 to index
    %c0_553 = arith.constant 0 : index
    %c0_554 = arith.constant 0 : index
    %1335 = vector.load %arg10[%1334, %c0_553, %c0_554] : memref<8x8x32xf32, #tpu.memory_space<vmem>>, vector<1x8x32xf32>
    %1336 = vector.shape_cast %1335 : vector<1x8x32xf32> to vector<8x32xf32>
    %1337 = vector.shape_cast %1333 : vector<8x32xf32> to vector<1x8x32xf32>
    tpu.vector_store %arg10[%1334, %c0_553, %c0_554], %1337 {strides = array<i32>} : memref<8x8x32xf32, #tpu.memory_space<vmem>>, vector<1x8x32xf32>,
    %c7_i32_555 = arith.constant 7 : i32
    %1338 = arith.index_cast %c7_i32_555 : i32 to index
    %c0_556 = arith.constant 0 : index
    %c0_557 = arith.constant 0 : index
    %1339 = vector.load %arg11[%1338, %c0_556, %c0_557] : memref<8x8x128xf32, #tpu.memory_space<vmem>>, vector<1x8x128xf32>
    %1340 = vector.shape_cast %1339 : vector<1x8x128xf32> to vector<8x128xf32>
    %cst_558 = arith.constant dense<0.000000e+00> : vector<8x128xf32>
    %1341 = tpu.matmul %1333, %1147, %cst_558 {dimension_numbers = #tpu.dot_dimension_numbers<[1], [0], [0], [1], [0, 0, 1, 1], [], []>} : vector<8x32xf32>, vector<32x128xf32>, vector<8x128xf32> -> vector<8x128xf32>
    %1342 = arith.addf %1340, %1341 : vector<8x128xf32>
    %cst_559 = arith.constant 5.000000e-01 : f32
    %1343 = vector.broadcast %cst_559 : f32 to vector<8x128xf32>
    %1344 = arith.mulf %1343, %1342 : vector<8x128xf32>
    %1345 = arith.select %5, %1342, %1344 : vector<8x128xi1>, vector<8x128xf32>
    %1346 = math.tanh %1345 : vector<8x128xf32>
    %cst_560 = arith.constant 1.000000e+00 : f32
    %1347 = vector.broadcast %cst_560 : f32 to vector<8x128xf32>
    %1348 = arith.addf %1346, %1347 : vector<8x128xf32>
    %cst_561 = arith.constant 5.000000e-01 : f32
    %1349 = vector.broadcast %cst_561 : f32 to vector<8x128xf32>
    %1350 = arith.mulf %1349, %1348 : vector<8x128xf32>
    %1351 = arith.select %5, %1346, %1350 : vector<8x128xi1>, vector<8x128xf32>
    %1352 = vector.extract_strided_slice %1351 {offsets = [0, 0], sizes = [8, 32], strides = [1, 1]} : vector<8x128xf32> to vector<8x32xf32>
    %1353 = vector.extract_strided_slice %1351 {offsets = [0, 32], sizes = [8, 32], strides = [1, 1]} : vector<8x128xf32> to vector<8x32xf32>
    %1354 = vector.extract_strided_slice %1351 {offsets = [0, 64], sizes = [8, 32], strides = [1, 1]} : vector<8x128xf32> to vector<8x32xf32>
    %1355 = vector.extract_strided_slice %1351 {offsets = [0, 96], sizes = [8, 32], strides = [1, 1]} : vector<8x128xf32> to vector<8x32xf32>
    %1356 = arith.mulf %1353, %1331 : vector<8x32xf32>
    %1357 = arith.mulf %1352, %1354 : vector<8x32xf32>
    %1358 = arith.addf %1356, %1357 : vector<8x32xf32>
    %1359 = math.tanh %1358 : vector<8x32xf32>
    %1360 = arith.mulf %1355, %1359 : vector<8x32xf32>
    %1361 = arith.index_cast %c7_i32_555 : i32 to index
    %c0_562 = arith.constant 0 : index
    %c0_563 = arith.constant 0 : index
    %1362 = vector.load %arg10[%1361, %c0_562, %c0_563] : memref<8x8x32xf32, #tpu.memory_space<vmem>>, vector<1x8x32xf32>
    %1363 = vector.shape_cast %1362 : vector<1x8x32xf32> to vector<8x32xf32>
    %1364 = vector.shape_cast %1360 : vector<8x32xf32> to vector<1x8x32xf32>
    tpu.vector_store %arg10[%1361, %c0_562, %c0_563], %1364 {strides = array<i32>} : memref<8x8x32xf32, #tpu.memory_space<vmem>>, vector<1x8x32xf32>,
    %c8_i32_564 = arith.constant 8 : i32
    %c4_565 = arith.constant 4 : index
    %c0_566 = arith.constant 0 : index
    %c0_567 = arith.constant 0 : index
    %1365 = vector.load %arg3[%c4_565, %c0_566, %c0_567] : memref<5x32x128xf32, #tpu.memory_space<vmem>>, vector<1x32x128xf32>
    %1366 = vector.shape_cast %1365 : vector<1x32x128xf32> to vector<32x128xf32>
    %c5 = arith.constant 5 : index
    %c0_568 = arith.constant 0 : index
    %c0_569 = arith.constant 0 : index
    %1367 = vector.load %arg5[%c5, %c0_568, %c0_569] : memref<6x1x128xf32, #tpu.memory_space<vmem>>, vector<1x1x128xf32>
    %1368 = vector.shape_cast %1367 : vector<1x1x128xf32> to vector<1x128xf32>
    %1369 = vector.shape_cast %1368 : vector<1x128xf32> to vector<1x128xf32>
    %1370 = vector.broadcast %1369 : vector<1x128xf32> to vector<8x128xf32>
    %c0_i32_570 = arith.constant 0 : i32
    %1371 = arith.index_cast %c0_i32_570 : i32 to index
    %c0_571 = arith.constant 0 : index
    %c0_572 = arith.constant 0 : index
    %1372 = vector.load %arg10[%1371, %c0_571, %c0_572] : memref<8x8x32xf32, #tpu.memory_space<vmem>>, vector<1x8x32xf32>
    %1373 = vector.shape_cast %1372 : vector<1x8x32xf32> to vector<8x32xf32>
    %cst_573 = arith.constant dense<0.000000e+00> : vector<8x128xf32>
    %1374 = tpu.matmul %1373, %1366, %cst_573 {dimension_numbers = #tpu.dot_dimension_numbers<[1], [0], [0], [1], [0, 0, 1, 1], [], []>} : vector<8x32xf32>, vector<32x128xf32>, vector<8x128xf32> -> vector<8x128xf32>
    %1375 = arith.addf %1374, %1370 : vector<8x128xf32>
    %1376 = arith.index_cast %c0_i32_570 : i32 to index
    %c0_574 = arith.constant 0 : index
    %c0_575 = arith.constant 0 : index
    %1377 = vector.load %arg11[%1376, %c0_574, %c0_575] : memref<8x8x128xf32, #tpu.memory_space<vmem>>, vector<1x8x128xf32>
    %1378 = vector.shape_cast %1377 : vector<1x8x128xf32> to vector<8x128xf32>
    %1379 = vector.shape_cast %1375 : vector<8x128xf32> to vector<1x8x128xf32>
    tpu.vector_store %arg11[%1376, %c0_574, %c0_575], %1379 {strides = array<i32>} : memref<8x8x128xf32, #tpu.memory_space<vmem>>, vector<1x8x128xf32>,
    %c1_i32_576 = arith.constant 1 : i32
    %1380 = arith.index_cast %c1_i32_576 : i32 to index
    %c0_577 = arith.constant 0 : index
    %c0_578 = arith.constant 0 : index
    %1381 = vector.load %arg10[%1380, %c0_577, %c0_578] : memref<8x8x32xf32, #tpu.memory_space<vmem>>, vector<1x8x32xf32>
    %1382 = vector.shape_cast %1381 : vector<1x8x32xf32> to vector<8x32xf32>
    %cst_579 = arith.constant dense<0.000000e+00> : vector<8x128xf32>
    %1383 = tpu.matmul %1382, %1366, %cst_579 {dimension_numbers = #tpu.dot_dimension_numbers<[1], [0], [0], [1], [0, 0, 1, 1], [], []>} : vector<8x32xf32>, vector<32x128xf32>, vector<8x128xf32> -> vector<8x128xf32>
    %1384 = arith.addf %1383, %1370 : vector<8x128xf32>
    %1385 = arith.index_cast %c1_i32_576 : i32 to index
    %c0_580 = arith.constant 0 : index
    %c0_581 = arith.constant 0 : index
    %1386 = vector.load %arg11[%1385, %c0_580, %c0_581] : memref<8x8x128xf32, #tpu.memory_space<vmem>>, vector<1x8x128xf32>
    %1387 = vector.shape_cast %1386 : vector<1x8x128xf32> to vector<8x128xf32>
    %1388 = vector.shape_cast %1384 : vector<8x128xf32> to vector<1x8x128xf32>
    tpu.vector_store %arg11[%1385, %c0_580, %c0_581], %1388 {strides = array<i32>} : memref<8x8x128xf32, #tpu.memory_space<vmem>>, vector<1x8x128xf32>,
    %c2_i32_582 = arith.constant 2 : i32
    %1389 = arith.index_cast %c2_i32_582 : i32 to index
    %c0_583 = arith.constant 0 : index
    %c0_584 = arith.constant 0 : index
    %1390 = vector.load %arg10[%1389, %c0_583, %c0_584] : memref<8x8x32xf32, #tpu.memory_space<vmem>>, vector<1x8x32xf32>
    %1391 = vector.shape_cast %1390 : vector<1x8x32xf32> to vector<8x32xf32>
    %cst_585 = arith.constant dense<0.000000e+00> : vector<8x128xf32>
    %1392 = tpu.matmul %1391, %1366, %cst_585 {dimension_numbers = #tpu.dot_dimension_numbers<[1], [0], [0], [1], [0, 0, 1, 1], [], []>} : vector<8x32xf32>, vector<32x128xf32>, vector<8x128xf32> -> vector<8x128xf32>
    %1393 = arith.addf %1392, %1370 : vector<8x128xf32>
    %1394 = arith.index_cast %c2_i32_582 : i32 to index
    %c0_586 = arith.constant 0 : index
    %c0_587 = arith.constant 0 : index
    %1395 = vector.load %arg11[%1394, %c0_586, %c0_587] : memref<8x8x128xf32, #tpu.memory_space<vmem>>, vector<1x8x128xf32>
    %1396 = vector.shape_cast %1395 : vector<1x8x128xf32> to vector<8x128xf32>
    %1397 = vector.shape_cast %1393 : vector<8x128xf32> to vector<1x8x128xf32>
    tpu.vector_store %arg11[%1394, %c0_586, %c0_587], %1397 {strides = array<i32>} : memref<8x8x128xf32, #tpu.memory_space<vmem>>, vector<1x8x128xf32>,
    %c3_i32_588 = arith.constant 3 : i32
    %1398 = arith.index_cast %c3_i32_588 : i32 to index
    %c0_589 = arith.constant 0 : index
    %c0_590 = arith.constant 0 : index
    %1399 = vector.load %arg10[%1398, %c0_589, %c0_590] : memref<8x8x32xf32, #tpu.memory_space<vmem>>, vector<1x8x32xf32>
    %1400 = vector.shape_cast %1399 : vector<1x8x32xf32> to vector<8x32xf32>
    %cst_591 = arith.constant dense<0.000000e+00> : vector<8x128xf32>
    %1401 = tpu.matmul %1400, %1366, %cst_591 {dimension_numbers = #tpu.dot_dimension_numbers<[1], [0], [0], [1], [0, 0, 1, 1], [], []>} : vector<8x32xf32>, vector<32x128xf32>, vector<8x128xf32> -> vector<8x128xf32>
    %1402 = arith.addf %1401, %1370 : vector<8x128xf32>
    %1403 = arith.index_cast %c3_i32_588 : i32 to index
    %c0_592 = arith.constant 0 : index
    %c0_593 = arith.constant 0 : index
    %1404 = vector.load %arg11[%1403, %c0_592, %c0_593] : memref<8x8x128xf32, #tpu.memory_space<vmem>>, vector<1x8x128xf32>
    %1405 = vector.shape_cast %1404 : vector<1x8x128xf32> to vector<8x128xf32>
    %1406 = vector.shape_cast %1402 : vector<8x128xf32> to vector<1x8x128xf32>
    tpu.vector_store %arg11[%1403, %c0_592, %c0_593], %1406 {strides = array<i32>} : memref<8x8x128xf32, #tpu.memory_space<vmem>>, vector<1x8x128xf32>,
    %c4_i32_594 = arith.constant 4 : i32
    %1407 = arith.index_cast %c4_i32_594 : i32 to index
    %c0_595 = arith.constant 0 : index
    %c0_596 = arith.constant 0 : index
    %1408 = vector.load %arg10[%1407, %c0_595, %c0_596] : memref<8x8x32xf32, #tpu.memory_space<vmem>>, vector<1x8x32xf32>
    %1409 = vector.shape_cast %1408 : vector<1x8x32xf32> to vector<8x32xf32>
    %cst_597 = arith.constant dense<0.000000e+00> : vector<8x128xf32>
    %1410 = tpu.matmul %1409, %1366, %cst_597 {dimension_numbers = #tpu.dot_dimension_numbers<[1], [0], [0], [1], [0, 0, 1, 1], [], []>} : vector<8x32xf32>, vector<32x128xf32>, vector<8x128xf32> -> vector<8x128xf32>
    %1411 = arith.addf %1410, %1370 : vector<8x128xf32>
    %1412 = arith.index_cast %c4_i32_594 : i32 to index
    %c0_598 = arith.constant 0 : index
    %c0_599 = arith.constant 0 : index
    %1413 = vector.load %arg11[%1412, %c0_598, %c0_599] : memref<8x8x128xf32, #tpu.memory_space<vmem>>, vector<1x8x128xf32>
    %1414 = vector.shape_cast %1413 : vector<1x8x128xf32> to vector<8x128xf32>
    %1415 = vector.shape_cast %1411 : vector<8x128xf32> to vector<1x8x128xf32>
    tpu.vector_store %arg11[%1412, %c0_598, %c0_599], %1415 {strides = array<i32>} : memref<8x8x128xf32, #tpu.memory_space<vmem>>, vector<1x8x128xf32>,
    %c5_i32_600 = arith.constant 5 : i32
    %1416 = arith.index_cast %c5_i32_600 : i32 to index
    %c0_601 = arith.constant 0 : index
    %c0_602 = arith.constant 0 : index
    %1417 = vector.load %arg10[%1416, %c0_601, %c0_602] : memref<8x8x32xf32, #tpu.memory_space<vmem>>, vector<1x8x32xf32>
    %1418 = vector.shape_cast %1417 : vector<1x8x32xf32> to vector<8x32xf32>
    %cst_603 = arith.constant dense<0.000000e+00> : vector<8x128xf32>
    %1419 = tpu.matmul %1418, %1366, %cst_603 {dimension_numbers = #tpu.dot_dimension_numbers<[1], [0], [0], [1], [0, 0, 1, 1], [], []>} : vector<8x32xf32>, vector<32x128xf32>, vector<8x128xf32> -> vector<8x128xf32>
    %1420 = arith.addf %1419, %1370 : vector<8x128xf32>
    %1421 = arith.index_cast %c5_i32_600 : i32 to index
    %c0_604 = arith.constant 0 : index
    %c0_605 = arith.constant 0 : index
    %1422 = vector.load %arg11[%1421, %c0_604, %c0_605] : memref<8x8x128xf32, #tpu.memory_space<vmem>>, vector<1x8x128xf32>
    %1423 = vector.shape_cast %1422 : vector<1x8x128xf32> to vector<8x128xf32>
    %1424 = vector.shape_cast %1420 : vector<8x128xf32> to vector<1x8x128xf32>
    tpu.vector_store %arg11[%1421, %c0_604, %c0_605], %1424 {strides = array<i32>} : memref<8x8x128xf32, #tpu.memory_space<vmem>>, vector<1x8x128xf32>,
    %c6_i32_606 = arith.constant 6 : i32
    %1425 = arith.index_cast %c6_i32_606 : i32 to index
    %c0_607 = arith.constant 0 : index
    %c0_608 = arith.constant 0 : index
    %1426 = vector.load %arg10[%1425, %c0_607, %c0_608] : memref<8x8x32xf32, #tpu.memory_space<vmem>>, vector<1x8x32xf32>
    %1427 = vector.shape_cast %1426 : vector<1x8x32xf32> to vector<8x32xf32>
    %cst_609 = arith.constant dense<0.000000e+00> : vector<8x128xf32>
    %1428 = tpu.matmul %1427, %1366, %cst_609 {dimension_numbers = #tpu.dot_dimension_numbers<[1], [0], [0], [1], [0, 0, 1, 1], [], []>} : vector<8x32xf32>, vector<32x128xf32>, vector<8x128xf32> -> vector<8x128xf32>
    %1429 = arith.addf %1428, %1370 : vector<8x128xf32>
    %1430 = arith.index_cast %c6_i32_606 : i32 to index
    %c0_610 = arith.constant 0 : index
    %c0_611 = arith.constant 0 : index
    %1431 = vector.load %arg11[%1430, %c0_610, %c0_611] : memref<8x8x128xf32, #tpu.memory_space<vmem>>, vector<1x8x128xf32>
    %1432 = vector.shape_cast %1431 : vector<1x8x128xf32> to vector<8x128xf32>
    %1433 = vector.shape_cast %1429 : vector<8x128xf32> to vector<1x8x128xf32>
    tpu.vector_store %arg11[%1430, %c0_610, %c0_611], %1433 {strides = array<i32>} : memref<8x8x128xf32, #tpu.memory_space<vmem>>, vector<1x8x128xf32>,
    %c7_i32_612 = arith.constant 7 : i32
    %1434 = arith.index_cast %c7_i32_612 : i32 to index
    %c0_613 = arith.constant 0 : index
    %c0_614 = arith.constant 0 : index
    %1435 = vector.load %arg10[%1434, %c0_613, %c0_614] : memref<8x8x32xf32, #tpu.memory_space<vmem>>, vector<1x8x32xf32>
    %1436 = vector.shape_cast %1435 : vector<1x8x32xf32> to vector<8x32xf32>
    %cst_615 = arith.constant dense<0.000000e+00> : vector<8x128xf32>
    %1437 = tpu.matmul %1436, %1366, %cst_615 {dimension_numbers = #tpu.dot_dimension_numbers<[1], [0], [0], [1], [0, 0, 1, 1], [], []>} : vector<8x32xf32>, vector<32x128xf32>, vector<8x128xf32> -> vector<8x128xf32>
    %1438 = arith.addf %1437, %1370 : vector<8x128xf32>
    %1439 = arith.index_cast %c7_i32_612 : i32 to index
    %c0_616 = arith.constant 0 : index
    %c0_617 = arith.constant 0 : index
    %1440 = vector.load %arg11[%1439, %c0_616, %c0_617] : memref<8x8x128xf32, #tpu.memory_space<vmem>>, vector<1x8x128xf32>
    %1441 = vector.shape_cast %1440 : vector<1x8x128xf32> to vector<8x128xf32>
    %1442 = vector.shape_cast %1438 : vector<8x128xf32> to vector<1x8x128xf32>
    tpu.vector_store %arg11[%1439, %c0_616, %c0_617], %1442 {strides = array<i32>} : memref<8x8x128xf32, #tpu.memory_space<vmem>>, vector<1x8x128xf32>,
    %c8_i32_618 = arith.constant 8 : i32
    %c5_619 = arith.constant 5 : index
    %c0_620 = arith.constant 0 : index
    %c0_621 = arith.constant 0 : index
    %1443 = vector.load %arg4[%c5_619, %c0_620, %c0_621] : memref<6x32x128xf32, #tpu.memory_space<vmem>>, vector<1x32x128xf32>
    %1444 = vector.shape_cast %1443 : vector<1x32x128xf32> to vector<32x128xf32>
    %cst_622 = arith.constant 0.000000e+00 : f32
    %1445 = vector.broadcast %cst_622 : f32 to vector<8x32xf32>
    %c0_i32_623 = arith.constant 0 : i32
    %1446 = arith.index_cast %c0_i32_623 : i32 to index
    %c0_624 = arith.constant 0 : index
    %c0_625 = arith.constant 0 : index
    %1447 = vector.load %arg11[%1446, %c0_624, %c0_625] : memref<8x8x128xf32, #tpu.memory_space<vmem>>, vector<1x8x128xf32>
    %1448 = vector.shape_cast %1447 : vector<1x8x128xf32> to vector<8x128xf32>
    %cst_626 = arith.constant dense<0.000000e+00> : vector<8x128xf32>
    %1449 = tpu.matmul %1445, %1444, %cst_626 {dimension_numbers = #tpu.dot_dimension_numbers<[1], [0], [0], [1], [0, 0, 1, 1], [], []>} : vector<8x32xf32>, vector<32x128xf32>, vector<8x128xf32> -> vector<8x128xf32>
    %1450 = arith.addf %1448, %1449 : vector<8x128xf32>
    %cst_627 = arith.constant 5.000000e-01 : f32
    %1451 = vector.broadcast %cst_627 : f32 to vector<8x128xf32>
    %1452 = arith.mulf %1451, %1450 : vector<8x128xf32>
    %1453 = arith.select %5, %1450, %1452 : vector<8x128xi1>, vector<8x128xf32>
    %1454 = math.tanh %1453 : vector<8x128xf32>
    %cst_628 = arith.constant 1.000000e+00 : f32
    %1455 = vector.broadcast %cst_628 : f32 to vector<8x128xf32>
    %1456 = arith.addf %1454, %1455 : vector<8x128xf32>
    %cst_629 = arith.constant 5.000000e-01 : f32
    %1457 = vector.broadcast %cst_629 : f32 to vector<8x128xf32>
    %1458 = arith.mulf %1457, %1456 : vector<8x128xf32>
    %1459 = arith.select %5, %1454, %1458 : vector<8x128xi1>, vector<8x128xf32>
    %1460 = vector.extract_strided_slice %1459 {offsets = [0, 0], sizes = [8, 32], strides = [1, 1]} : vector<8x128xf32> to vector<8x32xf32>
    %1461 = vector.extract_strided_slice %1459 {offsets = [0, 32], sizes = [8, 32], strides = [1, 1]} : vector<8x128xf32> to vector<8x32xf32>
    %1462 = vector.extract_strided_slice %1459 {offsets = [0, 64], sizes = [8, 32], strides = [1, 1]} : vector<8x128xf32> to vector<8x32xf32>
    %1463 = vector.extract_strided_slice %1459 {offsets = [0, 96], sizes = [8, 32], strides = [1, 1]} : vector<8x128xf32> to vector<8x32xf32>
    %1464 = arith.mulf %1461, %1445 : vector<8x32xf32>
    %1465 = arith.mulf %1460, %1462 : vector<8x32xf32>
    %1466 = arith.addf %1464, %1465 : vector<8x32xf32>
    %1467 = math.tanh %1466 : vector<8x32xf32>
    %1468 = arith.mulf %1463, %1467 : vector<8x32xf32>
    %1469 = arith.index_cast %c0_i32_623 : i32 to index
    %c0_630 = arith.constant 0 : index
    %c0_631 = arith.constant 0 : index
    %1470 = vector.load %arg9[%1469, %c0_630, %c0_631] : memref<8x8x32xf32, #tpu.memory_space<vmem>>, vector<1x8x32xf32>
    %1471 = vector.shape_cast %1470 : vector<1x8x32xf32> to vector<8x32xf32>
    %1472 = vector.shape_cast %1468 : vector<8x32xf32> to vector<1x8x32xf32>
    tpu.vector_store %arg9[%1469, %c0_630, %c0_631], %1472 {strides = array<i32>} : memref<8x8x32xf32, #tpu.memory_space<vmem>>, vector<1x8x32xf32>,
    %c1_i32_632 = arith.constant 1 : i32
    %1473 = arith.index_cast %c1_i32_632 : i32 to index
    %c0_633 = arith.constant 0 : index
    %c0_634 = arith.constant 0 : index
    %1474 = vector.load %arg11[%1473, %c0_633, %c0_634] : memref<8x8x128xf32, #tpu.memory_space<vmem>>, vector<1x8x128xf32>
    %1475 = vector.shape_cast %1474 : vector<1x8x128xf32> to vector<8x128xf32>
    %cst_635 = arith.constant dense<0.000000e+00> : vector<8x128xf32>
    %1476 = tpu.matmul %1468, %1444, %cst_635 {dimension_numbers = #tpu.dot_dimension_numbers<[1], [0], [0], [1], [0, 0, 1, 1], [], []>} : vector<8x32xf32>, vector<32x128xf32>, vector<8x128xf32> -> vector<8x128xf32>
    %1477 = arith.addf %1475, %1476 : vector<8x128xf32>
    %cst_636 = arith.constant 5.000000e-01 : f32
    %1478 = vector.broadcast %cst_636 : f32 to vector<8x128xf32>
    %1479 = arith.mulf %1478, %1477 : vector<8x128xf32>
    %1480 = arith.select %5, %1477, %1479 : vector<8x128xi1>, vector<8x128xf32>
    %1481 = math.tanh %1480 : vector<8x128xf32>
    %cst_637 = arith.constant 1.000000e+00 : f32
    %1482 = vector.broadcast %cst_637 : f32 to vector<8x128xf32>
    %1483 = arith.addf %1481, %1482 : vector<8x128xf32>
    %cst_638 = arith.constant 5.000000e-01 : f32
    %1484 = vector.broadcast %cst_638 : f32 to vector<8x128xf32>
    %1485 = arith.mulf %1484, %1483 : vector<8x128xf32>
    %1486 = arith.select %5, %1481, %1485 : vector<8x128xi1>, vector<8x128xf32>
    %1487 = vector.extract_strided_slice %1486 {offsets = [0, 0], sizes = [8, 32], strides = [1, 1]} : vector<8x128xf32> to vector<8x32xf32>
    %1488 = vector.extract_strided_slice %1486 {offsets = [0, 32], sizes = [8, 32], strides = [1, 1]} : vector<8x128xf32> to vector<8x32xf32>
    %1489 = vector.extract_strided_slice %1486 {offsets = [0, 64], sizes = [8, 32], strides = [1, 1]} : vector<8x128xf32> to vector<8x32xf32>
    %1490 = vector.extract_strided_slice %1486 {offsets = [0, 96], sizes = [8, 32], strides = [1, 1]} : vector<8x128xf32> to vector<8x32xf32>
    %1491 = arith.mulf %1488, %1466 : vector<8x32xf32>
    %1492 = arith.mulf %1487, %1489 : vector<8x32xf32>
    %1493 = arith.addf %1491, %1492 : vector<8x32xf32>
    %1494 = math.tanh %1493 : vector<8x32xf32>
    %1495 = arith.mulf %1490, %1494 : vector<8x32xf32>
    %1496 = arith.index_cast %c1_i32_632 : i32 to index
    %c0_639 = arith.constant 0 : index
    %c0_640 = arith.constant 0 : index
    %1497 = vector.load %arg9[%1496, %c0_639, %c0_640] : memref<8x8x32xf32, #tpu.memory_space<vmem>>, vector<1x8x32xf32>
    %1498 = vector.shape_cast %1497 : vector<1x8x32xf32> to vector<8x32xf32>
    %1499 = vector.shape_cast %1495 : vector<8x32xf32> to vector<1x8x32xf32>
    tpu.vector_store %arg9[%1496, %c0_639, %c0_640], %1499 {strides = array<i32>} : memref<8x8x32xf32, #tpu.memory_space<vmem>>, vector<1x8x32xf32>,
    %c2_i32_641 = arith.constant 2 : i32
    %1500 = arith.index_cast %c2_i32_641 : i32 to index
    %c0_642 = arith.constant 0 : index
    %c0_643 = arith.constant 0 : index
    %1501 = vector.load %arg11[%1500, %c0_642, %c0_643] : memref<8x8x128xf32, #tpu.memory_space<vmem>>, vector<1x8x128xf32>
    %1502 = vector.shape_cast %1501 : vector<1x8x128xf32> to vector<8x128xf32>
    %cst_644 = arith.constant dense<0.000000e+00> : vector<8x128xf32>
    %1503 = tpu.matmul %1495, %1444, %cst_644 {dimension_numbers = #tpu.dot_dimension_numbers<[1], [0], [0], [1], [0, 0, 1, 1], [], []>} : vector<8x32xf32>, vector<32x128xf32>, vector<8x128xf32> -> vector<8x128xf32>
    %1504 = arith.addf %1502, %1503 : vector<8x128xf32>
    %cst_645 = arith.constant 5.000000e-01 : f32
    %1505 = vector.broadcast %cst_645 : f32 to vector<8x128xf32>
    %1506 = arith.mulf %1505, %1504 : vector<8x128xf32>
    %1507 = arith.select %5, %1504, %1506 : vector<8x128xi1>, vector<8x128xf32>
    %1508 = math.tanh %1507 : vector<8x128xf32>
    %cst_646 = arith.constant 1.000000e+00 : f32
    %1509 = vector.broadcast %cst_646 : f32 to vector<8x128xf32>
    %1510 = arith.addf %1508, %1509 : vector<8x128xf32>
    %cst_647 = arith.constant 5.000000e-01 : f32
    %1511 = vector.broadcast %cst_647 : f32 to vector<8x128xf32>
    %1512 = arith.mulf %1511, %1510 : vector<8x128xf32>
    %1513 = arith.select %5, %1508, %1512 : vector<8x128xi1>, vector<8x128xf32>
    %1514 = vector.extract_strided_slice %1513 {offsets = [0, 0], sizes = [8, 32], strides = [1, 1]} : vector<8x128xf32> to vector<8x32xf32>
    %1515 = vector.extract_strided_slice %1513 {offsets = [0, 32], sizes = [8, 32], strides = [1, 1]} : vector<8x128xf32> to vector<8x32xf32>
    %1516 = vector.extract_strided_slice %1513 {offsets = [0, 64], sizes = [8, 32], strides = [1, 1]} : vector<8x128xf32> to vector<8x32xf32>
    %1517 = vector.extract_strided_slice %1513 {offsets = [0, 96], sizes = [8, 32], strides = [1, 1]} : vector<8x128xf32> to vector<8x32xf32>
    %1518 = arith.mulf %1515, %1493 : vector<8x32xf32>
    %1519 = arith.mulf %1514, %1516 : vector<8x32xf32>
    %1520 = arith.addf %1518, %1519 : vector<8x32xf32>
    %1521 = math.tanh %1520 : vector<8x32xf32>
    %1522 = arith.mulf %1517, %1521 : vector<8x32xf32>
    %1523 = arith.index_cast %c2_i32_641 : i32 to index
    %c0_648 = arith.constant 0 : index
    %c0_649 = arith.constant 0 : index
    %1524 = vector.load %arg9[%1523, %c0_648, %c0_649] : memref<8x8x32xf32, #tpu.memory_space<vmem>>, vector<1x8x32xf32>
    %1525 = vector.shape_cast %1524 : vector<1x8x32xf32> to vector<8x32xf32>
    %1526 = vector.shape_cast %1522 : vector<8x32xf32> to vector<1x8x32xf32>
    tpu.vector_store %arg9[%1523, %c0_648, %c0_649], %1526 {strides = array<i32>} : memref<8x8x32xf32, #tpu.memory_space<vmem>>, vector<1x8x32xf32>,
    %c3_i32_650 = arith.constant 3 : i32
    %1527 = arith.index_cast %c3_i32_650 : i32 to index
    %c0_651 = arith.constant 0 : index
    %c0_652 = arith.constant 0 : index
    %1528 = vector.load %arg11[%1527, %c0_651, %c0_652] : memref<8x8x128xf32, #tpu.memory_space<vmem>>, vector<1x8x128xf32>
    %1529 = vector.shape_cast %1528 : vector<1x8x128xf32> to vector<8x128xf32>
    %cst_653 = arith.constant dense<0.000000e+00> : vector<8x128xf32>
    %1530 = tpu.matmul %1522, %1444, %cst_653 {dimension_numbers = #tpu.dot_dimension_numbers<[1], [0], [0], [1], [0, 0, 1, 1], [], []>} : vector<8x32xf32>, vector<32x128xf32>, vector<8x128xf32> -> vector<8x128xf32>
    %1531 = arith.addf %1529, %1530 : vector<8x128xf32>
    %cst_654 = arith.constant 5.000000e-01 : f32
    %1532 = vector.broadcast %cst_654 : f32 to vector<8x128xf32>
    %1533 = arith.mulf %1532, %1531 : vector<8x128xf32>
    %1534 = arith.select %5, %1531, %1533 : vector<8x128xi1>, vector<8x128xf32>
    %1535 = math.tanh %1534 : vector<8x128xf32>
    %cst_655 = arith.constant 1.000000e+00 : f32
    %1536 = vector.broadcast %cst_655 : f32 to vector<8x128xf32>
    %1537 = arith.addf %1535, %1536 : vector<8x128xf32>
    %cst_656 = arith.constant 5.000000e-01 : f32
    %1538 = vector.broadcast %cst_656 : f32 to vector<8x128xf32>
    %1539 = arith.mulf %1538, %1537 : vector<8x128xf32>
    %1540 = arith.select %5, %1535, %1539 : vector<8x128xi1>, vector<8x128xf32>
    %1541 = vector.extract_strided_slice %1540 {offsets = [0, 0], sizes = [8, 32], strides = [1, 1]} : vector<8x128xf32> to vector<8x32xf32>
    %1542 = vector.extract_strided_slice %1540 {offsets = [0, 32], sizes = [8, 32], strides = [1, 1]} : vector<8x128xf32> to vector<8x32xf32>
    %1543 = vector.extract_strided_slice %1540 {offsets = [0, 64], sizes = [8, 32], strides = [1, 1]} : vector<8x128xf32> to vector<8x32xf32>
    %1544 = vector.extract_strided_slice %1540 {offsets = [0, 96], sizes = [8, 32], strides = [1, 1]} : vector<8x128xf32> to vector<8x32xf32>
    %1545 = arith.mulf %1542, %1520 : vector<8x32xf32>
    %1546 = arith.mulf %1541, %1543 : vector<8x32xf32>
    %1547 = arith.addf %1545, %1546 : vector<8x32xf32>
    %1548 = math.tanh %1547 : vector<8x32xf32>
    %1549 = arith.mulf %1544, %1548 : vector<8x32xf32>
    %1550 = arith.index_cast %c3_i32_650 : i32 to index
    %c0_657 = arith.constant 0 : index
    %c0_658 = arith.constant 0 : index
    %1551 = vector.load %arg9[%1550, %c0_657, %c0_658] : memref<8x8x32xf32, #tpu.memory_space<vmem>>, vector<1x8x32xf32>
    %1552 = vector.shape_cast %1551 : vector<1x8x32xf32> to vector<8x32xf32>
    %1553 = vector.shape_cast %1549 : vector<8x32xf32> to vector<1x8x32xf32>
    tpu.vector_store %arg9[%1550, %c0_657, %c0_658], %1553 {strides = array<i32>} : memref<8x8x32xf32, #tpu.memory_space<vmem>>, vector<1x8x32xf32>,
    %c4_i32_659 = arith.constant 4 : i32
    %1554 = arith.index_cast %c4_i32_659 : i32 to index
    %c0_660 = arith.constant 0 : index
    %c0_661 = arith.constant 0 : index
    %1555 = vector.load %arg11[%1554, %c0_660, %c0_661] : memref<8x8x128xf32, #tpu.memory_space<vmem>>, vector<1x8x128xf32>
    %1556 = vector.shape_cast %1555 : vector<1x8x128xf32> to vector<8x128xf32>
    %cst_662 = arith.constant dense<0.000000e+00> : vector<8x128xf32>
    %1557 = tpu.matmul %1549, %1444, %cst_662 {dimension_numbers = #tpu.dot_dimension_numbers<[1], [0], [0], [1], [0, 0, 1, 1], [], []>} : vector<8x32xf32>, vector<32x128xf32>, vector<8x128xf32> -> vector<8x128xf32>
    %1558 = arith.addf %1556, %1557 : vector<8x128xf32>
    %cst_663 = arith.constant 5.000000e-01 : f32
    %1559 = vector.broadcast %cst_663 : f32 to vector<8x128xf32>
    %1560 = arith.mulf %1559, %1558 : vector<8x128xf32>
    %1561 = arith.select %5, %1558, %1560 : vector<8x128xi1>, vector<8x128xf32>
    %1562 = math.tanh %1561 : vector<8x128xf32>
    %cst_664 = arith.constant 1.000000e+00 : f32
    %1563 = vector.broadcast %cst_664 : f32 to vector<8x128xf32>
    %1564 = arith.addf %1562, %1563 : vector<8x128xf32>
    %cst_665 = arith.constant 5.000000e-01 : f32
    %1565 = vector.broadcast %cst_665 : f32 to vector<8x128xf32>
    %1566 = arith.mulf %1565, %1564 : vector<8x128xf32>
    %1567 = arith.select %5, %1562, %1566 : vector<8x128xi1>, vector<8x128xf32>
    %1568 = vector.extract_strided_slice %1567 {offsets = [0, 0], sizes = [8, 32], strides = [1, 1]} : vector<8x128xf32> to vector<8x32xf32>
    %1569 = vector.extract_strided_slice %1567 {offsets = [0, 32], sizes = [8, 32], strides = [1, 1]} : vector<8x128xf32> to vector<8x32xf32>
    %1570 = vector.extract_strided_slice %1567 {offsets = [0, 64], sizes = [8, 32], strides = [1, 1]} : vector<8x128xf32> to vector<8x32xf32>
    %1571 = vector.extract_strided_slice %1567 {offsets = [0, 96], sizes = [8, 32], strides = [1, 1]} : vector<8x128xf32> to vector<8x32xf32>
    %1572 = arith.mulf %1569, %1547 : vector<8x32xf32>
    %1573 = arith.mulf %1568, %1570 : vector<8x32xf32>
    %1574 = arith.addf %1572, %1573 : vector<8x32xf32>
    %1575 = math.tanh %1574 : vector<8x32xf32>
    %1576 = arith.mulf %1571, %1575 : vector<8x32xf32>
    %1577 = arith.index_cast %c4_i32_659 : i32 to index
    %c0_666 = arith.constant 0 : index
    %c0_667 = arith.constant 0 : index
    %1578 = vector.load %arg9[%1577, %c0_666, %c0_667] : memref<8x8x32xf32, #tpu.memory_space<vmem>>, vector<1x8x32xf32>
    %1579 = vector.shape_cast %1578 : vector<1x8x32xf32> to vector<8x32xf32>
    %1580 = vector.shape_cast %1576 : vector<8x32xf32> to vector<1x8x32xf32>
    tpu.vector_store %arg9[%1577, %c0_666, %c0_667], %1580 {strides = array<i32>} : memref<8x8x32xf32, #tpu.memory_space<vmem>>, vector<1x8x32xf32>,
    %c5_i32_668 = arith.constant 5 : i32
    %1581 = arith.index_cast %c5_i32_668 : i32 to index
    %c0_669 = arith.constant 0 : index
    %c0_670 = arith.constant 0 : index
    %1582 = vector.load %arg11[%1581, %c0_669, %c0_670] : memref<8x8x128xf32, #tpu.memory_space<vmem>>, vector<1x8x128xf32>
    %1583 = vector.shape_cast %1582 : vector<1x8x128xf32> to vector<8x128xf32>
    %cst_671 = arith.constant dense<0.000000e+00> : vector<8x128xf32>
    %1584 = tpu.matmul %1576, %1444, %cst_671 {dimension_numbers = #tpu.dot_dimension_numbers<[1], [0], [0], [1], [0, 0, 1, 1], [], []>} : vector<8x32xf32>, vector<32x128xf32>, vector<8x128xf32> -> vector<8x128xf32>
    %1585 = arith.addf %1583, %1584 : vector<8x128xf32>
    %cst_672 = arith.constant 5.000000e-01 : f32
    %1586 = vector.broadcast %cst_672 : f32 to vector<8x128xf32>
    %1587 = arith.mulf %1586, %1585 : vector<8x128xf32>
    %1588 = arith.select %5, %1585, %1587 : vector<8x128xi1>, vector<8x128xf32>
    %1589 = math.tanh %1588 : vector<8x128xf32>
    %cst_673 = arith.constant 1.000000e+00 : f32
    %1590 = vector.broadcast %cst_673 : f32 to vector<8x128xf32>
    %1591 = arith.addf %1589, %1590 : vector<8x128xf32>
    %cst_674 = arith.constant 5.000000e-01 : f32
    %1592 = vector.broadcast %cst_674 : f32 to vector<8x128xf32>
    %1593 = arith.mulf %1592, %1591 : vector<8x128xf32>
    %1594 = arith.select %5, %1589, %1593 : vector<8x128xi1>, vector<8x128xf32>
    %1595 = vector.extract_strided_slice %1594 {offsets = [0, 0], sizes = [8, 32], strides = [1, 1]} : vector<8x128xf32> to vector<8x32xf32>
    %1596 = vector.extract_strided_slice %1594 {offsets = [0, 32], sizes = [8, 32], strides = [1, 1]} : vector<8x128xf32> to vector<8x32xf32>
    %1597 = vector.extract_strided_slice %1594 {offsets = [0, 64], sizes = [8, 32], strides = [1, 1]} : vector<8x128xf32> to vector<8x32xf32>
    %1598 = vector.extract_strided_slice %1594 {offsets = [0, 96], sizes = [8, 32], strides = [1, 1]} : vector<8x128xf32> to vector<8x32xf32>
    %1599 = arith.mulf %1596, %1574 : vector<8x32xf32>
    %1600 = arith.mulf %1595, %1597 : vector<8x32xf32>
    %1601 = arith.addf %1599, %1600 : vector<8x32xf32>
    %1602 = math.tanh %1601 : vector<8x32xf32>
    %1603 = arith.mulf %1598, %1602 : vector<8x32xf32>
    %1604 = arith.index_cast %c5_i32_668 : i32 to index
    %c0_675 = arith.constant 0 : index
    %c0_676 = arith.constant 0 : index
    %1605 = vector.load %arg9[%1604, %c0_675, %c0_676] : memref<8x8x32xf32, #tpu.memory_space<vmem>>, vector<1x8x32xf32>
    %1606 = vector.shape_cast %1605 : vector<1x8x32xf32> to vector<8x32xf32>
    %1607 = vector.shape_cast %1603 : vector<8x32xf32> to vector<1x8x32xf32>
    tpu.vector_store %arg9[%1604, %c0_675, %c0_676], %1607 {strides = array<i32>} : memref<8x8x32xf32, #tpu.memory_space<vmem>>, vector<1x8x32xf32>,
    %c6_i32_677 = arith.constant 6 : i32
    %1608 = arith.index_cast %c6_i32_677 : i32 to index
    %c0_678 = arith.constant 0 : index
    %c0_679 = arith.constant 0 : index
    %1609 = vector.load %arg11[%1608, %c0_678, %c0_679] : memref<8x8x128xf32, #tpu.memory_space<vmem>>, vector<1x8x128xf32>
    %1610 = vector.shape_cast %1609 : vector<1x8x128xf32> to vector<8x128xf32>
    %cst_680 = arith.constant dense<0.000000e+00> : vector<8x128xf32>
    %1611 = tpu.matmul %1603, %1444, %cst_680 {dimension_numbers = #tpu.dot_dimension_numbers<[1], [0], [0], [1], [0, 0, 1, 1], [], []>} : vector<8x32xf32>, vector<32x128xf32>, vector<8x128xf32> -> vector<8x128xf32>
    %1612 = arith.addf %1610, %1611 : vector<8x128xf32>
    %cst_681 = arith.constant 5.000000e-01 : f32
    %1613 = vector.broadcast %cst_681 : f32 to vector<8x128xf32>
    %1614 = arith.mulf %1613, %1612 : vector<8x128xf32>
    %1615 = arith.select %5, %1612, %1614 : vector<8x128xi1>, vector<8x128xf32>
    %1616 = math.tanh %1615 : vector<8x128xf32>
    %cst_682 = arith.constant 1.000000e+00 : f32
    %1617 = vector.broadcast %cst_682 : f32 to vector<8x128xf32>
    %1618 = arith.addf %1616, %1617 : vector<8x128xf32>
    %cst_683 = arith.constant 5.000000e-01 : f32
    %1619 = vector.broadcast %cst_683 : f32 to vector<8x128xf32>
    %1620 = arith.mulf %1619, %1618 : vector<8x128xf32>
    %1621 = arith.select %5, %1616, %1620 : vector<8x128xi1>, vector<8x128xf32>
    %1622 = vector.extract_strided_slice %1621 {offsets = [0, 0], sizes = [8, 32], strides = [1, 1]} : vector<8x128xf32> to vector<8x32xf32>
    %1623 = vector.extract_strided_slice %1621 {offsets = [0, 32], sizes = [8, 32], strides = [1, 1]} : vector<8x128xf32> to vector<8x32xf32>
    %1624 = vector.extract_strided_slice %1621 {offsets = [0, 64], sizes = [8, 32], strides = [1, 1]} : vector<8x128xf32> to vector<8x32xf32>
    %1625 = vector.extract_strided_slice %1621 {offsets = [0, 96], sizes = [8, 32], strides = [1, 1]} : vector<8x128xf32> to vector<8x32xf32>
    %1626 = arith.mulf %1623, %1601 : vector<8x32xf32>
    %1627 = arith.mulf %1622, %1624 : vector<8x32xf32>
    %1628 = arith.addf %1626, %1627 : vector<8x32xf32>
    %1629 = math.tanh %1628 : vector<8x32xf32>
    %1630 = arith.mulf %1625, %1629 : vector<8x32xf32>
    %1631 = arith.index_cast %c6_i32_677 : i32 to index
    %c0_684 = arith.constant 0 : index
    %c0_685 = arith.constant 0 : index
    %1632 = vector.load %arg9[%1631, %c0_684, %c0_685] : memref<8x8x32xf32, #tpu.memory_space<vmem>>, vector<1x8x32xf32>
    %1633 = vector.shape_cast %1632 : vector<1x8x32xf32> to vector<8x32xf32>
    %1634 = vector.shape_cast %1630 : vector<8x32xf32> to vector<1x8x32xf32>
    tpu.vector_store %arg9[%1631, %c0_684, %c0_685], %1634 {strides = array<i32>} : memref<8x8x32xf32, #tpu.memory_space<vmem>>, vector<1x8x32xf32>,
    %c7_i32_686 = arith.constant 7 : i32
    %1635 = arith.index_cast %c7_i32_686 : i32 to index
    %c0_687 = arith.constant 0 : index
    %c0_688 = arith.constant 0 : index
    %1636 = vector.load %arg11[%1635, %c0_687, %c0_688] : memref<8x8x128xf32, #tpu.memory_space<vmem>>, vector<1x8x128xf32>
    %1637 = vector.shape_cast %1636 : vector<1x8x128xf32> to vector<8x128xf32>
    %cst_689 = arith.constant dense<0.000000e+00> : vector<8x128xf32>
    %1638 = tpu.matmul %1630, %1444, %cst_689 {dimension_numbers = #tpu.dot_dimension_numbers<[1], [0], [0], [1], [0, 0, 1, 1], [], []>} : vector<8x32xf32>, vector<32x128xf32>, vector<8x128xf32> -> vector<8x128xf32>
    %1639 = arith.addf %1637, %1638 : vector<8x128xf32>
    %cst_690 = arith.constant 5.000000e-01 : f32
    %1640 = vector.broadcast %cst_690 : f32 to vector<8x128xf32>
    %1641 = arith.mulf %1640, %1639 : vector<8x128xf32>
    %1642 = arith.select %5, %1639, %1641 : vector<8x128xi1>, vector<8x128xf32>
    %1643 = math.tanh %1642 : vector<8x128xf32>
    %cst_691 = arith.constant 1.000000e+00 : f32
    %1644 = vector.broadcast %cst_691 : f32 to vector<8x128xf32>
    %1645 = arith.addf %1643, %1644 : vector<8x128xf32>
    %cst_692 = arith.constant 5.000000e-01 : f32
    %1646 = vector.broadcast %cst_692 : f32 to vector<8x128xf32>
    %1647 = arith.mulf %1646, %1645 : vector<8x128xf32>
    %1648 = arith.select %5, %1643, %1647 : vector<8x128xi1>, vector<8x128xf32>
    %1649 = vector.extract_strided_slice %1648 {offsets = [0, 0], sizes = [8, 32], strides = [1, 1]} : vector<8x128xf32> to vector<8x32xf32>
    %1650 = vector.extract_strided_slice %1648 {offsets = [0, 32], sizes = [8, 32], strides = [1, 1]} : vector<8x128xf32> to vector<8x32xf32>
    %1651 = vector.extract_strided_slice %1648 {offsets = [0, 64], sizes = [8, 32], strides = [1, 1]} : vector<8x128xf32> to vector<8x32xf32>
    %1652 = vector.extract_strided_slice %1648 {offsets = [0, 96], sizes = [8, 32], strides = [1, 1]} : vector<8x128xf32> to vector<8x32xf32>
    %1653 = arith.mulf %1650, %1628 : vector<8x32xf32>
    %1654 = arith.mulf %1649, %1651 : vector<8x32xf32>
    %1655 = arith.addf %1653, %1654 : vector<8x32xf32>
    %1656 = math.tanh %1655 : vector<8x32xf32>
    %1657 = arith.mulf %1652, %1656 : vector<8x32xf32>
    %1658 = arith.index_cast %c7_i32_686 : i32 to index
    %c0_693 = arith.constant 0 : index
    %c0_694 = arith.constant 0 : index
    %1659 = vector.load %arg9[%1658, %c0_693, %c0_694] : memref<8x8x32xf32, #tpu.memory_space<vmem>>, vector<1x8x32xf32>
    %1660 = vector.shape_cast %1659 : vector<1x8x32xf32> to vector<8x32xf32>
    %1661 = vector.shape_cast %1657 : vector<8x32xf32> to vector<1x8x32xf32>
    tpu.vector_store %arg9[%1658, %c0_693, %c0_694], %1661 {strides = array<i32>} : memref<8x8x32xf32, #tpu.memory_space<vmem>>, vector<1x8x32xf32>,
    %c8_i32_695 = arith.constant 8 : i32
    %c0_696 = arith.constant 0 : index
    %c0_697 = arith.constant 0 : index
    %1662 = vector.load %arg6[%c0_696, %c0_697] : memref<32x8xf32, #tpu.memory_space<vmem>>, vector<32x8xf32>
    %c0_698 = arith.constant 0 : index
    %c0_699 = arith.constant 0 : index
    %1663 = vector.load %arg7[%c0_698, %c0_699] : memref<1x8xf32, #tpu.memory_space<vmem>>, vector<1x8xf32>
    %1664 = vector.shape_cast %1663 : vector<1x8xf32> to vector<1x8xf32>
    %1665 = vector.broadcast %1664 : vector<1x8xf32> to vector<8x8xf32>
    %c0_i32_700 = arith.constant 0 : i32
    %1666 = arith.index_cast %c0_i32_700 : i32 to index
    %c0_701 = arith.constant 0 : index
    %c0_702 = arith.constant 0 : index
    %1667 = vector.load %arg9[%1666, %c0_701, %c0_702] : memref<8x8x32xf32, #tpu.memory_space<vmem>>, vector<1x8x32xf32>
    %1668 = vector.shape_cast %1667 : vector<1x8x32xf32> to vector<8x32xf32>
    %cst_703 = arith.constant dense<0.000000e+00> : vector<8x8xf32>
    %1669 = tpu.matmul %1668, %1662, %cst_703 {dimension_numbers = #tpu.dot_dimension_numbers<[1], [0], [0], [1], [0, 0, 1, 1], [], []>} : vector<8x32xf32>, vector<32x8xf32>, vector<8x8xf32> -> vector<8x8xf32>
    %1670 = arith.addf %1669, %1665 : vector<8x8xf32>
    %1671 = arith.index_cast %c0_i32_700 : i32 to index
    %c0_704 = arith.constant 0 : index
    %c0_705 = arith.constant 0 : index
    %1672 = vector.load %arg8[%1671, %c0_704, %c0_705] : memref<8x8x8xf32, #tpu.memory_space<vmem>>, vector<1x8x8xf32>
    %1673 = vector.shape_cast %1672 : vector<1x8x8xf32> to vector<8x8xf32>
    %1674 = vector.shape_cast %1670 : vector<8x8xf32> to vector<1x8x8xf32>
    tpu.vector_store %arg8[%1671, %c0_704, %c0_705], %1674 {strides = array<i32>} : memref<8x8x8xf32, #tpu.memory_space<vmem>>, vector<1x8x8xf32>,
    %c1_i32_706 = arith.constant 1 : i32
    %1675 = arith.index_cast %c1_i32_706 : i32 to index
    %c0_707 = arith.constant 0 : index
    %c0_708 = arith.constant 0 : index
    %1676 = vector.load %arg9[%1675, %c0_707, %c0_708] : memref<8x8x32xf32, #tpu.memory_space<vmem>>, vector<1x8x32xf32>
    %1677 = vector.shape_cast %1676 : vector<1x8x32xf32> to vector<8x32xf32>
    %cst_709 = arith.constant dense<0.000000e+00> : vector<8x8xf32>
    %1678 = tpu.matmul %1677, %1662, %cst_709 {dimension_numbers = #tpu.dot_dimension_numbers<[1], [0], [0], [1], [0, 0, 1, 1], [], []>} : vector<8x32xf32>, vector<32x8xf32>, vector<8x8xf32> -> vector<8x8xf32>
    %1679 = arith.addf %1678, %1665 : vector<8x8xf32>
    %1680 = arith.index_cast %c1_i32_706 : i32 to index
    %c0_710 = arith.constant 0 : index
    %c0_711 = arith.constant 0 : index
    %1681 = vector.load %arg8[%1680, %c0_710, %c0_711] : memref<8x8x8xf32, #tpu.memory_space<vmem>>, vector<1x8x8xf32>
    %1682 = vector.shape_cast %1681 : vector<1x8x8xf32> to vector<8x8xf32>
    %1683 = vector.shape_cast %1679 : vector<8x8xf32> to vector<1x8x8xf32>
    tpu.vector_store %arg8[%1680, %c0_710, %c0_711], %1683 {strides = array<i32>} : memref<8x8x8xf32, #tpu.memory_space<vmem>>, vector<1x8x8xf32>,
    %c2_i32_712 = arith.constant 2 : i32
    %1684 = arith.index_cast %c2_i32_712 : i32 to index
    %c0_713 = arith.constant 0 : index
    %c0_714 = arith.constant 0 : index
    %1685 = vector.load %arg9[%1684, %c0_713, %c0_714] : memref<8x8x32xf32, #tpu.memory_space<vmem>>, vector<1x8x32xf32>
    %1686 = vector.shape_cast %1685 : vector<1x8x32xf32> to vector<8x32xf32>
    %cst_715 = arith.constant dense<0.000000e+00> : vector<8x8xf32>
    %1687 = tpu.matmul %1686, %1662, %cst_715 {dimension_numbers = #tpu.dot_dimension_numbers<[1], [0], [0], [1], [0, 0, 1, 1], [], []>} : vector<8x32xf32>, vector<32x8xf32>, vector<8x8xf32> -> vector<8x8xf32>
    %1688 = arith.addf %1687, %1665 : vector<8x8xf32>
    %1689 = arith.index_cast %c2_i32_712 : i32 to index
    %c0_716 = arith.constant 0 : index
    %c0_717 = arith.constant 0 : index
    %1690 = vector.load %arg8[%1689, %c0_716, %c0_717] : memref<8x8x8xf32, #tpu.memory_space<vmem>>, vector<1x8x8xf32>
    %1691 = vector.shape_cast %1690 : vector<1x8x8xf32> to vector<8x8xf32>
    %1692 = vector.shape_cast %1688 : vector<8x8xf32> to vector<1x8x8xf32>
    tpu.vector_store %arg8[%1689, %c0_716, %c0_717], %1692 {strides = array<i32>} : memref<8x8x8xf32, #tpu.memory_space<vmem>>, vector<1x8x8xf32>,
    %c3_i32_718 = arith.constant 3 : i32
    %1693 = arith.index_cast %c3_i32_718 : i32 to index
    %c0_719 = arith.constant 0 : index
    %c0_720 = arith.constant 0 : index
    %1694 = vector.load %arg9[%1693, %c0_719, %c0_720] : memref<8x8x32xf32, #tpu.memory_space<vmem>>, vector<1x8x32xf32>
    %1695 = vector.shape_cast %1694 : vector<1x8x32xf32> to vector<8x32xf32>
    %cst_721 = arith.constant dense<0.000000e+00> : vector<8x8xf32>
    %1696 = tpu.matmul %1695, %1662, %cst_721 {dimension_numbers = #tpu.dot_dimension_numbers<[1], [0], [0], [1], [0, 0, 1, 1], [], []>} : vector<8x32xf32>, vector<32x8xf32>, vector<8x8xf32> -> vector<8x8xf32>
    %1697 = arith.addf %1696, %1665 : vector<8x8xf32>
    %1698 = arith.index_cast %c3_i32_718 : i32 to index
    %c0_722 = arith.constant 0 : index
    %c0_723 = arith.constant 0 : index
    %1699 = vector.load %arg8[%1698, %c0_722, %c0_723] : memref<8x8x8xf32, #tpu.memory_space<vmem>>, vector<1x8x8xf32>
    %1700 = vector.shape_cast %1699 : vector<1x8x8xf32> to vector<8x8xf32>
    %1701 = vector.shape_cast %1697 : vector<8x8xf32> to vector<1x8x8xf32>
    tpu.vector_store %arg8[%1698, %c0_722, %c0_723], %1701 {strides = array<i32>} : memref<8x8x8xf32, #tpu.memory_space<vmem>>, vector<1x8x8xf32>,
    %c4_i32_724 = arith.constant 4 : i32
    %1702 = arith.index_cast %c4_i32_724 : i32 to index
    %c0_725 = arith.constant 0 : index
    %c0_726 = arith.constant 0 : index
    %1703 = vector.load %arg9[%1702, %c0_725, %c0_726] : memref<8x8x32xf32, #tpu.memory_space<vmem>>, vector<1x8x32xf32>
    %1704 = vector.shape_cast %1703 : vector<1x8x32xf32> to vector<8x32xf32>
    %cst_727 = arith.constant dense<0.000000e+00> : vector<8x8xf32>
    %1705 = tpu.matmul %1704, %1662, %cst_727 {dimension_numbers = #tpu.dot_dimension_numbers<[1], [0], [0], [1], [0, 0, 1, 1], [], []>} : vector<8x32xf32>, vector<32x8xf32>, vector<8x8xf32> -> vector<8x8xf32>
    %1706 = arith.addf %1705, %1665 : vector<8x8xf32>
    %1707 = arith.index_cast %c4_i32_724 : i32 to index
    %c0_728 = arith.constant 0 : index
    %c0_729 = arith.constant 0 : index
    %1708 = vector.load %arg8[%1707, %c0_728, %c0_729] : memref<8x8x8xf32, #tpu.memory_space<vmem>>, vector<1x8x8xf32>
    %1709 = vector.shape_cast %1708 : vector<1x8x8xf32> to vector<8x8xf32>
    %1710 = vector.shape_cast %1706 : vector<8x8xf32> to vector<1x8x8xf32>
    tpu.vector_store %arg8[%1707, %c0_728, %c0_729], %1710 {strides = array<i32>} : memref<8x8x8xf32, #tpu.memory_space<vmem>>, vector<1x8x8xf32>,
    %c5_i32_730 = arith.constant 5 : i32
    %1711 = arith.index_cast %c5_i32_730 : i32 to index
    %c0_731 = arith.constant 0 : index
    %c0_732 = arith.constant 0 : index
    %1712 = vector.load %arg9[%1711, %c0_731, %c0_732] : memref<8x8x32xf32, #tpu.memory_space<vmem>>, vector<1x8x32xf32>
    %1713 = vector.shape_cast %1712 : vector<1x8x32xf32> to vector<8x32xf32>
    %cst_733 = arith.constant dense<0.000000e+00> : vector<8x8xf32>
    %1714 = tpu.matmul %1713, %1662, %cst_733 {dimension_numbers = #tpu.dot_dimension_numbers<[1], [0], [0], [1], [0, 0, 1, 1], [], []>} : vector<8x32xf32>, vector<32x8xf32>, vector<8x8xf32> -> vector<8x8xf32>
    %1715 = arith.addf %1714, %1665 : vector<8x8xf32>
    %1716 = arith.index_cast %c5_i32_730 : i32 to index
    %c0_734 = arith.constant 0 : index
    %c0_735 = arith.constant 0 : index
    %1717 = vector.load %arg8[%1716, %c0_734, %c0_735] : memref<8x8x8xf32, #tpu.memory_space<vmem>>, vector<1x8x8xf32>
    %1718 = vector.shape_cast %1717 : vector<1x8x8xf32> to vector<8x8xf32>
    %1719 = vector.shape_cast %1715 : vector<8x8xf32> to vector<1x8x8xf32>
    tpu.vector_store %arg8[%1716, %c0_734, %c0_735], %1719 {strides = array<i32>} : memref<8x8x8xf32, #tpu.memory_space<vmem>>, vector<1x8x8xf32>,
    %c6_i32_736 = arith.constant 6 : i32
    %1720 = arith.index_cast %c6_i32_736 : i32 to index
    %c0_737 = arith.constant 0 : index
    %c0_738 = arith.constant 0 : index
    %1721 = vector.load %arg9[%1720, %c0_737, %c0_738] : memref<8x8x32xf32, #tpu.memory_space<vmem>>, vector<1x8x32xf32>
    %1722 = vector.shape_cast %1721 : vector<1x8x32xf32> to vector<8x32xf32>
    %cst_739 = arith.constant dense<0.000000e+00> : vector<8x8xf32>
    %1723 = tpu.matmul %1722, %1662, %cst_739 {dimension_numbers = #tpu.dot_dimension_numbers<[1], [0], [0], [1], [0, 0, 1, 1], [], []>} : vector<8x32xf32>, vector<32x8xf32>, vector<8x8xf32> -> vector<8x8xf32>
    %1724 = arith.addf %1723, %1665 : vector<8x8xf32>
    %1725 = arith.index_cast %c6_i32_736 : i32 to index
    %c0_740 = arith.constant 0 : index
    %c0_741 = arith.constant 0 : index
    %1726 = vector.load %arg8[%1725, %c0_740, %c0_741] : memref<8x8x8xf32, #tpu.memory_space<vmem>>, vector<1x8x8xf32>
    %1727 = vector.shape_cast %1726 : vector<1x8x8xf32> to vector<8x8xf32>
    %1728 = vector.shape_cast %1724 : vector<8x8xf32> to vector<1x8x8xf32>
    tpu.vector_store %arg8[%1725, %c0_740, %c0_741], %1728 {strides = array<i32>} : memref<8x8x8xf32, #tpu.memory_space<vmem>>, vector<1x8x8xf32>,
    %c7_i32_742 = arith.constant 7 : i32
    %1729 = arith.index_cast %c7_i32_742 : i32 to index
    %c0_743 = arith.constant 0 : index
    %c0_744 = arith.constant 0 : index
    %1730 = vector.load %arg9[%1729, %c0_743, %c0_744] : memref<8x8x32xf32, #tpu.memory_space<vmem>>, vector<1x8x32xf32>
    %1731 = vector.shape_cast %1730 : vector<1x8x32xf32> to vector<8x32xf32>
    %cst_745 = arith.constant dense<0.000000e+00> : vector<8x8xf32>
    %1732 = tpu.matmul %1731, %1662, %cst_745 {dimension_numbers = #tpu.dot_dimension_numbers<[1], [0], [0], [1], [0, 0, 1, 1], [], []>} : vector<8x32xf32>, vector<32x8xf32>, vector<8x8xf32> -> vector<8x8xf32>
    %1733 = arith.addf %1732, %1665 : vector<8x8xf32>
    %1734 = arith.index_cast %c7_i32_742 : i32 to index
    %c0_746 = arith.constant 0 : index
    %c0_747 = arith.constant 0 : index
    %1735 = vector.load %arg8[%1734, %c0_746, %c0_747] : memref<8x8x8xf32, #tpu.memory_space<vmem>>, vector<1x8x8xf32>
    %1736 = vector.shape_cast %1735 : vector<1x8x8xf32> to vector<8x8xf32>
    %1737 = vector.shape_cast %1733 : vector<8x8xf32> to vector<1x8x8xf32>
    tpu.vector_store %arg8[%1734, %c0_746, %c0_747], %1737 {strides = array<i32>} : memref<8x8x8xf32, #tpu.memory_space<vmem>>, vector<1x8x8xf32>,
    %c8_i32_748 = arith.constant 8 : i32
    return
  }
  func.func @transform_0(%arg0: i32) -> (i32, i32, i32) {
    %c0_i32 = arith.constant 0 : i32
    %c0_i32_0 = arith.constant 0 : i32
    %c0_i32_1 = arith.constant 0 : i32
    return %c0_i32, %arg0, %c0_i32_0 : i32, i32, i32
  }
  func.func @transform_1(%arg0: i32) -> (i32, i32) {
    %c0_i32 = arith.constant 0 : i32
    %c0_i32_0 = arith.constant 0 : i32
    %c0_i32_1 = arith.constant 0 : i32
    return %c0_i32, %c0_i32_0 : i32, i32
  }
  func.func @transform_2(%arg0: i32) -> (i32, i32, i32) {
    %c0_i32 = arith.constant 0 : i32
    %c0_i32_0 = arith.constant 0 : i32
    %c0_i32_1 = arith.constant 0 : i32
    %c0_i32_2 = arith.constant 0 : i32
    return %c0_i32, %c0_i32_0, %c0_i32_1 : i32, i32, i32
  }
  func.func @transform_3(%arg0: i32) -> (i32, i32, i32) {
    %c0_i32 = arith.constant 0 : i32
    %c0_i32_0 = arith.constant 0 : i32
    %c0_i32_1 = arith.constant 0 : i32
    %c0_i32_2 = arith.constant 0 : i32
    return %c0_i32, %c0_i32_0, %c0_i32_1 : i32, i32, i32
  }
  func.func @transform_4(%arg0: i32) -> (i32, i32, i32) {
    %c0_i32 = arith.constant 0 : i32
    %c0_i32_0 = arith.constant 0 : i32
    %c0_i32_1 = arith.constant 0 : i32
    %c0_i32_2 = arith.constant 0 : i32
    return %c0_i32, %c0_i32_0, %c0_i32_1 : i32, i32, i32
  }
  func.func @transform_5(%arg0: i32) -> (i32, i32) {
    %c0_i32 = arith.constant 0 : i32
    %c0_i32_0 = arith.constant 0 : i32
    %c0_i32_1 = arith.constant 0 : i32
    return %c0_i32, %c0_i32_0 : i32, i32
  }
  func.func @transform_6(%arg0: i32) -> (i32, i32) {
    %c0_i32 = arith.constant 0 : i32
    %c0_i32_0 = arith.constant 0 : i32
    %c0_i32_1 = arith.constant 0 : i32
    return %c0_i32, %c0_i32_0 : i32, i32
  }
  func.func @transform_7(%arg0: i32) -> (i32, i32, i32) {
    %c0_i32 = arith.constant 0 : i32
    %c0_i32_0 = arith.constant 0 : i32
    %c0_i32_1 = arith.constant 0 : i32
    return %c0_i32, %arg0, %c0_i32_0 : i32, i32, i32
  }
}

</mosaic_0001>

<bundles_post_ra>
// kernel: tpu_custom_call.1
= control target key start
LH: loop header
LB: loop body
LE: loop exit
PB: predicated region body
PF: predicated region fallthrough
CT: control target
= control target key end

     0   :  { %12 = vsyncpa [#allocation6], 0  ;;  %s12700_s0 = inlined_call_operand.hbm [shape: f32[8,8,8], index: 0, kind: input, shape index: {}]   ;;  %s12701_s1 = inlined_call_operand.vmem [shape: f32[8,128], index: 1, kind: input, shape index: {}]   ;;  %s12702_s2 = inlined_call_operand.hbm [shape: f32[5,32,128], index: 2, kind: input, shape index: {}]   ;;  %s12703_s3 = inlined_call_operand.hbm [shape: f32[6,32,128], index: 3, kind: input, shape index: {}]   ;;  %s12704_s4 = inlined_call_operand.vmem [shape: f32[6,1,128], index: 4, kind: input, shape index: {}]   ;;  %s12705_s5 = inlined_call_operand.vmem [shape: f32[32,8], index: 5, kind: input, shape index: {}]   ;;  %s12706_s6 = inlined_call_operand.vmem [shape: f32[1,8], index: 6, kind: input, shape index: {}]   ;;  %s12707_s7 = inlined_call_operand.hbm [shape: f32[8,8,8], index: 7, kind: output, shape index: {}]  }
   0x1   :  { %13 = vsyncpa [#allocation9], 0 }
   0x2   :  { %14 = vsyncpa [#allocation7], 0  ;;  %s11309_s24 = smov [#allocation8]   ;;  %s11310_s26 = smov [#allocation5]  }
   0x3   :  { %s34_s25 = sshll.u32 %s11309_s24, 4  ;;  %s20_s27 = sshll.u32 %s11310_s26, 4  ;;  %s35_s25 = int_to_ptr.vmem [resolvable:$true] %s34_s25  ;;  %s11360_s27 = int_to_ptr.vmem [resolvable:$true] %s20_s27 }
   0x4   :  { %s11215_s30 = scalar_lea.hbm %s12702_s2, 2560 }
   0x5   :  { %p11216_p0 = scmp.ne.s32.totalorder %s12702_s2, %s11215_s30  ;;  %p11219_p1 = scmp.lt.u32.totalorder %s11215_s30, %s12702_s2 }
   0x7   :  { %p11221_p2 = pnand %p11219_p1, %p11216_p0 }
   0x9   :  { %11224 = shalt.err (!%p11221_p2)
}
   0xa   :  { %s11225_s12 = scalar_lea.vmem %s35_s25, 2560  ;;  %p11230_p4 = scmp.lt.s32.totalorder %s35_s25, %s35_s25 }
   0xb   :  { %p11226_p3 = scmp.ne.s32.totalorder %s35_s25, %s11225_s12  ;;  %p11231_p5 = scmp.lt.s32.totalorder %s11225_s12, %s11225_s12 }
   0xd   :  { %p11232_p6 = por %p11231_p5, %p11230_p4 }
   0xf   :  { %p11233_p7 = pnand %p11232_p6, %p11226_p3 }
  0x11   :  { %11236 = shalt.err (!%p11233_p7)
}
  0x12   :  { %s11311_s13 = smov 128   ;;  %s11312_s14 = smov 8  }
  0x13   :  { %40 = dma.hbm_to_vmem [thread:$0]  %s12702_s2, 2560, %s35_s25, [#allocation9], %s11311_s13, %s11311_s13, %s11312_s14  }
  0x14   :  { %s11237_s19 = scalar_lea.hbm %s12700_s0, 1024 }
  0x15   :  { %p11238_p8 = scmp.ne.s32.totalorder %s12700_s0, %s11237_s19  ;;  %p11241_p9 = scmp.lt.u32.totalorder %s11237_s19, %s12700_s0 }
  0x17   :  { %p11243_p10 = pnand %p11241_p9, %p11238_p8 }
  0x19   :  { %11246 = shalt.err (!%p11243_p10)
}
  0x1a   :  { %s11247_s24 = scalar_lea.vmem %s11360_s27, 1024  ;;  %p11252_p12 = scmp.lt.s32.totalorder %s11360_s27, %s11360_s27 }
  0x1b   :  { %p11248_p11 = scmp.ne.s32.totalorder %s11360_s27, %s11247_s24  ;;  %p11253_p13 = scmp.lt.s32.totalorder %s11247_s24, %s11247_s24 }
  0x1d   :  { %p11254_p0 = por %p11253_p13, %p11252_p12 }
  0x1f   :  { %p11255_p1 = pnand %p11254_p0, %p11248_p11 }
  0x21   :  { %11258 = shalt.err (!%p11255_p1)
}
  0x22   :  { %26 = dma.hbm_to_vmem [thread:$0]  %s12700_s0, 1024, %s11360_s27, [#allocation6], %s11311_s13, %s11311_s13, %s11312_s14  }
  0x23   :  { %s11313_s26 = smov [#allocation10]   ;;  %s11259_s8 = scalar_lea.hbm %s12703_s3, 3072 }
  0x24   :  { %s46_s28 = sshll.u32 %s11313_s26, 4  ;;  %p11260_p2 = scmp.ne.s32.totalorder %s12703_s3, %s11259_s8  ;;  %s47_s28 = int_to_ptr.vmem [resolvable:$true] %s46_s28 }
  0x25   :  { %p11263_p3 = scmp.lt.u32.totalorder %s11259_s8, %s12703_s3 }
  0x27   :  { %p11265_p4 = pnand %p11263_p3, %p11260_p2 }
  0x29   :  { %11268 = shalt.err (!%p11265_p4)
}
  0x2a   :  { %s11269_s15 = scalar_lea.vmem %s47_s28, 3072  ;;  %p11274_p6 = scmp.lt.s32.totalorder %s47_s28, %s47_s28 }
  0x2b   :  { %p11270_p5 = scmp.ne.s32.totalorder %s47_s28, %s11269_s15  ;;  %p11275_p7 = scmp.lt.s32.totalorder %s11269_s15, %s11269_s15 }
  0x2d   :  { %p11276_p8 = por %p11275_p7, %p11274_p6 }
  0x2f   :  { %p11277_p9 = pnand %p11276_p8, %p11270_p5 }
  0x31   :  { %11280 = shalt.err (!%p11277_p9)
}
  0x32   :  { %52 = dma.hbm_to_vmem [thread:$0]  %s12703_s3, 3072, %s47_s28, [#allocation9], %s11311_s13, %s11311_s13, %s11312_s14  }
  0x33   :  { %11303 = dma.done.wait [#allocation6], 1024  }
  0x34   :  { %11304 = vsyncadd [#allocation6], 4294966272 }
  0x35   :  { %11305 = dma.done.wait [#allocation9], 5632  }
  0x36   :  { %11306 = vsyncadd [#allocation9], 4294961664  ;;  %v11314_v0 = vmov 0.0   ;;  %vm11315_vm0 = vmmov 0   ;;  %vm82_vm1 = vcmask 64512   ;;  %v11421_v1 = vld [vmem:[%s12701_s1] sm:$0xff]  ;;  %v68_v15 = vlaneseq }
  0x37   :  { %9350 = vmatprep.subr.mxu0 %v11314_v0  ;;  %9352 = vmatprep.mubr.msk.f32.mxu0 %vm11315_vm0, %v11314_v0  ;;  %v235_v2 = vld [vmem:[#allocation5 + $0x10] sm:$0xff]  ;;  %v81_v3 = vld [vmem:[#allocation5] sm:$0xff]  ;;  %v697_v6 = vld [vmem:[#allocation10 + $0x8] sm:$0xff]  ;;  %v11316_v9 = vmov 0.0|0.0   ;;  %s11317_s18 = smov 64   ;;  %s11318_s19 = smov 32  }
  0x38   :  { %9340 = vmatprep.subr.mxu1 %v11314_v0  ;;  %9342 = vmatprep.mubr.msk.f32.mxu1 %vm11315_vm0, %v11314_v0  ;;  %v389_v4 = vld [vmem:[#allocation5 + $0x20] sm:$0xff]  ;;  %v543_v7 = vld [vmem:[#allocation5 + $0x30] sm:$0xff]  ;;  %v699_v11 = vld [vmem:[#allocation10 + $0x18] sm:$0xff]  ;;  %v69_v17 = vand.u32 127, %v68_v15  ;;  %vm701_vm5 = vcmask 261120  }
  0x39   :  { %9351 = vmatpush3.msra.mxu0 %v11421_v1  ;;  %9341 = vmatpush3.msra.mxu1 %v11421_v1  ;;  %v696_v5 = vld [vmem:[#allocation10] sm:$0xff]  ;;  %v698_v10 = vld [vmem:[#allocation10 + $0x10] sm:$0xff]  ;;  %v158_v34 = vld [vmem:[#allocation5 + $0x8] sm:$0xff] }
  0x3a   :  { %9353 = vmatmul.mubr.msk.f32.vlgmr.msra.gmra.mrb[0].mxu0 %vm82_vm1, %v235_v2  ;;  %9360 = vmatprep.subr.mxu0 %v11314_v0  ;;  %v11440_v8 = vpack.c.bf16 %v697_v6, %v696_v5  ;;  %v11446_v12 = vpack.c.bf16 %v699_v11, %v698_v10  ;;  %v11463_v16 = vld [vmem:[%s12704_s4] ss:$0 sm:$0xff]  ;;  %vm70_vm2 = vcmp.ge.s32.totalorder %v69_v17, 64  ;;  %vm71_vm3 = vcmp.lt.s32.totalorder %v69_v17, 96  ;;  %v312_v35 = vld [vmem:[#allocation5 + $0x18] sm:$0xff]  ;;  %v466_v36 = vld [vmem:[#allocation5 + $0x28] sm:$0xff] }
  0x3b   :  { %9361 = vmatpush3.msra.mxu0 %v11421_v1  ;;  %9362 = vmatprep.mubr.msk.f32.mxu0 %vm11315_vm0, %v11314_v0  ;;  %vm11466_vm4 = vmand %vm70_vm2, %vm71_vm3  ;;  %v620_v38 = vld [vmem:[#allocation5 + $0x38] sm:$0xff] }
  0x3c   :  { %9370 = vmatprep.subr.mxu0 %v11314_v0  ;;  %9343 = vmatmul.mubr.msk.f32.vlgmr.msra.gmra.mrb[0].mxu1 %vm82_vm1, %v81_v3 }
  0x3d   :  { %9345 = vmatprep.subr.mxu1 %v11314_v0  ;;  %9347 = vmatprep.mubr.msk.f32.mxu1 %vm11315_vm0, %v11314_v0 }
  0x3e   :  { %9363 = vmatmul.mubr.msk.f32.vlgmr.msra.gmra.mrb[2].mxu0 %vm82_vm1, %v389_v4  ;;  %9346 = vmatpush3.msra.mxu1 %v11421_v1 }
  0x3f   :  { %9371 = vmatpush3.msra.mxu0 %v11421_v1  ;;  %9372 = vmatprep.mubr.msk.f32.mxu0 %vm11315_vm0, %v11314_v0 }
  0x40   :  { %10359 = vmatprep.subr.bf16.mxu0 %v11316_v9  ;;  %9355 = vmatprep.subr.mxu1 %v11314_v0 }
  0x41   :  { %9348 = vmatmul.mubr.msk.f32.vlgmr.msra.gmra.mrb[2].mxu1 %vm82_vm1, %v158_v34 }
  0x42   :  { %9373 = vmatmul.mubr.msk.f32.vlgmr.msra.gmra.mrb[4].mxu0 %vm82_vm1, %v543_v7  ;;  %9356 = vmatpush3.msra.mxu1 %v11421_v1 }
  0x43   :  { %10361 = vmatpush3.bf16.msra.mxu0 %v11440_v8  ;;  %9388 = vmatprep.mubr.msk.f32.mxu0 %vm11315_vm0, %v11314_v0 }
  0x44   :  { %10362 = vmatprep.subr.bf16.mxu0 %v11316_v9  ;;  %9357 = vmatprep.mubr.msk.f32.mxu1 %vm11315_vm0, %v11314_v0 }
  0x45   :  { %9365 = vmatprep.subr.mxu1 %v11314_v0  ;;  %9358 = vmatmul.mubr.msk.f32.vlgmr.msra.gmra.mrb[4].mxu1 %vm82_vm1, %v312_v35 }
  0x46   :  { %9366 = vmatpush3.msra.mxu1 %v11421_v1  ;;  %9367 = vmatprep.mubr.msk.f32.mxu1 %vm11315_vm0, %v11314_v0 }
  0x47   :  { %10364 = vmatpush3.bf16.msra.mxu0 %v11446_v12  ;;  %9375 = vmatprep.subr.mxu1 %v11314_v0 }
  0x48   :  { %10371 = vmatprep.subr.bf16.mxu0 %v11316_v9 }
  0x49   :  { %9368 = vmatmul.mubr.msk.f32.vlgmr.msra.gmra.mrb[6].mxu1 %vm82_vm1, %v466_v36 }
  0x4a   :  { %9389 = vmatmul.mubr.f32.vlgmr.msra.gmra.mrb[6].mxu0 %v11314_v0  ;;  %9376 = vmatpush3.msra.mxu1 %v11421_v1 }
  0x4b   :  { %10373 = vmatpush3.bf16.msra.mxu0 %v11440_v8  ;;  %9410 = vmatprep.mubr.msk.f32.mxu0 %vm11315_vm0, %v11314_v0 }
  0x4c   :  { %10374 = vmatprep.subr.bf16.mxu0 %v11316_v9  ;;  %9377 = vmatprep.mubr.msk.f32.mxu1 %vm11315_vm0, %v11314_v0 }
  0x4d   :  { %10365 = vmatprep.subr.bf16.mxu1 %v11316_v9  ;;  %9378 = vmatmul.mubr.msk.f32.vlgmr.msra.gmra.mrb[8].mxu1 %vm82_vm1, %v620_v38 }
  0x4e   :  { %10367 = vmatpush3.bf16.msra.mxu1 %v11440_v8  ;;  %9399 = vmatprep.mubr.msk.f32.mxu1 %vm11315_vm0, %v11314_v0 }
  0x4f   :  { %10376 = vmatpush3.bf16.msra.mxu0 %v11446_v12  ;;  %10368 = vmatprep.subr.bf16.mxu1 %v11316_v9 }
  0x50   :  { %10383 = vmatprep.subr.bf16.mxu0 %v11316_v9 }
  0x52   :  { %10370 = vmatpush3.bf16.msra.mxu1 %v11446_v12 }
  0x53   :  { %10377 = vmatprep.subr.bf16.mxu1 %v11316_v9 }
 0x10f   :  { %v152_v13 = vpop.f32.mrb[0].mxu1 }
 0x110   :  { %v9344_v14 = vpop.f32.mrb[1].mxu1  ;;  %v153_v18 = vadd.f32 %v11463_v16, %v152_v13 }
 0x11d   :  { %v771_v19 = vpop.f32.mrb[6].mxu0 }
 0x11e   :  { %v775_v20 = vadd.f32 %v771_v19, %v153_v18  ;;  %v9390_v21 = vpop.f32.mrb[7].mxu0 }
 0x120   :  { %v776_v23 = vmul.f32 0.5, %v775_v20 }
 0x122   :  { %v777_v24 = vsel %vm11466_vm4, %v775_v20, %v776_v23 }
 0x123   :  { %11023 = vtanh.f32 %v777_v24 }
 0x12d   :  { %v11024_v25 = vpop.eup %11023 }
 0x12e   :  { %v779_v26 = vadd.f32 1.0, %v11024_v25 }
 0x130   :  { %v780_v27 = vmul.f32 0.5, %v779_v26 }
 0x132   :  { %v781_v28 = vsel %vm11466_vm4, %v11024_v25, %v780_v27 }
 0x133   :  { %784 = vrot.lane.b32.xlu0 %v781_v28, %s11317_s18  ;;  %v782_v31 = vmul.f32 0.0, %v781_v28 }
 0x1a5   :  { %v785_v29 = vpop.permute.xlu0 %784 }
 0x1a6   :  { %v787_v30 = vmul.f32 %v785_v29, %v781_v28 }
 0x1a8   :  { %789 = vrot.lane.b32.xlu0 %v787_v30, %s11318_s19 }
 0x21a   :  { %v790_v32 = vpop.permute.xlu0 %789 }
 0x21b   :  { %v792_v33 = vadd.f32 %v790_v32, %v782_v31 }
 0x21d   :  { %11025 = vtanh.f32 %v792_v33 }
 0x227   :  { %v11026_v37 = vpop.eup %11025 }
 0x228   :  { %795 = vrot.lane.b32.xlu1 %v11026_v37, %s11317_s18 }
 0x29a   :  { %v796_v39 = vpop.permute.xlu1 %795 }
 0x29b   :  { %v798_v40 = vmul.f32 %v796_v39, %v781_v28 }
 0x29d   :  { %800 = vrot.lane.b32.xlu1 %v798_v40, %s11318_s19 }
 0x30f   :  { %v801_v41 = vpop.permute.xlu1 %800 }
 0x310   :  { %803 = vst.msk [vmem:[#allocation2] sm:$0xff] %vm701_vm5, %v801_v41  ;;  %9400 = vmatmul.mubr.msk.f32.vlgmr.msra.gmra.mrb[2].mxu1 %vm701_vm5, %v801_v41 }
 0x311   :  { %10379 = vmatpush3.bf16.msra.mxu1 %v11440_v8  ;;  %9421 = vmatprep.mubr.msk.f32.mxu1 %vm11315_vm0, %v11314_v0 }
 0x312   :  { %10380 = vmatprep.subr.bf16.mxu1 %v11316_v9 }
 0x315   :  { %10382 = vmatpush3.bf16.msra.mxu1 %v11446_v12 }
 0x316   :  { %10389 = vmatprep.subr.bf16.mxu1 %v11316_v9 }
 0x3e3   :  { %v873_v42 = vpop.f32.mrb[2].mxu1 }
 0x3e4   :  { %v10895_v43 = vadd.f32 %v11463_v16, %v873_v42  ;;  %v9401_v44 = vpop.f32.mrb[3].mxu1 }
 0x3e6   :  { %v878_v45 = vmul.f32 0.5, %v10895_v43 }
 0x3e8   :  { %v879_v46 = vsel %vm11466_vm4, %v10895_v43, %v878_v45 }
 0x3e9   :  { %11027 = vtanh.f32 %v879_v46 }
 0x3f3   :  { %v11028_v47 = vpop.eup %11027 }
 0x3f4   :  { %v881_v48 = vadd.f32 1.0, %v11028_v47 }
 0x3f6   :  { %v882_v49 = vmul.f32 0.5, %v881_v48 }
 0x3f8   :  { %v883_v50 = vsel %vm11466_vm4, %v11028_v47, %v882_v49 }
 0x3f9   :  { %886 = vrot.lane.b32.xlu0 %v883_v50, %s11317_s18  ;;  %v884_v53 = vmul.f32 %v883_v50, %v792_v33 }
 0x46b   :  { %v887_v51 = vpop.permute.xlu0 %886 }
 0x46c   :  { %v889_v52 = vmul.f32 %v887_v51, %v883_v50 }
 0x46e   :  { %891 = vrot.lane.b32.xlu1 %v889_v52, %s11318_s19 }
 0x4e0   :  { %v892_v54 = vpop.permute.xlu1 %891 }
 0x4e1   :  { %v894_v55 = vadd.f32 %v892_v54, %v884_v53 }
 0x4e3   :  { %11029 = vtanh.f32 %v894_v55 }
 0x4ed   :  { %v11030_v56 = vpop.eup %11029 }
 0x4ee   :  { %897 = vrot.lane.b32.xlu0 %v11030_v56, %s11317_s18 }
 0x560   :  { %v898_v57 = vpop.permute.xlu0 %897 }
 0x561   :  { %v900_v58 = vmul.f32 %v898_v57, %v883_v50 }
 0x563   :  { %902 = vrot.lane.b32.xlu1 %v900_v58, %s11318_s19 }
 0x5d5   :  { %v903_v59 = vpop.permute.xlu1 %902 }
 0x5d6   :  { %906 = vst.msk [vmem:[#allocation2 + $0x8] sm:$0xff] %vm701_vm5, %v903_v59  ;;  %9411 = vmatmul.mubr.msk.f32.vlgmr.msra.gmra.mrb[0].mxu0 %vm701_vm5, %v903_v59 }
 0x5d7   :  { %10385 = vmatpush3.bf16.msra.mxu0 %v11440_v8  ;;  %9432 = vmatprep.mubr.msk.f32.mxu0 %vm11315_vm0, %v11314_v0 }
 0x5d8   :  { %10386 = vmatprep.subr.bf16.mxu0 %v11316_v9 }
 0x5db   :  { %10388 = vmatpush3.bf16.msra.mxu0 %v11446_v12 }
 0x5dc   :  { %10395 = vmatprep.subr.bf16.mxu0 %v11316_v9 }
 0x6a9   :  { %v976_v60 = vpop.f32.mrb[0].mxu0 }
 0x6aa   :  { %v10896_v61 = vadd.f32 %v11463_v16, %v976_v60  ;;  %v9412_v62 = vpop.f32.mrb[1].mxu0 }
 0x6ac   :  { %v981_v63 = vmul.f32 0.5, %v10896_v61 }
 0x6ae   :  { %v982_v1 = vsel %vm11466_vm4, %v10896_v61, %v981_v63 }
 0x6af   :  { %11031 = vtanh.f32 %v982_v1 }
 0x6b9   :  { %v11032_v2 = vpop.eup %11031 }
 0x6ba   :  { %v984_v3 = vadd.f32 1.0, %v11032_v2 }
 0x6bc   :  { %v985_v4 = vmul.f32 0.5, %v984_v3 }
 0x6be   :  { %v986_v5 = vsel %vm11466_vm4, %v11032_v2, %v985_v4 }
 0x6bf   :  { %989 = vrot.lane.b32.xlu0 %v986_v5, %s11317_s18  ;;  %v987_v10 = vmul.f32 %v986_v5, %v894_v55 }
 0x731   :  { %v990_v6 = vpop.permute.xlu0 %989 }
 0x732   :  { %v992_v7 = vmul.f32 %v990_v6, %v986_v5 }
 0x734   :  { %994 = vrot.lane.b32.xlu1 %v992_v7, %s11318_s19 }
 0x7a6   :  { %v995_v11 = vpop.permute.xlu1 %994 }
 0x7a7   :  { %v997_v13 = vadd.f32 %v995_v11, %v987_v10  ;;  %v1525_v10 = vld [vmem:[#allocation8] sm:$0xff]  ;;  %v1526_v11 = vld [vmem:[#allocation8 + $0x8] sm:$0xff] }
 0x7a9   :  { %11033 = vtanh.f32 %v997_v13 }
 0x7b3   :  { %v11034_v14 = vpop.eup %11033 }
 0x7b4   :  { %1000 = vrot.lane.b32.xlu0 %v11034_v14, %s11317_s18  ;;  %v1527_v14 = vld [vmem:[#allocation8 + $0x10] sm:$0xff] }
 0x826   :  { %v1001_v15 = vpop.permute.xlu0 %1000 }
 0x827   :  { %v1003_v17 = vmul.f32 %v1001_v15, %v986_v5  ;;  %v1528_v15 = vld [vmem:[#allocation8 + $0x18] sm:$0xff] }
 0x829   :  { %1005 = vrot.lane.b32.xlu1 %v1003_v17, %s11318_s19 }
 0x89b   :  { %v1006_v18 = vpop.permute.xlu1 %1005 }
 0x89c   :  { %1009 = vst.msk [vmem:[#allocation2 + $0x10] sm:$0xff] %vm701_vm5, %v1006_v18  ;;  %9422 = vmatmul.mubr.msk.f32.vlgmr.msra.gmra.mrb[4].mxu1 %vm701_vm5, %v1006_v18  ;;  %v11590_v18 = vpack.c.bf16 %v1528_v15, %v1527_v14 }
 0x89d   :  { %10391 = vmatpush3.bf16.msra.mxu1 %v11440_v8  ;;  %9443 = vmatprep.mubr.msk.f32.mxu1 %vm11315_vm0, %v11314_v0 }
 0x89e   :  { %10392 = vmatprep.subr.bf16.mxu1 %v11316_v9 }
 0x8a1   :  { %10394 = vmatpush3.bf16.msra.mxu1 %v11446_v12 }
 0x8a2   :  { %10401 = vmatprep.subr.bf16.mxu1 %v11316_v9 }
 0x96f   :  { %v1079_v19 = vpop.f32.mrb[4].mxu1 }
 0x970   :  { %v10897_v20 = vadd.f32 %v11463_v16, %v1079_v19  ;;  %v9423_v21 = vpop.f32.mrb[5].mxu1  ;;  %v1537_v19 = vld [vmem:[#allocation2] sm:$0xff] }
 0x972   :  { %v1084_v23 = vmul.f32 0.5, %v10897_v20 }
 0x974   :  { %v1085_v24 = vsel %vm11466_vm4, %v10897_v20, %v1084_v23  ;;  %v1687_v20 = vld [vmem:[#allocation2 + $0x10] sm:$0xff] }
 0x975   :  { %11035 = vtanh.f32 %v1085_v24 }
 0x97f   :  { %v11036_v25 = vpop.eup %11035 }
 0x980   :  { %v1087_v26 = vadd.f32 1.0, %v11036_v25 }
 0x982   :  { %v1088_v27 = vmul.f32 0.5, %v1087_v26 }
 0x984   :  { %v1089_v28 = vsel %vm11466_vm4, %v11036_v25, %v1088_v27 }
 0x985   :  { %1092 = vrot.lane.b32.xlu0 %v1089_v28, %s11317_s18  ;;  %v1090_v31 = vmul.f32 %v1089_v28, %v997_v13  ;;  %v11585_v13 = vpack.c.bf16 %v1526_v11, %v1525_v10 }
 0x9f7   :  { %v1093_v29 = vpop.permute.xlu0 %1092 }
 0x9f8   :  { %v1095_v30 = vmul.f32 %v1093_v29, %v1089_v28 }
 0x9fa   :  { %1097 = vrot.lane.b32.xlu1 %v1095_v30, %s11318_s19 }
 0xa6c   :  { %v1098_v32 = vpop.permute.xlu1 %1097 }
 0xa6d   :  { %v1100_v33 = vadd.f32 %v1098_v32, %v1090_v31 }
 0xa6f   :  { %11037 = vtanh.f32 %v1100_v33 }
 0xa79   :  { %v11038_v34 = vpop.eup %11037 }
 0xa7a   :  { %1103 = vrot.lane.b32.xlu0 %v11038_v34, %s11317_s18 }
 0xaec   :  { %v1104_v35 = vpop.permute.xlu0 %1103 }
 0xaed   :  { %v1106_v36 = vmul.f32 %v1104_v35, %v1089_v28 }
 0xaef   :  { %1108 = vrot.lane.b32.xlu1 %v1106_v36, %s11318_s19 }
 0xb61   :  { %v1109_v37 = vpop.permute.xlu1 %1108 }
 0xb62   :  { %1112 = vst.msk [vmem:[#allocation2 + $0x18] sm:$0xff] %vm701_vm5, %v1109_v37  ;;  %9433 = vmatmul.mubr.msk.f32.vlgmr.msra.gmra.mrb[2].mxu0 %vm701_vm5, %v1109_v37 }
 0xb63   :  { %10397 = vmatpush3.bf16.msra.mxu0 %v11440_v8  ;;  %9454 = vmatprep.mubr.msk.f32.mxu0 %vm11315_vm0, %v11314_v0 }
 0xb64   :  { %10398 = vmatprep.subr.bf16.mxu0 %v11316_v9 }
 0xb67   :  { %10400 = vmatpush3.bf16.msra.mxu0 %v11446_v12 }
 0xb68   :  { %10407 = vmatprep.subr.bf16.mxu0 %v11316_v9 }
 0xc35   :  { %v1182_v38 = vpop.f32.mrb[2].mxu0 }
 0xc36   :  { %v10898_v39 = vadd.f32 %v11463_v16, %v1182_v38  ;;  %v9434_v40 = vpop.f32.mrb[3].mxu0 }
 0xc38   :  { %v1187_v41 = vmul.f32 0.5, %v10898_v39 }
 0xc3a   :  { %v1188_v42 = vsel %vm11466_vm4, %v10898_v39, %v1187_v41  ;;  %v2138_v41 = vld [vmem:[#allocation10 + $0x20] sm:$0xff] }
 0xc3b   :  { %11039 = vtanh.f32 %v1188_v42  ;;  %v2139_v42 = vld [vmem:[#allocation10 + $0x28] sm:$0xff] }
 0xc45   :  { %v11040_v43 = vpop.eup %11039 }
 0xc46   :  { %v1190_v44 = vadd.f32 1.0, %v11040_v43 }
 0xc48   :  { %v1191_v45 = vmul.f32 0.5, %v1190_v44  ;;  %v2140_v44 = vld [vmem:[#allocation10 + $0x30] sm:$0xff] }
 0xc4a   :  { %v1192_v46 = vsel %vm11466_vm4, %v11040_v43, %v1191_v45  ;;  %v11637_v43 = vpack.c.bf16 %v2139_v42, %v2138_v41  ;;  %v2141_v45 = vld [vmem:[#allocation10 + $0x38] sm:$0xff] }
 0xc4b   :  { %1195 = vrot.lane.b32.xlu0 %v1192_v46, %s11317_s18  ;;  %v1193_v49 = vmul.f32 %v1192_v46, %v1100_v33 }
 0xcbd   :  { %v1196_v47 = vpop.permute.xlu0 %1195 }
 0xcbe   :  { %v1198_v48 = vmul.f32 %v1196_v47, %v1192_v46 }
 0xcc0   :  { %1200 = vrot.lane.b32.xlu1 %v1198_v48, %s11318_s19  ;;  %v11644_v48 = vpack.c.bf16 %v2141_v45, %v2140_v44 }
 0xd32   :  { %v1201_v50 = vpop.permute.xlu1 %1200 }
 0xd33   :  { %v1203_v51 = vadd.f32 %v1201_v50, %v1193_v49  ;;  %v1762_v49 = vld [vmem:[#allocation2 + $0x18] sm:$0xff] }
 0xd35   :  { %11041 = vtanh.f32 %v1203_v51 }
 0xd3f   :  { %v11042_v52 = vpop.eup %11041 }
 0xd40   :  { %1206 = vrot.lane.b32.xlu0 %v11042_v52, %s11317_s18 }
 0xdb2   :  { %v1207_v53 = vpop.permute.xlu0 %1206 }
 0xdb3   :  { %v1209_v54 = vmul.f32 %v1207_v53, %v1192_v46  ;;  %v1612_v46 = vld [vmem:[#allocation2 + $0x8] sm:$0xff] }
 0xdb5   :  { %1211 = vrot.lane.b32.xlu1 %v1209_v54, %s11318_s19 }
 0xe27   :  { %v1212_v55 = vpop.permute.xlu1 %1211 }
 0xe28   :  { %1215 = vst.msk [vmem:[#allocation2 + $0x20] sm:$0xff] %vm701_vm5, %v1212_v55  ;;  %9444 = vmatmul.mubr.msk.f32.vlgmr.msra.gmra.mrb[6].mxu1 %vm701_vm5, %v1212_v55 }
 0xe29   :  { %10403 = vmatpush3.bf16.msra.mxu1 %v11440_v8  ;;  %9465 = vmatprep.mubr.msk.f32.mxu1 %vm11315_vm0, %v11314_v0 }
 0xe2a   :  { %10404 = vmatprep.subr.bf16.mxu1 %v11316_v9 }
 0xe2d   :  { %10406 = vmatpush3.bf16.msra.mxu1 %v11446_v12 }
 0xe2e   :  { %10413 = vmatprep.subr.bf16.mxu1 %v11316_v9 }
 0xe2f   :  { %v1837_v21 = vld [vmem:[#allocation2 + $0x20] sm:$0xff] }
 0xefb   :  { %v1285_v56 = vpop.f32.mrb[6].mxu1 }
 0xefc   :  { %v10899_v57 = vadd.f32 %v11463_v16, %v1285_v56  ;;  %v9445_v58 = vpop.f32.mrb[7].mxu1  ;;  %v11683_v56 = vld [vmem:[%s12704_s4 + $0x1] ss:$0 sm:$0xff] }
 0xefe   :  { %v1290_v59 = vmul.f32 0.5, %v10899_v57 }
 0xf00   :  { %v1291_v60 = vsel %vm11466_vm4, %v10899_v57, %v1290_v59 }
 0xf01   :  { %11043 = vtanh.f32 %v1291_v60 }
 0xf0b   :  { %v11044_v61 = vpop.eup %11043 }
 0xf0c   :  { %v1293_v8 = vadd.f32 1.0, %v11044_v61 }
 0xf0e   :  { %v1294_v62 = vmul.f32 0.5, %v1293_v8 }
 0xf10   :  { %v1295_v63 = vsel %vm11466_vm4, %v11044_v61, %v1294_v62 }
 0xf11   :  { %1298 = vrot.lane.b32.xlu0 %v1295_v63, %s11317_s18  ;;  %v1296_v2 = vmul.f32 %v1295_v63, %v1203_v51 }
 0xf83   :  { %v1299_v12 = vpop.permute.xlu0 %1298 }
 0xf84   :  { %v1301_v1 = vmul.f32 %v1299_v12, %v1295_v63 }
 0xf86   :  { %1303 = vrot.lane.b32.xlu1 %v1301_v1, %s11318_s19 }
 0xff8   :  { %v1304_v3 = vpop.permute.xlu1 %1303 }
 0xff9   :  { %v1306_v4 = vadd.f32 %v1304_v3, %v1296_v2 }
 0xffb   :  { %11045 = vtanh.f32 %v1306_v4 }
0x1005   :  { %v11046_v5 = vpop.eup %11045 }
0x1006   :  { %1309 = vrot.lane.b32.xlu0 %v11046_v5, %s11317_s18 }
0x1078   :  { %v1310_v6 = vpop.permute.xlu0 %1309 }
0x1079   :  { %v1312_v7 = vmul.f32 %v1310_v6, %v1295_v63 }
0x107b   :  { %1314 = vrot.lane.b32.xlu1 %v1312_v7, %s11318_s19 }
0x10ed   :  { %v1315_v17 = vpop.permute.xlu1 %1314 }
0x10ee   :  { %1318 = vst.msk [vmem:[#allocation2 + $0x28] sm:$0xff] %vm701_vm5, %v1315_v17  ;;  %9455 = vmatmul.mubr.msk.f32.vlgmr.msra.gmra.mrb[4].mxu0 %vm701_vm5, %v1315_v17 }
0x10ef   :  { %10409 = vmatpush3.bf16.msra.mxu0 %v11585_v13  ;;  %9476 = vmatprep.mubr.msk.f32.mxu0 %vm11315_vm0, %v11314_v0 }
0x10f0   :  { %10410 = vmatprep.subr.bf16.mxu0 %v11316_v9 }
0x10f3   :  { %10412 = vmatpush3.bf16.msra.mxu0 %v11590_v18 }
0x10f4   :  { %10419 = vmatprep.subr.bf16.mxu0 %v11316_v9 }
0x10f5   :  { %v1912_v50 = vld [vmem:[#allocation2 + $0x28] sm:$0xff] }
0x10f6   :  { %9477 = vmatmul.mubr.msk.f32.vlgmr.msra.gmra.mrb[8].mxu0 %vm701_vm5, %v1537_v19 }
0x10f7   :  { %10421 = vmatpush3.bf16.msra.mxu0 %v11585_v13  ;;  %9498 = vmatprep.mubr.msk.f32.mxu0 %vm11315_vm0, %v11314_v0 }
0x10f8   :  { %10422 = vmatprep.subr.bf16.mxu0 %v11316_v9 }
0x10fb   :  { %10424 = vmatpush3.bf16.msra.mxu0 %v11590_v18 }
0x10fc   :  { %10431 = vmatprep.subr.bf16.mxu0 %v11316_v9 }
0x10fe   :  { %9499 = vmatmul.mubr.msk.f32.vlgmr.msra.gmra.mrb[10].mxu0 %vm701_vm5, %v1687_v20 }
0x10ff   :  { %10433 = vmatpush3.bf16.msra.mxu0 %v11585_v13  ;;  %9520 = vmatprep.mubr.msk.f32.mxu0 %vm11315_vm0, %v11314_v0 }
0x1100   :  { %10434 = vmatprep.subr.bf16.mxu0 %v11316_v9 }
0x1103   :  { %10436 = vmatpush3.bf16.msra.mxu0 %v11590_v18 }
0x1104   :  { %10443 = vmatprep.subr.bf16.mxu0 %v11316_v9 }
0x1106   :  { %9521 = vmatmul.mubr.msk.f32.vlgmr.msra.gmra.mrb[12].mxu0 %vm701_vm5, %v1837_v21 }
0x1107   :  { %10445 = vmatpush3.bf16.msra.mxu0 %v11585_v13  ;;  %9542 = vmatprep.mubr.msk.f32.mxu0 %vm11315_vm0, %v11314_v0 }
0x1108   :  { %10446 = vmatprep.subr.bf16.mxu0 %v11316_v9 }
0x110b   :  { %10448 = vmatpush3.bf16.msra.mxu0 %v11590_v18 }
0x110c   :  { %10455 = vmatprep.subr.bf16.mxu0 %v11316_v9 }
0x11c1   :  { %v1388_v23 = vpop.f32.mrb[4].mxu0 }
0x11c2   :  { %v10900_v24 = vadd.f32 %v11463_v16, %v1388_v23  ;;  %v9456_v25 = vpop.f32.mrb[5].mxu0 }
0x11c4   :  { %v1393_v26 = vmul.f32 0.5, %v10900_v24 }
0x11c6   :  { %v1394_v27 = vsel %vm11466_vm4, %v10900_v24, %v1393_v26 }
0x11c7   :  { %11047 = vtanh.f32 %v1394_v27 }
0x11d1   :  { %v11048_v28 = vpop.eup %11047 }
0x11d2   :  { %v1396_v29 = vadd.f32 1.0, %v11048_v28 }
0x11d4   :  { %v1397_v30 = vmul.f32 0.5, %v1396_v29 }
0x11d6   :  { %v1398_v31 = vsel %vm11466_vm4, %v11048_v28, %v1397_v30 }
0x11d7   :  { %1401 = vrot.lane.b32.xlu0 %v1398_v31, %s11317_s18  ;;  %v1399_v34 = vmul.f32 %v1398_v31, %v1306_v4 }
0x1249   :  { %v1402_v32 = vpop.permute.xlu0 %1401 }
0x124a   :  { %v1404_v33 = vmul.f32 %v1402_v32, %v1398_v31 }
0x124c   :  { %1406 = vrot.lane.b32.xlu1 %v1404_v33, %s11318_s19 }
0x12be   :  { %v1407_v35 = vpop.permute.xlu1 %1406 }
0x12bf   :  { %v11625_v36 = vadd.f32 %v1407_v35, %v1399_v34 }
0x12c1   :  { %11049 = vtanh.f32 %v11625_v36 }
0x12cb   :  { %v11050_v37 = vpop.eup %11049 }
0x12cc   :  { %1412 = vrot.lane.b32.xlu0 %v11050_v37, %s11317_s18 }
0x133e   :  { %v1413_v38 = vpop.permute.xlu0 %1412 }
0x133f   :  { %v1415_v39 = vmul.f32 %v1413_v38, %v1398_v31 }
0x1341   :  { %1417 = vrot.lane.b32.xlu1 %v1415_v39, %s11318_s19 }
0x13b3   :  { %v1418_v40 = vpop.permute.xlu1 %1417 }
0x13b4   :  { %1421 = vst.msk [vmem:[#allocation2 + $0x30] sm:$0xff] %vm701_vm5, %v1418_v40  ;;  %9466 = vmatmul.mubr.msk.f32.vlgmr.msra.gmra.mrb[8].mxu1 %vm701_vm5, %v1418_v40 }
0x13b5   :  { %10415 = vmatpush3.bf16.msra.mxu1 %v11585_v13  ;;  %9487 = vmatprep.mubr.msk.f32.mxu1 %vm11315_vm0, %v11314_v0 }
0x13b6   :  { %10416 = vmatprep.subr.bf16.mxu1 %v11316_v9 }
0x13b9   :  { %10418 = vmatpush3.bf16.msra.mxu1 %v11590_v18 }
0x13ba   :  { %10425 = vmatprep.subr.bf16.mxu1 %v11316_v9 }
0x13bb   :  { %v1987_v47 = vld [vmem:[#allocation2 + $0x30] sm:$0xff] }
0x13bc   :  { %9488 = vmatmul.mubr.msk.f32.vlgmr.msra.gmra.mrb[10].mxu1 %vm701_vm5, %v1612_v46  ;;  %9543 = vmatmul.mubr.msk.f32.vlgmr.msra.gmra.mrb[14].mxu0 %vm701_vm5, %v1987_v47 }
0x13bd   :  { %10427 = vmatpush3.bf16.msra.mxu1 %v11585_v13  ;;  %10457 = vmatpush3.bf16.msra.mxu0 %v11637_v43 }
0x13be   :  { %10428 = vmatprep.subr.bf16.mxu1 %v11316_v9  ;;  %10458 = vmatprep.subr.bf16.mxu0 %v11316_v9 }
0x13bf   :  { %9509 = vmatprep.mubr.msk.f32.mxu1 %vm11315_vm0, %v11314_v0  ;;  %9564 = vmatprep.mubr.msk.f32.mxu0 %vm11315_vm0, %v11314_v0 }
0x13c1   :  { %10430 = vmatpush3.bf16.msra.mxu1 %v11590_v18  ;;  %10460 = vmatpush3.bf16.msra.mxu0 %v11644_v48 }
0x13c2   :  { %10437 = vmatprep.subr.bf16.mxu1 %v11316_v9  ;;  %10467 = vmatprep.subr.bf16.mxu0 %v11316_v9 }
0x13c4   :  { %9510 = vmatmul.mubr.msk.f32.vlgmr.msra.gmra.mrb[12].mxu1 %vm701_vm5, %v1762_v49  ;;  %9565 = vmatmul.mubr.f32.vlgmr.msra.gmra.mrb[8].mxu0 %v11314_v0 }
0x13c5   :  { %10439 = vmatpush3.bf16.msra.mxu1 %v11585_v13  ;;  %9531 = vmatprep.mubr.msk.f32.mxu1 %vm11315_vm0, %v11314_v0 }
0x13c6   :  { %10440 = vmatprep.subr.bf16.mxu1 %v11316_v9  ;;  %10469 = vmatpush3.bf16.msra.mxu0 %v11637_v43 }
0x13c7   :  { %10470 = vmatprep.subr.bf16.mxu0 %v11316_v9  ;;  %9586 = vmatprep.mubr.msk.f32.mxu0 %vm11315_vm0, %v11314_v0 }
0x13c9   :  { %10442 = vmatpush3.bf16.msra.mxu1 %v11590_v18 }
0x13ca   :  { %10449 = vmatprep.subr.bf16.mxu1 %v11316_v9  ;;  %10472 = vmatpush3.bf16.msra.mxu0 %v11644_v48 }
0x13cb   :  { %10479 = vmatprep.subr.bf16.mxu0 %v11316_v9 }
0x13cc   :  { %9532 = vmatmul.mubr.msk.f32.vlgmr.msra.gmra.mrb[14].mxu1 %vm701_vm5, %v1912_v50 }
0x13cd   :  { %10451 = vmatpush3.bf16.msra.mxu1 %v11585_v13  ;;  %9553 = vmatprep.mubr.msk.f32.mxu1 %vm11315_vm0, %v11314_v0 }
0x13ce   :  { %10452 = vmatprep.subr.bf16.mxu1 %v11316_v9 }
0x13d1   :  { %10454 = vmatpush3.bf16.msra.mxu1 %v11590_v18 }
0x13d2   :  { %10461 = vmatprep.subr.bf16.mxu1 %v11316_v9 }
0x1487   :  { %v1491_v51 = vpop.f32.mrb[8].mxu1 }
0x1488   :  { %v10901_v52 = vadd.f32 %v11463_v16, %v1491_v51  ;;  %v9467_v53 = vpop.f32.mrb[9].mxu1 }
0x148a   :  { %v1496_v54 = vmul.f32 0.5, %v10901_v52 }
0x148c   :  { %v1497_v55 = vsel %vm11466_vm4, %v10901_v52, %v1496_v54 }
0x148d   :  { %11051 = vtanh.f32 %v1497_v55 }
0x1497   :  { %v11052_v57 = vpop.eup %11051  ;;  %v2209_v58 = vpop.f32.mrb[8].mxu0 }
0x1498   :  { %v10902_v59 = vadd.f32 %v11683_v56, %v2209_v58  ;;  %v9566_v60 = vpop.f32.mrb[9].mxu0  ;;  %v1499_v61 = vadd.f32 1.0, %v11052_v57 }
0x149a   :  { %v2214_v8 = vmul.f32 0.5, %v10902_v59  ;;  %v1500_v62 = vmul.f32 0.5, %v1499_v61 }
0x149c   :  { %v2215_v16 = vsel %vm11466_vm4, %v10902_v59, %v2214_v8  ;;  %v1501_v63 = vsel %vm11466_vm4, %v11052_v57, %v1500_v62 }
0x149d   :  { %11053 = vtanh.f32 %v2215_v16  ;;  %1504 = vrot.lane.b32.xlu0 %v1501_v63, %s11317_s18  ;;  %v1502_v10 = vmul.f32 %v1501_v63, %v11625_v36 }
0x14a7   :  { %v11054_v12 = vpop.eup %11053 }
0x14a8   :  { %v2217_v1 = vadd.f32 1.0, %v11054_v12 }
0x14aa   :  { %v2218_v2 = vmul.f32 0.5, %v2217_v1 }
0x14ac   :  { %v2219_v3 = vsel %vm11466_vm4, %v11054_v12, %v2218_v2 }
0x14ad   :  { %2222 = vrot.lane.b32.xlu1 %v2219_v3, %s11317_s18  ;;  %v2220_v15 = vmul.f32 0.0, %v2219_v3 }
0x150f   :  { %v1505_v4 = vpop.permute.xlu0 %1504 }
0x1510   :  { %v1507_v5 = vmul.f32 %v1505_v4, %v1501_v63 }
0x1512   :  { %1509 = vrot.lane.b32.xlu0 %v1507_v5, %s11318_s19 }
0x151f   :  { %v2223_v6 = vpop.permute.xlu1 %2222 }
0x1520   :  { %v2225_v7 = vmul.f32 %v2223_v6, %v2219_v3 }
0x1522   :  { %2227 = vrot.lane.b32.xlu1 %v2225_v7, %s11318_s19 }
0x1584   :  { %v1510_v11 = vpop.permute.xlu0 %1509 }
0x1585   :  { %v1512_v13 = vadd.f32 %v1510_v11, %v1502_v10 }
0x1587   :  { %11055 = vtanh.f32 %v1512_v13 }
0x1591   :  { %v11056_v14 = vpop.eup %11055 }
0x1592   :  { %1515 = vrot.lane.b32.xlu0 %v11056_v14, %s11317_s18 }
0x1594   :  { %v2228_v17 = vpop.permute.xlu1 %2227 }
0x1595   :  { %v2230_v18 = vadd.f32 %v2228_v17, %v2220_v15 }
0x1597   :  { %11057 = vtanh.f32 %v2230_v18 }
0x15a1   :  { %v11058_v19 = vpop.eup %11057 }
0x15a2   :  { %2233 = vrot.lane.b32.xlu1 %v11058_v19, %s11317_s18 }
0x1604   :  { %v1516_v20 = vpop.permute.xlu0 %1515 }
0x1605   :  { %v1518_v21 = vmul.f32 %v1516_v20, %v1501_v63 }
0x1607   :  { %1520 = vrot.lane.b32.xlu0 %v1518_v21, %s11318_s19 }
0x1614   :  { %v2234_v23 = vpop.permute.xlu1 %2233 }
0x1615   :  { %v2236_v24 = vmul.f32 %v2234_v23, %v2219_v3 }
0x1617   :  { %2239 = vrot.lane.b32.xlu1 %v2236_v24, %s11318_s19 }
0x1679   :  { %v1521_v25 = vpop.permute.xlu0 %1520 }
0x167a   :  { %1524 = vst.msk [vmem:[#allocation2 + $0x38] sm:$0xff] %vm701_vm5, %v1521_v25 }
0x1681   :  { %v2062_v26 = vld [vmem:[#allocation2 + $0x38] sm:$0xff] }
0x1682   :  { %9554 = vmatmul.mubr.msk.f32.vlgmr.msra.gmra.mrb[16].mxu1 %vm701_vm5, %v2062_v26 }
0x1683   :  { %10463 = vmatpush3.bf16.msra.mxu1 %v11637_v43  ;;  %9575 = vmatprep.mubr.msk.f32.mxu1 %vm11315_vm0, %v11314_v0 }
0x1684   :  { %10464 = vmatprep.subr.bf16.mxu1 %v11316_v9 }
0x1687   :  { %10466 = vmatpush3.bf16.msra.mxu1 %v11644_v48 }
0x1688   :  { %10473 = vmatprep.subr.bf16.mxu1 %v11316_v9 }
0x1689   :  { %v2240_v27 = vpop.permute.xlu1 %2239 }
0x168a   :  { %9576 = vmatmul.mubr.msk.f32.vlgmr.msra.gmra.mrb[10].mxu1 %vm701_vm5, %v2240_v27 }
0x168b   :  { %10475 = vmatpush3.bf16.msra.mxu1 %v11637_v43  ;;  %9597 = vmatprep.mubr.msk.f32.mxu1 %vm11315_vm0, %v11314_v0 }
0x168c   :  { %10476 = vmatprep.subr.bf16.mxu1 %v11316_v9 }
0x168f   :  { %10478 = vmatpush3.bf16.msra.mxu1 %v11644_v48 }
0x1690   :  { %10485 = vmatprep.subr.bf16.mxu1 %v11316_v9 }
0x175d   :  { %v2309_v28 = vpop.f32.mrb[10].mxu1 }
0x175e   :  { %v10903_v29 = vadd.f32 %v11683_v56, %v2309_v28  ;;  %v9577_v30 = vpop.f32.mrb[11].mxu1 }
0x1760   :  { %v2314_v31 = vmul.f32 0.5, %v10903_v29 }
0x1762   :  { %v2315_v32 = vsel %vm11466_vm4, %v10903_v29, %v2314_v31 }
0x1763   :  { %11059 = vtanh.f32 %v2315_v32 }
0x176d   :  { %v11060_v33 = vpop.eup %11059 }
0x176e   :  { %v2317_v34 = vadd.f32 1.0, %v11060_v33 }
0x1770   :  { %v2318_v35 = vmul.f32 0.5, %v2317_v34 }
0x1772   :  { %v2319_v36 = vsel %vm11466_vm4, %v11060_v33, %v2318_v35 }
0x1773   :  { %2322 = vrot.lane.b32.xlu0 %v2319_v36, %s11317_s18  ;;  %v2320_v39 = vmul.f32 %v2319_v36, %v2230_v18 }
0x17e5   :  { %v2323_v37 = vpop.permute.xlu0 %2322 }
0x17e6   :  { %v2325_v38 = vmul.f32 %v2323_v37, %v2319_v36 }
0x17e8   :  { %2327 = vrot.lane.b32.xlu1 %v2325_v38, %s11318_s19 }
0x185a   :  { %v2328_v40 = vpop.permute.xlu1 %2327 }
0x185b   :  { %v2330_v41 = vadd.f32 %v2328_v40, %v2320_v39 }
0x185d   :  { %11061 = vtanh.f32 %v2330_v41 }
0x1867   :  { %v11062_v42 = vpop.eup %11061 }
0x1868   :  { %2333 = vrot.lane.b32.xlu0 %v11062_v42, %s11317_s18 }
0x18da   :  { %v2334_v44 = vpop.permute.xlu0 %2333 }
0x18db   :  { %v2336_v45 = vmul.f32 %v2334_v44, %v2319_v36 }
0x18dd   :  { %2339 = vrot.lane.b32.xlu1 %v2336_v45, %s11318_s19 }
0x194f   :  { %v2340_v46 = vpop.permute.xlu1 %2339 }
0x1950   :  { %9587 = vmatmul.mubr.msk.f32.vlgmr.msra.gmra.mrb[10].mxu0 %vm701_vm5, %v2340_v46 }
0x1951   :  { %10481 = vmatpush3.bf16.msra.mxu0 %v11637_v43  ;;  %9608 = vmatprep.mubr.msk.f32.mxu0 %vm11315_vm0, %v11314_v0 }
0x1952   :  { %10482 = vmatprep.subr.bf16.mxu0 %v11316_v9 }
0x1955   :  { %10484 = vmatpush3.bf16.msra.mxu0 %v11644_v48 }
0x1956   :  { %10491 = vmatprep.subr.bf16.mxu0 %v11316_v9 }
0x1a23   :  { %v2409_v47 = vpop.f32.mrb[10].mxu0 }
0x1a24   :  { %v10904_v49 = vadd.f32 %v11683_v56, %v2409_v47  ;;  %v9588_v50 = vpop.f32.mrb[11].mxu0 }
0x1a26   :  { %v2414_v51 = vmul.f32 0.5, %v10904_v49 }
0x1a28   :  { %v2415_v52 = vsel %vm11466_vm4, %v10904_v49, %v2414_v51 }
0x1a29   :  { %11063 = vtanh.f32 %v2415_v52 }
0x1a33   :  { %v11064_v53 = vpop.eup %11063 }
0x1a34   :  { %v2417_v54 = vadd.f32 1.0, %v11064_v53 }
0x1a36   :  { %v2418_v55 = vmul.f32 0.5, %v2417_v54 }
0x1a38   :  { %v2419_v57 = vsel %vm11466_vm4, %v11064_v53, %v2418_v55 }
0x1a39   :  { %2422 = vrot.lane.b32.xlu0 %v2419_v57, %s11317_s18  ;;  %v2420_v60 = vmul.f32 %v2419_v57, %v2330_v41 }
0x1aab   :  { %v2423_v58 = vpop.permute.xlu0 %2422 }
0x1aac   :  { %v2425_v59 = vmul.f32 %v2423_v58, %v2419_v57 }
0x1aae   :  { %2427 = vrot.lane.b32.xlu1 %v2425_v59, %s11318_s19 }
0x1b20   :  { %v2428_v61 = vpop.permute.xlu1 %2427 }
0x1b21   :  { %v2430_v8 = vadd.f32 %v2428_v61, %v2420_v60 }
0x1b23   :  { %11065 = vtanh.f32 %v2430_v8 }
0x1b2d   :  { %v11066_v62 = vpop.eup %11065 }
0x1b2e   :  { %2433 = vrot.lane.b32.xlu0 %v11066_v62, %s11317_s18 }
0x1ba0   :  { %v2434_v16 = vpop.permute.xlu0 %2433 }
0x1ba1   :  { %v2436_v63 = vmul.f32 %v2434_v16, %v2419_v57 }
0x1ba3   :  { %2439 = vrot.lane.b32.xlu1 %v2436_v63, %s11318_s19 }
0x1c15   :  { %v2440_v12 = vpop.permute.xlu1 %2439 }
0x1c16   :  { %9598 = vmatmul.mubr.msk.f32.vlgmr.msra.gmra.mrb[12].mxu1 %vm701_vm5, %v2440_v12 }
0x1c17   :  { %10487 = vmatpush3.bf16.msra.mxu1 %v11637_v43  ;;  %9619 = vmatprep.mubr.msk.f32.mxu1 %vm11315_vm0, %v11314_v0 }
0x1c18   :  { %10488 = vmatprep.subr.bf16.mxu1 %v11316_v9 }
0x1c1b   :  { %10490 = vmatpush3.bf16.msra.mxu1 %v11644_v48 }
0x1c1c   :  { %10497 = vmatprep.subr.bf16.mxu1 %v11316_v9 }
0x1ce9   :  { %v2509_v1 = vpop.f32.mrb[12].mxu1 }
0x1cea   :  { %v10905_v2 = vadd.f32 %v11683_v56, %v2509_v1  ;;  %v9599_v3 = vpop.f32.mrb[13].mxu1 }
0x1cec   :  { %v2514_v4 = vmul.f32 0.5, %v10905_v2 }
0x1cee   :  { %v2515_v5 = vsel %vm11466_vm4, %v10905_v2, %v2514_v4 }
0x1cef   :  { %11067 = vtanh.f32 %v2515_v5 }
0x1cf9   :  { %v11068_v6 = vpop.eup %11067 }
0x1cfa   :  { %v2517_v7 = vadd.f32 1.0, %v11068_v6 }
0x1cfc   :  { %v2518_v10 = vmul.f32 0.5, %v2517_v7 }
0x1cfe   :  { %v2519_v11 = vsel %vm11466_vm4, %v11068_v6, %v2518_v10 }
0x1cff   :  { %2522 = vrot.lane.b32.xlu0 %v2519_v11, %s11317_s18  ;;  %v2520_v15 = vmul.f32 %v2519_v11, %v2430_v8 }
0x1d71   :  { %v2523_v13 = vpop.permute.xlu0 %2522 }
0x1d72   :  { %v2525_v14 = vmul.f32 %v2523_v13, %v2519_v11 }
0x1d74   :  { %2527 = vrot.lane.b32.xlu1 %v2525_v14, %s11318_s19 }
0x1de6   :  { %v2528_v17 = vpop.permute.xlu1 %2527 }
0x1de7   :  { %v2530_v18 = vadd.f32 %v2528_v17, %v2520_v15 }
0x1de9   :  { %11069 = vtanh.f32 %v2530_v18 }
0x1df3   :  { %v11070_v19 = vpop.eup %11069 }
0x1df4   :  { %2533 = vrot.lane.b32.xlu0 %v11070_v19, %s11317_s18 }
0x1e66   :  { %v2534_v20 = vpop.permute.xlu0 %2533 }
0x1e67   :  { %v2536_v21 = vmul.f32 %v2534_v20, %v2519_v11 }
0x1e69   :  { %2539 = vrot.lane.b32.xlu1 %v2536_v21, %s11318_s19 }
0x1edb   :  { %v2540_v23 = vpop.permute.xlu1 %2539 }
0x1edc   :  { %9609 = vmatmul.mubr.msk.f32.vlgmr.msra.gmra.mrb[12].mxu0 %vm701_vm5, %v2540_v23 }
0x1edd   :  { %10493 = vmatpush3.bf16.msra.mxu0 %v11637_v43  ;;  %9630 = vmatprep.mubr.msk.f32.mxu0 %vm11315_vm0, %v11314_v0 }
0x1ede   :  { %10494 = vmatprep.subr.bf16.mxu0 %v11316_v9 }
0x1ee1   :  { %10496 = vmatpush3.bf16.msra.mxu0 %v11644_v48 }
0x1ee2   :  { %10503 = vmatprep.subr.bf16.mxu0 %v11316_v9 }
0x1faf   :  { %v2609_v24 = vpop.f32.mrb[12].mxu0 }
0x1fb0   :  { %v10906_v25 = vadd.f32 %v11683_v56, %v2609_v24  ;;  %v9610_v26 = vpop.f32.mrb[13].mxu0 }
0x1fb2   :  { %v2614_v27 = vmul.f32 0.5, %v10906_v25 }
0x1fb4   :  { %v2615_v28 = vsel %vm11466_vm4, %v10906_v25, %v2614_v27 }
0x1fb5   :  { %11071 = vtanh.f32 %v2615_v28 }
0x1fbf   :  { %v11072_v29 = vpop.eup %11071 }
0x1fc0   :  { %v2617_v30 = vadd.f32 1.0, %v11072_v29 }
0x1fc2   :  { %v2618_v31 = vmul.f32 0.5, %v2617_v30 }
0x1fc4   :  { %v2619_v32 = vsel %vm11466_vm4, %v11072_v29, %v2618_v31  ;;  %v2939_v31 = vld [vmem:[#allocation8 + $0x20] sm:$0xff] }
0x1fc5   :  { %2622 = vrot.lane.b32.xlu0 %v2619_v32, %s11317_s18  ;;  %v2620_v35 = vmul.f32 %v2619_v32, %v2530_v18 }
0x2037   :  { %v2623_v33 = vpop.permute.xlu0 %2622 }
0x2038   :  { %v2625_v34 = vmul.f32 %v2623_v33, %v2619_v32  ;;  %v3027_v33 = vld [vmem:[#allocation10 + $0x40] sm:$0xff] }
0x203a   :  { %2627 = vrot.lane.b32.xlu1 %v2625_v34, %s11318_s19 }
0x20ac   :  { %v2628_v36 = vpop.permute.xlu1 %2627 }
0x20ad   :  { %v2630_v37 = vadd.f32 %v2628_v36, %v2620_v35  ;;  %v3028_v35 = vld [vmem:[#allocation10 + $0x48] sm:$0xff]  ;;  %v2941_v36 = vld [vmem:[#allocation8 + $0x30] sm:$0xff] }
0x20af   :  { %11073 = vtanh.f32 %v2630_v37 }
0x20b9   :  { %v11074_v38 = vpop.eup %11073 }
0x20ba   :  { %2633 = vrot.lane.b32.xlu0 %v11074_v38, %s11317_s18  ;;  %v11811_v38 = vpack.c.bf16 %v3028_v35, %v3027_v33 }
0x212c   :  { %v2634_v39 = vpop.permute.xlu0 %2633 }
0x212d   :  { %v2636_v40 = vmul.f32 %v2634_v39, %v2619_v32  ;;  %v2940_v32 = vld [vmem:[#allocation8 + $0x28] sm:$0xff]  ;;  %v3029_v39 = vld [vmem:[#allocation10 + $0x50] sm:$0xff] }
0x212e   :  { %v10504_v34 = vpack.c.bf16 %v2940_v32, %v2939_v31 }
0x212f   :  { %2639 = vrot.lane.b32.xlu1 %v2636_v40, %s11318_s19  ;;  %v3030_v40 = vld [vmem:[#allocation10 + $0x58] sm:$0xff] }
0x21a1   :  { %v2640_v41 = vpop.permute.xlu1 %2639 }
0x21a2   :  { %9620 = vmatmul.mubr.msk.f32.vlgmr.msra.gmra.mrb[14].mxu1 %vm701_vm5, %v2640_v41 }
0x21a3   :  { %10499 = vmatpush3.bf16.msra.mxu1 %v11637_v43  ;;  %9641 = vmatprep.mubr.msk.f32.mxu1 %vm11315_vm0, %v11314_v0 }
0x21a4   :  { %10500 = vmatprep.subr.bf16.mxu1 %v11316_v9 }
0x21a7   :  { %10502 = vmatpush3.bf16.msra.mxu1 %v11644_v48 }
0x21a8   :  { %10509 = vmatprep.subr.bf16.mxu1 %v11316_v9 }
0x2275   :  { %v2709_v42 = vpop.f32.mrb[14].mxu1 }
0x2276   :  { %v10907_v44 = vadd.f32 %v11683_v56, %v2709_v42  ;;  %v9621_v45 = vpop.f32.mrb[15].mxu1  ;;  %v11815_v42 = vpack.c.bf16 %v3030_v40, %v3029_v39 }
0x2278   :  { %v2714_v46 = vmul.f32 0.5, %v10907_v44 }
0x227a   :  { %v2715_v47 = vsel %vm11466_vm4, %v10907_v44, %v2714_v46 }
0x227b   :  { %11075 = vtanh.f32 %v2715_v47 }
0x2285   :  { %v11076_v49 = vpop.eup %11075 }
0x2286   :  { %v2717_v43 = vadd.f32 1.0, %v11076_v49 }
0x2288   :  { %v2718_v50 = vmul.f32 0.5, %v2717_v43 }
0x228a   :  { %v2719_v51 = vsel %vm11466_vm4, %v11076_v49, %v2718_v50 }
0x228b   :  { %2722 = vrot.lane.b32.xlu0 %v2719_v51, %s11317_s18  ;;  %v2720_v53 = vmul.f32 %v2719_v51, %v2630_v37  ;;  %v2942_v37 = vld [vmem:[#allocation8 + $0x38] sm:$0xff] }
0x228c   :  { %v10507_v41 = vpack.c.bf16 %v2942_v37, %v2941_v36 }
0x22fd   :  { %v2723_v48 = vpop.permute.xlu0 %2722 }
0x22fe   :  { %v2725_v52 = vmul.f32 %v2723_v48, %v2719_v51 }
0x2300   :  { %2727 = vrot.lane.b32.xlu1 %v2725_v52, %s11318_s19 }
0x2372   :  { %v2728_v54 = vpop.permute.xlu1 %2727 }
0x2373   :  { %v2730_v55 = vadd.f32 %v2728_v54, %v2720_v53 }
0x2375   :  { %11077 = vtanh.f32 %v2730_v55 }
0x237f   :  { %v11078_v57 = vpop.eup %11077 }
0x2380   :  { %2733 = vrot.lane.b32.xlu0 %v11078_v57, %s11317_s18 }
0x23f2   :  { %v2734_v58 = vpop.permute.xlu0 %2733 }
0x23f3   :  { %v2736_v59 = vmul.f32 %v2734_v58, %v2719_v51  ;;  %v8810_v51 = vld [vmem:[%s12704_s4 + $0x2] ss:$0 sm:$0xff] }
0x23f5   :  { %2739 = vrot.lane.b32.xlu1 %v2736_v59, %s11318_s19 }
0x2467   :  { %v2740_v60 = vpop.permute.xlu1 %2739 }
0x2468   :  { %9631 = vmatmul.mubr.msk.f32.vlgmr.msra.gmra.mrb[14].mxu0 %vm701_vm5, %v2740_v60 }
0x2469   :  { %9652 = vmatprep.mubr.msk.f32.mxu0 %vm11315_vm0, %v11314_v0  ;;  %10505 = vmatpush3.bf16.msra.mxu0 %v10504_v34 }
0x246a   :  { %10506 = vmatprep.subr.bf16.mxu0 %v11316_v9 }
0x246d   :  { %10508 = vmatpush3.bf16.msra.mxu0 %v10507_v41 }
0x246e   :  { %10515 = vmatprep.subr.bf16.mxu0 %v11316_v9 }
0x253b   :  { %v2809_v61 = vpop.f32.mrb[14].mxu0 }
0x253c   :  { %v10908_v8 = vadd.f32 %v11683_v56, %v2809_v61  ;;  %v9632_v62 = vpop.f32.mrb[15].mxu0 }
0x253e   :  { %v2814_v16 = vmul.f32 0.5, %v10908_v8 }
0x2540   :  { %v2815_v63 = vsel %vm11466_vm4, %v10908_v8, %v2814_v16 }
0x2541   :  { %11079 = vtanh.f32 %v2815_v63 }
0x254b   :  { %v11080_v12 = vpop.eup %11079 }
0x254c   :  { %v2817_v1 = vadd.f32 1.0, %v11080_v12 }
0x254e   :  { %v2818_v2 = vmul.f32 0.5, %v2817_v1 }
0x2550   :  { %v2819_v3 = vsel %vm11466_vm4, %v11080_v12, %v2818_v2 }
0x2551   :  { %2822 = vrot.lane.b32.xlu0 %v2819_v3, %s11317_s18  ;;  %v2820_v6 = vmul.f32 %v2819_v3, %v2730_v55 }
0x25c3   :  { %v2823_v4 = vpop.permute.xlu0 %2822 }
0x25c4   :  { %v2825_v5 = vmul.f32 %v2823_v4, %v2819_v3 }
0x25c6   :  { %2827 = vrot.lane.b32.xlu1 %v2825_v5, %s11318_s19 }
0x2638   :  { %v2828_v7 = vpop.permute.xlu1 %2827 }
0x2639   :  { %v2830_v10 = vadd.f32 %v2828_v7, %v2820_v6 }
0x263b   :  { %11081 = vtanh.f32 %v2830_v10 }
0x2645   :  { %v11082_v11 = vpop.eup %11081 }
0x2646   :  { %2833 = vrot.lane.b32.xlu0 %v11082_v11, %s11317_s18 }
0x26b8   :  { %v2834_v13 = vpop.permute.xlu0 %2833 }
0x26b9   :  { %v2836_v14 = vmul.f32 %v2834_v13, %v2819_v3 }
0x26bb   :  { %2839 = vrot.lane.b32.xlu1 %v2836_v14, %s11318_s19 }
0x272d   :  { %v2840_v15 = vpop.permute.xlu1 %2839 }
0x272e   :  { %9642 = vmatmul.mubr.msk.f32.vlgmr.msra.gmra.mrb[16].mxu1 %vm701_vm5, %v2840_v15 }
0x272f   :  { %9663 = vmatprep.mubr.msk.f32.mxu1 %vm11315_vm0, %v11314_v0  ;;  %10511 = vmatpush3.bf16.msra.mxu1 %v11811_v38 }
0x2730   :  { %10512 = vmatprep.subr.bf16.mxu1 %v11316_v9 }
0x2733   :  { %10514 = vmatpush3.bf16.msra.mxu1 %v11815_v42 }
0x2734   :  { %10521 = vmatprep.subr.bf16.mxu1 %v11316_v9 }
0x2736   :  { %9664 = vmatmul.mubr.f32.vlgmr.msra.gmra.mrb[18].mxu1 %v11314_v0 }
0x2737   :  { %10523 = vmatpush3.bf16.msra.mxu1 %v11811_v38  ;;  %9685 = vmatprep.mubr.msk.f32.mxu1 %vm11315_vm0, %v11314_v0 }
0x2738   :  { %10524 = vmatprep.subr.bf16.mxu1 %v11316_v9 }
0x273b   :  { %10526 = vmatpush3.bf16.msra.mxu1 %v11815_v42 }
0x273c   :  { %10533 = vmatprep.subr.bf16.mxu1 %v11316_v9 }
0x2801   :  { %v2909_v17 = vpop.f32.mrb[16].mxu1 }
0x2802   :  { %v10909_v18 = vadd.f32 %v11683_v56, %v2909_v17  ;;  %v9643_v19 = vpop.f32.mrb[17].mxu1 }
0x2804   :  { %v2914_v20 = vmul.f32 0.5, %v10909_v18 }
0x2806   :  { %v2915_v21 = vsel %vm11466_vm4, %v10909_v18, %v2914_v20 }
0x2807   :  { %11083 = vtanh.f32 %v2915_v21 }
0x2809   :  { %v3097_v43 = vpop.f32.mrb[18].mxu1 }
0x280a   :  { %v9665_v50 = vpop.f32.mrb[19].mxu1 }
0x2811   :  { %v11084_v23 = vpop.eup %11083 }
0x2812   :  { %v2917_v24 = vadd.f32 1.0, %v11084_v23 }
0x2814   :  { %v2918_v25 = vmul.f32 0.5, %v2917_v24 }
0x2816   :  { %v2919_v26 = vsel %vm11466_vm4, %v11084_v23, %v2918_v25 }
0x2817   :  { %2922 = vrot.lane.b32.xlu0 %v2919_v26, %s11317_s18  ;;  %v2920_v29 = vmul.f32 %v2919_v26, %v2830_v10 }
0x2889   :  { %v2923_v27 = vpop.permute.xlu0 %2922 }
0x288a   :  { %v2925_v28 = vmul.f32 %v2923_v27, %v2919_v26 }
0x288c   :  { %2927 = vrot.lane.b32.xlu1 %v2925_v28, %s11318_s19 }
0x28fe   :  { %v2928_v56 = vpop.permute.xlu1 %2927 }
0x28ff   :  { %v2930_v30 = vadd.f32 %v2928_v56, %v2920_v29 }
0x2901   :  { %11085 = vtanh.f32 %v2930_v30 }
0x290b   :  { %v11086_v44 = vpop.eup %11085 }
0x290c   :  { %2933 = vrot.lane.b32.xlu0 %v11086_v44, %s11317_s18 }
0x297e   :  { %v2934_v45 = vpop.permute.xlu0 %2933 }
0x297f   :  { %v2936_v46 = vmul.f32 %v2934_v45, %v2919_v26 }
0x2981   :  { %v2937_v47 = vmax.f32 %v2936_v46, 0.0 }
0x2983   :  { %2952 = vrot.lane.b32.xlu1 %v2937_v47, %s11318_s19 }
0x29f5   :  { %v2953_v49 = vpop.permute.xlu1 %2952 }
0x29f6   :  { %9653 = vmatmul.mubr.msk.f32.vlgmr.msra.gmra.mrb[16].mxu0 %vm701_vm5, %v2953_v49 }
0x29f7   :  { %10517 = vmatpush3.bf16.msra.mxu0 %v11811_v38  ;;  %9674 = vmatprep.mubr.msk.f32.mxu0 %vm11315_vm0, %v11314_v0 }
0x29f8   :  { %10518 = vmatprep.subr.bf16.mxu0 %v11316_v9 }
0x29fb   :  { %10520 = vmatpush3.bf16.msra.mxu0 %v11815_v42 }
0x29fc   :  { %10527 = vmatprep.subr.bf16.mxu0 %v11316_v9 }
0x2ac9   :  { %v3022_v48 = vpop.f32.mrb[16].mxu0 }
0x2aca   :  { %v11840_v52 = vadd.f32 %v8810_v51, %v3022_v48  ;;  %v9654_v53 = vpop.f32.mrb[17].mxu0 }
0x2acc   :  { %v3101_v54 = vadd.f32 %v3097_v43, %v11840_v52 }
0x2ace   :  { %v3102_v55 = vmul.f32 0.5, %v3101_v54 }
0x2ad0   :  { %v3103_v57 = vsel %vm11466_vm4, %v3101_v54, %v3102_v55 }
0x2ad1   :  { %11087 = vtanh.f32 %v3103_v57 }
0x2adb   :  { %v11088_v58 = vpop.eup %11087 }
0x2adc   :  { %v3105_v59 = vadd.f32 1.0, %v11088_v58 }
0x2ade   :  { %v3106_v60 = vmul.f32 0.5, %v3105_v59 }
0x2ae0   :  { %v3107_v61 = vsel %vm11466_vm4, %v11088_v58, %v3106_v60 }
0x2ae1   :  { %3110 = vrot.lane.b32.xlu0 %v3107_v61, %s11317_s18  ;;  %v3108_v16 = vmul.f32 0.0, %v3107_v61 }
0x2b53   :  { %v3111_v8 = vpop.permute.xlu0 %3110 }
0x2b54   :  { %v3113_v62 = vmul.f32 %v3111_v8, %v3107_v61 }
0x2b56   :  { %3115 = vrot.lane.b32.xlu1 %v3113_v62, %s11318_s19 }
0x2bc8   :  { %v3116_v63 = vpop.permute.xlu1 %3115 }
0x2bc9   :  { %v3118_v12 = vadd.f32 %v3116_v63, %v3108_v16 }
0x2bcb   :  { %11089 = vtanh.f32 %v3118_v12 }
0x2bd5   :  { %v11090_v1 = vpop.eup %11089 }
0x2bd6   :  { %3121 = vrot.lane.b32.xlu0 %v11090_v1, %s11317_s18 }
0x2c48   :  { %v3122_v2 = vpop.permute.xlu0 %3121 }
0x2c49   :  { %v3124_v3 = vmul.f32 %v3122_v2, %v3107_v61 }
0x2c4b   :  { %3126 = vrot.lane.b32.xlu1 %v3124_v3, %s11318_s19 }
0x2cbd   :  { %v3127_v4 = vpop.permute.xlu1 %3126 }
0x2cbe   :  { %3129 = vst.msk [vmem:[#allocation3] sm:$0xff] %vm701_vm5, %v3127_v4  ;;  %9675 = vmatmul.mubr.msk.f32.vlgmr.msra.gmra.mrb[18].mxu0 %vm701_vm5, %v3127_v4 }
0x2cbf   :  { %10529 = vmatpush3.bf16.msra.mxu0 %v11811_v38  ;;  %9696 = vmatprep.mubr.msk.f32.mxu0 %vm11315_vm0, %v11314_v0 }
0x2cc0   :  { %10530 = vmatprep.subr.bf16.mxu0 %v11316_v9 }
0x2cc3   :  { %10532 = vmatpush3.bf16.msra.mxu0 %v11815_v42 }
0x2cc4   :  { %10539 = vmatprep.subr.bf16.mxu0 %v11316_v9 }
0x2d91   :  { %v3198_v5 = vpop.f32.mrb[18].mxu0 }
0x2d92   :  { %v3202_v6 = vadd.f32 %v3198_v5, %v11840_v52  ;;  %v9676_v7 = vpop.f32.mrb[19].mxu0 }
0x2d94   :  { %v3203_v10 = vmul.f32 0.5, %v3202_v6 }
0x2d96   :  { %v3204_v11 = vsel %vm11466_vm4, %v3202_v6, %v3203_v10 }
0x2d97   :  { %11091 = vtanh.f32 %v3204_v11 }
0x2da1   :  { %v11092_v13 = vpop.eup %11091 }
0x2da2   :  { %v3206_v14 = vadd.f32 1.0, %v11092_v13 }
0x2da4   :  { %v3207_v15 = vmul.f32 0.5, %v3206_v14 }
0x2da6   :  { %v3208_v17 = vsel %vm11466_vm4, %v11092_v13, %v3207_v15 }
0x2da7   :  { %3211 = vrot.lane.b32.xlu0 %v3208_v17, %s11317_s18  ;;  %v3209_v20 = vmul.f32 %v3208_v17, %v3118_v12 }
0x2e19   :  { %v3212_v18 = vpop.permute.xlu0 %3211 }
0x2e1a   :  { %v3214_v19 = vmul.f32 %v3212_v18, %v3208_v17 }
0x2e1c   :  { %3216 = vrot.lane.b32.xlu1 %v3214_v19, %s11318_s19 }
0x2e8e   :  { %v3217_v21 = vpop.permute.xlu1 %3216 }
0x2e8f   :  { %v3219_v23 = vadd.f32 %v3217_v21, %v3209_v20 }
0x2e91   :  { %11093 = vtanh.f32 %v3219_v23 }
0x2e9b   :  { %v11094_v24 = vpop.eup %11093 }
0x2e9c   :  { %3222 = vrot.lane.b32.xlu0 %v11094_v24, %s11317_s18 }
0x2f0e   :  { %v3223_v25 = vpop.permute.xlu0 %3222 }
0x2f0f   :  { %v3225_v26 = vmul.f32 %v3223_v25, %v3208_v17 }
0x2f11   :  { %3227 = vrot.lane.b32.xlu1 %v3225_v26, %s11318_s19 }
0x2f83   :  { %v3228_v27 = vpop.permute.xlu1 %3227 }
0x2f84   :  { %3231 = vst.msk [vmem:[#allocation3 + $0x8] sm:$0xff] %vm701_vm5, %v3228_v27  ;;  %9686 = vmatmul.mubr.msk.f32.vlgmr.msra.gmra.mrb[20].mxu1 %vm701_vm5, %v3228_v27 }
0x2f85   :  { %10535 = vmatpush3.bf16.msra.mxu1 %v11811_v38  ;;  %9707 = vmatprep.mubr.msk.f32.mxu1 %vm11315_vm0, %v11314_v0 }
0x2f86   :  { %10536 = vmatprep.subr.bf16.mxu1 %v11316_v9 }
0x2f89   :  { %10538 = vmatpush3.bf16.msra.mxu1 %v11815_v42 }
0x2f8a   :  { %10545 = vmatprep.subr.bf16.mxu1 %v11316_v9 }
0x3057   :  { %v3300_v28 = vpop.f32.mrb[20].mxu1 }
0x3058   :  { %v3304_v29 = vadd.f32 %v3300_v28, %v11840_v52  ;;  %v9687_v56 = vpop.f32.mrb[21].mxu1 }
0x305a   :  { %v3305_v30 = vmul.f32 0.5, %v3304_v29 }
0x305c   :  { %v3306_v31 = vsel %vm11466_vm4, %v3304_v29, %v3305_v30 }
0x305d   :  { %11095 = vtanh.f32 %v3306_v31 }
0x3067   :  { %v11096_v32 = vpop.eup %11095 }
0x3068   :  { %v3308_v33 = vadd.f32 1.0, %v11096_v32 }
0x306a   :  { %v3309_v34 = vmul.f32 0.5, %v3308_v33 }
0x306c   :  { %v3310_v35 = vsel %vm11466_vm4, %v11096_v32, %v3309_v34 }
0x306d   :  { %3313 = vrot.lane.b32.xlu0 %v3310_v35, %s11317_s18  ;;  %v3311_v39 = vmul.f32 %v3310_v35, %v3219_v23 }
0x30df   :  { %v3314_v36 = vpop.permute.xlu0 %3313 }
0x30e0   :  { %v3316_v37 = vmul.f32 %v3314_v36, %v3310_v35 }
0x30e2   :  { %3318 = vrot.lane.b32.xlu1 %v3316_v37, %s11318_s19 }
0x3154   :  { %v3319_v40 = vpop.permute.xlu1 %3318 }
0x3155   :  { %v3321_v41 = vadd.f32 %v3319_v40, %v3311_v39  ;;  %v3845_v39 = vld [vmem:[#allocation8 + $0x40] sm:$0xff]  ;;  %v3846_v40 = vld [vmem:[#allocation8 + $0x48] sm:$0xff] }
0x3157   :  { %11097 = vtanh.f32 %v3321_v41 }
0x3161   :  { %v11098_v44 = vpop.eup %11097 }
0x3162   :  { %3324 = vrot.lane.b32.xlu0 %v11098_v44, %s11317_s18  ;;  %v3847_v44 = vld [vmem:[#allocation8 + $0x50] sm:$0xff] }
0x31d4   :  { %v3325_v45 = vpop.permute.xlu0 %3324 }
0x31d5   :  { %v3327_v46 = vmul.f32 %v3325_v45, %v3310_v35  ;;  %v3848_v45 = vld [vmem:[#allocation8 + $0x58] sm:$0xff] }
0x31d7   :  { %3329 = vrot.lane.b32.xlu1 %v3327_v46, %s11318_s19 }
0x3249   :  { %v3330_v47 = vpop.permute.xlu1 %3329 }
0x324a   :  { %3333 = vst.msk [vmem:[#allocation3 + $0x10] sm:$0xff] %vm701_vm5, %v3330_v47  ;;  %9697 = vmatmul.mubr.msk.f32.vlgmr.msra.gmra.mrb[20].mxu0 %vm701_vm5, %v3330_v47  ;;  %v11941_v47 = vpack.c.bf16 %v3848_v45, %v3847_v44 }
0x324b   :  { %10541 = vmatpush3.bf16.msra.mxu0 %v11811_v38  ;;  %9718 = vmatprep.mubr.msk.f32.mxu0 %vm11315_vm0, %v11314_v0 }
0x324c   :  { %10542 = vmatprep.subr.bf16.mxu0 %v11316_v9 }
0x324f   :  { %10544 = vmatpush3.bf16.msra.mxu0 %v11815_v42 }
0x3250   :  { %10551 = vmatprep.subr.bf16.mxu0 %v11316_v9 }
0x331d   :  { %v3402_v49 = vpop.f32.mrb[20].mxu0 }
0x331e   :  { %v3406_v43 = vadd.f32 %v3402_v49, %v11840_v52  ;;  %v9698_v50 = vpop.f32.mrb[21].mxu0  ;;  %v3857_v49 = vld [vmem:[#allocation3] sm:$0xff] }
0x3320   :  { %v3407_v51 = vmul.f32 0.5, %v3406_v43 }
0x3322   :  { %v3408_v48 = vsel %vm11466_vm4, %v3406_v43, %v3407_v51  ;;  %v4007_v43 = vld [vmem:[#allocation3 + $0x10] sm:$0xff] }
0x3323   :  { %11099 = vtanh.f32 %v3408_v48 }
0x332d   :  { %v11100_v53 = vpop.eup %11099 }
0x332e   :  { %v3410_v54 = vadd.f32 1.0, %v11100_v53 }
0x3330   :  { %v3411_v55 = vmul.f32 0.5, %v3410_v54 }
0x3332   :  { %v3412_v57 = vsel %vm11466_vm4, %v11100_v53, %v3411_v55 }
0x3333   :  { %3415 = vrot.lane.b32.xlu0 %v3412_v57, %s11317_s18  ;;  %v3413_v60 = vmul.f32 %v3412_v57, %v3321_v41  ;;  %v11936_v41 = vpack.c.bf16 %v3846_v40, %v3845_v39 }
0x33a5   :  { %v3416_v58 = vpop.permute.xlu0 %3415 }
0x33a6   :  { %v3418_v59 = vmul.f32 %v3416_v58, %v3412_v57 }
0x33a8   :  { %3420 = vrot.lane.b32.xlu1 %v3418_v59, %s11318_s19 }
0x341a   :  { %v3421_v61 = vpop.permute.xlu1 %3420 }
0x341b   :  { %v3423_v8 = vadd.f32 %v3421_v61, %v3413_v60 }
0x341d   :  { %11101 = vtanh.f32 %v3423_v8 }
0x3427   :  { %v11102_v62 = vpop.eup %11101 }
0x3428   :  { %3426 = vrot.lane.b32.xlu0 %v11102_v62, %s11317_s18 }
0x349a   :  { %v3427_v16 = vpop.permute.xlu0 %3426 }
0x349b   :  { %v3429_v63 = vmul.f32 %v3427_v16, %v3412_v57 }
0x349d   :  { %3431 = vrot.lane.b32.xlu1 %v3429_v63, %s11318_s19 }
0x350f   :  { %v3432_v12 = vpop.permute.xlu1 %3431 }
0x3510   :  { %3435 = vst.msk [vmem:[#allocation3 + $0x18] sm:$0xff] %vm701_vm5, %v3432_v12  ;;  %9708 = vmatmul.mubr.msk.f32.vlgmr.msra.gmra.mrb[22].mxu1 %vm701_vm5, %v3432_v12 }
0x3511   :  { %10547 = vmatpush3.bf16.msra.mxu1 %v11811_v38  ;;  %9729 = vmatprep.mubr.msk.f32.mxu1 %vm11315_vm0, %v11314_v0 }
0x3512   :  { %10548 = vmatprep.subr.bf16.mxu1 %v11316_v9 }
0x3515   :  { %10550 = vmatpush3.bf16.msra.mxu1 %v11815_v42 }
0x3516   :  { %10557 = vmatprep.subr.bf16.mxu1 %v11316_v9 }
0x35e3   :  { %v3504_v1 = vpop.f32.mrb[22].mxu1 }
0x35e4   :  { %v3508_v2 = vadd.f32 %v3504_v1, %v11840_v52  ;;  %v9709_v3 = vpop.f32.mrb[23].mxu1 }
0x35e6   :  { %v3509_v4 = vmul.f32 0.5, %v3508_v2 }
0x35e8   :  { %v3510_v5 = vsel %vm11466_vm4, %v3508_v2, %v3509_v4  ;;  %v4458_v4 = vld [vmem:[#allocation10 + $0x60] sm:$0xff] }
0x35e9   :  { %11103 = vtanh.f32 %v3510_v5  ;;  %v4459_v5 = vld [vmem:[#allocation10 + $0x68] sm:$0xff] }
0x35f3   :  { %v11104_v6 = vpop.eup %11103 }
0x35f4   :  { %v3512_v7 = vadd.f32 1.0, %v11104_v6 }
0x35f6   :  { %v3513_v10 = vmul.f32 0.5, %v3512_v7  ;;  %v4460_v7 = vld [vmem:[#allocation10 + $0x70] sm:$0xff] }
0x35f8   :  { %v3514_v11 = vsel %vm11466_vm4, %v11104_v6, %v3513_v10  ;;  %v11988_v6 = vpack.c.bf16 %v4459_v5, %v4458_v4  ;;  %v4461_v10 = vld [vmem:[#allocation10 + $0x78] sm:$0xff] }
0x35f9   :  { %3517 = vrot.lane.b32.xlu0 %v3514_v11, %s11317_s18  ;;  %v3515_v15 = vmul.f32 %v3514_v11, %v3423_v8 }
0x366b   :  { %v3518_v13 = vpop.permute.xlu0 %3517 }
0x366c   :  { %v3520_v14 = vmul.f32 %v3518_v13, %v3514_v11 }
0x366e   :  { %3522 = vrot.lane.b32.xlu1 %v3520_v14, %s11318_s19  ;;  %v11995_v14 = vpack.c.bf16 %v4461_v10, %v4460_v7 }
0x36e0   :  { %v3523_v17 = vpop.permute.xlu1 %3522 }
0x36e1   :  { %v3525_v18 = vadd.f32 %v3523_v17, %v3515_v15  ;;  %v4082_v15 = vld [vmem:[#allocation3 + $0x18] sm:$0xff] }
0x36e3   :  { %11105 = vtanh.f32 %v3525_v18 }
0x36ed   :  { %v11106_v19 = vpop.eup %11105 }
0x36ee   :  { %3528 = vrot.lane.b32.xlu0 %v11106_v19, %s11317_s18 }
0x3760   :  { %v3529_v20 = vpop.permute.xlu0 %3528 }
0x3761   :  { %v3531_v21 = vmul.f32 %v3529_v20, %v3514_v11  ;;  %v3932_v11 = vld [vmem:[#allocation3 + $0x8] sm:$0xff] }
0x3763   :  { %3533 = vrot.lane.b32.xlu1 %v3531_v21, %s11318_s19 }
0x37d5   :  { %v3534_v23 = vpop.permute.xlu1 %3533 }
0x37d6   :  { %3537 = vst.msk [vmem:[#allocation3 + $0x20] sm:$0xff] %vm701_vm5, %v3534_v23  ;;  %9719 = vmatmul.mubr.msk.f32.vlgmr.msra.gmra.mrb[22].mxu0 %vm701_vm5, %v3534_v23 }
0x37d7   :  { %10553 = vmatpush3.bf16.msra.mxu0 %v11811_v38  ;;  %9740 = vmatprep.mubr.msk.f32.mxu0 %vm11315_vm0, %v11314_v0 }
0x37d8   :  { %10554 = vmatprep.subr.bf16.mxu0 %v11316_v9 }
0x37db   :  { %10556 = vmatpush3.bf16.msra.mxu0 %v11815_v42 }
0x37dc   :  { %10563 = vmatprep.subr.bf16.mxu0 %v11316_v9 }
0x37dd   :  { %v4157_v50 = vld [vmem:[#allocation3 + $0x20] sm:$0xff] }
0x38a9   :  { %v3606_v24 = vpop.f32.mrb[22].mxu0 }
0x38aa   :  { %v3610_v25 = vadd.f32 %v3606_v24, %v11840_v52  ;;  %v9720_v26 = vpop.f32.mrb[23].mxu0  ;;  %v12034_v24 = vld [vmem:[%s12704_s4 + $0x3] ss:$0 sm:$0xff] }
0x38ac   :  { %v3611_v27 = vmul.f32 0.5, %v3610_v25 }
0x38ae   :  { %v3612_v28 = vsel %vm11466_vm4, %v3610_v25, %v3611_v27 }
0x38af   :  { %11107 = vtanh.f32 %v3612_v28 }
0x38b9   :  { %v11108_v29 = vpop.eup %11107 }
0x38ba   :  { %v3614_v38 = vadd.f32 1.0, %v11108_v29 }
0x38bc   :  { %v3615_v56 = vmul.f32 0.5, %v3614_v38 }
0x38be   :  { %v3616_v30 = vsel %vm11466_vm4, %v11108_v29, %v3615_v56 }
0x38bf   :  { %3619 = vrot.lane.b32.xlu0 %v3616_v30, %s11317_s18  ;;  %v3617_v32 = vmul.f32 %v3616_v30, %v3525_v18 }
0x3931   :  { %v3620_v42 = vpop.permute.xlu0 %3619 }
0x3932   :  { %v3622_v31 = vmul.f32 %v3620_v42, %v3616_v30 }
0x3934   :  { %3624 = vrot.lane.b32.xlu1 %v3622_v31, %s11318_s19 }
0x39a6   :  { %v3625_v33 = vpop.permute.xlu1 %3624 }
0x39a7   :  { %v3627_v34 = vadd.f32 %v3625_v33, %v3617_v32 }
0x39a9   :  { %11109 = vtanh.f32 %v3627_v34 }
0x39b3   :  { %v11110_v35 = vpop.eup %11109 }
0x39b4   :  { %3630 = vrot.lane.b32.xlu0 %v11110_v35, %s11317_s18 }
0x3a26   :  { %v3631_v36 = vpop.permute.xlu0 %3630 }
0x3a27   :  { %v3633_v37 = vmul.f32 %v3631_v36, %v3616_v30 }
0x3a29   :  { %3635 = vrot.lane.b32.xlu1 %v3633_v37, %s11318_s19 }
0x3a9b   :  { %v3636_v46 = vpop.permute.xlu1 %3635 }
0x3a9c   :  { %3639 = vst.msk [vmem:[#allocation3 + $0x28] sm:$0xff] %vm701_vm5, %v3636_v46  ;;  %9730 = vmatmul.mubr.msk.f32.vlgmr.msra.gmra.mrb[24].mxu1 %vm701_vm5, %v3636_v46 }
0x3a9d   :  { %10559 = vmatpush3.bf16.msra.mxu1 %v11936_v41  ;;  %9751 = vmatprep.mubr.msk.f32.mxu1 %vm11315_vm0, %v11314_v0 }
0x3a9e   :  { %10560 = vmatprep.subr.bf16.mxu1 %v11316_v9 }
0x3aa1   :  { %10562 = vmatpush3.bf16.msra.mxu1 %v11941_v47 }
0x3aa2   :  { %10569 = vmatprep.subr.bf16.mxu1 %v11316_v9 }
0x3aa3   :  { %v4232_v17 = vld [vmem:[#allocation3 + $0x28] sm:$0xff] }
0x3aa4   :  { %9752 = vmatmul.mubr.msk.f32.vlgmr.msra.gmra.mrb[26].mxu1 %vm701_vm5, %v3857_v49 }
0x3aa5   :  { %10571 = vmatpush3.bf16.msra.mxu1 %v11936_v41  ;;  %9773 = vmatprep.mubr.msk.f32.mxu1 %vm11315_vm0, %v11314_v0 }
0x3aa6   :  { %10572 = vmatprep.subr.bf16.mxu1 %v11316_v9 }
0x3aa9   :  { %10574 = vmatpush3.bf16.msra.mxu1 %v11941_v47 }
0x3aaa   :  { %10581 = vmatprep.subr.bf16.mxu1 %v11316_v9 }
0x3aac   :  { %9774 = vmatmul.mubr.msk.f32.vlgmr.msra.gmra.mrb[28].mxu1 %vm701_vm5, %v4007_v43 }
0x3aad   :  { %10583 = vmatpush3.bf16.msra.mxu1 %v11936_v41  ;;  %9795 = vmatprep.mubr.msk.f32.mxu1 %vm11315_vm0, %v11314_v0 }
0x3aae   :  { %10584 = vmatprep.subr.bf16.mxu1 %v11316_v9 }
0x3ab1   :  { %10586 = vmatpush3.bf16.msra.mxu1 %v11941_v47 }
0x3ab2   :  { %10593 = vmatprep.subr.bf16.mxu1 %v11316_v9 }
0x3ab4   :  { %9796 = vmatmul.mubr.msk.f32.vlgmr.msra.gmra.mrb[30].mxu1 %vm701_vm5, %v4157_v50 }
0x3ab5   :  { %10595 = vmatpush3.bf16.msra.mxu1 %v11936_v41  ;;  %9817 = vmatprep.mubr.msk.f32.mxu1 %vm11315_vm0, %v11314_v0 }
0x3ab6   :  { %10596 = vmatprep.subr.bf16.mxu1 %v11316_v9 }
0x3ab9   :  { %10598 = vmatpush3.bf16.msra.mxu1 %v11941_v47 }
0x3aba   :  { %10605 = vmatprep.subr.bf16.mxu1 %v11316_v9 }
0x3b6f   :  { %v3708_v51 = vpop.f32.mrb[24].mxu1 }
0x3b70   :  { %v3712_v48 = vadd.f32 %v3708_v51, %v11840_v52  ;;  %v9731_v53 = vpop.f32.mrb[25].mxu1 }
0x3b72   :  { %v3713_v54 = vmul.f32 0.5, %v3712_v48 }
0x3b74   :  { %v3714_v55 = vsel %vm11466_vm4, %v3712_v48, %v3713_v54 }
0x3b75   :  { %11111 = vtanh.f32 %v3714_v55 }
0x3b7f   :  { %v11112_v57 = vpop.eup %11111 }
0x3b80   :  { %v3716_v58 = vadd.f32 1.0, %v11112_v57 }
0x3b82   :  { %v3717_v59 = vmul.f32 0.5, %v3716_v58 }
0x3b84   :  { %v3718_v60 = vsel %vm11466_vm4, %v11112_v57, %v3717_v59 }
0x3b85   :  { %3721 = vrot.lane.b32.xlu0 %v3718_v60, %s11317_s18  ;;  %v3719_v62 = vmul.f32 %v3718_v60, %v3627_v34 }
0x3bf7   :  { %v3722_v61 = vpop.permute.xlu0 %3721 }
0x3bf8   :  { %v3724_v8 = vmul.f32 %v3722_v61, %v3718_v60 }
0x3bfa   :  { %3726 = vrot.lane.b32.xlu1 %v3724_v8, %s11318_s19 }
0x3c6c   :  { %v3727_v16 = vpop.permute.xlu1 %3726 }
0x3c6d   :  { %v11976_v63 = vadd.f32 %v3727_v16, %v3719_v62 }
0x3c6f   :  { %11113 = vtanh.f32 %v11976_v63 }
0x3c79   :  { %v11114_v12 = vpop.eup %11113 }
0x3c7a   :  { %3732 = vrot.lane.b32.xlu0 %v11114_v12, %s11317_s18 }
0x3cec   :  { %v3733_v1 = vpop.permute.xlu0 %3732 }
0x3ced   :  { %v3735_v2 = vmul.f32 %v3733_v1, %v3718_v60 }
0x3cef   :  { %3737 = vrot.lane.b32.xlu1 %v3735_v2, %s11318_s19 }
0x3d61   :  { %v3738_v3 = vpop.permute.xlu1 %3737 }
0x3d62   :  { %3741 = vst.msk [vmem:[#allocation3 + $0x30] sm:$0xff] %vm701_vm5, %v3738_v3  ;;  %9741 = vmatmul.mubr.msk.f32.vlgmr.msra.gmra.mrb[24].mxu0 %vm701_vm5, %v3738_v3 }
0x3d63   :  { %10565 = vmatpush3.bf16.msra.mxu0 %v11936_v41  ;;  %9762 = vmatprep.mubr.msk.f32.mxu0 %vm11315_vm0, %v11314_v0 }
0x3d64   :  { %10566 = vmatprep.subr.bf16.mxu0 %v11316_v9 }
0x3d67   :  { %10568 = vmatpush3.bf16.msra.mxu0 %v11941_v47 }
0x3d68   :  { %10575 = vmatprep.subr.bf16.mxu0 %v11316_v9 }
0x3d69   :  { %v4307_v13 = vld [vmem:[#allocation3 + $0x30] sm:$0xff] }
0x3d6a   :  { %9763 = vmatmul.mubr.msk.f32.vlgmr.msra.gmra.mrb[26].mxu0 %vm701_vm5, %v3932_v11  ;;  %9818 = vmatmul.mubr.msk.f32.vlgmr.msra.gmra.mrb[32].mxu1 %vm701_vm5, %v4307_v13 }
0x3d6b   :  { %10577 = vmatpush3.bf16.msra.mxu0 %v11936_v41  ;;  %10607 = vmatpush3.bf16.msra.mxu1 %v11988_v6 }
0x3d6c   :  { %10578 = vmatprep.subr.bf16.mxu0 %v11316_v9  ;;  %10608 = vmatprep.subr.bf16.mxu1 %v11316_v9 }
0x3d6d   :  { %9784 = vmatprep.mubr.msk.f32.mxu0 %vm11315_vm0, %v11314_v0  ;;  %9839 = vmatprep.mubr.msk.f32.mxu1 %vm11315_vm0, %v11314_v0 }
0x3d6f   :  { %10580 = vmatpush3.bf16.msra.mxu0 %v11941_v47  ;;  %10610 = vmatpush3.bf16.msra.mxu1 %v11995_v14 }
0x3d70   :  { %10587 = vmatprep.subr.bf16.mxu0 %v11316_v9  ;;  %10617 = vmatprep.subr.bf16.mxu1 %v11316_v9 }
0x3d72   :  { %9785 = vmatmul.mubr.msk.f32.vlgmr.msra.gmra.mrb[28].mxu0 %vm701_vm5, %v4082_v15  ;;  %9840 = vmatmul.mubr.f32.vlgmr.msra.gmra.mrb[26].mxu1 %v11314_v0 }
0x3d73   :  { %10589 = vmatpush3.bf16.msra.mxu0 %v11936_v41  ;;  %9806 = vmatprep.mubr.msk.f32.mxu0 %vm11315_vm0, %v11314_v0 }
0x3d74   :  { %10590 = vmatprep.subr.bf16.mxu0 %v11316_v9  ;;  %10619 = vmatpush3.bf16.msra.mxu1 %v11988_v6 }
0x3d75   :  { %10620 = vmatprep.subr.bf16.mxu1 %v11316_v9  ;;  %9861 = vmatprep.mubr.msk.f32.mxu1 %vm11315_vm0, %v11314_v0 }
0x3d77   :  { %10592 = vmatpush3.bf16.msra.mxu0 %v11941_v47 }
0x3d78   :  { %10599 = vmatprep.subr.bf16.mxu0 %v11316_v9  ;;  %10622 = vmatpush3.bf16.msra.mxu1 %v11995_v14 }
0x3d79   :  { %10629 = vmatprep.subr.bf16.mxu1 %v11316_v9 }
0x3d7a   :  { %9807 = vmatmul.mubr.msk.f32.vlgmr.msra.gmra.mrb[30].mxu0 %vm701_vm5, %v4232_v17 }
0x3d7b   :  { %10601 = vmatpush3.bf16.msra.mxu0 %v11936_v41  ;;  %9828 = vmatprep.mubr.msk.f32.mxu0 %vm11315_vm0, %v11314_v0 }
0x3d7c   :  { %10602 = vmatprep.subr.bf16.mxu0 %v11316_v9 }
0x3d7f   :  { %10604 = vmatpush3.bf16.msra.mxu0 %v11941_v47 }
0x3d80   :  { %10611 = vmatprep.subr.bf16.mxu0 %v11316_v9 }
0x3e35   :  { %v3810_v18 = vpop.f32.mrb[24].mxu0 }
0x3e36   :  { %v3814_v19 = vadd.f32 %v3810_v18, %v11840_v52  ;;  %v9742_v20 = vpop.f32.mrb[25].mxu0 }
0x3e38   :  { %v3815_v21 = vmul.f32 0.5, %v3814_v19 }
0x3e3a   :  { %v3816_v23 = vsel %vm11466_vm4, %v3814_v19, %v3815_v21 }
0x3e3b   :  { %11115 = vtanh.f32 %v3816_v23 }
0x3e45   :  { %v11116_v25 = vpop.eup %11115  ;;  %v4529_v26 = vpop.f32.mrb[26].mxu1 }
0x3e46   :  { %v10910_v27 = vadd.f32 %v12034_v24, %v4529_v26  ;;  %v9841_v28 = vpop.f32.mrb[27].mxu1  ;;  %v3818_v29 = vadd.f32 1.0, %v11116_v25 }
0x3e48   :  { %v4534_v38 = vmul.f32 0.5, %v10910_v27  ;;  %v3819_v56 = vmul.f32 0.5, %v3818_v29 }
0x3e4a   :  { %v4535_v52 = vsel %vm11466_vm4, %v10910_v27, %v4534_v38  ;;  %v3820_v30 = vsel %vm11466_vm4, %v11116_v25, %v3819_v56 }
0x3e4b   :  { %11117 = vtanh.f32 %v4535_v52  ;;  %3823 = vrot.lane.b32.xlu0 %v3820_v30, %s11317_s18  ;;  %v3821_v39 = vmul.f32 %v3820_v30, %v11976_v63 }
0x3e55   :  { %v11118_v42 = vpop.eup %11117 }
0x3e56   :  { %v4537_v31 = vadd.f32 1.0, %v11118_v42 }
0x3e58   :  { %v4538_v32 = vmul.f32 0.5, %v4537_v31 }
0x3e5a   :  { %v4539_v33 = vsel %vm11466_vm4, %v11118_v42, %v4538_v32 }
0x3e5b   :  { %4542 = vrot.lane.b32.xlu1 %v4539_v33, %s11317_s18  ;;  %v4540_v45 = vmul.f32 0.0, %v4539_v33 }
0x3ebd   :  { %v3824_v34 = vpop.permute.xlu0 %3823 }
0x3ebe   :  { %v3826_v35 = vmul.f32 %v3824_v34, %v3820_v30 }
0x3ec0   :  { %3828 = vrot.lane.b32.xlu0 %v3826_v35, %s11318_s19 }
0x3ecd   :  { %v4543_v36 = vpop.permute.xlu1 %4542 }
0x3ece   :  { %v4545_v37 = vmul.f32 %v4543_v36, %v4539_v33 }
0x3ed0   :  { %4547 = vrot.lane.b32.xlu1 %v4545_v37, %s11318_s19 }
0x3f32   :  { %v3829_v40 = vpop.permute.xlu0 %3828 }
0x3f33   :  { %v3831_v41 = vadd.f32 %v3829_v40, %v3821_v39 }
0x3f35   :  { %11119 = vtanh.f32 %v3831_v41 }
0x3f3f   :  { %v11120_v44 = vpop.eup %11119 }
0x3f40   :  { %3834 = vrot.lane.b32.xlu0 %v11120_v44, %s11317_s18 }
0x3f42   :  { %v4548_v46 = vpop.permute.xlu1 %4547 }
0x3f43   :  { %v4550_v47 = vadd.f32 %v4548_v46, %v4540_v45 }
0x3f45   :  { %11121 = vtanh.f32 %v4550_v47 }
0x3f4f   :  { %v11122_v49 = vpop.eup %11121 }
0x3f50   :  { %4553 = vrot.lane.b32.xlu1 %v11122_v49, %s11317_s18 }
0x3fb2   :  { %v3835_v43 = vpop.permute.xlu0 %3834 }
0x3fb3   :  { %v3837_v50 = vmul.f32 %v3835_v43, %v3820_v30 }
0x3fb5   :  { %3839 = vrot.lane.b32.xlu0 %v3837_v50, %s11318_s19 }
0x3fc2   :  { %v4554_v51 = vpop.permute.xlu1 %4553 }
0x3fc3   :  { %v4556_v48 = vmul.f32 %v4554_v51, %v4539_v33 }
0x3fc5   :  { %4558 = vrot.lane.b32.xlu1 %v4556_v48, %s11318_s19 }
0x4027   :  { %v3840_v53 = vpop.permute.xlu0 %3839 }
0x4028   :  { %3843 = vst.msk [vmem:[#allocation3 + $0x38] sm:$0xff] %vm701_vm5, %v3840_v53 }
0x402f   :  { %v4382_v54 = vld [vmem:[#allocation3 + $0x38] sm:$0xff] }
0x4030   :  { %9829 = vmatmul.mubr.msk.f32.vlgmr.msra.gmra.mrb[32].mxu0 %vm701_vm5, %v4382_v54 }
0x4031   :  { %10613 = vmatpush3.bf16.msra.mxu0 %v11988_v6  ;;  %9850 = vmatprep.mubr.msk.f32.mxu0 %vm11315_vm0, %v11314_v0 }
0x4032   :  { %10614 = vmatprep.subr.bf16.mxu0 %v11316_v9 }
0x4035   :  { %10616 = vmatpush3.bf16.msra.mxu0 %v11995_v14 }
0x4036   :  { %10623 = vmatprep.subr.bf16.mxu0 %v11316_v9 }
0x4037   :  { %v4559_v55 = vpop.permute.xlu1 %4558 }
0x4038   :  { %4561 = vst.msk [vmem:[#allocation2] sm:$0xff] %vm701_vm5, %v4559_v55  ;;  %9851 = vmatmul.mubr.msk.f32.vlgmr.msra.gmra.mrb[26].mxu0 %vm701_vm5, %v4559_v55 }
0x4039   :  { %10625 = vmatpush3.bf16.msra.mxu0 %v11988_v6  ;;  %9872 = vmatprep.mubr.msk.f32.mxu0 %vm11315_vm0, %v11314_v0 }
0x403a   :  { %10626 = vmatprep.subr.bf16.mxu0 %v11316_v9 }
0x403d   :  { %10628 = vmatpush3.bf16.msra.mxu0 %v11995_v14 }
0x403e   :  { %10635 = vmatprep.subr.bf16.mxu0 %v11316_v9 }
0x410b   :  { %v4631_v57 = vpop.f32.mrb[26].mxu0 }
0x410c   :  { %v10911_v58 = vadd.f32 %v12034_v24, %v4631_v57  ;;  %v9852_v59 = vpop.f32.mrb[27].mxu0 }
0x410e   :  { %v4636_v60 = vmul.f32 0.5, %v10911_v58 }
0x4110   :  { %v4637_v61 = vsel %vm11466_vm4, %v10911_v58, %v4636_v60 }
0x4111   :  { %11123 = vtanh.f32 %v4637_v61 }
0x411b   :  { %v11124_v8 = vpop.eup %11123 }
0x411c   :  { %v4639_v62 = vadd.f32 1.0, %v11124_v8 }
0x411e   :  { %v4640_v16 = vmul.f32 0.5, %v4639_v62 }
0x4120   :  { %v4641_v63 = vsel %vm11466_vm4, %v11124_v8, %v4640_v16 }
0x4121   :  { %4644 = vrot.lane.b32.xlu0 %v4641_v63, %s11317_s18  ;;  %v4642_v2 = vmul.f32 %v4641_v63, %v4550_v47 }
0x4193   :  { %v4645_v12 = vpop.permute.xlu0 %4644 }
0x4194   :  { %v4647_v1 = vmul.f32 %v4645_v12, %v4641_v63 }
0x4196   :  { %4649 = vrot.lane.b32.xlu1 %v4647_v1, %s11318_s19 }
0x4208   :  { %v4650_v3 = vpop.permute.xlu1 %4649 }
0x4209   :  { %v4652_v4 = vadd.f32 %v4650_v3, %v4642_v2 }
0x420b   :  { %11125 = vtanh.f32 %v4652_v4 }
0x4215   :  { %v11126_v5 = vpop.eup %11125 }
0x4216   :  { %4655 = vrot.lane.b32.xlu0 %v11126_v5, %s11317_s18 }
0x4288   :  { %v4656_v7 = vpop.permute.xlu0 %4655 }
0x4289   :  { %v4658_v10 = vmul.f32 %v4656_v7, %v4641_v63 }
0x428b   :  { %4660 = vrot.lane.b32.xlu1 %v4658_v10, %s11318_s19 }
0x42fd   :  { %v4661_v11 = vpop.permute.xlu1 %4660 }
0x42fe   :  { %4663 = vst.msk [vmem:[#allocation2 + $0x8] sm:$0xff] %vm701_vm5, %v4661_v11  ;;  %9862 = vmatmul.mubr.msk.f32.vlgmr.msra.gmra.mrb[28].mxu1 %vm701_vm5, %v4661_v11 }
0x42ff   :  { %10631 = vmatpush3.bf16.msra.mxu1 %v11988_v6  ;;  %9883 = vmatprep.mubr.msk.f32.mxu1 %vm11315_vm0, %v11314_v0 }
0x4300   :  { %10632 = vmatprep.subr.bf16.mxu1 %v11316_v9 }
0x4303   :  { %10634 = vmatpush3.bf16.msra.mxu1 %v11995_v14 }
0x4304   :  { %10641 = vmatprep.subr.bf16.mxu1 %v11316_v9 }
0x43d1   :  { %v4733_v13 = vpop.f32.mrb[28].mxu1 }
0x43d2   :  { %v10912_v15 = vadd.f32 %v12034_v24, %v4733_v13  ;;  %v9863_v17 = vpop.f32.mrb[29].mxu1 }
0x43d4   :  { %v4738_v18 = vmul.f32 0.5, %v10912_v15 }
0x43d6   :  { %v4739_v19 = vsel %vm11466_vm4, %v10912_v15, %v4738_v18 }
0x43d7   :  { %11127 = vtanh.f32 %v4739_v19 }
0x43e1   :  { %v11128_v20 = vpop.eup %11127 }
0x43e2   :  { %v4741_v21 = vadd.f32 1.0, %v11128_v20 }
0x43e4   :  { %v4742_v23 = vmul.f32 0.5, %v4741_v21 }
0x43e6   :  { %v4743_v25 = vsel %vm11466_vm4, %v11128_v20, %v4742_v23 }
0x43e7   :  { %4746 = vrot.lane.b32.xlu0 %v4743_v25, %s11317_s18  ;;  %v4744_v28 = vmul.f32 %v4743_v25, %v4652_v4 }
0x4459   :  { %v4747_v26 = vpop.permute.xlu0 %4746 }
0x445a   :  { %v4749_v27 = vmul.f32 %v4747_v26, %v4743_v25 }
0x445c   :  { %4751 = vrot.lane.b32.xlu1 %v4749_v27, %s11318_s19 }
0x44ce   :  { %v4752_v29 = vpop.permute.xlu1 %4751 }
0x44cf   :  { %v4754_v38 = vadd.f32 %v4752_v29, %v4744_v28  ;;  %v5277_v28 = vld [vmem:[#allocation8 + $0x60] sm:$0xff]  ;;  %v5278_v29 = vld [vmem:[#allocation8 + $0x68] sm:$0xff] }
0x44d1   :  { %11129 = vtanh.f32 %v4754_v38 }
0x44db   :  { %v11130_v56 = vpop.eup %11129 }
0x44dc   :  { %4757 = vrot.lane.b32.xlu0 %v11130_v56, %s11317_s18  ;;  %v5279_v56 = vld [vmem:[#allocation8 + $0x70] sm:$0xff] }
0x454e   :  { %v4758_v52 = vpop.permute.xlu0 %4757 }
0x454f   :  { %v4760_v30 = vmul.f32 %v4758_v52, %v4743_v25  ;;  %v5280_v52 = vld [vmem:[#allocation8 + $0x78] sm:$0xff] }
0x4551   :  { %4762 = vrot.lane.b32.xlu1 %v4760_v30, %s11318_s19 }
0x45c3   :  { %v4763_v42 = vpop.permute.xlu1 %4762 }
0x45c4   :  { %4765 = vst.msk [vmem:[#allocation2 + $0x10] sm:$0xff] %vm701_vm5, %v4763_v42  ;;  %9873 = vmatmul.mubr.msk.f32.vlgmr.msra.gmra.mrb[28].mxu0 %vm701_vm5, %v4763_v42  ;;  %v12150_v42 = vpack.c.bf16 %v5280_v52, %v5279_v56 }
0x45c5   :  { %10637 = vmatpush3.bf16.msra.mxu0 %v11988_v6  ;;  %9894 = vmatprep.mubr.msk.f32.mxu0 %vm11315_vm0, %v11314_v0 }
0x45c6   :  { %10638 = vmatprep.subr.bf16.mxu0 %v11316_v9 }
0x45c9   :  { %10640 = vmatpush3.bf16.msra.mxu0 %v11995_v14 }
0x45ca   :  { %10647 = vmatprep.subr.bf16.mxu0 %v11316_v9 }
0x4697   :  { %v4835_v31 = vpop.f32.mrb[28].mxu0 }
0x4698   :  { %v10913_v32 = vadd.f32 %v12034_v24, %v4835_v31  ;;  %v9874_v33 = vpop.f32.mrb[29].mxu0  ;;  %v5289_v31 = vld [vmem:[#allocation2] sm:$0xff] }
0x469a   :  { %v4840_v34 = vmul.f32 0.5, %v10913_v32 }
0x469c   :  { %v4841_v35 = vsel %vm11466_vm4, %v10913_v32, %v4840_v34  ;;  %v5439_v32 = vld [vmem:[#allocation2 + $0x10] sm:$0xff] }
0x469d   :  { %11131 = vtanh.f32 %v4841_v35 }
0x46a7   :  { %v11132_v36 = vpop.eup %11131 }
0x46a8   :  { %v4843_v37 = vadd.f32 1.0, %v11132_v36 }
0x46aa   :  { %v4844_v39 = vmul.f32 0.5, %v4843_v37 }
0x46ac   :  { %v4845_v40 = vsel %vm11466_vm4, %v11132_v36, %v4844_v39 }
0x46ad   :  { %4848 = vrot.lane.b32.xlu0 %v4845_v40, %s11317_s18  ;;  %v4846_v45 = vmul.f32 %v4845_v40, %v4754_v38  ;;  %v12145_v38 = vpack.c.bf16 %v5278_v29, %v5277_v28 }
0x471f   :  { %v4849_v41 = vpop.permute.xlu0 %4848 }
0x4720   :  { %v4851_v44 = vmul.f32 %v4849_v41, %v4845_v40 }
0x4722   :  { %4853 = vrot.lane.b32.xlu1 %v4851_v44, %s11318_s19 }
0x4794   :  { %v4854_v46 = vpop.permute.xlu1 %4853 }
0x4795   :  { %v4856_v47 = vadd.f32 %v4854_v46, %v4846_v45 }
0x4797   :  { %11133 = vtanh.f32 %v4856_v47 }
0x47a1   :  { %v11134_v49 = vpop.eup %11133 }
0x47a2   :  { %4859 = vrot.lane.b32.xlu0 %v11134_v49, %s11317_s18 }
0x4814   :  { %v4860_v43 = vpop.permute.xlu0 %4859 }
0x4815   :  { %v4862_v50 = vmul.f32 %v4860_v43, %v4845_v40 }
0x4817   :  { %4864 = vrot.lane.b32.xlu1 %v4862_v50, %s11318_s19 }
0x4889   :  { %v4865_v51 = vpop.permute.xlu1 %4864 }
0x488a   :  { %4867 = vst.msk [vmem:[#allocation2 + $0x18] sm:$0xff] %vm701_vm5, %v4865_v51  ;;  %9884 = vmatmul.mubr.msk.f32.vlgmr.msra.gmra.mrb[30].mxu1 %vm701_vm5, %v4865_v51 }
0x488b   :  { %10643 = vmatpush3.bf16.msra.mxu1 %v11988_v6  ;;  %9905 = vmatprep.mubr.msk.f32.mxu1 %vm11315_vm0, %v11314_v0 }
0x488c   :  { %10644 = vmatprep.subr.bf16.mxu1 %v11316_v9 }
0x488f   :  { %10646 = vmatpush3.bf16.msra.mxu1 %v11995_v14 }
0x4890   :  { %10653 = vmatprep.subr.bf16.mxu1 %v11316_v9 }
0x495d   :  { %v4937_v48 = vpop.f32.mrb[30].mxu1 }
0x495e   :  { %v10914_v53 = vadd.f32 %v12034_v24, %v4937_v48  ;;  %v9885_v54 = vpop.f32.mrb[31].mxu1 }
0x4960   :  { %v4942_v55 = vmul.f32 0.5, %v10914_v53 }
0x4962   :  { %v4943_v57 = vsel %vm11466_vm4, %v10914_v53, %v4942_v55  ;;  %v5890_v55 = vld [vmem:[#allocation10 + $0x80] sm:$0xff] }
0x4963   :  { %11135 = vtanh.f32 %v4943_v57  ;;  %v5891_v57 = vld [vmem:[#allocation10 + $0x88] sm:$0xff] }
0x496d   :  { %v11136_v58 = vpop.eup %11135 }
0x496e   :  { %v4945_v59 = vadd.f32 1.0, %v11136_v58 }
0x4970   :  { %v4946_v60 = vmul.f32 0.5, %v4945_v59  ;;  %v5892_v59 = vld [vmem:[#allocation10 + $0x90] sm:$0xff] }
0x4972   :  { %v4947_v61 = vsel %vm11466_vm4, %v11136_v58, %v4946_v60  ;;  %v12197_v58 = vpack.c.bf16 %v5891_v57, %v5890_v55  ;;  %v5893_v60 = vld [vmem:[#allocation10 + $0x98] sm:$0xff] }
0x4973   :  { %4950 = vrot.lane.b32.xlu0 %v4947_v61, %s11317_s18  ;;  %v4948_v16 = vmul.f32 %v4947_v61, %v4856_v47 }
0x49e5   :  { %v4951_v8 = vpop.permute.xlu0 %4950 }
0x49e6   :  { %v4953_v62 = vmul.f32 %v4951_v8, %v4947_v61 }
0x49e8   :  { %4955 = vrot.lane.b32.xlu1 %v4953_v62, %s11318_s19  ;;  %v12204_v62 = vpack.c.bf16 %v5893_v60, %v5892_v59 }
0x4a5a   :  { %v4956_v63 = vpop.permute.xlu1 %4955 }
0x4a5b   :  { %v4958_v12 = vadd.f32 %v4956_v63, %v4948_v16  ;;  %v5514_v16 = vld [vmem:[#allocation2 + $0x18] sm:$0xff] }
0x4a5d   :  { %11137 = vtanh.f32 %v4958_v12 }
0x4a67   :  { %v11138_v1 = vpop.eup %11137 }
0x4a68   :  { %4961 = vrot.lane.b32.xlu0 %v11138_v1, %s11317_s18 }
0x4ada   :  { %v4962_v2 = vpop.permute.xlu0 %4961 }
0x4adb   :  { %v4964_v3 = vmul.f32 %v4962_v2, %v4947_v61  ;;  %v5364_v61 = vld [vmem:[#allocation2 + $0x8] sm:$0xff] }
0x4add   :  { %4966 = vrot.lane.b32.xlu1 %v4964_v3, %s11318_s19 }
0x4b4f   :  { %v4967_v4 = vpop.permute.xlu1 %4966 }
0x4b50   :  { %4969 = vst.msk [vmem:[#allocation2 + $0x20] sm:$0xff] %vm701_vm5, %v4967_v4  ;;  %9895 = vmatmul.mubr.msk.f32.vlgmr.msra.gmra.mrb[30].mxu0 %vm701_vm5, %v4967_v4 }
0x4b51   :  { %10649 = vmatpush3.bf16.msra.mxu0 %v11988_v6  ;;  %9916 = vmatprep.mubr.msk.f32.mxu0 %vm11315_vm0, %v11314_v0 }
0x4b52   :  { %10650 = vmatprep.subr.bf16.mxu0 %v11316_v9 }
0x4b55   :  { %10652 = vmatpush3.bf16.msra.mxu0 %v11995_v14 }
0x4b56   :  { %10659 = vmatprep.subr.bf16.mxu0 %v11316_v9 }
0x4b57   :  { %v5589_v33 = vld [vmem:[#allocation2 + $0x20] sm:$0xff] }
0x4c23   :  { %v5039_v5 = vpop.f32.mrb[30].mxu0 }
0x4c24   :  { %v10915_v7 = vadd.f32 %v12034_v24, %v5039_v5  ;;  %v9896_v10 = vpop.f32.mrb[31].mxu0  ;;  %v12243_v5 = vld [vmem:[%s12704_s4 + $0x4] ss:$0 sm:$0xff] }
0x4c26   :  { %v5044_v11 = vmul.f32 0.5, %v10915_v7 }
0x4c28   :  { %v5045_v13 = vsel %vm11466_vm4, %v10915_v7, %v5044_v11 }
0x4c29   :  { %11139 = vtanh.f32 %v5045_v13 }
0x4c33   :  { %v11140_v15 = vpop.eup %11139 }
0x4c34   :  { %v5047_v6 = vadd.f32 1.0, %v11140_v15 }
0x4c36   :  { %v5048_v17 = vmul.f32 0.5, %v5047_v6 }
0x4c38   :  { %v5049_v18 = vsel %vm11466_vm4, %v11140_v15, %v5048_v17 }
0x4c39   :  { %5052 = vrot.lane.b32.xlu0 %v5049_v18, %s11317_s18  ;;  %v5050_v20 = vmul.f32 %v5049_v18, %v4958_v12 }
0x4cab   :  { %v5053_v14 = vpop.permute.xlu0 %5052 }
0x4cac   :  { %v5055_v19 = vmul.f32 %v5053_v14, %v5049_v18 }
0x4cae   :  { %5057 = vrot.lane.b32.xlu1 %v5055_v19, %s11318_s19 }
0x4d20   :  { %v5058_v21 = vpop.permute.xlu1 %5057 }
0x4d21   :  { %v5060_v23 = vadd.f32 %v5058_v21, %v5050_v20 }
0x4d23   :  { %11141 = vtanh.f32 %v5060_v23 }
0x4d2d   :  { %v11142_v25 = vpop.eup %11141 }
0x4d2e   :  { %5063 = vrot.lane.b32.xlu0 %v11142_v25, %s11317_s18 }
0x4da0   :  { %v5064_v26 = vpop.permute.xlu0 %5063 }
0x4da1   :  { %v5066_v27 = vmul.f32 %v5064_v26, %v5049_v18 }
0x4da3   :  { %5068 = vrot.lane.b32.xlu1 %v5066_v27, %s11318_s19 }
0x4e15   :  { %v5069_v30 = vpop.permute.xlu1 %5068 }
0x4e16   :  { %5071 = vst.msk [vmem:[#allocation2 + $0x28] sm:$0xff] %vm701_vm5, %v5069_v30  ;;  %9906 = vmatmul.mubr.msk.f32.vlgmr.msra.gmra.mrb[32].mxu1 %vm701_vm5, %v5069_v30 }
0x4e17   :  { %10655 = vmatpush3.bf16.msra.mxu1 %v12145_v38  ;;  %9927 = vmatprep.mubr.msk.f32.mxu1 %vm11315_vm0, %v11314_v0 }
0x4e18   :  { %10656 = vmatprep.subr.bf16.mxu1 %v11316_v9 }
0x4e1b   :  { %10658 = vmatpush3.bf16.msra.mxu1 %v12150_v42 }
0x4e1c   :  { %10665 = vmatprep.subr.bf16.mxu1 %v11316_v9 }
0x4e1d   :  { %v5664_v63 = vld [vmem:[#allocation2 + $0x28] sm:$0xff] }
0x4e1e   :  { %9928 = vmatmul.mubr.msk.f32.vlgmr.msra.gmra.mrb[34].mxu1 %vm701_vm5, %v5289_v31 }
0x4e1f   :  { %10667 = vmatpush3.bf16.msra.mxu1 %v12145_v38  ;;  %9949 = vmatprep.mubr.msk.f32.mxu1 %vm11315_vm0, %v11314_v0 }
0x4e20   :  { %10668 = vmatprep.subr.bf16.mxu1 %v11316_v9 }
0x4e23   :  { %10670 = vmatpush3.bf16.msra.mxu1 %v12150_v42 }
0x4e24   :  { %10677 = vmatprep.subr.bf16.mxu1 %v11316_v9 }
0x4e26   :  { %9950 = vmatmul.mubr.msk.f32.vlgmr.msra.gmra.mrb[36].mxu1 %vm701_vm5, %v5439_v32 }
0x4e27   :  { %10679 = vmatpush3.bf16.msra.mxu1 %v12145_v38  ;;  %9971 = vmatprep.mubr.msk.f32.mxu1 %vm11315_vm0, %v11314_v0 }
0x4e28   :  { %10680 = vmatprep.subr.bf16.mxu1 %v11316_v9 }
0x4e2b   :  { %10682 = vmatpush3.bf16.msra.mxu1 %v12150_v42 }
0x4e2c   :  { %10689 = vmatprep.subr.bf16.mxu1 %v11316_v9 }
0x4e2e   :  { %9972 = vmatmul.mubr.msk.f32.vlgmr.msra.gmra.mrb[38].mxu1 %vm701_vm5, %v5589_v33 }
0x4e2f   :  { %10691 = vmatpush3.bf16.msra.mxu1 %v12145_v38  ;;  %9993 = vmatprep.mubr.msk.f32.mxu1 %vm11315_vm0, %v11314_v0 }
0x4e30   :  { %10692 = vmatprep.subr.bf16.mxu1 %v11316_v9 }
0x4e33   :  { %10694 = vmatpush3.bf16.msra.mxu1 %v12150_v42 }
0x4e34   :  { %10701 = vmatprep.subr.bf16.mxu1 %v11316_v9 }
0x4ee9   :  { %v5141_v34 = vpop.f32.mrb[32].mxu1 }
0x4eea   :  { %v10916_v35 = vadd.f32 %v12034_v24, %v5141_v34  ;;  %v9907_v36 = vpop.f32.mrb[33].mxu1 }
0x4eec   :  { %v5146_v37 = vmul.f32 0.5, %v10916_v35 }
0x4eee   :  { %v5147_v39 = vsel %vm11466_vm4, %v10916_v35, %v5146_v37 }
0x4eef   :  { %11143 = vtanh.f32 %v5147_v39 }
0x4ef9   :  { %v11144_v40 = vpop.eup %11143 }
0x4efa   :  { %v5149_v41 = vadd.f32 1.0, %v11144_v40 }
0x4efc   :  { %v5150_v44 = vmul.f32 0.5, %v5149_v41 }
0x4efe   :  { %v5151_v45 = vsel %vm11466_vm4, %v11144_v40, %v5150_v44 }
0x4eff   :  { %5154 = vrot.lane.b32.xlu0 %v5151_v45, %s11317_s18  ;;  %v5152_v49 = vmul.f32 %v5151_v45, %v5060_v23 }
0x4f71   :  { %v5155_v46 = vpop.permute.xlu0 %5154 }
0x4f72   :  { %v5157_v47 = vmul.f32 %v5155_v46, %v5151_v45 }
0x4f74   :  { %5159 = vrot.lane.b32.xlu1 %v5157_v47, %s11318_s19 }
0x4fe6   :  { %v5160_v43 = vpop.permute.xlu1 %5159 }
0x4fe7   :  { %v12185_v50 = vadd.f32 %v5160_v43, %v5152_v49 }
0x4fe9   :  { %11145 = vtanh.f32 %v12185_v50 }
0x4ff3   :  { %v11146_v51 = vpop.eup %11145 }
0x4ff4   :  { %5165 = vrot.lane.b32.xlu0 %v11146_v51, %s11317_s18 }
0x5066   :  { %v5166_v48 = vpop.permute.xlu0 %5165 }
0x5067   :  { %v5168_v53 = vmul.f32 %v5166_v48, %v5151_v45 }
0x5069   :  { %5170 = vrot.lane.b32.xlu1 %v5168_v53, %s11318_s19 }
0x50db   :  { %v5171_v54 = vpop.permute.xlu1 %5170 }
0x50dc   :  { %5173 = vst.msk [vmem:[#allocation2 + $0x30] sm:$0xff] %vm701_vm5, %v5171_v54  ;;  %9917 = vmatmul.mubr.msk.f32.vlgmr.msra.gmra.mrb[32].mxu0 %vm701_vm5, %v5171_v54 }
0x50dd   :  { %10661 = vmatpush3.bf16.msra.mxu0 %v12145_v38  ;;  %9938 = vmatprep.mubr.msk.f32.mxu0 %vm11315_vm0, %v11314_v0 }
0x50de   :  { %10662 = vmatprep.subr.bf16.mxu0 %v11316_v9 }
0x50e1   :  { %10664 = vmatpush3.bf16.msra.mxu0 %v12150_v42 }
0x50e2   :  { %10671 = vmatprep.subr.bf16.mxu0 %v11316_v9 }
0x50e3   :  { %v5739_v8 = vld [vmem:[#allocation2 + $0x30] sm:$0xff] }
0x50e4   :  { %9939 = vmatmul.mubr.msk.f32.vlgmr.msra.gmra.mrb[34].mxu0 %vm701_vm5, %v5364_v61  ;;  %9994 = vmatmul.mubr.msk.f32.vlgmr.msra.gmra.mrb[40].mxu1 %vm701_vm5, %v5739_v8 }
0x50e5   :  { %10673 = vmatpush3.bf16.msra.mxu0 %v12145_v38  ;;  %10703 = vmatpush3.bf16.msra.mxu1 %v12197_v58 }
0x50e6   :  { %10674 = vmatprep.subr.bf16.mxu0 %v11316_v9  ;;  %10704 = vmatprep.subr.bf16.mxu1 %v11316_v9 }
0x50e7   :  { %9960 = vmatprep.mubr.msk.f32.mxu0 %vm11315_vm0, %v11314_v0  ;;  %10015 = vmatprep.mubr.msk.f32.mxu1 %vm11315_vm0, %v11314_v0 }
0x50e9   :  { %10676 = vmatpush3.bf16.msra.mxu0 %v12150_v42  ;;  %10706 = vmatpush3.bf16.msra.mxu1 %v12204_v62 }
0x50ea   :  { %10683 = vmatprep.subr.bf16.mxu0 %v11316_v9  ;;  %10713 = vmatprep.subr.bf16.mxu1 %v11316_v9 }
0x50ec   :  { %9961 = vmatmul.mubr.msk.f32.vlgmr.msra.gmra.mrb[36].mxu0 %vm701_vm5, %v5514_v16  ;;  %10016 = vmatmul.mubr.f32.vlgmr.msra.gmra.mrb[34].mxu1 %v11314_v0 }
0x50ed   :  { %10685 = vmatpush3.bf16.msra.mxu0 %v12145_v38  ;;  %9982 = vmatprep.mubr.msk.f32.mxu0 %vm11315_vm0, %v11314_v0 }
0x50ee   :  { %10686 = vmatprep.subr.bf16.mxu0 %v11316_v9  ;;  %10715 = vmatpush3.bf16.msra.mxu1 %v12197_v58 }
0x50ef   :  { %10716 = vmatprep.subr.bf16.mxu1 %v11316_v9  ;;  %10037 = vmatprep.mubr.msk.f32.mxu1 %vm11315_vm0, %v11314_v0 }
0x50f1   :  { %10688 = vmatpush3.bf16.msra.mxu0 %v12150_v42 }
0x50f2   :  { %10695 = vmatprep.subr.bf16.mxu0 %v11316_v9  ;;  %10718 = vmatpush3.bf16.msra.mxu1 %v12204_v62 }
0x50f3   :  { %10725 = vmatprep.subr.bf16.mxu1 %v11316_v9 }
0x50f4   :  { %9983 = vmatmul.mubr.msk.f32.vlgmr.msra.gmra.mrb[38].mxu0 %vm701_vm5, %v5664_v63 }
0x50f5   :  { %10697 = vmatpush3.bf16.msra.mxu0 %v12145_v38  ;;  %10004 = vmatprep.mubr.msk.f32.mxu0 %vm11315_vm0, %v11314_v0 }
0x50f6   :  { %10698 = vmatprep.subr.bf16.mxu0 %v11316_v9 }
0x50f9   :  { %10700 = vmatpush3.bf16.msra.mxu0 %v12150_v42 }
0x50fa   :  { %10707 = vmatprep.subr.bf16.mxu0 %v11316_v9 }
0x51af   :  { %v5243_v12 = vpop.f32.mrb[32].mxu0 }
0x51b0   :  { %v10917_v1 = vadd.f32 %v12034_v24, %v5243_v12  ;;  %v9918_v2 = vpop.f32.mrb[33].mxu0 }
0x51b2   :  { %v5248_v3 = vmul.f32 0.5, %v10917_v1 }
0x51b4   :  { %v5249_v4 = vsel %vm11466_vm4, %v10917_v1, %v5248_v3 }
0x51b5   :  { %11147 = vtanh.f32 %v5249_v4 }
0x51bf   :  { %v11148_v7 = vpop.eup %11147  ;;  %v5961_v10 = vpop.f32.mrb[34].mxu1 }
0x51c0   :  { %v10918_v11 = vadd.f32 %v12243_v5, %v5961_v10  ;;  %v10017_v13 = vpop.f32.mrb[35].mxu1  ;;  %v5251_v15 = vadd.f32 1.0, %v11148_v7 }
0x51c2   :  { %v5966_v6 = vmul.f32 0.5, %v10918_v11  ;;  %v5252_v17 = vmul.f32 0.5, %v5251_v15 }
0x51c4   :  { %v5967_v24 = vsel %vm11466_vm4, %v10918_v11, %v5966_v6  ;;  %v5253_v18 = vsel %vm11466_vm4, %v11148_v7, %v5252_v17 }
0x51c5   :  { %11149 = vtanh.f32 %v5967_v24  ;;  %5256 = vrot.lane.b32.xlu0 %v5253_v18, %s11317_s18  ;;  %v5254_v28 = vmul.f32 %v5253_v18, %v12185_v50 }
0x51cf   :  { %v11150_v14 = vpop.eup %11149 }
0x51d0   :  { %v5969_v19 = vadd.f32 1.0, %v11150_v14 }
0x51d2   :  { %v5970_v20 = vmul.f32 0.5, %v5969_v19 }
0x51d4   :  { %v5971_v21 = vsel %vm11466_vm4, %v11150_v14, %v5970_v20 }
0x51d5   :  { %5974 = vrot.lane.b32.xlu1 %v5971_v21, %s11317_s18  ;;  %v5972_v52 = vmul.f32 0.0, %v5971_v21 }
0x5237   :  { %v5257_v23 = vpop.permute.xlu0 %5256 }
0x5238   :  { %v5259_v25 = vmul.f32 %v5257_v23, %v5253_v18 }
0x523a   :  { %5261 = vrot.lane.b32.xlu0 %v5259_v25, %s11318_s19 }
0x5247   :  { %v5975_v26 = vpop.permute.xlu1 %5974 }
0x5248   :  { %v5977_v27 = vmul.f32 %v5975_v26, %v5971_v21 }
0x524a   :  { %5979 = vrot.lane.b32.xlu1 %v5977_v27, %s11318_s19 }
0x52ac   :  { %v5262_v29 = vpop.permute.xlu0 %5261 }
0x52ad   :  { %v5264_v38 = vadd.f32 %v5262_v29, %v5254_v28 }
0x52af   :  { %11151 = vtanh.f32 %v5264_v38 }
0x52b9   :  { %v11152_v56 = vpop.eup %11151 }
0x52ba   :  { %5267 = vrot.lane.b32.xlu0 %v11152_v56, %s11317_s18 }
0x52bc   :  { %v5980_v30 = vpop.permute.xlu1 %5979 }
0x52bd   :  { %v5982_v42 = vadd.f32 %v5980_v30, %v5972_v52 }
0x52bf   :  { %11153 = vtanh.f32 %v5982_v42 }
0x52c9   :  { %v11154_v31 = vpop.eup %11153 }
0x52ca   :  { %5985 = vrot.lane.b32.xlu1 %v11154_v31, %s11317_s18 }
0x532c   :  { %v5268_v32 = vpop.permute.xlu0 %5267 }
0x532d   :  { %v5270_v33 = vmul.f32 %v5268_v32, %v5253_v18 }
0x532f   :  { %5272 = vrot.lane.b32.xlu0 %v5270_v33, %s11318_s19 }
0x533c   :  { %v5986_v34 = vpop.permute.xlu1 %5985 }
0x533d   :  { %v5988_v35 = vmul.f32 %v5986_v34, %v5971_v21 }
0x533f   :  { %5990 = vrot.lane.b32.xlu1 %v5988_v35, %s11318_s19 }
0x53a1   :  { %v5273_v36 = vpop.permute.xlu0 %5272 }
0x53a2   :  { %5275 = vst.msk [vmem:[#allocation2 + $0x38] sm:$0xff] %vm701_vm5, %v5273_v36 }
0x53a9   :  { %v5814_v37 = vld [vmem:[#allocation2 + $0x38] sm:$0xff] }
0x53aa   :  { %10005 = vmatmul.mubr.msk.f32.vlgmr.msra.gmra.mrb[40].mxu0 %vm701_vm5, %v5814_v37 }
0x53ab   :  { %10709 = vmatpush3.bf16.msra.mxu0 %v12197_v58  ;;  %10026 = vmatprep.mubr.msk.f32.mxu0 %vm11315_vm0, %v11314_v0 }
0x53ac   :  { %10710 = vmatprep.subr.bf16.mxu0 %v11316_v9 }
0x53af   :  { %10712 = vmatpush3.bf16.msra.mxu0 %v12204_v62 }
0x53b0   :  { %10719 = vmatprep.subr.bf16.mxu0 %v11316_v9 }
0x53b1   :  { %v5991_v39 = vpop.permute.xlu1 %5990 }
0x53b2   :  { %5993 = vst.msk [vmem:[#allocation3] sm:$0xff] %vm701_vm5, %v5991_v39  ;;  %10027 = vmatmul.mubr.msk.f32.vlgmr.msra.gmra.mrb[34].mxu0 %vm701_vm5, %v5991_v39 }
0x53b3   :  { %10721 = vmatpush3.bf16.msra.mxu0 %v12197_v58  ;;  %10048 = vmatprep.mubr.msk.f32.mxu0 %vm11315_vm0, %v11314_v0 }
0x53b4   :  { %10722 = vmatprep.subr.bf16.mxu0 %v11316_v9 }
0x53b7   :  { %10724 = vmatpush3.bf16.msra.mxu0 %v12204_v62 }
0x53b8   :  { %10731 = vmatprep.subr.bf16.mxu0 %v11316_v9 }
0x5485   :  { %v6063_v40 = vpop.f32.mrb[34].mxu0 }
0x5486   :  { %v10919_v41 = vadd.f32 %v12243_v5, %v6063_v40  ;;  %v10028_v44 = vpop.f32.mrb[35].mxu0 }
0x5488   :  { %v6068_v45 = vmul.f32 0.5, %v10919_v41 }
0x548a   :  { %v6069_v46 = vsel %vm11466_vm4, %v10919_v41, %v6068_v45 }
0x548b   :  { %11155 = vtanh.f32 %v6069_v46 }
0x5495   :  { %v11156_v47 = vpop.eup %11155 }
0x5496   :  { %v6071_v49 = vadd.f32 1.0, %v11156_v47 }
0x5498   :  { %v6072_v43 = vmul.f32 0.5, %v6071_v49 }
0x549a   :  { %v6073_v50 = vsel %vm11466_vm4, %v11156_v47, %v6072_v43 }
0x549b   :  { %6076 = vrot.lane.b32.xlu0 %v6073_v50, %s11317_s18  ;;  %v6074_v53 = vmul.f32 %v6073_v50, %v5982_v42 }
0x550d   :  { %v6077_v51 = vpop.permute.xlu0 %6076 }
0x550e   :  { %v6079_v48 = vmul.f32 %v6077_v51, %v6073_v50 }
0x5510   :  { %6081 = vrot.lane.b32.xlu1 %v6079_v48, %s11318_s19 }
0x5582   :  { %v6082_v54 = vpop.permute.xlu1 %6081 }
0x5583   :  { %v6084_v55 = vadd.f32 %v6082_v54, %v6074_v53 }
0x5585   :  { %11157 = vtanh.f32 %v6084_v55 }
0x558f   :  { %v11158_v57 = vpop.eup %11157 }
0x5590   :  { %6087 = vrot.lane.b32.xlu0 %v11158_v57, %s11317_s18 }
0x5602   :  { %v6088_v59 = vpop.permute.xlu0 %6087 }
0x5603   :  { %v6090_v60 = vmul.f32 %v6088_v59, %v6073_v50 }
0x5605   :  { %6092 = vrot.lane.b32.xlu1 %v6090_v60, %s11318_s19 }
0x5677   :  { %v6093_v61 = vpop.permute.xlu1 %6092 }
0x5678   :  { %6095 = vst.msk [vmem:[#allocation3 + $0x8] sm:$0xff] %vm701_vm5, %v6093_v61  ;;  %10038 = vmatmul.mubr.msk.f32.vlgmr.msra.gmra.mrb[36].mxu1 %vm701_vm5, %v6093_v61 }
0x5679   :  { %10727 = vmatpush3.bf16.msra.mxu1 %v12197_v58  ;;  %10059 = vmatprep.mubr.msk.f32.mxu1 %vm11315_vm0, %v11314_v0 }
0x567a   :  { %10728 = vmatprep.subr.bf16.mxu1 %v11316_v9 }
0x567d   :  { %10730 = vmatpush3.bf16.msra.mxu1 %v12204_v62 }
0x567e   :  { %10737 = vmatprep.subr.bf16.mxu1 %v11316_v9 }
0x574b   :  { %v6165_v8 = vpop.f32.mrb[36].mxu1 }
0x574c   :  { %v10920_v16 = vadd.f32 %v12243_v5, %v6165_v8  ;;  %v10039_v63 = vpop.f32.mrb[37].mxu1 }
0x574e   :  { %v6170_v12 = vmul.f32 0.5, %v10920_v16 }
0x5750   :  { %v6171_v1 = vsel %vm11466_vm4, %v10920_v16, %v6170_v12 }
0x5751   :  { %11159 = vtanh.f32 %v6171_v1 }
0x575b   :  { %v11160_v2 = vpop.eup %11159 }
0x575c   :  { %v6173_v3 = vadd.f32 1.0, %v11160_v2 }
0x575e   :  { %v6174_v4 = vmul.f32 0.5, %v6173_v3 }
0x5760   :  { %v6175_v7 = vsel %vm11466_vm4, %v11160_v2, %v6174_v4 }
0x5761   :  { %6178 = vrot.lane.b32.xlu0 %v6175_v7, %s11317_s18  ;;  %v6176_v13 = vmul.f32 %v6175_v7, %v6084_v55 }
0x57d3   :  { %v6179_v10 = vpop.permute.xlu0 %6178 }
0x57d4   :  { %v6181_v11 = vmul.f32 %v6179_v10, %v6175_v7 }
0x57d6   :  { %6183 = vrot.lane.b32.xlu1 %v6181_v11, %s11318_s19 }
0x5848   :  { %v6184_v15 = vpop.permute.xlu1 %6183 }
0x5849   :  { %v6186_v6 = vadd.f32 %v6184_v15, %v6176_v13  ;;  %v6709_v13 = vld [vmem:[#allocation8 + $0x80] sm:$0xff]  ;;  %v6710_v15 = vld [vmem:[#allocation8 + $0x88] sm:$0xff] }
0x584b   :  { %11161 = vtanh.f32 %v6186_v6 }
0x5855   :  { %v11162_v17 = vpop.eup %11161 }
0x5856   :  { %6189 = vrot.lane.b32.xlu0 %v11162_v17, %s11317_s18  ;;  %v6711_v17 = vld [vmem:[#allocation8 + $0x90] sm:$0xff] }
0x58c8   :  { %v6190_v24 = vpop.permute.xlu0 %6189 }
0x58c9   :  { %v6192_v18 = vmul.f32 %v6190_v24, %v6175_v7  ;;  %v6712_v24 = vld [vmem:[#allocation8 + $0x98] sm:$0xff] }
0x58cb   :  { %6194 = vrot.lane.b32.xlu1 %v6192_v18, %s11318_s19 }
0x593d   :  { %v6195_v14 = vpop.permute.xlu1 %6194 }
0x593e   :  { %6197 = vst.msk [vmem:[#allocation3 + $0x10] sm:$0xff] %vm701_vm5, %v6195_v14  ;;  %10049 = vmatmul.mubr.msk.f32.vlgmr.msra.gmra.mrb[36].mxu0 %vm701_vm5, %v6195_v14  ;;  %v12359_v14 = vpack.c.bf16 %v6712_v24, %v6711_v17 }
0x593f   :  { %10733 = vmatpush3.bf16.msra.mxu0 %v12197_v58  ;;  %10070 = vmatprep.mubr.msk.f32.mxu0 %vm11315_vm0, %v11314_v0 }
0x5940   :  { %10734 = vmatprep.subr.bf16.mxu0 %v11316_v9 }
0x5943   :  { %10736 = vmatpush3.bf16.msra.mxu0 %v12204_v62 }
0x5944   :  { %10743 = vmatprep.subr.bf16.mxu0 %v11316_v9 }
0x5a11   :  { %v6267_v19 = vpop.f32.mrb[36].mxu0 }
0x5a12   :  { %v10921_v20 = vadd.f32 %v12243_v5, %v6267_v19  ;;  %v10050_v21 = vpop.f32.mrb[37].mxu0  ;;  %v6721_v19 = vld [vmem:[#allocation3] sm:$0xff] }
0x5a14   :  { %v6272_v23 = vmul.f32 0.5, %v10921_v20 }
0x5a16   :  { %v6273_v25 = vsel %vm11466_vm4, %v10921_v20, %v6272_v23  ;;  %v6871_v20 = vld [vmem:[#allocation3 + $0x10] sm:$0xff] }
0x5a17   :  { %11163 = vtanh.f32 %v6273_v25 }
0x5a21   :  { %v11164_v26 = vpop.eup %11163 }
0x5a22   :  { %v6275_v27 = vadd.f32 1.0, %v11164_v26 }
0x5a24   :  { %v6276_v28 = vmul.f32 0.5, %v6275_v27 }
0x5a26   :  { %v6277_v29 = vsel %vm11466_vm4, %v11164_v26, %v6276_v28 }
0x5a27   :  { %6280 = vrot.lane.b32.xlu0 %v6277_v29, %s11317_s18  ;;  %v6278_v52 = vmul.f32 %v6277_v29, %v6186_v6  ;;  %v12354_v6 = vpack.c.bf16 %v6710_v15, %v6709_v13 }
0x5a99   :  { %v6281_v38 = vpop.permute.xlu0 %6280 }
0x5a9a   :  { %v6283_v56 = vmul.f32 %v6281_v38, %v6277_v29 }
0x5a9c   :  { %6285 = vrot.lane.b32.xlu1 %v6283_v56, %s11318_s19 }
0x5b0e   :  { %v6286_v30 = vpop.permute.xlu1 %6285 }
0x5b0f   :  { %v6288_v42 = vadd.f32 %v6286_v30, %v6278_v52 }
0x5b11   :  { %11165 = vtanh.f32 %v6288_v42 }
0x5b1b   :  { %v11166_v31 = vpop.eup %11165 }
0x5b1c   :  { %6291 = vrot.lane.b32.xlu0 %v11166_v31, %s11317_s18 }
0x5b8e   :  { %v6292_v32 = vpop.permute.xlu0 %6291 }
0x5b8f   :  { %v6294_v33 = vmul.f32 %v6292_v32, %v6277_v29 }
0x5b91   :  { %6296 = vrot.lane.b32.xlu1 %v6294_v33, %s11318_s19 }
0x5c03   :  { %v6297_v34 = vpop.permute.xlu1 %6296 }
0x5c04   :  { %6299 = vst.msk [vmem:[#allocation3 + $0x18] sm:$0xff] %vm701_vm5, %v6297_v34  ;;  %10060 = vmatmul.mubr.msk.f32.vlgmr.msra.gmra.mrb[38].mxu1 %vm701_vm5, %v6297_v34 }
0x5c05   :  { %10739 = vmatpush3.bf16.msra.mxu1 %v12197_v58  ;;  %10081 = vmatprep.mubr.msk.f32.mxu1 %vm11315_vm0, %v11314_v0 }
0x5c06   :  { %10740 = vmatprep.subr.bf16.mxu1 %v11316_v9 }
0x5c09   :  { %10742 = vmatpush3.bf16.msra.mxu1 %v12204_v62 }
0x5c0a   :  { %10749 = vmatprep.subr.bf16.mxu1 %v11316_v9 }
0x5cd7   :  { %v6369_v35 = vpop.f32.mrb[38].mxu1 }
0x5cd8   :  { %v10922_v36 = vadd.f32 %v12243_v5, %v6369_v35  ;;  %v10061_v37 = vpop.f32.mrb[39].mxu1 }
0x5cda   :  { %v6374_v39 = vmul.f32 0.5, %v10922_v36 }
0x5cdc   :  { %v6375_v40 = vsel %vm11466_vm4, %v10922_v36, %v6374_v39  ;;  %v7322_v39 = vld [vmem:[#allocation10 + $0xa0] sm:$0xff] }
0x5cdd   :  { %11167 = vtanh.f32 %v6375_v40  ;;  %v7323_v40 = vld [vmem:[#allocation10 + $0xa8] sm:$0xff] }
0x5ce7   :  { %v11168_v41 = vpop.eup %11167 }
0x5ce8   :  { %v6377_v44 = vadd.f32 1.0, %v11168_v41 }
0x5cea   :  { %v6378_v45 = vmul.f32 0.5, %v6377_v44  ;;  %v7324_v44 = vld [vmem:[#allocation10 + $0xb0] sm:$0xff] }
0x5cec   :  { %v6379_v46 = vsel %vm11466_vm4, %v11168_v41, %v6378_v45  ;;  %v12406_v41 = vpack.c.bf16 %v7323_v40, %v7322_v39  ;;  %v7325_v45 = vld [vmem:[#allocation10 + $0xb8] sm:$0xff] }
0x5ced   :  { %6382 = vrot.lane.b32.xlu0 %v6379_v46, %s11317_s18  ;;  %v6380_v43 = vmul.f32 %v6379_v46, %v6288_v42 }
0x5d5f   :  { %v6383_v47 = vpop.permute.xlu0 %6382 }
0x5d60   :  { %v6385_v49 = vmul.f32 %v6383_v47, %v6379_v46 }
0x5d62   :  { %6387 = vrot.lane.b32.xlu1 %v6385_v49, %s11318_s19  ;;  %v12413_v49 = vpack.c.bf16 %v7325_v45, %v7324_v44 }
0x5dd4   :  { %v6388_v50 = vpop.permute.xlu1 %6387 }
0x5dd5   :  { %v6390_v51 = vadd.f32 %v6388_v50, %v6380_v43  ;;  %v6946_v43 = vld [vmem:[#allocation3 + $0x18] sm:$0xff] }
0x5dd7   :  { %11169 = vtanh.f32 %v6390_v51 }
0x5de1   :  { %v11170_v48 = vpop.eup %11169 }
0x5de2   :  { %6393 = vrot.lane.b32.xlu0 %v11170_v48, %s11317_s18 }
0x5e54   :  { %v6394_v53 = vpop.permute.xlu0 %6393 }
0x5e55   :  { %v6396_v54 = vmul.f32 %v6394_v53, %v6379_v46  ;;  %v6796_v46 = vld [vmem:[#allocation3 + $0x8] sm:$0xff] }
0x5e57   :  { %6398 = vrot.lane.b32.xlu1 %v6396_v54, %s11318_s19 }
0x5ec9   :  { %v6399_v55 = vpop.permute.xlu1 %6398 }
0x5eca   :  { %6401 = vst.msk [vmem:[#allocation3 + $0x20] sm:$0xff] %vm701_vm5, %v6399_v55  ;;  %10071 = vmatmul.mubr.msk.f32.vlgmr.msra.gmra.mrb[38].mxu0 %vm701_vm5, %v6399_v55 }
0x5ecb   :  { %10745 = vmatpush3.bf16.msra.mxu0 %v12197_v58  ;;  %10092 = vmatprep.mubr.msk.f32.mxu0 %vm11315_vm0, %v11314_v0 }
0x5ecc   :  { %10746 = vmatprep.subr.bf16.mxu0 %v11316_v9 }
0x5ecf   :  { %10748 = vmatpush3.bf16.msra.mxu0 %v12204_v62 }
0x5ed0   :  { %10755 = vmatprep.subr.bf16.mxu0 %v11316_v9 }
0x5ed1   :  { %v7021_v21 = vld [vmem:[#allocation3 + $0x20] sm:$0xff] }
0x5f9d   :  { %v6471_v57 = vpop.f32.mrb[38].mxu0 }
0x5f9e   :  { %v10923_v59 = vadd.f32 %v12243_v5, %v6471_v57  ;;  %v10072_v60 = vpop.f32.mrb[39].mxu0  ;;  %v12452_v57 = vld [vmem:[%s12704_s4 + $0x5] ss:$0 sm:$0xff] }
0x5fa0   :  { %v6476_v61 = vmul.f32 0.5, %v10923_v59 }
0x5fa2   :  { %v6477_v8 = vsel %vm11466_vm4, %v10923_v59, %v6476_v61 }
0x5fa3   :  { %11171 = vtanh.f32 %v6477_v8 }
0x5fad   :  { %v11172_v16 = vpop.eup %11171 }
0x5fae   :  { %v6479_v58 = vadd.f32 1.0, %v11172_v16 }
0x5fb0   :  { %v6480_v63 = vmul.f32 0.5, %v6479_v58 }
0x5fb2   :  { %v6481_v12 = vsel %vm11466_vm4, %v11172_v16, %v6480_v63 }
0x5fb3   :  { %6484 = vrot.lane.b32.xlu0 %v6481_v12, %s11317_s18  ;;  %v6482_v2 = vmul.f32 %v6481_v12, %v6390_v51 }
0x6025   :  { %v6485_v62 = vpop.permute.xlu0 %6484 }
0x6026   :  { %v6487_v1 = vmul.f32 %v6485_v62, %v6481_v12 }
0x6028   :  { %6489 = vrot.lane.b32.xlu1 %v6487_v1, %s11318_s19 }
0x609a   :  { %v6490_v3 = vpop.permute.xlu1 %6489 }
0x609b   :  { %v6492_v4 = vadd.f32 %v6490_v3, %v6482_v2 }
0x609d   :  { %11173 = vtanh.f32 %v6492_v4 }
0x60a7   :  { %v11174_v7 = vpop.eup %11173 }
0x60a8   :  { %6495 = vrot.lane.b32.xlu0 %v11174_v7, %s11317_s18 }
0x611a   :  { %v6496_v10 = vpop.permute.xlu0 %6495 }
0x611b   :  { %v6498_v11 = vmul.f32 %v6496_v10, %v6481_v12 }
0x611d   :  { %6500 = vrot.lane.b32.xlu1 %v6498_v11, %s11318_s19 }
0x618f   :  { %v6501_v18 = vpop.permute.xlu1 %6500 }
0x6190   :  { %6503 = vst.msk [vmem:[#allocation3 + $0x28] sm:$0xff] %vm701_vm5, %v6501_v18  ;;  %10082 = vmatmul.mubr.msk.f32.vlgmr.msra.gmra.mrb[40].mxu1 %vm701_vm5, %v6501_v18 }
0x6191   :  { %10751 = vmatpush3.bf16.msra.mxu1 %v12354_v6  ;;  %10103 = vmatprep.mubr.msk.f32.mxu1 %vm11315_vm0, %v11314_v0 }
0x6192   :  { %10752 = vmatprep.subr.bf16.mxu1 %v11316_v9 }
0x6195   :  { %10754 = vmatpush3.bf16.msra.mxu1 %v12359_v14 }
0x6196   :  { %10761 = vmatprep.subr.bf16.mxu1 %v11316_v9 }
0x6197   :  { %v7096_v50 = vld [vmem:[#allocation3 + $0x28] sm:$0xff] }
0x6198   :  { %10104 = vmatmul.mubr.msk.f32.vlgmr.msra.gmra.mrb[42].mxu1 %vm701_vm5, %v6721_v19 }
0x6199   :  { %10763 = vmatpush3.bf16.msra.mxu1 %v12354_v6  ;;  %10125 = vmatprep.mubr.msk.f32.mxu1 %vm11315_vm0, %v11314_v0 }
0x619a   :  { %10764 = vmatprep.subr.bf16.mxu1 %v11316_v9 }
0x619d   :  { %10766 = vmatpush3.bf16.msra.mxu1 %v12359_v14 }
0x619e   :  { %10773 = vmatprep.subr.bf16.mxu1 %v11316_v9 }
0x61a0   :  { %10126 = vmatmul.mubr.msk.f32.vlgmr.msra.gmra.mrb[44].mxu1 %vm701_vm5, %v6871_v20 }
0x61a1   :  { %10775 = vmatpush3.bf16.msra.mxu1 %v12354_v6  ;;  %10147 = vmatprep.mubr.msk.f32.mxu1 %vm11315_vm0, %v11314_v0 }
0x61a2   :  { %10776 = vmatprep.subr.bf16.mxu1 %v11316_v9 }
0x61a5   :  { %10778 = vmatpush3.bf16.msra.mxu1 %v12359_v14 }
0x61a6   :  { %10785 = vmatprep.subr.bf16.mxu1 %v11316_v9 }
0x61a8   :  { %10148 = vmatmul.mubr.msk.f32.vlgmr.msra.gmra.mrb[46].mxu1 %vm701_vm5, %v7021_v21 }
0x61a9   :  { %10787 = vmatpush3.bf16.msra.mxu1 %v12354_v6  ;;  %10169 = vmatprep.mubr.msk.f32.mxu1 %vm11315_vm0, %v11314_v0 }
0x61aa   :  { %10788 = vmatprep.subr.bf16.mxu1 %v11316_v9 }
0x61ad   :  { %10790 = vmatpush3.bf16.msra.mxu1 %v12359_v14 }
0x61ae   :  { %10797 = vmatprep.subr.bf16.mxu1 %v11316_v9 }
0x6263   :  { %v6573_v23 = vpop.f32.mrb[40].mxu1 }
0x6264   :  { %v10924_v25 = vadd.f32 %v12243_v5, %v6573_v23  ;;  %v10083_v26 = vpop.f32.mrb[41].mxu1 }
0x6266   :  { %v6578_v27 = vmul.f32 0.5, %v10924_v25 }
0x6268   :  { %v6579_v28 = vsel %vm11466_vm4, %v10924_v25, %v6578_v27 }
0x6269   :  { %11175 = vtanh.f32 %v6579_v28 }
0x6273   :  { %v11176_v29 = vpop.eup %11175 }
0x6274   :  { %v6581_v38 = vadd.f32 1.0, %v11176_v29 }
0x6276   :  { %v6582_v56 = vmul.f32 0.5, %v6581_v38 }
0x6278   :  { %v6583_v52 = vsel %vm11466_vm4, %v11176_v29, %v6582_v56 }
0x6279   :  { %6586 = vrot.lane.b32.xlu0 %v6583_v52, %s11317_s18  ;;  %v6584_v31 = vmul.f32 %v6583_v52, %v6492_v4 }
0x62eb   :  { %v6587_v30 = vpop.permute.xlu0 %6586 }
0x62ec   :  { %v6589_v42 = vmul.f32 %v6587_v30, %v6583_v52 }
0x62ee   :  { %6591 = vrot.lane.b32.xlu1 %v6589_v42, %s11318_s19 }
0x6360   :  { %v6592_v32 = vpop.permute.xlu1 %6591 }
0x6361   :  { %v12394_v33 = vadd.f32 %v6592_v32, %v6584_v31 }
0x6363   :  { %11177 = vtanh.f32 %v12394_v33 }
0x636d   :  { %v11178_v34 = vpop.eup %11177 }
0x636e   :  { %6597 = vrot.lane.b32.xlu0 %v11178_v34, %s11317_s18 }
0x63e0   :  { %v6598_v35 = vpop.permute.xlu0 %6597 }
0x63e1   :  { %v6600_v36 = vmul.f32 %v6598_v35, %v6583_v52 }
0x63e3   :  { %6602 = vrot.lane.b32.xlu1 %v6600_v36, %s11318_s19 }
0x6455   :  { %v6603_v37 = vpop.permute.xlu1 %6602 }
0x6456   :  { %6605 = vst.msk [vmem:[#allocation3 + $0x30] sm:$0xff] %vm701_vm5, %v6603_v37  ;;  %10093 = vmatmul.mubr.msk.f32.vlgmr.msra.gmra.mrb[40].mxu0 %vm701_vm5, %v6603_v37 }
0x6457   :  { %10757 = vmatpush3.bf16.msra.mxu0 %v12354_v6  ;;  %10114 = vmatprep.mubr.msk.f32.mxu0 %vm11315_vm0, %v11314_v0 }
0x6458   :  { %10758 = vmatprep.subr.bf16.mxu0 %v11316_v9 }
0x645b   :  { %10760 = vmatpush3.bf16.msra.mxu0 %v12359_v14 }
0x645c   :  { %10767 = vmatprep.subr.bf16.mxu0 %v11316_v9 }
0x645d   :  { %v7171_v47 = vld [vmem:[#allocation3 + $0x30] sm:$0xff] }
0x645e   :  { %10115 = vmatmul.mubr.msk.f32.vlgmr.msra.gmra.mrb[42].mxu0 %vm701_vm5, %v6796_v46  ;;  %10170 = vmatmul.mubr.msk.f32.vlgmr.msra.gmra.mrb[48].mxu1 %vm701_vm5, %v7171_v47 }
0x645f   :  { %10769 = vmatpush3.bf16.msra.mxu0 %v12354_v6  ;;  %10799 = vmatpush3.bf16.msra.mxu1 %v12406_v41 }
0x6460   :  { %10770 = vmatprep.subr.bf16.mxu0 %v11316_v9  ;;  %10800 = vmatprep.subr.bf16.mxu1 %v11316_v9 }
0x6461   :  { %10136 = vmatprep.mubr.msk.f32.mxu0 %vm11315_vm0, %v11314_v0  ;;  %10191 = vmatprep.mubr.msk.f32.mxu1 %vm11315_vm0, %v11314_v0 }
0x6463   :  { %10772 = vmatpush3.bf16.msra.mxu0 %v12359_v14  ;;  %10802 = vmatpush3.bf16.msra.mxu1 %v12413_v49 }
0x6464   :  { %10779 = vmatprep.subr.bf16.mxu0 %v11316_v9  ;;  %10809 = vmatprep.subr.bf16.mxu1 %v11316_v9 }
0x6466   :  { %10137 = vmatmul.mubr.msk.f32.vlgmr.msra.gmra.mrb[44].mxu0 %vm701_vm5, %v6946_v43  ;;  %10192 = vmatmul.mubr.f32.vlgmr.msra.gmra.mrb[42].mxu1 %v11314_v0 }
0x6467   :  { %10781 = vmatpush3.bf16.msra.mxu0 %v12354_v6  ;;  %10158 = vmatprep.mubr.msk.f32.mxu0 %vm11315_vm0, %v11314_v0 }
0x6468   :  { %10782 = vmatprep.subr.bf16.mxu0 %v11316_v9  ;;  %10811 = vmatpush3.bf16.msra.mxu1 %v12406_v41 }
0x6469   :  { %10812 = vmatprep.subr.bf16.mxu1 %v11316_v9  ;;  %10213 = vmatprep.mubr.msk.f32.mxu1 %vm11315_vm0, %v11314_v0 }
0x646b   :  { %10784 = vmatpush3.bf16.msra.mxu0 %v12359_v14 }
0x646c   :  { %10791 = vmatprep.subr.bf16.mxu0 %v11316_v9  ;;  %10814 = vmatpush3.bf16.msra.mxu1 %v12413_v49 }
0x646d   :  { %10821 = vmatprep.subr.bf16.mxu1 %v11316_v9 }
0x646e   :  { %10159 = vmatmul.mubr.msk.f32.vlgmr.msra.gmra.mrb[46].mxu0 %vm701_vm5, %v7096_v50 }
0x646f   :  { %10793 = vmatpush3.bf16.msra.mxu0 %v12354_v6  ;;  %10180 = vmatprep.mubr.msk.f32.mxu0 %vm11315_vm0, %v11314_v0 }
0x6470   :  { %10794 = vmatprep.subr.bf16.mxu0 %v11316_v9 }
0x6473   :  { %10796 = vmatpush3.bf16.msra.mxu0 %v12359_v14 }
0x6474   :  { %10803 = vmatprep.subr.bf16.mxu0 %v11316_v9 }
0x6529   :  { %v6675_v51 = vpop.f32.mrb[40].mxu0 }
0x652a   :  { %v10925_v48 = vadd.f32 %v12243_v5, %v6675_v51  ;;  %v10094_v53 = vpop.f32.mrb[41].mxu0 }
0x652c   :  { %v6680_v54 = vmul.f32 0.5, %v10925_v48 }
0x652e   :  { %v6681_v55 = vsel %vm11466_vm4, %v10925_v48, %v6680_v54 }
0x652f   :  { %11179 = vtanh.f32 %v6681_v55 }
0x6539   :  { %v11180_v59 = vpop.eup %11179  ;;  %v7393_v60 = vpop.f32.mrb[42].mxu1 }
0x653a   :  { %v10926_v61 = vadd.f32 %v12452_v57, %v7393_v60  ;;  %v10193_v8 = vpop.f32.mrb[43].mxu1  ;;  %v6683_v16 = vadd.f32 1.0, %v11180_v59 }
0x653c   :  { %v7398_v58 = vmul.f32 0.5, %v10926_v61  ;;  %v6684_v63 = vmul.f32 0.5, %v6683_v16 }
0x653e   :  { %v7399_v5 = vsel %vm11466_vm4, %v10926_v61, %v7398_v58  ;;  %v6685_v12 = vsel %vm11466_vm4, %v11180_v59, %v6684_v63 }
0x653f   :  { %11181 = vtanh.f32 %v7399_v5  ;;  %6688 = vrot.lane.b32.xlu0 %v6685_v12, %s11317_s18  ;;  %v6686_v13 = vmul.f32 %v6685_v12, %v12394_v33 }
0x6549   :  { %v11182_v62 = vpop.eup %11181 }
0x654a   :  { %v7401_v1 = vadd.f32 1.0, %v11182_v62 }
0x654c   :  { %v7402_v2 = vmul.f32 0.5, %v7401_v1 }
0x654e   :  { %v7403_v3 = vsel %vm11466_vm4, %v11182_v62, %v7402_v2 }
0x654f   :  { %7406 = vrot.lane.b32.xlu1 %v7403_v3, %s11317_s18  ;;  %v7404_v24 = vmul.f32 0.0, %v7403_v3 }
0x65b1   :  { %v6689_v4 = vpop.permute.xlu0 %6688 }
0x65b2   :  { %v6691_v7 = vmul.f32 %v6689_v4, %v6685_v12 }
0x65b4   :  { %6693 = vrot.lane.b32.xlu0 %v6691_v7, %s11318_s19 }
0x65c1   :  { %v7407_v10 = vpop.permute.xlu1 %7406 }
0x65c2   :  { %v7409_v11 = vmul.f32 %v7407_v10, %v7403_v3 }
0x65c4   :  { %7411 = vrot.lane.b32.xlu1 %v7409_v11, %s11318_s19 }
0x6626   :  { %v6694_v15 = vpop.permute.xlu0 %6693 }
0x6627   :  { %v6696_v6 = vadd.f32 %v6694_v15, %v6686_v13 }
0x6629   :  { %11183 = vtanh.f32 %v6696_v6 }
0x6633   :  { %v11184_v17 = vpop.eup %11183 }
0x6634   :  { %6699 = vrot.lane.b32.xlu0 %v11184_v17, %s11317_s18 }
0x6636   :  { %v7412_v18 = vpop.permute.xlu1 %7411 }
0x6637   :  { %v7414_v14 = vadd.f32 %v7412_v18, %v7404_v24 }
0x6639   :  { %11185 = vtanh.f32 %v7414_v14 }
0x6643   :  { %v11186_v19 = vpop.eup %11185 }
0x6644   :  { %7417 = vrot.lane.b32.xlu1 %v11186_v19, %s11317_s18 }
0x66a6   :  { %v6700_v20 = vpop.permute.xlu0 %6699 }
0x66a7   :  { %v6702_v21 = vmul.f32 %v6700_v20, %v6685_v12 }
0x66a9   :  { %6704 = vrot.lane.b32.xlu0 %v6702_v21, %s11318_s19 }
0x66b6   :  { %v7418_v23 = vpop.permute.xlu1 %7417 }
0x66b7   :  { %v7420_v25 = vmul.f32 %v7418_v23, %v7403_v3 }
0x66b9   :  { %7422 = vrot.lane.b32.xlu1 %v7420_v25, %s11318_s19 }
0x671b   :  { %v6705_v26 = vpop.permute.xlu0 %6704 }
0x671c   :  { %6707 = vst.msk [vmem:[#allocation3 + $0x38] sm:$0xff] %vm701_vm5, %v6705_v26 }
0x6723   :  { %v7246_v27 = vld [vmem:[#allocation3 + $0x38] sm:$0xff] }
0x6724   :  { %10181 = vmatmul.mubr.msk.f32.vlgmr.msra.gmra.mrb[48].mxu0 %vm701_vm5, %v7246_v27 }
0x6725   :  { %10805 = vmatpush3.bf16.msra.mxu0 %v12406_v41  ;;  %10202 = vmatprep.mubr.msk.f32.mxu0 %vm11315_vm0, %v11314_v0 }
0x6726   :  { %10806 = vmatprep.subr.bf16.mxu0 %v11316_v9 }
0x6729   :  { %10808 = vmatpush3.bf16.msra.mxu0 %v12413_v49 }
0x672a   :  { %10815 = vmatprep.subr.bf16.mxu0 %v11316_v9 }
0x672b   :  { %v7423_v28 = vpop.permute.xlu1 %7422 }
0x672c   :  { %7425 = vst.msk [vmem:[#allocation2] sm:$0xff] %vm701_vm5, %v7423_v28  ;;  %10203 = vmatmul.mubr.msk.f32.vlgmr.msra.gmra.mrb[42].mxu0 %vm701_vm5, %v7423_v28 }
0x672d   :  { %10817 = vmatpush3.bf16.msra.mxu0 %v12406_v41  ;;  %10224 = vmatprep.mubr.msk.f32.mxu0 %vm11315_vm0, %v11314_v0 }
0x672e   :  { %10818 = vmatprep.subr.bf16.mxu0 %v11316_v9 }
0x6731   :  { %10820 = vmatpush3.bf16.msra.mxu0 %v12413_v49 }
0x6732   :  { %10827 = vmatprep.subr.bf16.mxu0 %v11316_v9 }
0x67ff   :  { %v7495_v29 = vpop.f32.mrb[42].mxu0 }
0x6800   :  { %v10927_v38 = vadd.f32 %v12452_v57, %v7495_v29  ;;  %v10204_v56 = vpop.f32.mrb[43].mxu0 }
0x6802   :  { %v7500_v52 = vmul.f32 0.5, %v10927_v38 }
0x6804   :  { %v7501_v30 = vsel %vm11466_vm4, %v10927_v38, %v7500_v52 }
0x6805   :  { %11187 = vtanh.f32 %v7501_v30 }
0x680f   :  { %v11188_v42 = vpop.eup %11187 }
0x6810   :  { %v7503_v31 = vadd.f32 1.0, %v11188_v42 }
0x6812   :  { %v7504_v32 = vmul.f32 0.5, %v7503_v31 }
0x6814   :  { %v7505_v33 = vsel %vm11466_vm4, %v11188_v42, %v7504_v32 }
0x6815   :  { %7508 = vrot.lane.b32.xlu0 %v7505_v33, %s11317_s18  ;;  %v7506_v36 = vmul.f32 %v7505_v33, %v7414_v14 }
0x6887   :  { %v7509_v34 = vpop.permute.xlu0 %7508 }
0x6888   :  { %v7511_v35 = vmul.f32 %v7509_v34, %v7505_v33 }
0x688a   :  { %7513 = vrot.lane.b32.xlu1 %v7511_v35, %s11318_s19 }
0x68fc   :  { %v7514_v37 = vpop.permute.xlu1 %7513 }
0x68fd   :  { %v7516_v39 = vadd.f32 %v7514_v37, %v7506_v36 }
0x68ff   :  { %11189 = vtanh.f32 %v7516_v39 }
0x6909   :  { %v11190_v40 = vpop.eup %11189 }
0x690a   :  { %7519 = vrot.lane.b32.xlu0 %v11190_v40, %s11317_s18 }
0x697c   :  { %v7520_v44 = vpop.permute.xlu0 %7519 }
0x697d   :  { %v7522_v45 = vmul.f32 %v7520_v44, %v7505_v33 }
0x697f   :  { %7524 = vrot.lane.b32.xlu1 %v7522_v45, %s11318_s19 }
0x69f1   :  { %v7525_v46 = vpop.permute.xlu1 %7524 }
0x69f2   :  { %7527 = vst.msk [vmem:[#allocation2 + $0x8] sm:$0xff] %vm701_vm5, %v7525_v46  ;;  %10214 = vmatmul.mubr.msk.f32.vlgmr.msra.gmra.mrb[44].mxu1 %vm701_vm5, %v7525_v46 }
0x69f3   :  { %10823 = vmatpush3.bf16.msra.mxu1 %v12406_v41  ;;  %10235 = vmatprep.mubr.msk.f32.mxu1 %vm11315_vm0, %v11314_v0 }
0x69f4   :  { %10824 = vmatprep.subr.bf16.mxu1 %v11316_v9 }
0x69f7   :  { %10826 = vmatpush3.bf16.msra.mxu1 %v12413_v49 }
0x69f8   :  { %10833 = vmatprep.subr.bf16.mxu1 %v11316_v9 }
0x6ac5   :  { %v7597_v47 = vpop.f32.mrb[44].mxu1 }
0x6ac6   :  { %v10928_v43 = vadd.f32 %v12452_v57, %v7597_v47  ;;  %v10215_v50 = vpop.f32.mrb[45].mxu1 }
0x6ac8   :  { %v7602_v51 = vmul.f32 0.5, %v10928_v43 }
0x6aca   :  { %v7603_v48 = vsel %vm11466_vm4, %v10928_v43, %v7602_v51 }
0x6acb   :  { %11191 = vtanh.f32 %v7603_v48 }
0x6ad5   :  { %v11192_v53 = vpop.eup %11191 }
0x6ad6   :  { %v7605_v54 = vadd.f32 1.0, %v11192_v53 }
0x6ad8   :  { %v7606_v55 = vmul.f32 0.5, %v7605_v54 }
0x6ada   :  { %v7607_v59 = vsel %vm11466_vm4, %v11192_v53, %v7606_v55 }
0x6adb   :  { %7610 = vrot.lane.b32.xlu0 %v7607_v59, %s11317_s18  ;;  %v7608_v8 = vmul.f32 %v7607_v59, %v7516_v39 }
0x6b4d   :  { %v7611_v60 = vpop.permute.xlu0 %7610 }
0x6b4e   :  { %v7613_v61 = vmul.f32 %v7611_v60, %v7607_v59 }
0x6b50   :  { %7615 = vrot.lane.b32.xlu1 %v7613_v61, %s11318_s19 }
0x6bc2   :  { %v7616_v16 = vpop.permute.xlu1 %7615 }
0x6bc3   :  { %v7618_v58 = vadd.f32 %v7616_v16, %v7608_v8  ;;  %v8140_v8 = vld [vmem:[%s12705_s5] sm:$0xff]  ;;  %v8141_v16 = vld [vmem:[%s12705_s5 + $0x8] sm:$0xff] }
0x6bc5   :  { %11193 = vtanh.f32 %v7618_v58 }
0x6bcf   :  { %v11194_v63 = vpop.eup %11193 }
0x6bd0   :  { %7621 = vrot.lane.b32.xlu0 %v11194_v63, %s11317_s18  ;;  %v8142_v63 = vld [vmem:[%s12705_s5 + $0x10] sm:$0xff] }
0x6c42   :  { %v7622_v5 = vpop.permute.xlu0 %7621 }
0x6c43   :  { %v7624_v12 = vmul.f32 %v7622_v5, %v7607_v59  ;;  %v8143_v5 = vld [vmem:[%s12705_s5 + $0x18] sm:$0xff] }
0x6c45   :  { %7626 = vrot.lane.b32.xlu1 %v7624_v12, %s11318_s19 }
0x6cb7   :  { %v7627_v62 = vpop.permute.xlu1 %7626 }
0x6cb8   :  { %7629 = vst.msk [vmem:[#allocation2 + $0x10] sm:$0xff] %vm701_vm5, %v7627_v62  ;;  %10225 = vmatmul.mubr.msk.f32.vlgmr.msra.gmra.mrb[44].mxu0 %vm701_vm5, %v7627_v62  ;;  %v12583_v62 = vpack.c.bf16 %v8143_v5, %v8142_v63 }
0x6cb9   :  { %10829 = vmatpush3.bf16.msra.mxu0 %v12406_v41  ;;  %10246 = vmatprep.mubr.msk.f32.mxu0 %vm11315_vm0, %v11314_v0 }
0x6cba   :  { %10830 = vmatprep.subr.bf16.mxu0 %v11316_v9 }
0x6cbd   :  { %10832 = vmatpush3.bf16.msra.mxu0 %v12413_v49 }
0x6cbe   :  { %10839 = vmatprep.subr.bf16.mxu0 %v11316_v9 }
0x6d8b   :  { %v7699_v1 = vpop.f32.mrb[44].mxu0 }
0x6d8c   :  { %v10929_v2 = vadd.f32 %v12452_v57, %v7699_v1  ;;  %v10226_v3 = vpop.f32.mrb[45].mxu0  ;;  %v8151_v1 = vld [vmem:[#allocation2] sm:$0xff] }
0x6d8e   :  { %v7704_v4 = vmul.f32 0.5, %v10929_v2 }
0x6d90   :  { %v7705_v7 = vsel %vm11466_vm4, %v10929_v2, %v7704_v4  ;;  %v8302_v2 = vld [vmem:[#allocation2 + $0x10] sm:$0xff] }
0x6d91   :  { %11195 = vtanh.f32 %v7705_v7 }
0x6d9b   :  { %v11196_v10 = vpop.eup %11195 }
0x6d9c   :  { %v7707_v11 = vadd.f32 1.0, %v11196_v10 }
0x6d9e   :  { %v7708_v13 = vmul.f32 0.5, %v7707_v11 }
0x6da0   :  { %v7709_v15 = vsel %vm11466_vm4, %v11196_v10, %v7708_v13 }
0x6da1   :  { %7712 = vrot.lane.b32.xlu0 %v7709_v15, %s11317_s18  ;;  %v7710_v24 = vmul.f32 %v7709_v15, %v7618_v58  ;;  %v12572_v58 = vpack.c.bf16 %v8141_v16, %v8140_v8 }
0x6e13   :  { %v7713_v6 = vpop.permute.xlu0 %7712 }
0x6e14   :  { %v7715_v17 = vmul.f32 %v7713_v6, %v7709_v15 }
0x6e16   :  { %7717 = vrot.lane.b32.xlu1 %v7715_v17, %s11318_s19 }
0x6e88   :  { %v7718_v18 = vpop.permute.xlu1 %7717 }
0x6e89   :  { %v7720_v14 = vadd.f32 %v7718_v18, %v7710_v24 }
0x6e8b   :  { %11197 = vtanh.f32 %v7720_v14 }
0x6e95   :  { %v11198_v19 = vpop.eup %11197 }
0x6e96   :  { %7723 = vrot.lane.b32.xlu0 %v11198_v19, %s11317_s18 }
0x6f08   :  { %v7724_v20 = vpop.permute.xlu0 %7723 }
0x6f09   :  { %v7726_v21 = vmul.f32 %v7724_v20, %v7709_v15  ;;  %v12616_v15 = vld [vmem:[%s12706_s6] ss:$0 sm:$0xff]  ;;  %s11319_s6 = smov [#allocation11]  }
0x6f0a   :  { %s8763_s27 = sshll.u32 %s11319_s6, 4  ;;  %s8764_s27 = int_to_ptr.vmem [resolvable:$true] %s8763_s27 }
0x6f0b   :  { %7728 = vrot.lane.b32.xlu1 %v7726_v21, %s11318_s19  ;;  %s11281_s16 = scalar_lea.vmem %s8764_s27, 1024  ;;  %p11286_p11 = scmp.lt.s32.totalorder %s8764_s27, %s8764_s27 }
0x6f0c   :  { %p11282_p10 = scmp.ne.s32.totalorder %s8764_s27, %s11281_s16  ;;  %p11287_p12 = scmp.lt.s32.totalorder %s11281_s16, %s11281_s16 }
0x6f0e   :  { %p11288_p13 = por %p11287_p12, %p11286_p11 }
0x6f10   :  { %p11289_p0 = pnand %p11288_p13, %p11282_p10 }
0x6f7d   :  { %v7729_v23 = vpop.permute.xlu1 %7728 }
0x6f7e   :  { %7731 = vst.msk [vmem:[#allocation2 + $0x18] sm:$0xff] %vm701_vm5, %v7729_v23  ;;  %10236 = vmatmul.mubr.msk.f32.vlgmr.msra.gmra.mrb[46].mxu1 %vm701_vm5, %v7729_v23 }
0x6f7f   :  { %10835 = vmatpush3.bf16.msra.mxu1 %v12406_v41  ;;  %10257 = vmatprep.mubr.msk.f32.mxu1 %vm11315_vm0, %v11314_v0 }
0x6f80   :  { %10836 = vmatprep.subr.bf16.mxu1 %v11316_v9 }
0x6f83   :  { %10838 = vmatpush3.bf16.msra.mxu1 %v12413_v49 }
0x6f84   :  { %10845 = vmatprep.subr.bf16.mxu1 %v11316_v9 }
0x7051   :  { %v7801_v25 = vpop.f32.mrb[46].mxu1 }
0x7052   :  { %v10930_v26 = vadd.f32 %v12452_v57, %v7801_v25  ;;  %v10237_v27 = vpop.f32.mrb[47].mxu1 }
0x7054   :  { %v7806_v28 = vmul.f32 0.5, %v10930_v26 }
0x7056   :  { %v7807_v29 = vsel %vm11466_vm4, %v10930_v26, %v7806_v28 }
0x7057   :  { %11199 = vtanh.f32 %v7807_v29 }
0x7061   :  { %v11200_v38 = vpop.eup %11199 }
0x7062   :  { %v7809_v56 = vadd.f32 1.0, %v11200_v38 }
0x7064   :  { %v7810_v52 = vmul.f32 0.5, %v7809_v56 }
0x7066   :  { %v7811_v30 = vsel %vm11466_vm4, %v11200_v38, %v7810_v52 }
0x7067   :  { %7814 = vrot.lane.b32.xlu0 %v7811_v30, %s11317_s18  ;;  %v7812_v32 = vmul.f32 %v7811_v30, %v7720_v14 }
0x70d9   :  { %v7815_v42 = vpop.permute.xlu0 %7814 }
0x70da   :  { %v7817_v31 = vmul.f32 %v7815_v42, %v7811_v30 }
0x70dc   :  { %7819 = vrot.lane.b32.xlu1 %v7817_v31, %s11318_s19 }
0x714e   :  { %v7820_v33 = vpop.permute.xlu1 %7819 }
0x714f   :  { %v7822_v34 = vadd.f32 %v7820_v33, %v7812_v32 }
0x7151   :  { %11201 = vtanh.f32 %v7822_v34 }
0x715b   :  { %v11202_v35 = vpop.eup %11201 }
0x715c   :  { %7825 = vrot.lane.b32.xlu0 %v11202_v35, %s11317_s18 }
0x71ce   :  { %v7826_v36 = vpop.permute.xlu0 %7825 }
0x71cf   :  { %v7828_v37 = vmul.f32 %v7826_v36, %v7811_v30  ;;  %v8378_v36 = vld [vmem:[#allocation2 + $0x18] sm:$0xff] }
0x71d1   :  { %7830 = vrot.lane.b32.xlu1 %v7828_v37, %s11318_s19 }
0x7243   :  { %v7831_v39 = vpop.permute.xlu1 %7830 }
0x7244   :  { %7833 = vst.msk [vmem:[#allocation2 + $0x20] sm:$0xff] %vm701_vm5, %v7831_v39  ;;  %10247 = vmatmul.mubr.msk.f32.vlgmr.msra.gmra.mrb[46].mxu0 %vm701_vm5, %v7831_v39 }
0x7245   :  { %10841 = vmatpush3.bf16.msra.mxu0 %v12406_v41  ;;  %10268 = vmatprep.mubr.msk.f32.mxu0 %vm11315_vm0, %v11314_v0 }
0x7246   :  { %10842 = vmatprep.subr.bf16.mxu0 %v11316_v9 }
0x7249   :  { %10844 = vmatpush3.bf16.msra.mxu0 %v12413_v49 }
0x724a   :  { %10851 = vmatprep.subr.bf16.mxu0 %v11316_v9 }
0x724b   :  { %v8454_v3 = vld [vmem:[#allocation2 + $0x20] sm:$0xff] }
0x7317   :  { %v7903_v40 = vpop.f32.mrb[46].mxu0 }
0x7318   :  { %v10931_v44 = vadd.f32 %v12452_v57, %v7903_v40  ;;  %v10248_v45 = vpop.f32.mrb[47].mxu0 }
0x731a   :  { %v7908_v46 = vmul.f32 0.5, %v10931_v44 }
0x731c   :  { %v7909_v47 = vsel %vm11466_vm4, %v10931_v44, %v7908_v46 }
0x731d   :  { %11203 = vtanh.f32 %v7909_v47 }
0x7327   :  { %v11204_v43 = vpop.eup %11203 }
0x7328   :  { %v7911_v41 = vadd.f32 1.0, %v11204_v43 }
0x732a   :  { %v7912_v50 = vmul.f32 0.5, %v7911_v41 }
0x732c   :  { %v7913_v51 = vsel %vm11466_vm4, %v11204_v43, %v7912_v50 }
0x732d   :  { %7916 = vrot.lane.b32.xlu0 %v7913_v51, %s11317_s18  ;;  %v7914_v53 = vmul.f32 %v7913_v51, %v7822_v34  ;;  %v8226_v34 = vld [vmem:[#allocation2 + $0x8] sm:$0xff] }
0x739f   :  { %v7917_v49 = vpop.permute.xlu0 %7916 }
0x73a0   :  { %v7919_v48 = vmul.f32 %v7917_v49, %v7913_v51 }
0x73a2   :  { %7921 = vrot.lane.b32.xlu1 %v7919_v48, %s11318_s19 }
0x7414   :  { %v7922_v54 = vpop.permute.xlu1 %7921 }
0x7415   :  { %v12561_v55 = vadd.f32 %v7922_v54, %v7914_v53 }
0x7417   :  { %11205 = vtanh.f32 %v12561_v55 }
0x7421   :  { %v11206_v59 = vpop.eup %11205 }
0x7422   :  { %7927 = vrot.lane.b32.xlu0 %v11206_v59, %s11317_s18 }
0x7494   :  { %v7928_v60 = vpop.permute.xlu0 %7927 }
0x7495   :  { %v7930_v61 = vmul.f32 %v7928_v60, %v7913_v51 }
0x7497   :  { %7932 = vrot.lane.b32.xlu1 %v7930_v61, %s11318_s19 }
0x7509   :  { %v7933_v12 = vpop.permute.xlu1 %7932 }
0x750a   :  { %7935 = vst.msk [vmem:[#allocation2 + $0x28] sm:$0xff] %vm701_vm5, %v7933_v12  ;;  %10258 = vmatmul.mubr.msk.f32.vlgmr.msra.gmra.mrb[48].mxu1 %vm701_vm5, %v7933_v12 }
0x750b   :  { %10847 = vmatpush3.bf16.msra.mxu1 %v12572_v58  ;;  %10279 = vmatprep.mubr.msk.f32.mxu1 %vm11315_vm0, %v11314_v0 }
0x750c   :  { %10848 = vmatprep.subr.bf16.mxu1 %v11316_v9 }
0x750f   :  { %10850 = vmatpush3.bf16.msra.mxu1 %v12583_v62 }
0x7510   :  { %10857 = vmatprep.subr.bf16.mxu1 %v11316_v9 }
0x7511   :  { %v8530_v37 = vld [vmem:[#allocation2 + $0x28] sm:$0xff] }
0x7512   :  { %10280 = vmatmul.mubr.msk.f32.vlgmr.msra.gmra.mrb[50].mxu1 %vm701_vm5, %v8151_v1 }
0x7513   :  { %10859 = vmatpush3.bf16.msra.mxu1 %v12572_v58  ;;  %10301 = vmatprep.mubr.msk.f32.mxu1 %vm11315_vm0, %v11314_v0 }
0x7514   :  { %10860 = vmatprep.subr.bf16.mxu1 %v11316_v9 }
0x7517   :  { %10862 = vmatpush3.bf16.msra.mxu1 %v12583_v62 }
0x7518   :  { %10869 = vmatprep.subr.bf16.mxu1 %v11316_v9 }
0x751a   :  { %10302 = vmatmul.mubr.msk.f32.vlgmr.msra.gmra.mrb[52].mxu1 %vm701_vm5, %v8302_v2 }
0x751b   :  { %10871 = vmatpush3.bf16.msra.mxu1 %v12572_v58  ;;  %10323 = vmatprep.mubr.msk.f32.mxu1 %vm11315_vm0, %v11314_v0 }
0x751c   :  { %10872 = vmatprep.subr.bf16.mxu1 %v11316_v9 }
0x751f   :  { %10874 = vmatpush3.bf16.msra.mxu1 %v12583_v62 }
0x7520   :  { %10881 = vmatprep.subr.bf16.mxu1 %v11316_v9 }
0x7522   :  { %10324 = vmatmul.mubr.msk.f32.vlgmr.msra.gmra.mrb[54].mxu1 %vm701_vm5, %v8454_v3 }
0x7523   :  { %10883 = vmatpush3.bf16.msra.mxu1 %v12572_v58  ;;  %10345 = vmatprep.mubr.msk.f32.mxu1 %vm11315_vm0, %v11314_v0 }
0x7524   :  { %10884 = vmatprep.subr.bf16.mxu1 %v11316_v9 }
0x7527   :  { %10886 = vmatpush3.bf16.msra.mxu1 %v12583_v62 }
0x75dd   :  { %v8005_v4 = vpop.f32.mrb[48].mxu1 }
0x75de   :  { %v10932_v7 = vadd.f32 %v12452_v57, %v8005_v4  ;;  %v10259_v10 = vpop.f32.mrb[49].mxu1 }
0x75e0   :  { %v8010_v11 = vmul.f32 0.5, %v10932_v7 }
0x75e2   :  { %v8011_v13 = vsel %vm11466_vm4, %v10932_v7, %v8010_v11 }
0x75e3   :  { %11207 = vtanh.f32 %v8011_v13 }
0x75e5   :  { %v8221_v6 = vpop.f32.mrb[50].mxu1 }
0x75e6   :  { %v8222_v17 = vadd.f32 %v12616_v15, %v8221_v6  ;;  %v10281_v24 = vpop.f32.mrb[51].mxu1 }
0x75e8   :  { %8225 = vst.msk [vmem:[#allocation11] sm:$0xff] %vm82_vm1, %v8222_v17 }
0x75ed   :  { %v11208_v18 = vpop.eup %11207  ;;  %v8372_v14 = vpop.f32.mrb[52].mxu1 }
0x75ee   :  { %v8373_v19 = vadd.f32 %v12616_v15, %v8372_v14  ;;  %v10303_v20 = vpop.f32.mrb[53].mxu1  ;;  %v8013_v21 = vadd.f32 1.0, %v11208_v18 }
0x75f0   :  { %8377 = vst.msk [vmem:[#allocation11 + $0x10] sm:$0xff] %vm82_vm1, %v8373_v19  ;;  %v8014_v23 = vmul.f32 0.5, %v8013_v21 }
0x75f2   :  { %v8015_v25 = vsel %vm11466_vm4, %v11208_v18, %v8014_v23 }
0x75f3   :  { %8018 = vrot.lane.b32.xlu0 %v8015_v25, %s11317_s18  ;;  %v8016_v56 = vmul.f32 %v8015_v25, %v12561_v55 }
0x75f5   :  { %v8524_v26 = vpop.f32.mrb[54].mxu1 }
0x75f6   :  { %v8525_v27 = vadd.f32 %v12616_v15, %v8524_v26  ;;  %v10325_v28 = vpop.f32.mrb[55].mxu1 }
0x75f8   :  { %8529 = vst.msk [vmem:[#allocation11 + $0x20] sm:$0xff] %vm82_vm1, %v8525_v27 }
0x7665   :  { %v8019_v29 = vpop.permute.xlu0 %8018 }
0x7666   :  { %v8021_v38 = vmul.f32 %v8019_v29, %v8015_v25 }
0x7668   :  { %8023 = vrot.lane.b32.xlu1 %v8021_v38, %s11318_s19 }
0x76da   :  { %v8024_v52 = vpop.permute.xlu1 %8023 }
0x76db   :  { %v12629_v30 = vadd.f32 %v8024_v52, %v8016_v56 }
0x76dd   :  { %11209 = vtanh.f32 %v12629_v30 }
0x76e7   :  { %v11210_v42 = vpop.eup %11209 }
0x76e8   :  { %8029 = vrot.lane.b32.xlu0 %v11210_v42, %s11317_s18 }
0x775a   :  { %v8030_v31 = vpop.permute.xlu0 %8029 }
0x775b   :  { %v8032_v32 = vmul.f32 %v8030_v31, %v8015_v25 }
0x775d   :  { %8034 = vrot.lane.b32.xlu1 %v8032_v32, %s11318_s19 }
0x77cf   :  { %v8035_v33 = vpop.permute.xlu1 %8034 }
0x77d0   :  { %8037 = vst.msk [vmem:[#allocation2 + $0x30] sm:$0xff] %vm701_vm5, %v8035_v33  ;;  %10269 = vmatmul.mubr.msk.f32.vlgmr.msra.gmra.mrb[48].mxu0 %vm701_vm5, %v8035_v33 }
0x77d1   :  { %10853 = vmatpush3.bf16.msra.mxu0 %v12572_v58  ;;  %10290 = vmatprep.mubr.msk.f32.mxu0 %vm11315_vm0, %v11314_v0 }
0x77d2   :  { %10854 = vmatprep.subr.bf16.mxu0 %v11316_v9 }
0x77d5   :  { %10856 = vmatpush3.bf16.msra.mxu0 %v12583_v62 }
0x77d6   :  { %10863 = vmatprep.subr.bf16.mxu0 %v11316_v9 }
0x77d7   :  { %v8606_v35 = vld [vmem:[#allocation2 + $0x30] sm:$0xff] }
0x77d8   :  { %10291 = vmatmul.mubr.msk.f32.vlgmr.msra.gmra.mrb[50].mxu0 %vm701_vm5, %v8226_v34  ;;  %10346 = vmatmul.mubr.msk.f32.vlgmr.msra.gmra.mrb[56].mxu1 %vm701_vm5, %v8606_v35 }
0x77d9   :  { %10865 = vmatpush3.bf16.msra.mxu0 %v12572_v58  ;;  %10312 = vmatprep.mubr.msk.f32.mxu0 %vm11315_vm0, %v11314_v0 }
0x77da   :  { %10866 = vmatprep.subr.bf16.mxu0 %v11316_v9 }
0x77dd   :  { %10868 = vmatpush3.bf16.msra.mxu0 %v12583_v62 }
0x77de   :  { %10875 = vmatprep.subr.bf16.mxu0 %v11316_v9 }
0x77e0   :  { %10313 = vmatmul.mubr.msk.f32.vlgmr.msra.gmra.mrb[52].mxu0 %vm701_vm5, %v8378_v36 }
0x77e1   :  { %10877 = vmatpush3.bf16.msra.mxu0 %v12572_v58  ;;  %10334 = vmatprep.mubr.msk.f32.mxu0 %vm11315_vm0, %v11314_v0 }
0x77e2   :  { %10878 = vmatprep.subr.bf16.mxu0 %v11316_v9 }
0x77e5   :  { %10880 = vmatpush3.bf16.msra.mxu0 %v12583_v62 }
0x77e6   :  { %10887 = vmatprep.subr.bf16.mxu0 %v11316_v9 }
0x77e8   :  { %10335 = vmatmul.mubr.msk.f32.vlgmr.msra.gmra.mrb[54].mxu0 %vm701_vm5, %v8530_v37 }
0x77e9   :  { %10889 = vmatpush3.bf16.msra.mxu0 %v12572_v58  ;;  %10356 = vmatprep.mubr.msk.f32.mxu0 %vm11315_vm0, %v11314_v0 }
0x77ea   :  { %10890 = vmatprep.subr.bf16.mxu0 %v11316_v9 }
0x77ed   :  { %10892 = vmatpush3.bf16.msra.mxu0 %v12583_v62 }
0x78a3   :  { %v8107_v39 = vpop.f32.mrb[48].mxu0 }
0x78a4   :  { %v10933_v40 = vadd.f32 %v12452_v57, %v8107_v39  ;;  %v10270_v44 = vpop.f32.mrb[49].mxu0 }
0x78a6   :  { %v8112_v45 = vmul.f32 0.5, %v10933_v40 }
0x78a8   :  { %v8113_v46 = vsel %vm11466_vm4, %v10933_v40, %v8112_v45 }
0x78a9   :  { %11211 = vtanh.f32 %v8113_v46 }
0x78ab   :  { %v8296_v47 = vpop.f32.mrb[50].mxu0  ;;  %v8676_v43 = vpop.f32.mrb[56].mxu1 }
0x78ac   :  { %v8297_v41 = vadd.f32 %v12616_v15, %v8296_v47  ;;  %v10292_v50 = vpop.f32.mrb[51].mxu0  ;;  %v8677_v0 = vadd.f32 %v12616_v15, %v8676_v43  ;;  %v10347_v51 = vpop.f32.mrb[57].mxu1 }
0x78ae   :  { %8301 = vst.msk [vmem:[#allocation11 + $0x8] sm:$0xff] %vm82_vm1, %v8297_v41  ;;  %8681 = vst.msk [vmem:[#allocation11 + $0x30] sm:$0xff] %vm82_vm1, %v8677_v0 }
0x78b3   :  { %v11212_v9 = vpop.eup %11211  ;;  %v8448_v57 = vpop.f32.mrb[52].mxu0 }
0x78b4   :  { %v8449_v49 = vadd.f32 %v12616_v15, %v8448_v57  ;;  %v10314_v48 = vpop.f32.mrb[53].mxu0  ;;  %v8115_v53 = vadd.f32 1.0, %v11212_v9 }
0x78b6   :  { %8453 = vst.msk [vmem:[#allocation11 + $0x18] sm:$0xff] %vm82_vm1, %v8449_v49  ;;  %v8116_v54 = vmul.f32 0.5, %v8115_v53 }
0x78b8   :  { %v8117_v55 = vsel %vm11466_vm4, %v11212_v9, %v8116_v54 }
0x78b9   :  { %8120 = vrot.lane.b32.xlu0 %v8117_v55, %s11317_s18  ;;  %v8118_v58 = vmul.f32 %v8117_v55, %v12629_v30 }
0x78bb   :  { %v8600_v59 = vpop.f32.mrb[54].mxu0 }
0x78bc   :  { %v8601_v60 = vadd.f32 %v12616_v15, %v8600_v59  ;;  %v10336_v61 = vpop.f32.mrb[55].mxu0 }
0x78be   :  { %8605 = vst.msk [vmem:[#allocation11 + $0x28] sm:$0xff] %vm82_vm1, %v8601_v60 }
0x792b   :  { %v8121_v8 = vpop.permute.xlu0 %8120 }
0x792c   :  { %v8123_v16 = vmul.f32 %v8121_v8, %v8117_v55 }
0x792e   :  { %8125 = vrot.lane.b32.xlu1 %v8123_v16, %s11318_s19 }
0x79a0   :  { %v8126_v63 = vpop.permute.xlu1 %8125 }
0x79a1   :  { %v8128_v5 = vadd.f32 %v8126_v63, %v8118_v58 }
0x79a3   :  { %11213 = vtanh.f32 %v8128_v5 }
0x79ad   :  { %v11214_v12 = vpop.eup %11213 }
0x79ae   :  { %8131 = vrot.lane.b32.xlu0 %v11214_v12, %s11317_s18 }
0x7a20   :  { %v8132_v22 = vpop.permute.xlu0 %8131 }
0x7a21   :  { %v8134_v62 = vmul.f32 %v8132_v22, %v8117_v55 }
0x7a23   :  { %8136 = vrot.lane.b32.xlu1 %v8134_v62, %s11318_s19 }
0x7a95   :  { %v8137_v1 = vpop.permute.xlu1 %8136 }
0x7a96   :  { %8139 = vst.msk [vmem:[#allocation2 + $0x38] sm:$0xff] %vm701_vm5, %v8137_v1 }
0x7a9d   :  { %v8682_v2 = vld [vmem:[#allocation2 + $0x38] sm:$0xff] }
0x7a9e   :  { %10357 = vmatmul.mubr.msk.f32.vlgmr.msra.gmra.mrb[56].mxu0 %vm701_vm5, %v8682_v2 }
0x7b71   :  { %v8752_v3 = vpop.f32.mrb[56].mxu0 }
0x7b72   :  { %v8753_v4 = vadd.f32 %v12616_v15, %v8752_v3  ;;  %v10358_v7 = vpop.f32.mrb[57].mxu0 }
0x7b74   :  { %8757 = vst.msk [vmem:[#allocation11 + $0x38] sm:$0xff] %vm82_vm1, %v8753_v4 }
0x7b75   :  { %11292 = shalt.err (!%p11289_p0)
}
0x7b76   :  { %s11293_s3 = scalar_lea.hbm %s12707_s7, 1024 }
0x7b77   :  { %p11294_p1 = scmp.ne.s32.totalorder %s12707_s7, %s11293_s3  ;;  %p11297_p2 = scmp.lt.u32.totalorder %s11293_s3, %s12707_s7 }
0x7b79   :  { %p11299_p3 = pnand %p11297_p2, %p11294_p1 }
0x7b7b   :  { %11302 = shalt.err (!%p11299_p3)
}
0x7b7c   :  { %8769 = dma.vmem_to_hbm [thread:$0]  %s8764_s27, 1024, %s12707_s7, [#allocation7], %s11311_s13, %s11311_s13, %s11312_s14  }
0x7b7d   :  { %11307 = dma.done.wait [#allocation7], 1024  }
0x7b7e   :  { %11308 = vsyncadd [#allocation7], 4294966272 }
0x7b7f   :  { %8773 = vsyncpa [#allocation6], 1 }
0x7b80   :  { %8774 = vsyncpa [#allocation9], 1 }
0x7b81   :  { %8775 = vsyncpa [#allocation7], 1 }

</bundles_post_ra>
